<compile_context>
chip_gen: v7x
topology: tpu7x:2x2x1
jax: 0.10.0
libtpu: 0.0.40
codegen_flags: <defaults>
</compile_context>

<pallas_src>
import math

import jax
import jax.numpy as jnp
import numpy as np
from jax.experimental import pallas as pl
from jax.experimental.pallas import tpu as pltpu

KS = 7            # depthwise kernel size
PAD = KS // 2     # = 3
LN_EPS = 1e-6
BN_EPS = 1e-5

_SQRT_2_OVER_PI = math.sqrt(2.0 / math.pi)


def _gelu_tanh(x):
    # tanh-approx GELU (max abs err vs exact erf GELU ~1e-4): the tanh goes to
    # the otherwise-idle EUP slot; only a handful of VALU ops per element.
    return 0.5 * x * (1.0 + jnp.tanh(_SQRT_2_OVER_PI * (x + 0.044715 * x * x * x)))


def block_kernel(xp_ref, wdw_ref, bnb_ref, w1_ref, b1_ref, w2_ref, b2_ref, o_ref):
    # o_ref block: (1, TH, W, C);  xp_ref block: (1, H+6, W+6, C) (full padded image,
    # resident across the H-tile axis since its block index only depends on n).
    _, TH, W, C = o_ref.shape
    ht = pl.program_id(1)
    h0 = pl.multiple_of(ht * TH, TH)

    # Halo window for this row tile: rows [h0, h0 + TH + 6) of the padded image.
    xpt = xp_ref[0, pl.ds(h0, TH + 2 * PAD)]            # (TH+6, W+6, C) f32
    wdw = wdw_ref[...]                                   # (49, C), bn_scale pre-folded

    # Depthwise 7x7 conv (stride 1, pad 3, groups=C, no bias).
    # kw (sublane / W axis) shift hoisted: 7 shifted slices; kh shifts are free
    # major-dim offsets.  bn_scale is already folded into the taps.
    acc = jnp.zeros((TH, W, C), jnp.float32)
    resid = None
    for kw in range(KS):
        xs = xpt[:, kw:kw + W, :]                        # (TH+6, W, C), one W-shift per kw
        if kw == PAD:
            resid = xs[PAD:PAD + TH]                     # centered window == unpadded x tile
        for kh in range(KS):
            acc = acc + xs[kh:kh + TH] * wdw[kh * KS + kw]

    # BatchNorm bias (scale folded into the depthwise weights above).
    y = acc + bnb_ref[0][None, None, :]

    # LayerNorm over channels, single-pass statistics, f32.
    mu = jnp.mean(y, axis=-1, keepdims=True)
    ms = jnp.mean(y * y, axis=-1, keepdims=True)
    rstd = jax.lax.rsqrt(ms - mu * mu + LN_EPS)
    yn = (y - mu) * rstd                                 # ln_w / ln_b folded into W1 / b1

    # pwconv1 -> GELU -> pwconv2 on the MXU: bf16 operands, f32 accumulation.
    flat = yn.reshape(TH * W, C).astype(jnp.bfloat16)
    h = jnp.dot(flat, w1_ref[...], preferred_element_type=jnp.float32) + b1_ref[0][None, :]
    h = _gelu_tanh(h)
    h = jnp.dot(h.astype(jnp.bfloat16), w2_ref[...],
                preferred_element_type=jnp.float32) + b2_ref[0][None, :]   # gamma folded in

    # residual add (drop_path == Identity)
    o_ref[...] = (resid[None] + h.reshape(1, TH, W, C)).astype(o_ref.dtype)


def slak_block_forward(x_nchw, params, *, row_tile=8):
    """x_nchw: (N, C, H, W) float32 -> (N, C, H, W) float32."""
    N, C, H, W = x_nchw.shape
    C4 = 4 * C
    # Largest row-tile <= row_tile that divides H (keeps specs static & exact).
    TH = max(d for d in range(1, min(H, row_tile) + 1) if H % d == 0)
    nHT = H // TH

    x = jnp.transpose(x_nchw, (0, 2, 3, 1))                       # NHWC
    xp = jnp.pad(x, ((0, 0), (PAD, PAD), (PAD, PAD), (0, 0)))     # spatial halo
    Hp, Wp = H + 2 * PAD, W + 2 * PAD

    # Fold per-channel affines into the weights (done once on the host side):
    #   conv * bn_scale          -> depthwise taps
    #   diag(ln_w) @ W1, ln_b@W1 -> W1, b1
    #   W2 * gamma, b2 * gamma   -> W2, b2
    wdw = params["w_dw"].reshape(KS * KS, C) * params["bn_scale"][None, :]
    w1f = (params["ln_w"][:, None] * params["w1"]).astype(jnp.bfloat16)
    b1f = params["b1"] + params["ln_b"] @ params["w1"]
    w2f = (params["w2"] * params["gamma"][None, :]).astype(jnp.bfloat16)
    b2f = params["b2"] * params["gamma"]

    resident = lambda shape: pl.BlockSpec(shape, lambda n, h: (0,) * len(shape))
    out = pl.pallas_call(
        block_kernel,
        out_shape=jax.ShapeDtypeStruct((N, H, W, C), jnp.float32),
        grid_spec=pltpu.PrefetchScalarGridSpec(
            num_scalar_prefetch=0,
            grid=(N, nHT),                # batch x row-tiles, both independent
            in_specs=[
                # padded input: fetched once per batch element (index constant in ht)
                pl.BlockSpec((1, Hp, Wp, C), lambda n, h: (n, 0, 0, 0)),
                resident((KS * KS, C)),   # depthwise taps (bn_scale folded)
                resident((1, C)),         # bn bias
                resident((C, C4)),        # pwconv1 weight (ln_w folded, bf16)
                resident((1, C4)),        # pwconv1 bias (ln_b folded)
                resident((C4, C)),        # pwconv2 weight (gamma folded, bf16)
                resident((1, C)),         # pwconv2 bias (gamma folded)
            ],
            out_specs=pl.BlockSpec((1, TH, W, C), lambda n, h: (n, h, 0, 0)),
        ),
        compiler_params=pltpu.CompilerParams(
            dimension_semantics=("parallel", "parallel")),
    )(xp, wdw,
      params["bn_bias"][None, :],
      w1f, b1f[None, :],
      w2f, b2f[None, :])
    return jnp.transpose(out, (0, 3, 1, 2))


def init_params(key, dim):
    ks = jax.random.split(key, 9)
    w_dw = 0.1 * jax.random.normal(ks[0], (KS, KS, dim), jnp.float32)   # torch (C,1,7,7) -> (7,7,C)
    # SyncBatchNorm params / running stats (applied in inference form).
    bn_gamma = 1.0 + 0.1 * jax.random.normal(ks[1], (dim,), jnp.float32)
    bn_beta = 0.1 * jax.random.normal(ks[2], (dim,), jnp.float32)
    bn_mean = 0.1 * jax.random.normal(ks[3], (dim,), jnp.float32)
    bn_var = jnp.abs(jax.random.normal(ks[4], (dim,), jnp.float32)) + 0.5
    bn_scale = bn_gamma / jnp.sqrt(bn_var + BN_EPS)
    bn_bias = bn_beta - bn_mean * bn_scale
    params = dict(
        w_dw=w_dw,
        bn_scale=bn_scale,
        bn_bias=bn_bias,
        ln_w=jnp.ones((dim,), jnp.float32),
        ln_b=jnp.zeros((dim,), jnp.float32),
        w1=jax.random.normal(ks[5], (dim, 4 * dim), jnp.float32) / math.sqrt(dim),
        b1=0.1 * jax.random.normal(ks[6], (4 * dim,), jnp.float32),
        w2=jax.random.normal(ks[7], (4 * dim, dim), jnp.float32) / math.sqrt(4 * dim),
        b2=0.1 * jax.random.normal(ks[8], (dim,), jnp.float32),
        gamma=1e-6 * jnp.ones((dim,), jnp.float32),      # layer_scale_init_value * ones
    )
    return params


def reference_forward(x_nchw, params):
    """Pure-JAX f32 reference of the PyTorch forward (exact erf GELU)."""
    x = jnp.transpose(x_nchw, (0, 2, 3, 1))
    w = params["w_dw"][:, :, None, :]  # HWIO, depthwise
    y = jax.lax.conv_general_dilated(
        x, w, window_strides=(1, 1), padding=((PAD, PAD), (PAD, PAD)),
        dimension_numbers=("NHWC", "HWIO", "NHWC"),
        feature_group_count=x.shape[-1], precision=jax.lax.Precision.HIGHEST)
    y = y * params["bn_scale"] + params["bn_bias"]
    mu = jnp.mean(y, -1, keepdims=True)
    var = jnp.mean((y - mu) ** 2, -1, keepdims=True)
    y = (y - mu) / jnp.sqrt(var + LN_EPS)
    y = y * params["ln_w"] + params["ln_b"]
    h = jnp.dot(y, params["w1"], precision=jax.lax.Precision.HIGHEST) + params["b1"]
    h = jax.nn.gelu(h, approximate=False)
    h = jnp.dot(h, params["w2"], precision=jax.lax.Precision.HIGHEST) + params["b2"]
    h = h * params["gamma"]
    return jnp.transpose(x + h, (0, 3, 1, 2))


if __name__ == "__main__":
    key = jax.random.PRNGKey(0)
    kx, kp = jax.random.split(key)
    N, C, H, W = 2, 32, 16, 16          # small NCHW input (dim = 32 -> hidden = 128)
    x = jax.random.normal(kx, (N, C, H, W), jnp.float32)
    params = init_params(kp, C)

    # Faithful run (gamma = 1e-6 as in __init__); residual dominates -> tight tol.
    out = jax.block_until_ready(slak_block_forward(x, params))
    ref = reference_forward(x, params)
    np.testing.assert_allclose(np.asarray(out), np.asarray(ref), rtol=1e-4, atol=1e-4)

    # Stronger check of the inner path (same kernel, gamma = 1); tolerance covers
    # bf16 MXU operands + tanh-approx GELU vs the f32/erf reference.
    params_t = dict(params, gamma=jnp.ones((C,), jnp.float32))
    out_t = jax.block_until_ready(slak_block_forward(x, params_t))
    ref_t = reference_forward(x, params_t)
    np.testing.assert_allclose(np.asarray(out_t), np.asarray(ref_t), rtol=5e-2, atol=5e-2)

    print("KERNEL_OK")
</pallas_src>

<mosaic_0001>
module attributes {stable_mosaic.version = 11 : i64} {
  func.func @block_kernel(%arg0: i32, %arg1: i32, %arg2: memref<1x22x22x32xf32, #tpu.memory_space<vmem>>, %arg3: memref<49x32xf32, #tpu.memory_space<vmem>>, %arg4: memref<1x32xf32, #tpu.memory_space<vmem>>, %arg5: memref<32x128xbf16, #tpu.memory_space<vmem>>, %arg6: memref<1x128xf32, #tpu.memory_space<vmem>>, %arg7: memref<128x32xbf16, #tpu.memory_space<vmem>>, %arg8: memref<1x32xf32, #tpu.memory_space<vmem>>, %arg9: memref<1x8x16x32xf32, #tpu.memory_space<vmem>>) attributes {dimension_semantics = [#tpu.dimension_semantics<parallel>, #tpu.dimension_semantics<parallel>], iteration_bounds = array<i64: 2, 2>, scalar_prefetch = 0 : i64, scratch_operands = 0 : i64, tpu.core_type = #tpu.core_type<tc>, window_params = [{transform_indices = @transform_0, window_bounds = array<i64: 1, 22, 22, 32>}, {pipeline_mode = #tpu.pipeline_mode<synchronous>, transform_indices = @transform_1, window_bounds = array<i64: 49, 32>}, {pipeline_mode = #tpu.pipeline_mode<synchronous>, transform_indices = @transform_2, window_bounds = array<i64: 1, 32>}, {pipeline_mode = #tpu.pipeline_mode<synchronous>, transform_indices = @transform_3, window_bounds = array<i64: 32, 128>}, {pipeline_mode = #tpu.pipeline_mode<synchronous>, transform_indices = @transform_4, window_bounds = array<i64: 1, 128>}, {pipeline_mode = #tpu.pipeline_mode<synchronous>, transform_indices = @transform_5, window_bounds = array<i64: 128, 32>}, {pipeline_mode = #tpu.pipeline_mode<synchronous>, transform_indices = @transform_6, window_bounds = array<i64: 1, 32>}, {transform_indices = @transform_7, window_bounds = array<i64: 1, 8, 16, 32>}]} {
    %c8_i32 = arith.constant 8 : i32
    %0 = arith.muli %arg1, %c8_i32 : i32
    %1 = tpu.assume_multiple %0, 8 : i32
    %c0 = arith.constant 0 : index
    %2 = arith.index_cast %1 : i32 to index
    %c0_0 = arith.constant 0 : index
    %c0_1 = arith.constant 0 : index
    %3 = vector.load %arg2[%c0, %2, %c0_0, %c0_1] : memref<1x22x22x32xf32, #tpu.memory_space<vmem>>, vector<1x14x22x32xf32>
    %4 = vector.shape_cast %3 : vector<1x14x22x32xf32> to vector<14x22x32xf32>
    %c0_2 = arith.constant 0 : index
    %c0_3 = arith.constant 0 : index
    %5 = vector.load %arg3[%c0_2, %c0_3] : memref<49x32xf32, #tpu.memory_space<vmem>>, vector<49x32xf32>
    %cst = arith.constant 0.000000e+00 : f32
    %6 = vector.broadcast %cst : f32 to vector<8x16x32xf32>
    %7 = vector.extract_strided_slice %4 {offsets = [0, 0, 0], sizes = [14, 16, 32], strides = [1, 1, 1]} : vector<14x22x32xf32> to vector<14x16x32xf32>
    %8 = vector.extract_strided_slice %7 {offsets = [0, 0, 0], sizes = [8, 16, 32], strides = [1, 1, 1]} : vector<14x16x32xf32> to vector<8x16x32xf32>
    %9 = vector.extract_strided_slice %5 {offsets = [0, 0], sizes = [1, 32], strides = [1, 1]} : vector<49x32xf32> to vector<1x32xf32>
    %10 = vector.shape_cast %9 : vector<1x32xf32> to vector<32xf32>
    %11 = vector.shape_cast %10 : vector<32xf32> to vector<1x1x32xf32>
    %12 = vector.broadcast %11 : vector<1x1x32xf32> to vector<8x16x32xf32>
    %13 = arith.mulf %8, %12 : vector<8x16x32xf32>
    %14 = arith.addf %6, %13 : vector<8x16x32xf32>
    %15 = vector.extract_strided_slice %7 {offsets = [1, 0, 0], sizes = [8, 16, 32], strides = [1, 1, 1]} : vector<14x16x32xf32> to vector<8x16x32xf32>
    %16 = vector.extract_strided_slice %5 {offsets = [7, 0], sizes = [1, 32], strides = [1, 1]} : vector<49x32xf32> to vector<1x32xf32>
    %17 = vector.shape_cast %16 : vector<1x32xf32> to vector<32xf32>
    %18 = vector.shape_cast %17 : vector<32xf32> to vector<1x1x32xf32>
    %19 = vector.broadcast %18 : vector<1x1x32xf32> to vector<8x16x32xf32>
    %20 = arith.mulf %15, %19 : vector<8x16x32xf32>
    %21 = arith.addf %14, %20 : vector<8x16x32xf32>
    %22 = vector.extract_strided_slice %7 {offsets = [2, 0, 0], sizes = [8, 16, 32], strides = [1, 1, 1]} : vector<14x16x32xf32> to vector<8x16x32xf32>
    %23 = vector.extract_strided_slice %5 {offsets = [14, 0], sizes = [1, 32], strides = [1, 1]} : vector<49x32xf32> to vector<1x32xf32>
    %24 = vector.shape_cast %23 : vector<1x32xf32> to vector<32xf32>
    %25 = vector.shape_cast %24 : vector<32xf32> to vector<1x1x32xf32>
    %26 = vector.broadcast %25 : vector<1x1x32xf32> to vector<8x16x32xf32>
    %27 = arith.mulf %22, %26 : vector<8x16x32xf32>
    %28 = arith.addf %21, %27 : vector<8x16x32xf32>
    %29 = vector.extract_strided_slice %7 {offsets = [3, 0, 0], sizes = [8, 16, 32], strides = [1, 1, 1]} : vector<14x16x32xf32> to vector<8x16x32xf32>
    %30 = vector.extract_strided_slice %5 {offsets = [21, 0], sizes = [1, 32], strides = [1, 1]} : vector<49x32xf32> to vector<1x32xf32>
    %31 = vector.shape_cast %30 : vector<1x32xf32> to vector<32xf32>
    %32 = vector.shape_cast %31 : vector<32xf32> to vector<1x1x32xf32>
    %33 = vector.broadcast %32 : vector<1x1x32xf32> to vector<8x16x32xf32>
    %34 = arith.mulf %29, %33 : vector<8x16x32xf32>
    %35 = arith.addf %28, %34 : vector<8x16x32xf32>
    %36 = vector.extract_strided_slice %7 {offsets = [4, 0, 0], sizes = [8, 16, 32], strides = [1, 1, 1]} : vector<14x16x32xf32> to vector<8x16x32xf32>
    %37 = vector.extract_strided_slice %5 {offsets = [28, 0], sizes = [1, 32], strides = [1, 1]} : vector<49x32xf32> to vector<1x32xf32>
    %38 = vector.shape_cast %37 : vector<1x32xf32> to vector<32xf32>
    %39 = vector.shape_cast %38 : vector<32xf32> to vector<1x1x32xf32>
    %40 = vector.broadcast %39 : vector<1x1x32xf32> to vector<8x16x32xf32>
    %41 = arith.mulf %36, %40 : vector<8x16x32xf32>
    %42 = arith.addf %35, %41 : vector<8x16x32xf32>
    %43 = vector.extract_strided_slice %7 {offsets = [5, 0, 0], sizes = [8, 16, 32], strides = [1, 1, 1]} : vector<14x16x32xf32> to vector<8x16x32xf32>
    %44 = vector.extract_strided_slice %5 {offsets = [35, 0], sizes = [1, 32], strides = [1, 1]} : vector<49x32xf32> to vector<1x32xf32>
    %45 = vector.shape_cast %44 : vector<1x32xf32> to vector<32xf32>
    %46 = vector.shape_cast %45 : vector<32xf32> to vector<1x1x32xf32>
    %47 = vector.broadcast %46 : vector<1x1x32xf32> to vector<8x16x32xf32>
    %48 = arith.mulf %43, %47 : vector<8x16x32xf32>
    %49 = arith.addf %42, %48 : vector<8x16x32xf32>
    %50 = vector.extract_strided_slice %7 {offsets = [6, 0, 0], sizes = [8, 16, 32], strides = [1, 1, 1]} : vector<14x16x32xf32> to vector<8x16x32xf32>
    %51 = vector.extract_strided_slice %5 {offsets = [42, 0], sizes = [1, 32], strides = [1, 1]} : vector<49x32xf32> to vector<1x32xf32>
    %52 = vector.shape_cast %51 : vector<1x32xf32> to vector<32xf32>
    %53 = vector.shape_cast %52 : vector<32xf32> to vector<1x1x32xf32>
    %54 = vector.broadcast %53 : vector<1x1x32xf32> to vector<8x16x32xf32>
    %55 = arith.mulf %50, %54 : vector<8x16x32xf32>
    %56 = arith.addf %49, %55 : vector<8x16x32xf32>
    %57 = vector.extract_strided_slice %4 {offsets = [0, 1, 0], sizes = [14, 16, 32], strides = [1, 1, 1]} : vector<14x22x32xf32> to vector<14x16x32xf32>
    %58 = vector.extract_strided_slice %57 {offsets = [0, 0, 0], sizes = [8, 16, 32], strides = [1, 1, 1]} : vector<14x16x32xf32> to vector<8x16x32xf32>
    %59 = vector.extract_strided_slice %5 {offsets = [1, 0], sizes = [1, 32], strides = [1, 1]} : vector<49x32xf32> to vector<1x32xf32>
    %60 = vector.shape_cast %59 : vector<1x32xf32> to vector<32xf32>
    %61 = vector.shape_cast %60 : vector<32xf32> to vector<1x1x32xf32>
    %62 = vector.broadcast %61 : vector<1x1x32xf32> to vector<8x16x32xf32>
    %63 = arith.mulf %58, %62 : vector<8x16x32xf32>
    %64 = arith.addf %56, %63 : vector<8x16x32xf32>
    %65 = vector.extract_strided_slice %57 {offsets = [1, 0, 0], sizes = [8, 16, 32], strides = [1, 1, 1]} : vector<14x16x32xf32> to vector<8x16x32xf32>
    %66 = vector.extract_strided_slice %5 {offsets = [8, 0], sizes = [1, 32], strides = [1, 1]} : vector<49x32xf32> to vector<1x32xf32>
    %67 = vector.shape_cast %66 : vector<1x32xf32> to vector<32xf32>
    %68 = vector.shape_cast %67 : vector<32xf32> to vector<1x1x32xf32>
    %69 = vector.broadcast %68 : vector<1x1x32xf32> to vector<8x16x32xf32>
    %70 = arith.mulf %65, %69 : vector<8x16x32xf32>
    %71 = arith.addf %64, %70 : vector<8x16x32xf32>
    %72 = vector.extract_strided_slice %57 {offsets = [2, 0, 0], sizes = [8, 16, 32], strides = [1, 1, 1]} : vector<14x16x32xf32> to vector<8x16x32xf32>
    %73 = vector.extract_strided_slice %5 {offsets = [15, 0], sizes = [1, 32], strides = [1, 1]} : vector<49x32xf32> to vector<1x32xf32>
    %74 = vector.shape_cast %73 : vector<1x32xf32> to vector<32xf32>
    %75 = vector.shape_cast %74 : vector<32xf32> to vector<1x1x32xf32>
    %76 = vector.broadcast %75 : vector<1x1x32xf32> to vector<8x16x32xf32>
    %77 = arith.mulf %72, %76 : vector<8x16x32xf32>
    %78 = arith.addf %71, %77 : vector<8x16x32xf32>
    %79 = vector.extract_strided_slice %57 {offsets = [3, 0, 0], sizes = [8, 16, 32], strides = [1, 1, 1]} : vector<14x16x32xf32> to vector<8x16x32xf32>
    %80 = vector.extract_strided_slice %5 {offsets = [22, 0], sizes = [1, 32], strides = [1, 1]} : vector<49x32xf32> to vector<1x32xf32>
    %81 = vector.shape_cast %80 : vector<1x32xf32> to vector<32xf32>
    %82 = vector.shape_cast %81 : vector<32xf32> to vector<1x1x32xf32>
    %83 = vector.broadcast %82 : vector<1x1x32xf32> to vector<8x16x32xf32>
    %84 = arith.mulf %79, %83 : vector<8x16x32xf32>
    %85 = arith.addf %78, %84 : vector<8x16x32xf32>
    %86 = vector.extract_strided_slice %57 {offsets = [4, 0, 0], sizes = [8, 16, 32], strides = [1, 1, 1]} : vector<14x16x32xf32> to vector<8x16x32xf32>
    %87 = vector.extract_strided_slice %5 {offsets = [29, 0], sizes = [1, 32], strides = [1, 1]} : vector<49x32xf32> to vector<1x32xf32>
    %88 = vector.shape_cast %87 : vector<1x32xf32> to vector<32xf32>
    %89 = vector.shape_cast %88 : vector<32xf32> to vector<1x1x32xf32>
    %90 = vector.broadcast %89 : vector<1x1x32xf32> to vector<8x16x32xf32>
    %91 = arith.mulf %86, %90 : vector<8x16x32xf32>
    %92 = arith.addf %85, %91 : vector<8x16x32xf32>
    %93 = vector.extract_strided_slice %57 {offsets = [5, 0, 0], sizes = [8, 16, 32], strides = [1, 1, 1]} : vector<14x16x32xf32> to vector<8x16x32xf32>
    %94 = vector.extract_strided_slice %5 {offsets = [36, 0], sizes = [1, 32], strides = [1, 1]} : vector<49x32xf32> to vector<1x32xf32>
    %95 = vector.shape_cast %94 : vector<1x32xf32> to vector<32xf32>
    %96 = vector.shape_cast %95 : vector<32xf32> to vector<1x1x32xf32>
    %97 = vector.broadcast %96 : vector<1x1x32xf32> to vector<8x16x32xf32>
    %98 = arith.mulf %93, %97 : vector<8x16x32xf32>
    %99 = arith.addf %92, %98 : vector<8x16x32xf32>
    %100 = vector.extract_strided_slice %57 {offsets = [6, 0, 0], sizes = [8, 16, 32], strides = [1, 1, 1]} : vector<14x16x32xf32> to vector<8x16x32xf32>
    %101 = vector.extract_strided_slice %5 {offsets = [43, 0], sizes = [1, 32], strides = [1, 1]} : vector<49x32xf32> to vector<1x32xf32>
    %102 = vector.shape_cast %101 : vector<1x32xf32> to vector<32xf32>
    %103 = vector.shape_cast %102 : vector<32xf32> to vector<1x1x32xf32>
    %104 = vector.broadcast %103 : vector<1x1x32xf32> to vector<8x16x32xf32>
    %105 = arith.mulf %100, %104 : vector<8x16x32xf32>
    %106 = arith.addf %99, %105 : vector<8x16x32xf32>
    %107 = vector.extract_strided_slice %4 {offsets = [0, 2, 0], sizes = [14, 16, 32], strides = [1, 1, 1]} : vector<14x22x32xf32> to vector<14x16x32xf32>
    %108 = vector.extract_strided_slice %107 {offsets = [0, 0, 0], sizes = [8, 16, 32], strides = [1, 1, 1]} : vector<14x16x32xf32> to vector<8x16x32xf32>
    %109 = vector.extract_strided_slice %5 {offsets = [2, 0], sizes = [1, 32], strides = [1, 1]} : vector<49x32xf32> to vector<1x32xf32>
    %110 = vector.shape_cast %109 : vector<1x32xf32> to vector<32xf32>
    %111 = vector.shape_cast %110 : vector<32xf32> to vector<1x1x32xf32>
    %112 = vector.broadcast %111 : vector<1x1x32xf32> to vector<8x16x32xf32>
    %113 = arith.mulf %108, %112 : vector<8x16x32xf32>
    %114 = arith.addf %106, %113 : vector<8x16x32xf32>
    %115 = vector.extract_strided_slice %107 {offsets = [1, 0, 0], sizes = [8, 16, 32], strides = [1, 1, 1]} : vector<14x16x32xf32> to vector<8x16x32xf32>
    %116 = vector.extract_strided_slice %5 {offsets = [9, 0], sizes = [1, 32], strides = [1, 1]} : vector<49x32xf32> to vector<1x32xf32>
    %117 = vector.shape_cast %116 : vector<1x32xf32> to vector<32xf32>
    %118 = vector.shape_cast %117 : vector<32xf32> to vector<1x1x32xf32>
    %119 = vector.broadcast %118 : vector<1x1x32xf32> to vector<8x16x32xf32>
    %120 = arith.mulf %115, %119 : vector<8x16x32xf32>
    %121 = arith.addf %114, %120 : vector<8x16x32xf32>
    %122 = vector.extract_strided_slice %107 {offsets = [2, 0, 0], sizes = [8, 16, 32], strides = [1, 1, 1]} : vector<14x16x32xf32> to vector<8x16x32xf32>
    %123 = vector.extract_strided_slice %5 {offsets = [16, 0], sizes = [1, 32], strides = [1, 1]} : vector<49x32xf32> to vector<1x32xf32>
    %124 = vector.shape_cast %123 : vector<1x32xf32> to vector<32xf32>
    %125 = vector.shape_cast %124 : vector<32xf32> to vector<1x1x32xf32>
    %126 = vector.broadcast %125 : vector<1x1x32xf32> to vector<8x16x32xf32>
    %127 = arith.mulf %122, %126 : vector<8x16x32xf32>
    %128 = arith.addf %121, %127 : vector<8x16x32xf32>
    %129 = vector.extract_strided_slice %107 {offsets = [3, 0, 0], sizes = [8, 16, 32], strides = [1, 1, 1]} : vector<14x16x32xf32> to vector<8x16x32xf32>
    %130 = vector.extract_strided_slice %5 {offsets = [23, 0], sizes = [1, 32], strides = [1, 1]} : vector<49x32xf32> to vector<1x32xf32>
    %131 = vector.shape_cast %130 : vector<1x32xf32> to vector<32xf32>
    %132 = vector.shape_cast %131 : vector<32xf32> to vector<1x1x32xf32>
    %133 = vector.broadcast %132 : vector<1x1x32xf32> to vector<8x16x32xf32>
    %134 = arith.mulf %129, %133 : vector<8x16x32xf32>
    %135 = arith.addf %128, %134 : vector<8x16x32xf32>
    %136 = vector.extract_strided_slice %107 {offsets = [4, 0, 0], sizes = [8, 16, 32], strides = [1, 1, 1]} : vector<14x16x32xf32> to vector<8x16x32xf32>
    %137 = vector.extract_strided_slice %5 {offsets = [30, 0], sizes = [1, 32], strides = [1, 1]} : vector<49x32xf32> to vector<1x32xf32>
    %138 = vector.shape_cast %137 : vector<1x32xf32> to vector<32xf32>
    %139 = vector.shape_cast %138 : vector<32xf32> to vector<1x1x32xf32>
    %140 = vector.broadcast %139 : vector<1x1x32xf32> to vector<8x16x32xf32>
    %141 = arith.mulf %136, %140 : vector<8x16x32xf32>
    %142 = arith.addf %135, %141 : vector<8x16x32xf32>
    %143 = vector.extract_strided_slice %107 {offsets = [5, 0, 0], sizes = [8, 16, 32], strides = [1, 1, 1]} : vector<14x16x32xf32> to vector<8x16x32xf32>
    %144 = vector.extract_strided_slice %5 {offsets = [37, 0], sizes = [1, 32], strides = [1, 1]} : vector<49x32xf32> to vector<1x32xf32>
    %145 = vector.shape_cast %144 : vector<1x32xf32> to vector<32xf32>
    %146 = vector.shape_cast %145 : vector<32xf32> to vector<1x1x32xf32>
    %147 = vector.broadcast %146 : vector<1x1x32xf32> to vector<8x16x32xf32>
    %148 = arith.mulf %143, %147 : vector<8x16x32xf32>
    %149 = arith.addf %142, %148 : vector<8x16x32xf32>
    %150 = vector.extract_strided_slice %107 {offsets = [6, 0, 0], sizes = [8, 16, 32], strides = [1, 1, 1]} : vector<14x16x32xf32> to vector<8x16x32xf32>
    %151 = vector.extract_strided_slice %5 {offsets = [44, 0], sizes = [1, 32], strides = [1, 1]} : vector<49x32xf32> to vector<1x32xf32>
    %152 = vector.shape_cast %151 : vector<1x32xf32> to vector<32xf32>
    %153 = vector.shape_cast %152 : vector<32xf32> to vector<1x1x32xf32>
    %154 = vector.broadcast %153 : vector<1x1x32xf32> to vector<8x16x32xf32>
    %155 = arith.mulf %150, %154 : vector<8x16x32xf32>
    %156 = arith.addf %149, %155 : vector<8x16x32xf32>
    %157 = vector.extract_strided_slice %4 {offsets = [0, 3, 0], sizes = [14, 16, 32], strides = [1, 1, 1]} : vector<14x22x32xf32> to vector<14x16x32xf32>
    %158 = vector.extract_strided_slice %157 {offsets = [3, 0, 0], sizes = [8, 16, 32], strides = [1, 1, 1]} : vector<14x16x32xf32> to vector<8x16x32xf32>
    %159 = vector.extract_strided_slice %157 {offsets = [0, 0, 0], sizes = [8, 16, 32], strides = [1, 1, 1]} : vector<14x16x32xf32> to vector<8x16x32xf32>
    %160 = vector.extract_strided_slice %5 {offsets = [3, 0], sizes = [1, 32], strides = [1, 1]} : vector<49x32xf32> to vector<1x32xf32>
    %161 = vector.shape_cast %160 : vector<1x32xf32> to vector<32xf32>
    %162 = vector.shape_cast %161 : vector<32xf32> to vector<1x1x32xf32>
    %163 = vector.broadcast %162 : vector<1x1x32xf32> to vector<8x16x32xf32>
    %164 = arith.mulf %159, %163 : vector<8x16x32xf32>
    %165 = arith.addf %156, %164 : vector<8x16x32xf32>
    %166 = vector.extract_strided_slice %157 {offsets = [1, 0, 0], sizes = [8, 16, 32], strides = [1, 1, 1]} : vector<14x16x32xf32> to vector<8x16x32xf32>
    %167 = vector.extract_strided_slice %5 {offsets = [10, 0], sizes = [1, 32], strides = [1, 1]} : vector<49x32xf32> to vector<1x32xf32>
    %168 = vector.shape_cast %167 : vector<1x32xf32> to vector<32xf32>
    %169 = vector.shape_cast %168 : vector<32xf32> to vector<1x1x32xf32>
    %170 = vector.broadcast %169 : vector<1x1x32xf32> to vector<8x16x32xf32>
    %171 = arith.mulf %166, %170 : vector<8x16x32xf32>
    %172 = arith.addf %165, %171 : vector<8x16x32xf32>
    %173 = vector.extract_strided_slice %157 {offsets = [2, 0, 0], sizes = [8, 16, 32], strides = [1, 1, 1]} : vector<14x16x32xf32> to vector<8x16x32xf32>
    %174 = vector.extract_strided_slice %5 {offsets = [17, 0], sizes = [1, 32], strides = [1, 1]} : vector<49x32xf32> to vector<1x32xf32>
    %175 = vector.shape_cast %174 : vector<1x32xf32> to vector<32xf32>
    %176 = vector.shape_cast %175 : vector<32xf32> to vector<1x1x32xf32>
    %177 = vector.broadcast %176 : vector<1x1x32xf32> to vector<8x16x32xf32>
    %178 = arith.mulf %173, %177 : vector<8x16x32xf32>
    %179 = arith.addf %172, %178 : vector<8x16x32xf32>
    %180 = vector.extract_strided_slice %157 {offsets = [3, 0, 0], sizes = [8, 16, 32], strides = [1, 1, 1]} : vector<14x16x32xf32> to vector<8x16x32xf32>
    %181 = vector.extract_strided_slice %5 {offsets = [24, 0], sizes = [1, 32], strides = [1, 1]} : vector<49x32xf32> to vector<1x32xf32>
    %182 = vector.shape_cast %181 : vector<1x32xf32> to vector<32xf32>
    %183 = vector.shape_cast %182 : vector<32xf32> to vector<1x1x32xf32>
    %184 = vector.broadcast %183 : vector<1x1x32xf32> to vector<8x16x32xf32>
    %185 = arith.mulf %180, %184 : vector<8x16x32xf32>
    %186 = arith.addf %179, %185 : vector<8x16x32xf32>
    %187 = vector.extract_strided_slice %157 {offsets = [4, 0, 0], sizes = [8, 16, 32], strides = [1, 1, 1]} : vector<14x16x32xf32> to vector<8x16x32xf32>
    %188 = vector.extract_strided_slice %5 {offsets = [31, 0], sizes = [1, 32], strides = [1, 1]} : vector<49x32xf32> to vector<1x32xf32>
    %189 = vector.shape_cast %188 : vector<1x32xf32> to vector<32xf32>
    %190 = vector.shape_cast %189 : vector<32xf32> to vector<1x1x32xf32>
    %191 = vector.broadcast %190 : vector<1x1x32xf32> to vector<8x16x32xf32>
    %192 = arith.mulf %187, %191 : vector<8x16x32xf32>
    %193 = arith.addf %186, %192 : vector<8x16x32xf32>
    %194 = vector.extract_strided_slice %157 {offsets = [5, 0, 0], sizes = [8, 16, 32], strides = [1, 1, 1]} : vector<14x16x32xf32> to vector<8x16x32xf32>
    %195 = vector.extract_strided_slice %5 {offsets = [38, 0], sizes = [1, 32], strides = [1, 1]} : vector<49x32xf32> to vector<1x32xf32>
    %196 = vector.shape_cast %195 : vector<1x32xf32> to vector<32xf32>
    %197 = vector.shape_cast %196 : vector<32xf32> to vector<1x1x32xf32>
    %198 = vector.broadcast %197 : vector<1x1x32xf32> to vector<8x16x32xf32>
    %199 = arith.mulf %194, %198 : vector<8x16x32xf32>
    %200 = arith.addf %193, %199 : vector<8x16x32xf32>
    %201 = vector.extract_strided_slice %157 {offsets = [6, 0, 0], sizes = [8, 16, 32], strides = [1, 1, 1]} : vector<14x16x32xf32> to vector<8x16x32xf32>
    %202 = vector.extract_strided_slice %5 {offsets = [45, 0], sizes = [1, 32], strides = [1, 1]} : vector<49x32xf32> to vector<1x32xf32>
    %203 = vector.shape_cast %202 : vector<1x32xf32> to vector<32xf32>
    %204 = vector.shape_cast %203 : vector<32xf32> to vector<1x1x32xf32>
    %205 = vector.broadcast %204 : vector<1x1x32xf32> to vector<8x16x32xf32>
    %206 = arith.mulf %201, %205 : vector<8x16x32xf32>
    %207 = arith.addf %200, %206 : vector<8x16x32xf32>
    %208 = vector.extract_strided_slice %4 {offsets = [0, 4, 0], sizes = [14, 16, 32], strides = [1, 1, 1]} : vector<14x22x32xf32> to vector<14x16x32xf32>
    %209 = vector.extract_strided_slice %208 {offsets = [0, 0, 0], sizes = [8, 16, 32], strides = [1, 1, 1]} : vector<14x16x32xf32> to vector<8x16x32xf32>
    %210 = vector.extract_strided_slice %5 {offsets = [4, 0], sizes = [1, 32], strides = [1, 1]} : vector<49x32xf32> to vector<1x32xf32>
    %211 = vector.shape_cast %210 : vector<1x32xf32> to vector<32xf32>
    %212 = vector.shape_cast %211 : vector<32xf32> to vector<1x1x32xf32>
    %213 = vector.broadcast %212 : vector<1x1x32xf32> to vector<8x16x32xf32>
    %214 = arith.mulf %209, %213 : vector<8x16x32xf32>
    %215 = arith.addf %207, %214 : vector<8x16x32xf32>
    %216 = vector.extract_strided_slice %208 {offsets = [1, 0, 0], sizes = [8, 16, 32], strides = [1, 1, 1]} : vector<14x16x32xf32> to vector<8x16x32xf32>
    %217 = vector.extract_strided_slice %5 {offsets = [11, 0], sizes = [1, 32], strides = [1, 1]} : vector<49x32xf32> to vector<1x32xf32>
    %218 = vector.shape_cast %217 : vector<1x32xf32> to vector<32xf32>
    %219 = vector.shape_cast %218 : vector<32xf32> to vector<1x1x32xf32>
    %220 = vector.broadcast %219 : vector<1x1x32xf32> to vector<8x16x32xf32>
    %221 = arith.mulf %216, %220 : vector<8x16x32xf32>
    %222 = arith.addf %215, %221 : vector<8x16x32xf32>
    %223 = vector.extract_strided_slice %208 {offsets = [2, 0, 0], sizes = [8, 16, 32], strides = [1, 1, 1]} : vector<14x16x32xf32> to vector<8x16x32xf32>
    %224 = vector.extract_strided_slice %5 {offsets = [18, 0], sizes = [1, 32], strides = [1, 1]} : vector<49x32xf32> to vector<1x32xf32>
    %225 = vector.shape_cast %224 : vector<1x32xf32> to vector<32xf32>
    %226 = vector.shape_cast %225 : vector<32xf32> to vector<1x1x32xf32>
    %227 = vector.broadcast %226 : vector<1x1x32xf32> to vector<8x16x32xf32>
    %228 = arith.mulf %223, %227 : vector<8x16x32xf32>
    %229 = arith.addf %222, %228 : vector<8x16x32xf32>
    %230 = vector.extract_strided_slice %208 {offsets = [3, 0, 0], sizes = [8, 16, 32], strides = [1, 1, 1]} : vector<14x16x32xf32> to vector<8x16x32xf32>
    %231 = vector.extract_strided_slice %5 {offsets = [25, 0], sizes = [1, 32], strides = [1, 1]} : vector<49x32xf32> to vector<1x32xf32>
    %232 = vector.shape_cast %231 : vector<1x32xf32> to vector<32xf32>
    %233 = vector.shape_cast %232 : vector<32xf32> to vector<1x1x32xf32>
    %234 = vector.broadcast %233 : vector<1x1x32xf32> to vector<8x16x32xf32>
    %235 = arith.mulf %230, %234 : vector<8x16x32xf32>
    %236 = arith.addf %229, %235 : vector<8x16x32xf32>
    %237 = vector.extract_strided_slice %208 {offsets = [4, 0, 0], sizes = [8, 16, 32], strides = [1, 1, 1]} : vector<14x16x32xf32> to vector<8x16x32xf32>
    %238 = vector.extract_strided_slice %5 {offsets = [32, 0], sizes = [1, 32], strides = [1, 1]} : vector<49x32xf32> to vector<1x32xf32>
    %239 = vector.shape_cast %238 : vector<1x32xf32> to vector<32xf32>
    %240 = vector.shape_cast %239 : vector<32xf32> to vector<1x1x32xf32>
    %241 = vector.broadcast %240 : vector<1x1x32xf32> to vector<8x16x32xf32>
    %242 = arith.mulf %237, %241 : vector<8x16x32xf32>
    %243 = arith.addf %236, %242 : vector<8x16x32xf32>
    %244 = vector.extract_strided_slice %208 {offsets = [5, 0, 0], sizes = [8, 16, 32], strides = [1, 1, 1]} : vector<14x16x32xf32> to vector<8x16x32xf32>
    %245 = vector.extract_strided_slice %5 {offsets = [39, 0], sizes = [1, 32], strides = [1, 1]} : vector<49x32xf32> to vector<1x32xf32>
    %246 = vector.shape_cast %245 : vector<1x32xf32> to vector<32xf32>
    %247 = vector.shape_cast %246 : vector<32xf32> to vector<1x1x32xf32>
    %248 = vector.broadcast %247 : vector<1x1x32xf32> to vector<8x16x32xf32>
    %249 = arith.mulf %244, %248 : vector<8x16x32xf32>
    %250 = arith.addf %243, %249 : vector<8x16x32xf32>
    %251 = vector.extract_strided_slice %208 {offsets = [6, 0, 0], sizes = [8, 16, 32], strides = [1, 1, 1]} : vector<14x16x32xf32> to vector<8x16x32xf32>
    %252 = vector.extract_strided_slice %5 {offsets = [46, 0], sizes = [1, 32], strides = [1, 1]} : vector<49x32xf32> to vector<1x32xf32>
    %253 = vector.shape_cast %252 : vector<1x32xf32> to vector<32xf32>
    %254 = vector.shape_cast %253 : vector<32xf32> to vector<1x1x32xf32>
    %255 = vector.broadcast %254 : vector<1x1x32xf32> to vector<8x16x32xf32>
    %256 = arith.mulf %251, %255 : vector<8x16x32xf32>
    %257 = arith.addf %250, %256 : vector<8x16x32xf32>
    %258 = vector.extract_strided_slice %4 {offsets = [0, 5, 0], sizes = [14, 16, 32], strides = [1, 1, 1]} : vector<14x22x32xf32> to vector<14x16x32xf32>
    %259 = vector.extract_strided_slice %258 {offsets = [0, 0, 0], sizes = [8, 16, 32], strides = [1, 1, 1]} : vector<14x16x32xf32> to vector<8x16x32xf32>
    %260 = vector.extract_strided_slice %5 {offsets = [5, 0], sizes = [1, 32], strides = [1, 1]} : vector<49x32xf32> to vector<1x32xf32>
    %261 = vector.shape_cast %260 : vector<1x32xf32> to vector<32xf32>
    %262 = vector.shape_cast %261 : vector<32xf32> to vector<1x1x32xf32>
    %263 = vector.broadcast %262 : vector<1x1x32xf32> to vector<8x16x32xf32>
    %264 = arith.mulf %259, %263 : vector<8x16x32xf32>
    %265 = arith.addf %257, %264 : vector<8x16x32xf32>
    %266 = vector.extract_strided_slice %258 {offsets = [1, 0, 0], sizes = [8, 16, 32], strides = [1, 1, 1]} : vector<14x16x32xf32> to vector<8x16x32xf32>
    %267 = vector.extract_strided_slice %5 {offsets = [12, 0], sizes = [1, 32], strides = [1, 1]} : vector<49x32xf32> to vector<1x32xf32>
    %268 = vector.shape_cast %267 : vector<1x32xf32> to vector<32xf32>
    %269 = vector.shape_cast %268 : vector<32xf32> to vector<1x1x32xf32>
    %270 = vector.broadcast %269 : vector<1x1x32xf32> to vector<8x16x32xf32>
    %271 = arith.mulf %266, %270 : vector<8x16x32xf32>
    %272 = arith.addf %265, %271 : vector<8x16x32xf32>
    %273 = vector.extract_strided_slice %258 {offsets = [2, 0, 0], sizes = [8, 16, 32], strides = [1, 1, 1]} : vector<14x16x32xf32> to vector<8x16x32xf32>
    %274 = vector.extract_strided_slice %5 {offsets = [19, 0], sizes = [1, 32], strides = [1, 1]} : vector<49x32xf32> to vector<1x32xf32>
    %275 = vector.shape_cast %274 : vector<1x32xf32> to vector<32xf32>
    %276 = vector.shape_cast %275 : vector<32xf32> to vector<1x1x32xf32>
    %277 = vector.broadcast %276 : vector<1x1x32xf32> to vector<8x16x32xf32>
    %278 = arith.mulf %273, %277 : vector<8x16x32xf32>
    %279 = arith.addf %272, %278 : vector<8x16x32xf32>
    %280 = vector.extract_strided_slice %258 {offsets = [3, 0, 0], sizes = [8, 16, 32], strides = [1, 1, 1]} : vector<14x16x32xf32> to vector<8x16x32xf32>
    %281 = vector.extract_strided_slice %5 {offsets = [26, 0], sizes = [1, 32], strides = [1, 1]} : vector<49x32xf32> to vector<1x32xf32>
    %282 = vector.shape_cast %281 : vector<1x32xf32> to vector<32xf32>
    %283 = vector.shape_cast %282 : vector<32xf32> to vector<1x1x32xf32>
    %284 = vector.broadcast %283 : vector<1x1x32xf32> to vector<8x16x32xf32>
    %285 = arith.mulf %280, %284 : vector<8x16x32xf32>
    %286 = arith.addf %279, %285 : vector<8x16x32xf32>
    %287 = vector.extract_strided_slice %258 {offsets = [4, 0, 0], sizes = [8, 16, 32], strides = [1, 1, 1]} : vector<14x16x32xf32> to vector<8x16x32xf32>
    %288 = vector.extract_strided_slice %5 {offsets = [33, 0], sizes = [1, 32], strides = [1, 1]} : vector<49x32xf32> to vector<1x32xf32>
    %289 = vector.shape_cast %288 : vector<1x32xf32> to vector<32xf32>
    %290 = vector.shape_cast %289 : vector<32xf32> to vector<1x1x32xf32>
    %291 = vector.broadcast %290 : vector<1x1x32xf32> to vector<8x16x32xf32>
    %292 = arith.mulf %287, %291 : vector<8x16x32xf32>
    %293 = arith.addf %286, %292 : vector<8x16x32xf32>
    %294 = vector.extract_strided_slice %258 {offsets = [5, 0, 0], sizes = [8, 16, 32], strides = [1, 1, 1]} : vector<14x16x32xf32> to vector<8x16x32xf32>
    %295 = vector.extract_strided_slice %5 {offsets = [40, 0], sizes = [1, 32], strides = [1, 1]} : vector<49x32xf32> to vector<1x32xf32>
    %296 = vector.shape_cast %295 : vector<1x32xf32> to vector<32xf32>
    %297 = vector.shape_cast %296 : vector<32xf32> to vector<1x1x32xf32>
    %298 = vector.broadcast %297 : vector<1x1x32xf32> to vector<8x16x32xf32>
    %299 = arith.mulf %294, %298 : vector<8x16x32xf32>
    %300 = arith.addf %293, %299 : vector<8x16x32xf32>
    %301 = vector.extract_strided_slice %258 {offsets = [6, 0, 0], sizes = [8, 16, 32], strides = [1, 1, 1]} : vector<14x16x32xf32> to vector<8x16x32xf32>
    %302 = vector.extract_strided_slice %5 {offsets = [47, 0], sizes = [1, 32], strides = [1, 1]} : vector<49x32xf32> to vector<1x32xf32>
    %303 = vector.shape_cast %302 : vector<1x32xf32> to vector<32xf32>
    %304 = vector.shape_cast %303 : vector<32xf32> to vector<1x1x32xf32>
    %305 = vector.broadcast %304 : vector<1x1x32xf32> to vector<8x16x32xf32>
    %306 = arith.mulf %301, %305 : vector<8x16x32xf32>
    %307 = arith.addf %300, %306 : vector<8x16x32xf32>
    %308 = vector.extract_strided_slice %4 {offsets = [0, 6, 0], sizes = [14, 16, 32], strides = [1, 1, 1]} : vector<14x22x32xf32> to vector<14x16x32xf32>
    %309 = vector.extract_strided_slice %308 {offsets = [0, 0, 0], sizes = [8, 16, 32], strides = [1, 1, 1]} : vector<14x16x32xf32> to vector<8x16x32xf32>
    %310 = vector.extract_strided_slice %5 {offsets = [6, 0], sizes = [1, 32], strides = [1, 1]} : vector<49x32xf32> to vector<1x32xf32>
    %311 = vector.shape_cast %310 : vector<1x32xf32> to vector<32xf32>
    %312 = vector.shape_cast %311 : vector<32xf32> to vector<1x1x32xf32>
    %313 = vector.broadcast %312 : vector<1x1x32xf32> to vector<8x16x32xf32>
    %314 = arith.mulf %309, %313 : vector<8x16x32xf32>
    %315 = arith.addf %307, %314 : vector<8x16x32xf32>
    %316 = vector.extract_strided_slice %308 {offsets = [1, 0, 0], sizes = [8, 16, 32], strides = [1, 1, 1]} : vector<14x16x32xf32> to vector<8x16x32xf32>
    %317 = vector.extract_strided_slice %5 {offsets = [13, 0], sizes = [1, 32], strides = [1, 1]} : vector<49x32xf32> to vector<1x32xf32>
    %318 = vector.shape_cast %317 : vector<1x32xf32> to vector<32xf32>
    %319 = vector.shape_cast %318 : vector<32xf32> to vector<1x1x32xf32>
    %320 = vector.broadcast %319 : vector<1x1x32xf32> to vector<8x16x32xf32>
    %321 = arith.mulf %316, %320 : vector<8x16x32xf32>
    %322 = arith.addf %315, %321 : vector<8x16x32xf32>
    %323 = vector.extract_strided_slice %308 {offsets = [2, 0, 0], sizes = [8, 16, 32], strides = [1, 1, 1]} : vector<14x16x32xf32> to vector<8x16x32xf32>
    %324 = vector.extract_strided_slice %5 {offsets = [20, 0], sizes = [1, 32], strides = [1, 1]} : vector<49x32xf32> to vector<1x32xf32>
    %325 = vector.shape_cast %324 : vector<1x32xf32> to vector<32xf32>
    %326 = vector.shape_cast %325 : vector<32xf32> to vector<1x1x32xf32>
    %327 = vector.broadcast %326 : vector<1x1x32xf32> to vector<8x16x32xf32>
    %328 = arith.mulf %323, %327 : vector<8x16x32xf32>
    %329 = arith.addf %322, %328 : vector<8x16x32xf32>
    %330 = vector.extract_strided_slice %308 {offsets = [3, 0, 0], sizes = [8, 16, 32], strides = [1, 1, 1]} : vector<14x16x32xf32> to vector<8x16x32xf32>
    %331 = vector.extract_strided_slice %5 {offsets = [27, 0], sizes = [1, 32], strides = [1, 1]} : vector<49x32xf32> to vector<1x32xf32>
    %332 = vector.shape_cast %331 : vector<1x32xf32> to vector<32xf32>
    %333 = vector.shape_cast %332 : vector<32xf32> to vector<1x1x32xf32>
    %334 = vector.broadcast %333 : vector<1x1x32xf32> to vector<8x16x32xf32>
    %335 = arith.mulf %330, %334 : vector<8x16x32xf32>
    %336 = arith.addf %329, %335 : vector<8x16x32xf32>
    %337 = vector.extract_strided_slice %308 {offsets = [4, 0, 0], sizes = [8, 16, 32], strides = [1, 1, 1]} : vector<14x16x32xf32> to vector<8x16x32xf32>
    %338 = vector.extract_strided_slice %5 {offsets = [34, 0], sizes = [1, 32], strides = [1, 1]} : vector<49x32xf32> to vector<1x32xf32>
    %339 = vector.shape_cast %338 : vector<1x32xf32> to vector<32xf32>
    %340 = vector.shape_cast %339 : vector<32xf32> to vector<1x1x32xf32>
    %341 = vector.broadcast %340 : vector<1x1x32xf32> to vector<8x16x32xf32>
    %342 = arith.mulf %337, %341 : vector<8x16x32xf32>
    %343 = arith.addf %336, %342 : vector<8x16x32xf32>
    %344 = vector.extract_strided_slice %308 {offsets = [5, 0, 0], sizes = [8, 16, 32], strides = [1, 1, 1]} : vector<14x16x32xf32> to vector<8x16x32xf32>
    %345 = vector.extract_strided_slice %5 {offsets = [41, 0], sizes = [1, 32], strides = [1, 1]} : vector<49x32xf32> to vector<1x32xf32>
    %346 = vector.shape_cast %345 : vector<1x32xf32> to vector<32xf32>
    %347 = vector.shape_cast %346 : vector<32xf32> to vector<1x1x32xf32>
    %348 = vector.broadcast %347 : vector<1x1x32xf32> to vector<8x16x32xf32>
    %349 = arith.mulf %344, %348 : vector<8x16x32xf32>
    %350 = arith.addf %343, %349 : vector<8x16x32xf32>
    %351 = vector.extract_strided_slice %308 {offsets = [6, 0, 0], sizes = [8, 16, 32], strides = [1, 1, 1]} : vector<14x16x32xf32> to vector<8x16x32xf32>
    %352 = vector.extract_strided_slice %5 {offsets = [48, 0], sizes = [1, 32], strides = [1, 1]} : vector<49x32xf32> to vector<1x32xf32>
    %353 = vector.shape_cast %352 : vector<1x32xf32> to vector<32xf32>
    %354 = vector.shape_cast %353 : vector<32xf32> to vector<1x1x32xf32>
    %355 = vector.broadcast %354 : vector<1x1x32xf32> to vector<8x16x32xf32>
    %356 = arith.mulf %351, %355 : vector<8x16x32xf32>
    %357 = arith.addf %350, %356 : vector<8x16x32xf32>
    %c0_4 = arith.constant 0 : index
    %c0_5 = arith.constant 0 : index
    %358 = vector.load %arg4[%c0_4, %c0_5] : memref<1x32xf32, #tpu.memory_space<vmem>>, vector<1x32xf32>
    %359 = vector.shape_cast %358 : vector<1x32xf32> to vector<32xf32>
    %360 = vector.shape_cast %359 : vector<32xf32> to vector<1x1x32xf32>
    %361 = vector.broadcast %360 : vector<1x1x32xf32> to vector<8x16x32xf32>
    %362 = arith.addf %357, %361 : vector<8x16x32xf32>
    %cst_6 = arith.constant dense<0.000000e+00> : vector<8x16xf32>
    %363 = vector.multi_reduction <add>, %362, %cst_6 [2] : vector<8x16x32xf32> to vector<8x16xf32>
    %364 = vector.shape_cast %363 : vector<8x16xf32> to vector<8x16x1xf32>
    %cst_7 = arith.constant 3.200000e+01 : f32
    %365 = vector.broadcast %cst_7 : f32 to vector<8x16x1xf32>
    %366 = arith.divf %364, %365 : vector<8x16x1xf32>
    %367 = arith.mulf %362, %362 : vector<8x16x32xf32>
    %cst_8 = arith.constant dense<0.000000e+00> : vector<8x16xf32>
    %368 = vector.multi_reduction <add>, %367, %cst_8 [2] : vector<8x16x32xf32> to vector<8x16xf32>
    %369 = vector.shape_cast %368 : vector<8x16xf32> to vector<8x16x1xf32>
    %cst_9 = arith.constant 3.200000e+01 : f32
    %370 = vector.broadcast %cst_9 : f32 to vector<8x16x1xf32>
    %371 = arith.divf %369, %370 : vector<8x16x1xf32>
    %372 = arith.mulf %366, %366 : vector<8x16x1xf32>
    %373 = arith.subf %371, %372 : vector<8x16x1xf32>
    %cst_10 = arith.constant 9.99999997E-7 : f32
    %374 = vector.broadcast %cst_10 : f32 to vector<8x16x1xf32>
    %375 = arith.addf %373, %374 : vector<8x16x1xf32>
    %376 = math.rsqrt %375 : vector<8x16x1xf32>
    %377 = vector.broadcast %366 : vector<8x16x1xf32> to vector<8x16x32xf32>
    %378 = arith.subf %362, %377 : vector<8x16x32xf32>
    %379 = vector.broadcast %376 : vector<8x16x1xf32> to vector<8x16x32xf32>
    %380 = arith.mulf %378, %379 : vector<8x16x32xf32>
    %381 = vector.shape_cast %380 : vector<8x16x32xf32> to vector<128x32xf32>
    %382 = arith.truncf %381 : vector<128x32xf32> to vector<128x32xbf16>
    %c0_11 = arith.constant 0 : index
    %c0_12 = arith.constant 0 : index
    %383 = vector.load %arg5[%c0_11, %c0_12] : memref<32x128xbf16, #tpu.memory_space<vmem>>, vector<32x128xbf16>
    %cst_13 = arith.constant dense<0.000000e+00> : vector<128x128xf32>
    %384 = tpu.matmul %382, %383, %cst_13 {dimension_numbers = #tpu.dot_dimension_numbers<[1], [0], [0], [1], [0, 0, 1, 1], [], []>} : vector<128x32xbf16>, vector<32x128xbf16>, vector<128x128xf32> -> vector<128x128xf32>
    %c0_14 = arith.constant 0 : index
    %c0_15 = arith.constant 0 : index
    %385 = vector.load %arg6[%c0_14, %c0_15] : memref<1x128xf32, #tpu.memory_space<vmem>>, vector<1x128xf32>
    %386 = vector.shape_cast %385 : vector<1x128xf32> to vector<128xf32>
    %387 = vector.shape_cast %386 : vector<128xf32> to vector<1x128xf32>
    %388 = vector.broadcast %387 : vector<1x128xf32> to vector<128x128xf32>
    %389 = arith.addf %384, %388 : vector<128x128xf32>
    %cst_16 = arith.constant 5.000000e-01 : f32
    %390 = vector.broadcast %cst_16 : f32 to vector<128x128xf32>
    %391 = arith.mulf %390, %389 : vector<128x128xf32>
    %cst_17 = arith.constant 4.471500e-02 : f32
    %392 = vector.broadcast %cst_17 : f32 to vector<128x128xf32>
    %393 = arith.mulf %392, %389 : vector<128x128xf32>
    %394 = arith.mulf %393, %389 : vector<128x128xf32>
    %395 = arith.mulf %394, %389 : vector<128x128xf32>
    %396 = arith.addf %389, %395 : vector<128x128xf32>
    %cst_18 = arith.constant 0.797884583 : f32
    %397 = vector.broadcast %cst_18 : f32 to vector<128x128xf32>
    %398 = arith.mulf %397, %396 : vector<128x128xf32>
    %399 = math.tanh %398 : vector<128x128xf32>
    %cst_19 = arith.constant 1.000000e+00 : f32
    %400 = vector.broadcast %cst_19 : f32 to vector<128x128xf32>
    %401 = arith.addf %400, %399 : vector<128x128xf32>
    %402 = arith.mulf %391, %401 : vector<128x128xf32>
    %403 = arith.truncf %402 : vector<128x128xf32> to vector<128x128xbf16>
    %c0_20 = arith.constant 0 : index
    %c0_21 = arith.constant 0 : index
    %404 = vector.load %arg7[%c0_20, %c0_21] : memref<128x32xbf16, #tpu.memory_space<vmem>>, vector<128x32xbf16>
    %cst_22 = arith.constant dense<0.000000e+00> : vector<128x32xf32>
    %405 = tpu.matmul %403, %404, %cst_22 {dimension_numbers = #tpu.dot_dimension_numbers<[1], [0], [0], [1], [0, 0, 1, 1], [], []>} : vector<128x128xbf16>, vector<128x32xbf16>, vector<128x32xf32> -> vector<128x32xf32>
    %c0_23 = arith.constant 0 : index
    %c0_24 = arith.constant 0 : index
    %406 = vector.load %arg8[%c0_23, %c0_24] : memref<1x32xf32, #tpu.memory_space<vmem>>, vector<1x32xf32>
    %407 = vector.shape_cast %406 : vector<1x32xf32> to vector<32xf32>
    %408 = vector.shape_cast %407 : vector<32xf32> to vector<1x32xf32>
    %409 = vector.broadcast %408 : vector<1x32xf32> to vector<128x32xf32>
    %410 = arith.addf %405, %409 : vector<128x32xf32>
    %411 = vector.shape_cast %158 : vector<8x16x32xf32> to vector<1x8x16x32xf32>
    %412 = vector.shape_cast %410 : vector<128x32xf32> to vector<1x8x16x32xf32>
    %413 = arith.addf %411, %412 : vector<1x8x16x32xf32>
    %c0_25 = arith.constant 0 : index
    %c0_26 = arith.constant 0 : index
    %c0_27 = arith.constant 0 : index
    %c0_28 = arith.constant 0 : index
    %414 = vector.load %arg9[%c0_25, %c0_26, %c0_27, %c0_28] : memref<1x8x16x32xf32, #tpu.memory_space<vmem>>, vector<1x8x16x32xf32>
    tpu.vector_store %arg9[%c0_25, %c0_26, %c0_27, %c0_28], %413 {strides = array<i32>} : memref<1x8x16x32xf32, #tpu.memory_space<vmem>>, vector<1x8x16x32xf32>,
    return
  }
  func.func @transform_0(%arg0: i32, %arg1: i32) -> (i32, i32, i32, i32) {
    %c0_i32 = arith.constant 0 : i32
    %c0_i32_0 = arith.constant 0 : i32
    %c0_i32_1 = arith.constant 0 : i32
    %c0_i32_2 = arith.constant 0 : i32
    return %arg0, %c0_i32, %c0_i32_0, %c0_i32_1 : i32, i32, i32, i32
  }
  func.func @transform_1(%arg0: i32, %arg1: i32) -> (i32, i32) {
    %c0_i32 = arith.constant 0 : i32
    %c0_i32_0 = arith.constant 0 : i32
    %c0_i32_1 = arith.constant 0 : i32
    return %c0_i32, %c0_i32_0 : i32, i32
  }
  func.func @transform_2(%arg0: i32, %arg1: i32) -> (i32, i32) {
    %c0_i32 = arith.constant 0 : i32
    %c0_i32_0 = arith.constant 0 : i32
    %c0_i32_1 = arith.constant 0 : i32
    return %c0_i32, %c0_i32_0 : i32, i32
  }
  func.func @transform_3(%arg0: i32, %arg1: i32) -> (i32, i32) {
    %c0_i32 = arith.constant 0 : i32
    %c0_i32_0 = arith.constant 0 : i32
    %c0_i32_1 = arith.constant 0 : i32
    return %c0_i32, %c0_i32_0 : i32, i32
  }
  func.func @transform_4(%arg0: i32, %arg1: i32) -> (i32, i32) {
    %c0_i32 = arith.constant 0 : i32
    %c0_i32_0 = arith.constant 0 : i32
    %c0_i32_1 = arith.constant 0 : i32
    return %c0_i32, %c0_i32_0 : i32, i32
  }
  func.func @transform_5(%arg0: i32, %arg1: i32) -> (i32, i32) {
    %c0_i32 = arith.constant 0 : i32
    %c0_i32_0 = arith.constant 0 : i32
    %c0_i32_1 = arith.constant 0 : i32
    return %c0_i32, %c0_i32_0 : i32, i32
  }
  func.func @transform_6(%arg0: i32, %arg1: i32) -> (i32, i32) {
    %c0_i32 = arith.constant 0 : i32
    %c0_i32_0 = arith.constant 0 : i32
    %c0_i32_1 = arith.constant 0 : i32
    return %c0_i32, %c0_i32_0 : i32, i32
  }
  func.func @transform_7(%arg0: i32, %arg1: i32) -> (i32, i32, i32, i32) {
    %c0_i32 = arith.constant 0 : i32
    %c0_i32_0 = arith.constant 0 : i32
    %c0_i32_1 = arith.constant 0 : i32
    return %arg0, %arg1, %c0_i32, %c0_i32_0 : i32, i32, i32, i32
  }
}

</mosaic_0001>

<bundles_post_ra>
// kernel: tpu_custom_call.1
= control target key start
LH: loop header
LB: loop body
LE: loop exit
PB: predicated region body
PF: predicated region fallthrough
CT: control target
= control target key end

     0   :  { %12 = vsyncpa [#allocation3], 0  ;;  %s14544_s0 = inlined_call_operand.vmem [shape: f32[2,22,22,32], index: 0, kind: input, shape index: {}]   ;;  %s14545_s1 = inlined_call_operand.vmem [shape: f32[49,32], index: 1, kind: input, shape index: {}]   ;;  %s14546_s2 = inlined_call_operand.vmem [shape: f32[1,32], index: 2, kind: input, shape index: {}]   ;;  %s14547_s3 = inlined_call_operand.vmem [shape: bf16[32,128], index: 3, kind: input, shape index: {}]   ;;  %s14548_s4 = inlined_call_operand.vmem [shape: f32[1,128], index: 4, kind: input, shape index: {}]   ;;  %s14549_s5 = inlined_call_operand.vmem [shape: bf16[128,32], index: 5, kind: input, shape index: {}]   ;;  %s14550_s6 = inlined_call_operand.vmem [shape: f32[1,32], index: 6, kind: input, shape index: {}]   ;;  %s14551_s7 = inlined_call_operand.hbm [shape: f32[2,16,16,32], index: 7, kind: output, shape index: {}]  }
   0x1   :  { %14 = vsyncpa [#allocation3 + $0x1], 0  ;;  %s7314_s24 = smov 0   ;;  %s7316_s25 = smov 0  }
   0x2   :  { %s7318_s26 = smov 0   ;;  %s7320_s27 = smov 0  }
   0x3   :  { %s7322_s28 = smov 0   ;;  %s7324_s29 = smov 0  }
   0x4   :  { %s7326_s30 = smov 0   ;;  %s7328_s8 = smov 0  }
   0x5 LB: > { %s6757_s9 = sadd.s32 4294967295, %s7269_s8   ;;  %s6758_s10 = sadd.s32 4294967294, %s7269_s8   ;;  %s7269_s8 = sphi %s7328_s8, %s20_s8   ;;  %s7265_s30 = sphi %s7326_s30, %s17425_s30   ;;  %s7261_s29 = sphi %s7324_s29, %s17424_s29   ;;  %s7257_s28 = sphi %s7322_s28, %s17423_s28   ;;  %s7253_s27 = sphi %s7320_s27, %s17422_s27   ;;  %s7249_s26 = sphi %s7318_s26, %s17421_s26   ;;  %s7245_s25 = sphi %s7316_s25, %s17420_s25   ;;  %s7241_s24 = sphi %s7314_s24, %s17419_s24  }
   0x6   : > { %s29_s11 = sadd.s32 1, %s7261_s29  ;;  %s32_s12 = sadd.s32 1, %s7265_s30 }
   0x7   : > { %p30_p0 = scmp.ge.s32.totalorder %s29_s11, 2  ;;  %p203_p1 = scmp.ne.s32.totalorder %s7249_s26, %s7245_s25 }
   0x8   : > { %p204_p2 = scmp.eq.s32.totalorder %s6757_s9, 3  ;;  %p209_p5 = scmp.ne.s32.totalorder %s7245_s25, %s7241_s24 }
   0x9   : > { %s17427_s11 = smov (%p30_p0, %s29_s11), 0  ;;  %s17429_s12 = smov (!%p30_p0, %s32_s12), %s7265_s30 }
   0xa   : > { %s189_s13 = ssub.s32 %s7261_s29, %s17427_s11  ;;  %p7365_p3 = por %p204_p2, %p203_p1 }
   0xb   : > { %p34_p4 = scmp.ge.s32.totalorder %s17429_s12, 2  ;;  %p210_p6 = scmp.eq.s32.totalorder %s6758_s10, 3 }
   0xc   : > { %p6761_p7 = scmp.ge.s32.totalorder %s7269_s8, 1  ;;  %p254_p9 = scmp.lt.s32.totalorder %s7269_s8, 5 }
   0xd   : > { %s17431_s12 = smov (%p34_p4, %s17429_s12), 0  ;;  %p7374_p8 = por %p210_p6, %p209_p5 }
   0xe   : > { %15482 = sst [smem:[#allocation5_spill]] %s17431_s12  ;;  %s188_s16 = ssub.s32 %s7265_s30, %s17431_s12 }
   0xf   : > { %s193_s17 = sadd.s32 1, %s7249_s26  ;;  %s190_s18 = sor.u32 %s189_s13, %s188_s16 }
  0x10   : > { %p255_p10 = pnand %p6761_p7, %p254_p9  ;;  %p191_p11 = scmp.eq.s32.totalorder %s190_s18, 0 }
  0x12   : > { %s7383_s19 = scalar_select %p191_p11, %s7249_s26, %s193_s17  }
  0x13   : > { %258 = sbr.rel (%p255_p10) target bundleno = 1749 (0x6d5), region = 48 }
  0x1a   : > { %p286_p12 = scmp.lt.s32.totalorder %s7257_s28, 1  ;;  %v345_v0 = vlaneseq  ;;  %v7390_v1 = vld [vmem:[%s14545_s1] sm:$0xff]  ;;  %s6765_s23 = smul.u32 192, %s7253_s27  ;;  %v7396_v3 = vld [vmem:[%s14545_s1 + $0x8] sm:$0xff]  ;;  %v7401_v4 = vld [vmem:[%s14545_s1 + $0x10] sm:$0xff]  ;;  %vm649_vm0 = vcmask 1046528  }
  0x1b   : > { %v7406_v5 = vld [vmem:[%s14545_s1 + $0x18] sm:$0xff]  ;;  %v7419_v10 = vld [vmem:[%s14545_s1 + $0x20] sm:$0xff]  ;;  %v7470_v24 = vld [vmem:[%s14545_s1 + $0x28] sm:$0xff]  ;;  %vm1518_vm1 = vcmask 1045504   ;;  %vm2387_vm2 = vcmask 1044480   ;;  %vm3256_vm3 = vcmask 1043456  }
  0x1c   : > { %s287_s20 = scalar_select %p286_p12, %s7257_s28, 1  ;;  %v346_v2 = vshrl.u32 %v345_v0, 7  ;;  %vm4125_vm4 = vcmask 1042432   ;;  %vm4994_vm5 = vcmask 1041408   ;;  %vm5834_vm6 = vcmask 261120  }
  0x1d   : > { %vm6636_vm7 = vcmask 261123   ;;  %vm6639_vm8 = vcmask 256000   ;;  %s6791_s18 = sshll.u32 %s7257_s28, 5 }
  0x1e   : > { %s6890_s17 = smul.u32 528, %s287_s20  ;;  %v7408_v6 = vsub.s32 0, %v346_v2  ;;  %v7410_v7 = vsub.s32 7, %v346_v2  ;;  %v7412_v8 = vsub.s32 6, %v346_v2  ;;  %v7414_v9 = vsub.s32 5, %v346_v2  ;;  %s283_s20 = sand.u32 1, %s7245_s25  }
  0x1f   : > { %v7421_v11 = vsub.s32 4, %v346_v2  ;;  %v7423_v12 = vsub.s32 3, %v346_v2  ;;  %v7425_v13 = vsub.s32 1, %v346_v2  ;;  %v7458_v21 = vsub.s32 2, %v346_v2  ;;  %s6762_s13 = sshll.u32 %s283_s20, 7 }
  0x20   : > { %s290_s9 = scalar_lea.vmem %s14544_s0, %s6890_s17  ;;  %v7432_v14 = vrot.slane %v7390_v1, %v7408_v6  ;;  %v7436_v15 = vrot.slane %v7390_v1, %v7410_v7  ;;  %v7440_v16 = vrot.slane %v7396_v3, %v7412_v8  ;;  %v7446_v17 = vrot.slane %v7401_v4, %v7414_v9  ;;  %s14388_s16 = scalar_lea.vmem [#allocation2], %s6762_s13 }
  0x21   : > { %s7442_s10 = scalar_lea.vmem %s290_s9, %s6765_s23  ;;  %v7450_v18 = vrot.slane %v7390_v1, %v7425_v13  ;;  %v7462_v22 = vrot.slane %v7396_v3, %v7408_v6  ;;  %v7478_v27 = vrot.slane %v7406_v5, %v7421_v11  ;;  %v7482_v28 = vrot.slane %v7396_v3, %v7410_v7  ;;  %s6795_s17 = sshll.u32 %s7253_s27, 4 }
  0x22   : > { %15484 = vst [vmem:[#allocation6_spill] sm:$0xff] %v7432_v14  ;;  %15485 = vst [vmem:[#allocation7_spill] sm:$0xff] %v7436_v15  ;;  %v7453_v19 = vld [vmem:[%s7442_s10 + $0x18] sm:$0xff]  ;;  %v7456_v20 = vld [vmem:[%s7442_s10 + $0x30] sm:$0xff]  ;;  %v7497_v33 = vrot.slane %v7419_v10, %v7423_v12  ;;  %v7520_v42 = vrot.slane %v7470_v24, %v7458_v21  ;;  %v7528_v44 = vrot.slane %v7401_v4, %v7412_v8  ;;  %s6676_s27 = sadd.s32 %s6795_s17, %s6791_s18  ;;  %s6679_s21 = sshll.u32 %s14388_s16, 4  ;;  %s14479_s21 = int_to_ptr.vmem [resolvable:$true] %s6679_s21 }
  0x23   : > { %15486 = vst [vmem:[#allocation8_spill] sm:$0xff] %v7440_v16  ;;  %15487 = vst [vmem:[#allocation9_spill] sm:$0xff] %v7446_v17  ;;  %v7465_v23 = vld [vmem:[%s7442_s10 + $0x48] sm:$0xff]  ;;  %v351_v25 = vmul.f32 %v7432_v14, %v7453_v19  ;;  %v387_v26 = vmul.f32 %v7436_v15, %v7456_v20  ;;  %v7485_v29 = vld [vmem:[%s7442_s10 + $0x20] sm:$0xff]  ;;  %v604_v34 = vmul.f32 %v7450_v18, %v7453_v19  ;;  %s6792_s28 = sshll.u32 %s6676_s27, 7  ;;  %s14492_s23 = scalar_lea.sflag [#allocation3], %s283_s20 }
  0x24   : > { %15488 = vst [vmem:[#allocation10_spill] sm:$0xff] %v7450_v18  ;;  %15489 = vst [vmem:[#allocation11_spill] sm:$0xff] %v7462_v22  ;;  %v7488_v30 = vld [vmem:[%s7442_s10 + $0x60] sm:$0xff]  ;;  %v7491_v31 = vld [vmem:[%s7442_s10 + $0x78] sm:$0xff]  ;;  %v423_v32 = vmul.f32 %v7440_v16, %v7465_v23  ;;  %v7508_v38 = vmul.f32 %v7450_v18, %v7485_v29  ;;  %v729_v39 = vmul.f32 %v7462_v22, %v7456_v20  ;;  %s14477_s9 = scalar_lea.hbm %s14551_s7, %s6792_s28  ;;  %s7175_s13 = scalar_lea.vmem %s14479_s21, 2048 }
  0x25   : > { %15490 = vst [vmem:[#allocation12_spill] sm:$0xff] %v7478_v27  ;;  %15491 = vst [vmem:[#allocation13_spill] sm:$0xff] %v7482_v28  ;;  %v7502_v35 = vld [vmem:[%s7442_s10 + $0x38] sm:$0xff]  ;;  %v403_v36 = vadd.f32 %v387_v26, %v351_v25  ;;  %v459_v37 = vmul.f32 %v7446_v17, %v7488_v30  ;;  %v7513_v40 = vld [vmem:[%s7442_s10 + $0x50] sm:$0xff]  ;;  %v7532_v45 = vrot.slane %v7406_v5, %v7414_v9  ;;  %v655_v51 = vrot.slane %v604_v34, 1  ;;  %p7176_p13 = scmp.ne.s32.totalorder %s14479_s21, %s7175_s13  ;;  %s7271_s17 = smov [#allocation2]  }
  0x26   : > { %15492 = vst [vmem:[#allocation14_spill] sm:$0xff] %v7497_v33  ;;  %15493 = vst [vmem:[#allocation15_spill] sm:$0xff] %v7508_v38  ;;  %v7516_v41 = vld [vmem:[%s7442_s10 + $0x90] sm:$0xff]  ;;  %v7524_v43 = vmul.f32 %v7462_v22, %v7502_v35  ;;  %v7535_v46 = vld [vmem:[%s7442_s10 + $0xa8] sm:$0xff]  ;;  %v495_v48 = vmul.f32 %v7478_v27, %v7491_v31  ;;  %v853_v49 = vmul.f32 %v7482_v28, %v7465_v23  ;;  %v14554_v55 = vrot.slane %v7508_v38, 1  ;;  %s7179_s18 = sshll.u32 %s7271_s17, 4  ;;  %s7180_s18 = int_to_ptr.vmem [resolvable:$false] %s7179_s18 }
  0x27   : > { %15494 = vst [vmem:[#allocation16_spill] sm:$0xff] %v7520_v42  ;;  %15496 = vst [vmem:[#allocation18_spill] sm:$0xff] %v7528_v44  ;;  %v439_v47 = vadd.f32 %v423_v32, %v403_v36  ;;  %v7543_v50 = vmul.f32 %v7482_v28, %v7513_v40  ;;  %v7546_v52 = vld [vmem:[%s7442_s10 + $0x68] sm:$0xff]  ;;  %v531_v54 = vmul.f32 %v7497_v33, %v7516_v41  ;;  %v779_v56 = vrot.slane %v729_v39, 1  ;;  %v7552_v57 = vld [vmem:[%s7442_s10 + $0x80] sm:$0xff]  ;;  %p7177_p0 = pnand %p7176_p13, %p7365_p3  ;;  %s7181_s27 = scalar_lea.vmem %s7180_s18, 4096 }
  0x28   : > { %15495 = vst [vmem:[#allocation17_spill] sm:$0xff] %v7524_v43  ;;  %15497 = vst [vmem:[#allocation19_spill] sm:$0xff] %v7532_v45  ;;  %v567_v58 = vmul.f32 %v7520_v42, %v7535_v46  ;;  %v14556_v59 = vrot.slane %v7524_v43, 1  ;;  %v977_v60 = vmul.f32 %v7528_v44, %v7488_v30  ;;  %v7561_v61 = vmul.f32 %v7528_v44, %v7546_v52  ;;  %p7182_p2 = scmp.lt.s32.totalorder %s14479_s21, %s7180_s18  ;;  %p7183_p4 = scmp.lt.s32.totalorder %s7181_s27, %s7175_s13 }
  0x29   : > { %15498 = vst [vmem:[#allocation20_spill] sm:$0xff] %v7543_v50  ;;  %v475_v53 = vadd.f32 %v459_v37, %v439_v47  ;;  %v903_v63 = vrot.slane %v853_v49, 1  ;;  %v14555_v0 = vrot.slane %v7543_v50, 1  ;;  %v1101_v2 = vmul.f32 %v7532_v45, %v7491_v31  ;;  %v7591_v49 = vld [vmem:[%s7442_s10 + $0x98] sm:$0xff]  ;;  %p7178_p1 = pneg %p7177_p0 }
  0x2a   : > { %15499 = vst [vmem:[#allocation21_spill] sm:$0xff] %v7561_v61  ;;  %v7568_v25 = vmul.f32 %v7532_v45, %v7552_v57  ;;  %v7572_v26 = vrot.slane %v7419_v10, %v7421_v11  ;;  %v7576_v34 = vrot.slane %v7470_v24, %v7423_v12  ;;  %v7580_v36 = vrot.slane %v7390_v1, %v7458_v21  ;;  %p7184_p5 = por %p7183_p4, %p7182_p2 }
  0x2b   : > { %v511_v62 = vadd.f32 %v495_v48, %v475_v53  ;;  %v657_v37 = vsel %vm649_vm0, %v655_v51, %v14554_v55  ;;  %v1027_v39 = vrot.slane %v977_v60, 1  ;;  %v14560_v47 = vrot.slane %v7561_v61, 1  ;;  %v7600_v51 = vld [vmem:[%s7442_s10 + $0xb0] sm:$0xff] }
  0x2c   : > { %15500 = vst [vmem:[#allocation22_spill] sm:$0xff] %v7568_v25  ;;  %15501 = vst [vmem:[#allocation23_spill] sm:$0xff] %v7572_v26  ;;  %v7588_v48 = vrot.slane %v7396_v3, %v7425_v13  ;;  %v1151_v38 = vrot.slane %v1101_v2, 1  ;;  %v1225_v55 = vmul.f32 %v7572_v26, %v7516_v41  ;;  %v7617_v2 = vmul.f32 %v7576_v34, %v7600_v51  ;;  %p7185_p6 = pnand %p7184_p5, %p7178_p1 }
  0x2d   : > { %v547_v32 = vadd.f32 %v531_v54, %v511_v62  ;;  %15502 = vst [vmem:[#allocation24_spill] sm:$0xff] %v7576_v34  ;;  %15503 = vst [vmem:[#allocation25_spill] sm:$0xff] %v7580_v36  ;;  %v781_v54 = vsel %vm649_vm0, %v779_v56, %v14556_v59  ;;  %v905_v62 = vsel %vm649_vm0, %v903_v63, %v14555_v0 }
  0x2e   : > { %15504 = vst [vmem:[#allocation26_spill] sm:$0xff] %v7588_v48  ;;  %v7611_v56 = vrot.slane %v7401_v4, %v7408_v6  ;;  %v1349_v63 = vmul.f32 %v7576_v34, %v7535_v46  ;;  %15507 = vst [vmem:[#allocation29_spill] sm:$0xff] %v7617_v2  ;;  %v1473_v0 = vmul.f32 %v7580_v36, %v7453_v19  ;;  %v1275_v34 = vrot.slane %v1225_v55, 1 }
  0x2f   : > { %v583_v53 = vadd.f32 %v567_v58, %v547_v32  ;;  %v7607_v58 = vmul.f32 %v7572_v26, %v7591_v49  ;;  %v1029_v59 = vsel %vm649_vm0, %v1027_v39, %v14560_v47  ;;  %v7626_v60 = vmul.f32 %v7580_v36, %v7485_v29 }
  0x30   : > { %15506 = vst [vmem:[#allocation28_spill] sm:$0xff] %v7611_v56  ;;  %v1722_v43 = vmul.f32 %v7611_v56, %v7465_v23  ;;  %v7638_v61 = vmul.f32 %v7611_v56, %v7513_v40  ;;  %v7642_v39 = vrot.slane %v7401_v4, %v7410_v7  ;;  %v15512_v47 = vrot.slane %v7568_v25, 1 }
  0x31   : > { %15505 = vst [vmem:[#allocation27_spill] sm:$0xff] %v7607_v58  ;;  %v708_v32 = vadd.f32 %v657_v37, %v583_v53  ;;  %15508 = vst [vmem:[#allocation30_spill] sm:$0xff] %v7626_v60  ;;  %v1598_v37 = vmul.f32 %v7588_v48, %v7456_v20  ;;  %v7632_v53 = vmul.f32 %v7588_v48, %v7502_v35  ;;  %v1399_v26 = vrot.slane %v1349_v63, 1 }
  0x32   : > { %15510 = vst [vmem:[#allocation32_spill] sm:$0xff] %v7638_v61  ;;  %15511 = vst [vmem:[#allocation33_spill] sm:$0xff] %v7642_v39  ;;  %v1153_v36 = vsel %vm649_vm0, %v1151_v38, %v15512_v47  ;;  %v14579_v56 = vrot.slane %v7617_v2, 1  ;;  %v1524_v45 = vrot.slane %v1473_v0, 2  ;;  %v14584_v44 = vrot.slane %v7626_v60, 2 }
  0x33   : > { %15509 = vst [vmem:[#allocation31_spill] sm:$0xff] %v7632_v53  ;;  %v832_v50 = vadd.f32 %v781_v54, %v708_v32  ;;  %v7650_v54 = vrot.slane %v7406_v5, %v7412_v8  ;;  %v1648_v42 = vrot.slane %v1598_v37, 2  ;;  %v14583_v33 = vrot.slane %v7632_v53, 2 }
  0x34   : > { %v7657_v38 = vrot.slane %v7419_v10, %v7414_v9  ;;  %v1772_v47 = vrot.slane %v1722_v43, 2  ;;  %v7667_v63 = vmul.f32 %v7642_v39, %v7546_v52  ;;  %v7680_v48 = vrot.slane %v7470_v24, %v7421_v11 }
  0x35   : > { %15513 = vst [vmem:[#allocation34_spill] sm:$0xff] %v7650_v54  ;;  %v956_v32 = vadd.f32 %v905_v62, %v832_v50  ;;  %v1846_v50 = vmul.f32 %v7642_v39, %v7488_v30  ;;  %v15515_v62 = vrot.slane %v7607_v58, 1  ;;  %v1970_v37 = vmul.f32 %v7650_v54, %v7491_v31 }
  0x36   : > { %15514 = vst [vmem:[#allocation35_spill] sm:$0xff] %v7657_v38  ;;  %15516 = vst [vmem:[#allocation36_spill] sm:$0xff] %v7667_v63  ;;  %v15521_v2 = vrot.slane %v7638_v61, 2  ;;  %v7709_v53 = vrot.slane %v7401_v4, %v7425_v13  ;;  %v15529_v60 = vrot.slane %v7667_v63, 2 }
  0x37   : > { %v1080_v55 = vadd.f32 %v1029_v59, %v956_v32  ;;  %v1277_v0 = vsel %vm649_vm0, %v1275_v34, %v15515_v62  ;;  %v7673_v59 = vmul.f32 %v7650_v54, %v7552_v57  ;;  %v1401_v32 = vsel %vm649_vm0, %v1399_v26, %v14579_v56  ;;  %15518 = vst [vmem:[#allocation38_spill] sm:$0xff] %v7680_v48 }
  0x38   : > { %v7684_v34 = vrot.slane %v7390_v1, %v7423_v12  ;;  %v1526_v62 = vsel %vm1518_vm1, %v1524_v45, %v14584_v44  ;;  %v7696_v26 = vrot.slane %v7396_v3, %v7458_v21  ;;  %v1774_v58 = vsel %vm1518_vm1, %v1772_v47, %v15521_v2  ;;  %15523 = vst [vmem:[#allocation42_spill] sm:$0xff] %v7709_v53 }
  0x39   : > { %15517 = vst [vmem:[#allocation37_spill] sm:$0xff] %v7673_v59  ;;  %v1204_v43 = vadd.f32 %v1153_v36, %v1080_v55  ;;  %v1650_v36 = vsel %vm1518_vm1, %v1648_v42, %v14583_v33  ;;  %v2094_v55 = vmul.f32 %v7657_v38, %v7516_v41  ;;  %v1896_v25 = vrot.slane %v1846_v50, 2 }
  0x3a   : > { %15519 = vst [vmem:[#allocation39_spill] sm:$0xff] %v7684_v34  ;;  %15520 = vst [vmem:[#allocation40_spill] sm:$0xff] %v7696_v26  ;;  %v7703_v45 = vmul.f32 %v7657_v38, %v7591_v49  ;;  %v2020_v33 = vrot.slane %v1970_v37, 2  ;;  %v7715_v2 = vmul.f32 %v7680_v48, %v7600_v51  ;;  %v2342_v47 = vmul.f32 %v7684_v34, %v7453_v19 }
  0x3b   : > { %v1328_v56 = vadd.f32 %v1277_v0, %v1204_v43  ;;  %v2218_v43 = vmul.f32 %v7680_v48, %v7535_v46  ;;  %v2144_v50 = vrot.slane %v2094_v55, 2  ;;  %v7721_v37 = vmul.f32 %v7684_v34, %v7485_v29 }
  0x3c   : > { %15522 = vst [vmem:[#allocation41_spill] sm:$0xff] %v7703_v45  ;;  %15524 = vst [vmem:[#allocation43_spill] sm:$0xff] %v7715_v2  ;;  %v2467_v44 = vmul.f32 %v7696_v26, %v7456_v20  ;;  %v2591_v42 = vmul.f32 %v7709_v53, %v7465_v23  ;;  %v7733_v61 = vmul.f32 %v7709_v53, %v7513_v40  ;;  %v15530_v48 = vrot.slane %v7673_v59, 2 }
  0x3d   : > { %v1452_v0 = vadd.f32 %v1401_v32, %v1328_v56  ;;  %15525 = vst [vmem:[#allocation44_spill] sm:$0xff] %v7721_v37  ;;  %v7727_v56 = vmul.f32 %v7696_v26, %v7502_v35  ;;  %v7737_v55 = vrot.slane %v7406_v5, %v7408_v6  ;;  %v1898_v34 = vsel %vm1518_vm1, %v1896_v25, %v15529_v60 }
  0x3e   : > { %15527 = vst [vmem:[#allocation46_spill] sm:$0xff] %v7733_v61  ;;  %v2022_v26 = vsel %vm1518_vm1, %v2020_v33, %v15530_v48  ;;  %v2268_v38 = vrot.slane %v2218_v43, 2  ;;  %v14605_v54 = vrot.slane %v7715_v2, 2  ;;  %v2393_v39 = vrot.slane %v2342_v47, 3 }
  0x3f   : > { %15526 = vst [vmem:[#allocation45_spill] sm:$0xff] %v7727_v56  ;;  %v1577_v32 = vadd.f32 %v1526_v62, %v1452_v0  ;;  %15528 = vst [vmem:[#allocation47_spill] sm:$0xff] %v7737_v55  ;;  %v7748_v0 = vrot.slane %v7406_v5, %v7410_v7  ;;  %v14610_v28 = vrot.slane %v7721_v37, 3  ;;  %v2517_v63 = vrot.slane %v2467_v44, 3 }
  0x40   : > { %v14609_v25 = vrot.slane %v7727_v56, 3  ;;  %v7755_v60 = vrot.slane %v7419_v10, %v7412_v8  ;;  %v2641_v48 = vrot.slane %v2591_v42, 3  ;;  %v15533_v43 = vrot.slane %v7703_v45, 2 }
  0x41   : > { %15531 = vst [vmem:[#allocation48_spill] sm:$0xff] %v7748_v0  ;;  %v1701_v53 = vadd.f32 %v1650_v36, %v1577_v32  ;;  %v2715_v36 = vmul.f32 %v7737_v55, %v7488_v30  ;;  %v7765_v44 = vmul.f32 %v7737_v55, %v7546_v52  ;;  %v2839_v32 = vmul.f32 %v7748_v0, %v7491_v31 }
  0x42   : > { %15532 = vst [vmem:[#allocation49_spill] sm:$0xff] %v7755_v60  ;;  %v2146_v47 = vsel %vm1518_vm1, %v2144_v50, %v15533_v43  ;;  %v2270_v42 = vsel %vm1518_vm1, %v2268_v38, %v14605_v54  ;;  %v7778_v62 = vrot.slane %v7470_v24, %v7414_v9  ;;  %v7782_v50 = vrot.slane %v7390_v1, %v7421_v11 }
  0x43   : > { %v1825_v33 = vadd.f32 %v1774_v58, %v1701_v53  ;;  %15534 = vst [vmem:[#allocation50_spill] sm:$0xff] %v7765_v44  ;;  %v7771_v58 = vmul.f32 %v7748_v0, %v7552_v57  ;;  %v2395_v43 = vsel %vm2387_vm2, %v2393_v39, %v14610_v28  ;;  %v7794_v38 = vrot.slane %v7396_v3, %v7423_v12 }
  0x44   : > { %15536 = vst [vmem:[#allocation52_spill] sm:$0xff] %v7778_v62  ;;  %15537 = vst [vmem:[#allocation53_spill] sm:$0xff] %v7782_v50  ;;  %v15539_v2 = vrot.slane %v7733_v61, 3  ;;  %v2765_v59 = vrot.slane %v2715_v36, 3  ;;  %v7801_v39 = vmul.f32 %v7755_v60, %v7591_v49  ;;  %v7807_v56 = vrot.slane %v7401_v4, %v7458_v21 }
  0x45   : > { %15535 = vst [vmem:[#allocation51_spill] sm:$0xff] %v7771_v58  ;;  %v1949_v53 = vadd.f32 %v1898_v34, %v1825_v33  ;;  %v2519_v34 = vsel %vm2387_vm2, %v2517_v63, %v14609_v25  ;;  %v2963_v33 = vmul.f32 %v7755_v60, %v7516_v41  ;;  %15538 = vst [vmem:[#allocation54_spill] sm:$0xff] %v7794_v38  ;;  %v2889_v25 = vrot.slane %v2839_v32, 3 }
  0x46   : > { %v2643_v45 = vsel %vm2387_vm2, %v2641_v48, %v15539_v2  ;;  %15540 = vst [vmem:[#allocation55_spill] sm:$0xff] %v7801_v39  ;;  %15541 = vst [vmem:[#allocation56_spill] sm:$0xff] %v7807_v56  ;;  %v7813_v2 = vmul.f32 %v7778_v62, %v7600_v51  ;;  %v3211_v48 = vmul.f32 %v7782_v50, %v7453_v19  ;;  %v15547_v37 = vrot.slane %v7765_v44, 3 }
  0x47   : > { %v2073_v54 = vadd.f32 %v2022_v26, %v1949_v53  ;;  %v3087_v53 = vmul.f32 %v7778_v62, %v7535_v46  ;;  %v3013_v36 = vrot.slane %v2963_v33, 3  ;;  %v7819_v32 = vmul.f32 %v7782_v50, %v7485_v29 }
  0x48   : > { %15542 = vst [vmem:[#allocation57_spill] sm:$0xff] %v7813_v2  ;;  %v3336_v28 = vmul.f32 %v7794_v38, %v7456_v20  ;;  %v3460_v63 = vmul.f32 %v7807_v56, %v7465_v23  ;;  %v7831_v61 = vmul.f32 %v7807_v56, %v7513_v40  ;;  %v7835_v33 = vrot.slane %v7406_v5, %v7425_v13 }
  0x49   : > { %v2197_v26 = vadd.f32 %v2146_v47, %v2073_v54  ;;  %15543 = vst [vmem:[#allocation58_spill] sm:$0xff] %v7819_v32  ;;  %v7825_v54 = vmul.f32 %v7794_v38, %v7502_v35  ;;  %v2767_v50 = vsel %vm2387_vm2, %v2765_v59, %v15547_v37  ;;  %v15548_v62 = vrot.slane %v7771_v58, 3 }
  0x4a   : > { %15545 = vst [vmem:[#allocation60_spill] sm:$0xff] %v7831_v61  ;;  %15546 = vst [vmem:[#allocation61_spill] sm:$0xff] %v7835_v33  ;;  %v3137_v60 = vrot.slane %v3087_v53, 3  ;;  %v14631_v0 = vrot.slane %v7813_v2, 3  ;;  %v3262_v55 = vrot.slane %v3211_v48, 4  ;;  %v14636_v22 = vrot.slane %v7819_v32, 4 }
  0x4b   : > { %15544 = vst [vmem:[#allocation59_spill] sm:$0xff] %v7825_v54  ;;  %v2321_v47 = vadd.f32 %v2270_v42, %v2197_v26  ;;  %v2891_v38 = vsel %vm2387_vm2, %v2889_v25, %v15548_v62  ;;  %v7846_v26 = vrot.slane %v7419_v10, %v7408_v6  ;;  %v3386_v44 = vrot.slane %v3336_v28, 4 }
  0x4c   : > { %v14635_v59 = vrot.slane %v7825_v54, 4  ;;  %v7853_v37 = vrot.slane %v7419_v10, %v7410_v7  ;;  %v3510_v25 = vrot.slane %v3460_v63, 4  ;;  %v15551_v53 = vrot.slane %v7801_v39, 3 }
  0x4d   : > { %15549 = vst [vmem:[#allocation62_spill] sm:$0xff] %v7846_v26  ;;  %v2446_v56 = vadd.f32 %v2395_v43, %v2321_v47  ;;  %v3584_v43 = vmul.f32 %v7835_v33, %v7488_v30  ;;  %v7863_v28 = vmul.f32 %v7835_v33, %v7546_v52  ;;  %v3708_v47 = vmul.f32 %v7846_v26, %v7491_v31 }
  0x4e   : > { %15550 = vst [vmem:[#allocation63_spill] sm:$0xff] %v7853_v37  ;;  %v3015_v48 = vsel %vm2387_vm2, %v3013_v36, %v15551_v53  ;;  %v3139_v63 = vsel %vm2387_vm2, %v3137_v60, %v14631_v0  ;;  %v7876_v42 = vrot.slane %v7470_v24, %v7412_v8  ;;  %v7880_v36 = vrot.slane %v7390_v1, %v7414_v9 }
  0x4f   : > { %v2570_v62 = vadd.f32 %v2519_v34, %v2446_v56  ;;  %15552 = vst [vmem:[#allocation64_spill] sm:$0xff] %v7863_v28  ;;  %v7869_v56 = vmul.f32 %v7846_v26, %v7552_v57  ;;  %v3264_v53 = vsel %vm3256_vm3, %v3262_v55, %v14636_v22  ;;  %v7892_v60 = vrot.slane %v7396_v3, %v7421_v11 }
  0x50   : > { %15554 = vst [vmem:[#allocation66_spill] sm:$0xff] %v7876_v42  ;;  %15555 = vst [vmem:[#allocation67_spill] sm:$0xff] %v7880_v36  ;;  %v15557_v2 = vrot.slane %v7831_v61, 4  ;;  %v3634_v58 = vrot.slane %v3584_v43, 4  ;;  %v7899_v55 = vmul.f32 %v7853_v37, %v7591_v49  ;;  %v7905_v54 = vrot.slane %v7401_v4, %v7423_v12 }
  0x51   : > { %15553 = vst [vmem:[#allocation65_spill] sm:$0xff] %v7869_v56  ;;  %v2694_v34 = vadd.f32 %v2643_v45, %v2570_v62  ;;  %v3388_v45 = vsel %vm3256_vm3, %v3386_v44, %v14635_v59  ;;  %v3832_v62 = vmul.f32 %v7853_v37, %v7516_v41  ;;  %15556 = vst [vmem:[#allocation68_spill] sm:$0xff] %v7892_v60  ;;  %v3758_v59 = vrot.slane %v3708_v47, 4 }
  0x52   : > { %v3512_v39 = vsel %vm3256_vm3, %v3510_v25, %v15557_v2  ;;  %15558 = vst [vmem:[#allocation69_spill] sm:$0xff] %v7899_v55  ;;  %15559 = vst [vmem:[#allocation70_spill] sm:$0xff] %v7905_v54  ;;  %v7911_v2 = vmul.f32 %v7876_v42, %v7600_v51  ;;  %v4080_v25 = vmul.f32 %v7880_v36, %v7453_v19  ;;  %v15565_v32 = vrot.slane %v7863_v28, 4 }
  0x53   : > { %v2818_v0 = vadd.f32 %v2767_v50, %v2694_v34  ;;  %v3956_v34 = vmul.f32 %v7876_v42, %v7535_v46  ;;  %v3882_v43 = vrot.slane %v3832_v62, 4  ;;  %v7917_v47 = vmul.f32 %v7880_v36, %v7485_v29 }
  0x54   : > { %15560 = vst [vmem:[#allocation71_spill] sm:$0xff] %v7911_v2  ;;  %v4205_v22 = vmul.f32 %v7892_v60, %v7456_v20  ;;  %v4329_v44 = vmul.f32 %v7905_v54, %v7465_v23  ;;  %v7929_v61 = vmul.f32 %v7905_v54, %v7513_v40  ;;  %v7933_v62 = vrot.slane %v7406_v5, %v7458_v21 }
  0x55   : > { %v2942_v50 = vadd.f32 %v2891_v38, %v2818_v0  ;;  %15561 = vst [vmem:[#allocation72_spill] sm:$0xff] %v7917_v47  ;;  %v7923_v0 = vmul.f32 %v7892_v60, %v7502_v35  ;;  %v3636_v36 = vsel %vm3256_vm3, %v3634_v58, %v15565_v32  ;;  %v15566_v42 = vrot.slane %v7869_v56, 4 }
  0x56   : > { %15563 = vst [vmem:[#allocation74_spill] sm:$0xff] %v7929_v61  ;;  %15564 = vst [vmem:[#allocation75_spill] sm:$0xff] %v7933_v62  ;;  %v4006_v37 = vrot.slane %v3956_v34, 4  ;;  %v14660_v26 = vrot.slane %v7911_v2, 4  ;;  %v4131_v33 = vrot.slane %v4080_v25, 5  ;;  %v14657_v27 = vrot.slane %v7917_v47, 5 }
  0x57   : > { %15562 = vst [vmem:[#allocation73_spill] sm:$0xff] %v7923_v0  ;;  %v3066_v38 = vadd.f32 %v3015_v48, %v2942_v50  ;;  %v3760_v60 = vsel %vm3256_vm3, %v3758_v59, %v15566_v42  ;;  %v7944_v50 = vrot.slane %v7419_v10, %v7425_v13  ;;  %v4255_v28 = vrot.slane %v4205_v22, 5 }
  0x58   : > { %v14659_v58 = vrot.slane %v7923_v0, 5  ;;  %v7951_v32 = vrot.slane %v7470_v24, %v7408_v6  ;;  %v4379_v59 = vrot.slane %v4329_v44, 5  ;;  %v14658_v48 = vrot.slane %v7929_v61, 5 }
  0x59   : > { %15567 = vst [vmem:[#allocation76_spill] sm:$0xff] %v7944_v50  ;;  %v3190_v54 = vadd.f32 %v3139_v63, %v3066_v38  ;;  %v4453_v63 = vmul.f32 %v7933_v62, %v7488_v30  ;;  %v15569_v34 = vrot.slane %v7899_v55, 4  ;;  %v7961_v22 = vmul.f32 %v7933_v62, %v7546_v52 }
  0x5a   : > { %15568 = vst [vmem:[#allocation77_spill] sm:$0xff] %v7951_v32  ;;  %v4577_v38 = vmul.f32 %v7944_v50, %v7491_v31  ;;  %v7967_v6 = vmul.f32 %v7944_v50, %v7552_v57  ;;  %v7975_v44 = vrot.slane %v7390_v1, %v7412_v8  ;;  %v4701_v1 = vmul.f32 %v7951_v32, %v7516_v41 }
  0x5b   : > { %v3315_v42 = vadd.f32 %v3264_v53, %v3190_v54  ;;  %v3884_v25 = vsel %vm3256_vm3, %v3882_v43, %v15569_v34  ;;  %15570 = vst [vmem:[#allocation78_spill] sm:$0xff] %v7961_v22  ;;  %v7971_v53 = vrot.slane %v7470_v24, %v7410_v7  ;;  %v7979_v43 = vrot.slane %v7396_v3, %v7414_v9 }
  0x5c   : > { %15571 = vst [vmem:[#allocation79_spill] sm:$0xff] %v7967_v6  ;;  %15573 = vst [vmem:[#allocation81_spill] sm:$0xff] %v7975_v44  ;;  %v4008_v34 = vsel %vm3256_vm3, %v4006_v37, %v14660_v26  ;;  %v4257_v7 = vsel %vm4125_vm4, %v4255_v28, %v14659_v58  ;;  %v4381_v3 = vsel %vm4125_vm4, %v4379_v59, %v14658_v48  ;;  %v4503_v9 = vrot.slane %v4453_v63, 5 }
  0x5d   : > { %v3439_v54 = vadd.f32 %v3388_v45, %v3315_v42  ;;  %15572 = vst [vmem:[#allocation80_spill] sm:$0xff] %v7971_v53  ;;  %15574 = vst [vmem:[#allocation82_spill] sm:$0xff] %v7979_v43  ;;  %v4133_v45 = vsel %vm4125_vm4, %v4131_v33, %v14657_v27  ;;  %v7997_v37 = vmul.f32 %v7951_v32, %v7591_v49  ;;  %v14665_v33 = vrot.slane %v7961_v22, 5 }
  0x5e   : > { %v4627_v42 = vrot.slane %v4577_v38, 5  ;;  %v8003_v28 = vrot.slane %v7401_v4, %v7421_v11  ;;  %v8009_v59 = vmul.f32 %v7971_v53, %v7600_v51  ;;  %v4949_v63 = vmul.f32 %v7975_v44, %v7453_v19 }
  0x5f   : > { %v3563_v8 = vadd.f32 %v3512_v39, %v3439_v54  ;;  %15575 = vst [vmem:[#allocation83_spill] sm:$0xff] %v7997_v37  ;;  %v4825_v54 = vmul.f32 %v7971_v53, %v7535_v46  ;;  %v4751_v48 = vrot.slane %v4701_v1, 5  ;;  %v8015_v38 = vmul.f32 %v7975_v44, %v7485_v29 }
  0x60   : > { %15576 = vst [vmem:[#allocation84_spill] sm:$0xff] %v8003_v28  ;;  %15577 = vst [vmem:[#allocation85_spill] sm:$0xff] %v8009_v59  ;;  %v5074_v4 = vmul.f32 %v7979_v43, %v7456_v20  ;;  %v8021_v11 = vmul.f32 %v7979_v43, %v7502_v35  ;;  %v8027_v58 = vmul.f32 %v8003_v28, %v7513_v40  ;;  %v14666_v27 = vrot.slane %v7997_v37, 5 }
  0x61   : > { %v3687_v39 = vadd.f32 %v3636_v36, %v3563_v8  ;;  %15578 = vst [vmem:[#allocation86_spill] sm:$0xff] %v8015_v38  ;;  %v5198_v8 = vmul.f32 %v8003_v28, %v7465_v23  ;;  %v8031_v1 = vrot.slane %v7406_v5, %v7423_v12  ;;  %v4505_v26 = vsel %vm4125_vm4, %v4503_v9, %v14665_v33 }
  0x62   : > { %15579 = vst [vmem:[#allocation87_spill] sm:$0xff] %v8021_v11  ;;  %15580 = vst [vmem:[#allocation88_spill] sm:$0xff] %v8027_v58  ;;  %v4875_v0 = vrot.slane %v4825_v54, 5  ;;  %v14669_v47 = vrot.slane %v8009_v59, 5  ;;  %v5000_v5 = vrot.slane %v4949_v63, 6  ;;  %v5124_v22 = vrot.slane %v5074_v4, 6 }
  0x63   : > { %v3811_v36 = vadd.f32 %v3760_v60, %v3687_v39  ;;  %15581 = vst [vmem:[#allocation89_spill] sm:$0xff] %v8031_v1  ;;  %v8039_v60 = vrot.slane %v7419_v10, %v7458_v21  ;;  %v8043_v39 = vrot.slane %v7470_v24, %v7425_v13  ;;  %v5322_v9 = vmul.f32 %v8031_v1, %v7488_v30  ;;  %v8054_v10 = vld [vmem:[%s7442_s10] sm:$0xff] }
  0x64   : > { %v8051_v33 = vmul.f32 %v8031_v1, %v7546_v52  ;;  %v5248_v24 = vrot.slane %v5198_v8, 6  ;;  %v15585_v54 = vrot.slane %v7967_v6, 5  ;;  %v15590_v37 = vrot.slane %v8021_v11, 6 }
  0x65   : > { %15582 = vst [vmem:[#allocation90_spill] sm:$0xff] %v8039_v60  ;;  %15583 = vst [vmem:[#allocation91_spill] sm:$0xff] %v8043_v39  ;;  %v3935_v61 = vadd.f32 %v3884_v25, %v3811_v36  ;;  %v5446_v4 = vmul.f32 %v8039_v60, %v7491_v31  ;;  %v8065_v36 = vmul.f32 %v8039_v60, %v7552_v57  ;;  %v15588_v25 = vrot.slane %v8015_v38, 6 }
  0x66   : > { %15584 = vst [vmem:[#allocation92_spill] sm:$0xff] %v8051_v33  ;;  %v4629_v63 = vsel %vm4125_vm4, %v4627_v42, %v15585_v54  ;;  %v5570_v12 = vmul.f32 %v8043_v39, %v7516_v41  ;;  %v8074_v8 = vmul.f32 %v8043_v39, %v7591_v49  ;;  %v349_v42 = vmul.f32 %v7432_v14, %v8054_v10 }
  0x67   : > { %v4059_v21 = vadd.f32 %v4008_v34, %v3935_v61  ;;  %15586 = vst [vmem:[#allocation93_spill] sm:$0xff] %v8065_v36  ;;  %v4753_v34 = vsel %vm4125_vm4, %v4751_v48, %v14666_v27  ;;  %v4877_v54 = vsel %vm4125_vm4, %v4875_v0, %v14669_v47  ;;  %v5002_v13 = vsel %vm4994_vm5, %v5000_v5, %v15588_v25  ;;  %v8088_v48 = vld [vmem:[%s14545_s1 + $0x30] ss:$0 sm:$0xff] }
  0x68   : > { %15587 = vst [vmem:[#allocation94_spill] sm:$0xff] %v8074_v8  ;;  %15589 = vst [vmem:[#allocation95_spill] sm:$0xff] %v8088_v48  ;;  %v5126_v59 = vsel %vm4994_vm5, %v5124_v22, %v15590_v37  ;;  %v15591_v0 = vrot.slane %v8027_v58, 6  ;;  %v385_v5 = vmul.f32 %v7436_v15, %v7453_v19  ;;  %v14676_v25 = vrot.slane %v8065_v36, 6  ;;  %v15600_v36 = vld [vmem:[#allocation14_spill] sm:$0xff] }
  0x69   : > { %v4184_v61 = vadd.f32 %v4133_v45, %v4059_v21  ;;  %v5372_v45 = vrot.slane %v5322_v9, 6  ;;  %v5496_v9 = vrot.slane %v5446_v4, 6  ;;  %v5620_v21 = vrot.slane %v5570_v12, 6 }
  0x6a   : > { %v8096_v47 = vsel %vm4994_vm5, %v5248_v24, %v15591_v0  ;;  %v421_v38 = vmul.f32 %v7440_v16, %v7456_v20  ;;  %v401_v11 = vadd.f32 %v385_v5, %v349_v42  ;;  %v457_v22 = vmul.f32 %v7446_v17, %v7465_v23  ;;  %v8118_v0 = vld [vmem:[%s7442_s10 + $0x8] sm:$0xff]  ;;  %v15594_v5 = vld [vmem:[#allocation12_spill] sm:$0xff] }
  0x6b   : > { %v4308_v27 = vadd.f32 %v4257_v7, %v4184_v61  ;;  %v15592_v37 = vrot.slane %v8051_v33, 6  ;;  %v8111_v4 = vmul.f32 %v8088_v48, %v7535_v46  ;;  %v8115_v12 = vmul.f32 %v8088_v48, %v7600_v51  ;;  %v15596_v51 = vld [vmem:[#allocation11_spill] sm:$0xff] }
  0x6c   : > { %v437_v42 = vadd.f32 %v421_v38, %v401_v11  ;;  %v493_v61 = vmul.f32 %v15594_v5, %v7488_v30  ;;  %v5498_v46 = vsel %vm4994_vm5, %v5496_v9, %v14676_v25  ;;  %v8135_v33 = vmul.f32 %v15596_v51, %v7485_v29 }
  0x6d   : > { %v4432_v7 = vadd.f32 %v4381_v3, %v4308_v27  ;;  %v5374_v24 = vsel %vm4994_vm5, %v5372_v45, %v15592_v37  ;;  %15593 = vst [vmem:[#allocation96_spill] sm:$0xff] %v8115_v12  ;;  %v601_v27 = vmul.f32 %v7450_v18, %v8054_v10  ;;  %v8126_v45 = vmul.f32 %v7450_v18, %v8118_v0 }
  0x6e   : > { %v726_v37 = vmul.f32 %v15596_v51, %v7453_v19  ;;  %15597 = vst [vmem:[#allocation98_spill] sm:$0xff] %v8135_v33  ;;  %v473_v6 = vadd.f32 %v457_v22, %v437_v42  ;;  %v529_v9 = vmul.f32 %v15600_v36, %v7491_v31  ;;  %v5744_v25 = vrot.slane %v8111_v4, 6 }
  0x6f   : > { %v4556_v3 = vadd.f32 %v4505_v26, %v4432_v7  ;;  %15595 = vst [vmem:[#allocation97_spill] sm:$0xff] %v8126_v45  ;;  %v15598_v26 = vld [vmem:[#allocation13_spill] sm:$0xff]  ;;  %v15599_v7 = vrot.slane %v8074_v8, 6  ;;  %v650_v2 = vrot.slane %v601_v27, 1 }
  0x70   : > { %v850_v38 = vmul.f32 %v15598_v26, %v7456_v20  ;;  %v8150_v56 = vmul.f32 %v15598_v26, %v7502_v35  ;;  %v774_v42 = vrot.slane %v726_v37, 1  ;;  %v15606_v37 = vrot.slane %v8126_v45, 1  ;;  %v15609_v45 = vld [vmem:[#allocation23_spill] sm:$0xff] }
  0x71   : > { %v4680_v11 = vadd.f32 %v4629_v63, %v4556_v3  ;;  %v8142_v58 = vsel %vm4994_vm5, %v5620_v21, %v15599_v7  ;;  %v509_v63 = vadd.f32 %v493_v61, %v473_v6  ;;  %v15602_v3 = vld [vmem:[#allocation16_spill] sm:$0xff]  ;;  %v15603_v21 = vld [vmem:[#allocation18_spill] sm:$0xff]  ;;  %v15605_v6 = vld [vmem:[#allocation19_spill] sm:$0xff]  ;;  %v386_v26 = vmul.f32 %v7436_v15, %v7485_v29 }
  0x72   : > { %15601 = vst [vmem:[#allocation99_spill] sm:$0xff] %v8150_v56  ;;  %v565_v8 = vmul.f32 %v15602_v3, %v7516_v41  ;;  %v974_v22 = vmul.f32 %v15603_v21, %v7465_v23  ;;  %v898_v36 = vrot.slane %v850_v38, 1  ;;  %v8159_v4 = vmul.f32 %v15603_v21, %v7513_v40 }
  0x73   : > { %v4804_v51 = vadd.f32 %v4753_v34, %v4680_v11  ;;  %v545_v55 = vadd.f32 %v529_v9, %v509_v63  ;;  %v1098_v34 = vmul.f32 %v15605_v6, %v7488_v30  ;;  %v350_v11 = vmul.f32 %v7432_v14, %v8118_v0  ;;  %v15612_v63 = vld [vmem:[#allocation24_spill] sm:$0xff] }
  0x74   : > { %15604 = vst [vmem:[#allocation100_spill] sm:$0xff] %v8159_v4  ;;  %v652_v38 = vsel %vm649_vm0, %v650_v2, %v15606_v37  ;;  %v8172_v7 = vmul.f32 %v15605_v6, %v7546_v52  ;;  %v1022_v9 = vrot.slane %v974_v22, 1  ;;  %v15608_v61 = vrot.slane %v8135_v33, 1 }
  0x75   : > { %v4928_v27 = vadd.f32 %v4877_v54, %v4804_v51  ;;  %v581_v51 = vadd.f32 %v565_v8, %v545_v55  ;;  %v1222_v3 = vmul.f32 %v15609_v45, %v7491_v31  ;;  %v8184_v2 = vmul.f32 %v15609_v45, %v7552_v57 }
  0x76   : > { %15607 = vst [vmem:[#allocation101_spill] sm:$0xff] %v8172_v7  ;;  %v776_v21 = vsel %vm649_vm0, %v774_v42, %v15608_v61  ;;  %v15611_v55 = vrot.slane %v8150_v56, 1  ;;  %v1146_v22 = vrot.slane %v1098_v34, 1  ;;  %v1346_v33 = vmul.f32 %v15612_v63, %v7516_v41  ;;  %v15614_v61 = vld [vmem:[#allocation25_spill] sm:$0xff] }
  0x77   : > { %v5053_v54 = vadd.f32 %v5002_v13, %v4928_v27  ;;  %15610 = vst [vmem:[#allocation102_spill] sm:$0xff] %v8184_v2  ;;  %v706_v13 = vadd.f32 %v652_v38, %v581_v51  ;;  %v8194_v42 = vmul.f32 %v15612_v63, %v7591_v49  ;;  %v1470_v45 = vmul.f32 %v15614_v61, %v8054_v10  ;;  %v15617_v27 = vld [vmem:[#allocation26_spill] sm:$0xff] }
  0x78   : > { %v900_v8 = vsel %vm649_vm0, %v898_v36, %v15611_v55  ;;  %v8204_v34 = vmul.f32 %v15614_v61, %v8118_v0  ;;  %v1270_v51 = vrot.slane %v1222_v3, 1  ;;  %v1595_v56 = vmul.f32 %v15617_v27, %v7453_v19 }
  0x79   : > { %v5177_v37 = vadd.f32 %v5126_v59, %v5053_v54  ;;  %15613 = vst [vmem:[#allocation103_spill] sm:$0xff] %v8194_v42  ;;  %v830_v38 = vadd.f32 %v776_v21, %v706_v13  ;;  %v15615_v54 = vrot.slane %v8159_v4, 1  ;;  %v8211_v63 = vmul.f32 %v15617_v27, %v7485_v29 }
  0x7a   : > { %15616 = vst [vmem:[#allocation104_spill] sm:$0xff] %v8204_v34  ;;  %v15619_v21 = vrot.slane %v8115_v12, 6  ;;  %v15620_v3 = vrot.slane %v8172_v7, 1  ;;  %v1394_v55 = vrot.slane %v1346_v33, 1  ;;  %v14694_v4 = vrot.slane %v8194_v42, 1 }
  0x7b   : > { %v5301_v59 = vadd.f32 %v8096_v47, %v5177_v37  ;;  %v1024_v36 = vsel %vm649_vm0, %v1022_v9, %v15615_v54  ;;  %15618 = vst [vmem:[#allocation105_spill] sm:$0xff] %v8211_v63  ;;  %v422_v37 = vmul.f32 %v7440_v16, %v7502_v35  ;;  %v954_v13 = vadd.f32 %v900_v8, %v830_v38 }
  0x7c   : > { %v5746_v9 = vsel %vm4994_vm5, %v5744_v25, %v15619_v21  ;;  %v1148_v54 = vsel %vm649_vm0, %v1146_v22, %v15620_v3  ;;  %v1519_v61 = vrot.slane %v1470_v45, 2  ;;  %v15622_v25 = vrot.slane %v8184_v2, 1  ;;  %v15624_v22 = vld [vmem:[#allocation33_spill] sm:$0xff] }
  0x7d   : > { %v5425_v47 = vadd.f32 %v5374_v24, %v5301_v59  ;;  %v1078_v27 = vadd.f32 %v1024_v36, %v954_v13  ;;  %v14697_v24 = vrot.slane %v8204_v34, 2  ;;  %v15621_v59 = vld [vmem:[#allocation28_spill] sm:$0xff]  ;;  %v1643_v8 = vrot.slane %v1595_v56, 2  ;;  %v8243_v56 = vld [vmem:[%s14546_s2] ss:$0 sm:$0xff] }
  0x7e   : > { %v1719_v12 = vmul.f32 %v15621_v59, %v7456_v20  ;;  %v1272_v21 = vsel %vm649_vm0, %v1270_v51, %v15622_v25  ;;  %v8231_v33 = vmul.f32 %v15621_v59, %v7502_v35  ;;  %v1843_v36 = vmul.f32 %v15624_v22, %v7465_v23  ;;  %15626 = vst [vmem:[#allocation108_spill] sm:$0xff] %v8243_v56  ;;  %v15638_v34 = vld [vmem:[#allocation40_spill] sm:$0xff] }
  0x7f   : > { %v5549_v6 = vadd.f32 %v5498_v46, %v5425_v47  ;;  %v1202_v46 = vadd.f32 %v1148_v54, %v1078_v27  ;;  %v8238_v47 = vmul.f32 %v15624_v22, %v7513_v40  ;;  %v402_v51 = vadd.f32 %v386_v26, %v350_v11 }
  0x80   : > { %15623 = vst [vmem:[#allocation106_spill] sm:$0xff] %v8231_v33  ;;  %v1396_v13 = vsel %vm649_vm0, %v1394_v55, %v14694_v4  ;;  %v1521_v25 = vsel %vm1518_vm1, %v1519_v61, %v14697_v24  ;;  %v1767_v38 = vrot.slane %v1719_v12, 2  ;;  %v15629_v26 = vrot.slane %v8211_v63, 2  ;;  %v15630_v4 = vld [vmem:[#allocation35_spill] sm:$0xff] }
  0x81   : > { %v5673_v45 = vadd.f32 %v8142_v58, %v5549_v6  ;;  %15625 = vst [vmem:[#allocation107_spill] sm:$0xff] %v8238_v47  ;;  %v15627_v58 = vld [vmem:[#allocation34_spill] sm:$0xff]  ;;  %v1326_v54 = vadd.f32 %v1272_v21, %v1202_v46  ;;  %v2091_v42 = vmul.f32 %v15630_v4, %v7491_v31  ;;  %v8265_v2 = vmul.f32 %v15630_v4, %v7552_v57 }
  0x82   : > { %v1967_v6 = vmul.f32 %v15627_v58, %v7488_v30  ;;  %v8252_v27 = vmul.f32 %v15627_v58, %v7546_v52  ;;  %v1645_v11 = vsel %vm1518_vm1, %v1643_v8, %v15629_v26  ;;  %v15633_v8 = vld [vmem:[#allocation38_spill] sm:$0xff]  ;;  %v2464_v7 = vmul.f32 %v15638_v34, %v7453_v19 }
  0x83   : > { %v5797_v3 = vadd.f32 %v5746_v9, %v5673_v45  ;;  %15631 = vst [vmem:[#allocation110_spill] sm:$0xff] %v8265_v2  ;;  %v1450_v21 = vadd.f32 %v1396_v13, %v1326_v54  ;;  %v1891_v45 = vrot.slane %v1843_v36, 2  ;;  %v2215_v26 = vmul.f32 %v15633_v8, %v7516_v41 }
  0x84   : > { %15628 = vst [vmem:[#allocation109_spill] sm:$0xff] %v8252_v27  ;;  %v2015_v61 = vrot.slane %v1967_v6, 2  ;;  %v8276_v24 = vmul.f32 %v15633_v8, %v7591_v49  ;;  %v15637_v6 = vrot.slane %v8231_v33, 2  ;;  %v2139_v46 = vrot.slane %v2091_v42, 2 }
  0x85   : > { %v8268_v9 = vadd.f32 %v8243_v56, %v5797_v3  ;;  %v1575_v63 = vadd.f32 %v1521_v25, %v1450_v21  ;;  %v15635_v3 = vld [vmem:[#allocation39_spill] sm:$0xff]  ;;  %v458_v25 = vmul.f32 %v7446_v17, %v7513_v40  ;;  %v438_v56 = vadd.f32 %v422_v37, %v402_v51  ;;  %v15643_v51 = vld [vmem:[#allocation42_spill] sm:$0xff] }
  0x86   : > { %15634 = vst [vmem:[#allocation112_spill] sm:$0xff] %v8276_v24  ;;  %v2339_v13 = vmul.f32 %v15635_v3, %v8054_v10  ;;  %v8284_v36 = vmul.f32 %v15635_v3, %v8118_v0  ;;  %v1769_v54 = vsel %vm1518_vm1, %v1767_v38, %v15637_v6  ;;  %v15641_v42 = vrot.slane %v8252_v27, 2 }
  0x87   : > { %15632 = vst [vmem:[#allocation111_spill] sm:$0xff] %v8268_v9  ;;  %v5841_v55 = vsel %vm5834_vm6, %v8268_v9, 0.0  ;;  %v1699_v21 = vadd.f32 %v1645_v11, %v1575_v63  ;;  %v8296_v9 = vmul.f32 %v15638_v34, %v7485_v29  ;;  %v2263_v6 = vrot.slane %v2215_v26, 2 }
  0x88   : > { %15636 = vst [vmem:[#allocation113_spill] sm:$0xff] %v8284_v36  ;;  %5842 = vadd.xlane.f32.xlu1 %v5841_v55  ;;  %v15640_v55 = vrot.slane %v8238_v47, 2  ;;  %v2017_v38 = vsel %vm1518_vm1, %v2015_v61, %v15641_v42  ;;  %v14716_v3 = vrot.slane %v8276_v24, 2  ;;  %v2388_v8 = vrot.slane %v2339_v13, 3  ;;  %v15649_v42 = vld [vmem:[#allocation49_spill] sm:$0xff] }
  0x89   : > { %15639 = vst [vmem:[#allocation114_spill] sm:$0xff] %v8296_v9  ;;  %v1823_v12 = vadd.f32 %v1769_v54, %v1699_v21  ;;  %v15642_v11 = vrot.slane %v8265_v2, 2  ;;  %v2512_v37 = vrot.slane %v2464_v7, 3  ;;  %v2588_v47 = vmul.f32 %v15643_v51, %v7456_v20  ;;  %v15645_v54 = vld [vmem:[#allocation47_spill] sm:$0xff] }
  0x8a   : > { %v1893_v33 = vsel %vm1518_vm1, %v1891_v45, %v15640_v55  ;;  %v8313_v45 = vmul.f32 %v15643_v51, %v7502_v35  ;;  %v2712_v13 = vmul.f32 %v15645_v54, %v7465_v23  ;;  %v8320_v21 = vmul.f32 %v15645_v54, %v7513_v40  ;;  %v15653_v51 = vld [vmem:[#allocation52_spill] sm:$0xff] }
  0x8b   : > { %v2141_v34 = vsel %vm1518_vm1, %v2139_v46, %v15642_v11  ;;  %v1947_v61 = vadd.f32 %v1893_v33, %v1823_v12  ;;  %v15647_v46 = vld [vmem:[#allocation48_spill] sm:$0xff]  ;;  %v2960_v11 = vmul.f32 %v15649_v42, %v7491_v31  ;;  %v8332_v33 = vmul.f32 %v15649_v42, %v7552_v57 }
  0x8c   : > { %15644 = vst [vmem:[#allocation115_spill] sm:$0xff] %v8313_v45  ;;  %15646 = vst [vmem:[#allocation116_spill] sm:$0xff] %v8320_v21  ;;  %v2836_v7 = vmul.f32 %v15647_v46, %v7488_v30  ;;  %v8326_v55 = vmul.f32 %v15647_v46, %v7546_v52  ;;  %v8334_v12 = vadd.f32 %v458_v25, %v438_v56  ;;  %v15652_v2 = vrot.slane %v8284_v36, 3  ;;  %v15656_v36 = vld [vmem:[#allocation53_spill] sm:$0xff] }
  0x8d   : > { %15650 = vst [vmem:[#allocation118_spill] sm:$0xff] %v8332_v33  ;;  %v2071_v26 = vadd.f32 %v2017_v38, %v1947_v61  ;;  %v2265_v63 = vsel %vm1518_vm1, %v2263_v6, %v14716_v3  ;;  %v2636_v46 = vrot.slane %v2588_v47, 3  ;;  %v3084_v4 = vmul.f32 %v15653_v51, %v7516_v41 }
  0x8e   : > { %15648 = vst [vmem:[#allocation117_spill] sm:$0xff] %v8326_v55  ;;  %15651 = vst [vmem:[#allocation119_spill] sm:$0xff] %v8334_v12  ;;  %v2390_v27 = vsel %vm2387_vm2, %v2388_v8, %v15652_v2  ;;  %v8347_v42 = vmul.f32 %v15653_v51, %v7591_v49  ;;  %v15655_v25 = vrot.slane %v8296_v9, 3  ;;  %v2760_v6 = vrot.slane %v2712_v13, 3  ;;  %v15661_v8 = vld [vmem:[#allocation56_spill] sm:$0xff] }
  0x8f   : > { %v2195_v56 = vadd.f32 %v2141_v34, %v2071_v26  ;;  %v2884_v3 = vrot.slane %v2836_v7, 3  ;;  %v3008_v47 = vrot.slane %v2960_v11, 3  ;;  %v3208_v24 = vmul.f32 %v15656_v36, %v8054_v10  ;;  %v15658_v26 = vld [vmem:[#allocation54_spill] sm:$0xff] }
  0x90   : > { %15654 = vst [vmem:[#allocation120_spill] sm:$0xff] %v8347_v42  ;;  %v2514_v38 = vsel %vm2387_vm2, %v2512_v37, %v15655_v25  ;;  %v8359_v34 = vmul.f32 %v15656_v36, %v8118_v0  ;;  %v3333_v37 = vmul.f32 %v15658_v26, %v7453_v19  ;;  %v15659_v13 = vrot.slane %v8313_v45, 3  ;;  %v15663_v19 = vld [vmem:[#allocation61_spill] sm:$0xff] }
  0x91   : > { %v2319_v54 = vadd.f32 %v2265_v63, %v2195_v56  ;;  %v3132_v25 = vrot.slane %v3084_v4, 3  ;;  %v8369_v63 = vmul.f32 %v15658_v26, %v7485_v29  ;;  %v3457_v2 = vmul.f32 %v15661_v8, %v7456_v20  ;;  %v7046_v26 = vld [vmem:[%s7442_s10 + $0x90] sm:$0xff] }
  0x92   : > { %15657 = vst [vmem:[#allocation121_spill] sm:$0xff] %v8359_v34  ;;  %v2638_v7 = vsel %vm2387_vm2, %v2636_v46, %v15659_v13  ;;  %v8375_v61 = vmul.f32 %v15661_v8, %v7502_v35  ;;  %v3581_v45 = vmul.f32 %v15663_v19, %v7465_v23  ;;  %v15664_v46 = vrot.slane %v8320_v21, 3 }
  0x93   : > { %15660 = vst [vmem:[#allocation122_spill] sm:$0xff] %v8369_v63  ;;  %v2444_v56 = vadd.f32 %v2390_v27, %v2319_v54  ;;  %v15665_v13 = vrot.slane %v8326_v55, 3  ;;  %v15666_v27 = vrot.slane %v8332_v33, 3  ;;  %v8390_v20 = vmul.f32 %v15663_v19, %v7513_v40 }
  0x94   : > { %15662 = vst [vmem:[#allocation123_spill] sm:$0xff] %v8375_v61  ;;  %v2762_v4 = vsel %vm2387_vm2, %v2760_v6, %v15664_v46  ;;  %v3257_v11 = vrot.slane %v3208_v24, 4  ;;  %v3381_v9 = vrot.slane %v3333_v37, 4  ;;  %v15668_v21 = vrot.slane %v8347_v42, 3 }
  0x95   : > { %v2886_v29 = vsel %vm2387_vm2, %v2884_v3, %v15665_v13  ;;  %v3010_v54 = vsel %vm2387_vm2, %v3008_v47, %v15666_v27  ;;  %15667 = vst [vmem:[#allocation124_spill] sm:$0xff] %v8390_v20  ;;  %v2568_v35 = vadd.f32 %v2514_v38, %v2444_v56  ;;  %v15669_v3 = vld [vmem:[#allocation62_spill] sm:$0xff]  ;;  %v3505_v38 = vrot.slane %v3457_v2, 4  ;;  %v15671_v27 = vld [vmem:[#allocation63_spill] sm:$0xff] }
  0x96   : > { %v3134_v6 = vsel %vm2387_vm2, %v3132_v25, %v15668_v21  ;;  %v3705_v13 = vmul.f32 %v15669_v3, %v7488_v30  ;;  %v8401_v47 = vmul.f32 %v15669_v3, %v7546_v52  ;;  %v3629_v56 = vrot.slane %v3581_v45, 4  ;;  %v15673_v30 = vld [vmem:[#allocation66_spill] sm:$0xff]  ;;  %v15675_v45 = vld [vmem:[#allocation67_spill] sm:$0xff] }
  0x97   : > { %v2692_v40 = vadd.f32 %v2638_v7, %v2568_v35  ;;  %v3829_v21 = vmul.f32 %v15671_v27, %v7491_v31  ;;  %v8409_v25 = vmul.f32 %v15671_v27, %v7552_v57  ;;  %v3953_v46 = vmul.f32 %v15673_v30, %v7516_v41  ;;  %v7038_v41 = vld [vmem:[%s7442_s10 + $0x18] sm:$0xff] }
  0x98   : > { %15670 = vst [vmem:[#allocation125_spill] sm:$0xff] %v8401_v47  ;;  %v8415_v2 = vmul.f32 %v15673_v30, %v7591_v49  ;;  %v4077_v7 = vmul.f32 %v15675_v45, %v8054_v10  ;;  %v8421_v35 = vmul.f32 %v15675_v45, %v8118_v0  ;;  %v15677_v31 = vrot.slane %v8359_v34, 4  ;;  %v8436_v34 = vld [vmem:[%s7442_s10 + $0x20] sm:$0xff] }
  0x99   : > { %15672 = vst [vmem:[#allocation126_spill] sm:$0xff] %v8409_v25  ;;  %v2816_v23 = vadd.f32 %v2762_v4, %v2692_v40  ;;  %v3753_v24 = vrot.slane %v3705_v13, 4  ;;  %v15678_v4 = vld [vmem:[#allocation68_spill] sm:$0xff]  ;;  %v15679_v55 = vrot.slane %v8369_v63, 4  ;;  %v15680_v30 = vrot.slane %v8375_v61, 4 }
  0x9a   : > { %15674 = vst [vmem:[#allocation127_spill] sm:$0xff] %v8415_v2  ;;  %15676 = vst [vmem:[#allocation128_spill] sm:$0xff] %v8421_v35  ;;  %v3259_v37 = vsel %vm3256_vm3, %v3257_v11, %v15677_v31  ;;  %v4202_v40 = vmul.f32 %v7038_v41, %v15678_v4  ;;  %v8440_v11 = vmul.f32 %v8436_v34, %v15678_v4  ;;  %v15682_v13 = vrot.slane %v8390_v20, 4  ;;  %v8454_v4 = vld [vmem:[%s7442_s10 + $0x38] sm:$0xff] }
  0x9b   : > { %v2940_v33 = vadd.f32 %v2886_v29, %v2816_v23  ;;  %v3383_v12 = vsel %vm3256_vm3, %v3381_v9, %v15679_v55  ;;  %v3507_v45 = vsel %vm3256_vm3, %v3505_v38, %v15680_v30  ;;  %v3877_v29 = vrot.slane %v3829_v21, 4  ;;  %15685 = vst [vmem:[#allocation130_spill] sm:$0xff] %v8454_v4  ;;  %v8464_v38 = vld [vmem:[%s7442_s10 + $0x50] sm:$0xff] }
  0x9c   : > { %15681 = vst [vmem:[#allocation129_spill] sm:$0xff] %v8440_v11  ;;  %v3631_v31 = vsel %vm3256_vm3, %v3629_v56, %v15682_v13  ;;  %v4001_v9 = vrot.slane %v3953_v46, 4  ;;  %v4126_v30 = vrot.slane %v4077_v7, 5  ;;  %v15683_v61 = vrot.slane %v8401_v47, 4  ;;  %v7040_v56 = vld [vmem:[%s7442_s10 + $0x30] sm:$0xff]  ;;  %v15684_v13 = vld [vmem:[#allocation70_spill] sm:$0xff] }
  0x9d   : > { %v3064_v55 = vadd.f32 %v3010_v54, %v2940_v33  ;;  %v4250_v63 = vrot.slane %v4202_v40, 5  ;;  %v4326_v21 = vmul.f32 %v7040_v56, %v15684_v13  ;;  %v8458_v33 = vmul.f32 %v8454_v4, %v15684_v13  ;;  %v7042_v7 = vld [vmem:[%s7442_s10 + $0x48] sm:$0xff]  ;;  %15687 = vst [vmem:[#allocation132_spill] sm:$0xff] %v8464_v38 }
  0x9e   : > { %v3755_v20 = vsel %vm3256_vm3, %v3753_v24, %v15683_v61  ;;  %v4450_v42 = vmul.f32 %v7042_v7, %v7933_v62  ;;  %v8468_v61 = vmul.f32 %v8464_v38, %v7933_v62  ;;  %v7044_v24 = vld [vmem:[%s7442_s10 + $0x60] sm:$0xff]  ;;  %v8474_v23 = vmul.f32 %v7944_v50, %v7546_v52 }
  0x9f   : > { %15686 = vst [vmem:[#allocation131_spill] sm:$0xff] %v8458_v33  ;;  %v3188_v54 = vadd.f32 %v3134_v6, %v3064_v55  ;;  %v4574_v40 = vmul.f32 %v7044_v24, %v7944_v50  ;;  %v7045_v6 = vld [vmem:[%s7442_s10 + $0x78] sm:$0xff]  ;;  %v8480_v46 = vmul.f32 %v7951_v32, %v7552_v57  ;;  %v15691_v13 = vrot.slane %v8409_v25, 4 }
  0xa0   : > { %15688 = vst [vmem:[#allocation133_spill] sm:$0xff] %v8468_v61  ;;  %15689 = vst [vmem:[#allocation134_spill] sm:$0xff] %v8474_v23  ;;  %v4698_v55 = vmul.f32 %v7045_v6, %v7951_v32  ;;  %v15692_v27 = vrot.slane %v8415_v2, 4  ;;  %v15693_v19 = vrot.slane %v8421_v35, 5  ;;  %v4374_v50 = vrot.slane %v4326_v21, 5 }
  0xa1   : > { %15690 = vst [vmem:[#allocation135_spill] sm:$0xff] %v8480_v46  ;;  %v3313_v47 = vadd.f32 %v3259_v37, %v3188_v54  ;;  %v3879_v62 = vsel %vm3256_vm3, %v3877_v29, %v15691_v13  ;;  %v4822_v57 = vmul.f32 %v7046_v26, %v7971_v53  ;;  %v8496_v37 = vmul.f32 %v7971_v53, %v7591_v49 }
  0xa2   : > { %v4003_v3 = vsel %vm3256_vm3, %v4001_v9, %v15692_v27  ;;  %v4128_v52 = vsel %vm4125_vm4, %v4126_v30, %v15693_v19  ;;  %v15695_v29 = vrot.slane %v8440_v11, 5  ;;  %v4498_v27 = vrot.slane %v4450_v42, 5  ;;  %v15721_v11 = vld [vmem:[#allocation24_spill] sm:$0xff] }
  0xa3   : > { %15694 = vst [vmem:[#allocation136_spill] sm:$0xff] %v8496_v37  ;;  %v3437_v54 = vadd.f32 %v3383_v12, %v3313_v47  ;;  %v14748_v9 = vrot.slane %v8468_v61, 5  ;;  %v4622_v35 = vrot.slane %v4574_v40, 5  ;;  %v14747_v19 = vrot.slane %v8474_v23, 5  ;;  %v15717_v23 = vld [vmem:[#allocation18_spill] sm:$0xff] }
  0xa4   : > { %v4252_v13 = vsel %vm4125_vm4, %v4250_v63, %v15695_v29  ;;  %v4746_v30 = vrot.slane %v4698_v55, 5  ;;  %v14745_v21 = vrot.slane %v8480_v46, 5  ;;  %v4946_v2 = vmul.f32 %v7975_v44, %v8054_v10 }
  0xa5   : > { %v3561_v8 = vadd.f32 %v3507_v45, %v3437_v54  ;;  %v8508_v49 = vmul.f32 %v7975_v44, %v8118_v0  ;;  %v5071_v12 = vmul.f32 %v7038_v41, %v7979_v43  ;;  %v15697_v42 = vrot.slane %v8458_v33, 5 }
  0xa6   : > { %v4870_v47 = vrot.slane %v4822_v57, 5  ;;  %v14746_v40 = vrot.slane %v8496_v37, 5  ;;  %v8517_v55 = vmul.f32 %v8436_v34, %v7979_v43  ;;  %v8522_v10 = vsel %vm4125_vm4, %v4498_v27, %v14748_v9  ;;  %v15716_v37 = vld [vmem:[#allocation16_spill] sm:$0xff] }
  0xa7   : > { %15696 = vst [vmem:[#allocation137_spill] sm:$0xff] %v8508_v49  ;;  %v4376_v63 = vsel %vm4125_vm4, %v4374_v50, %v15697_v42  ;;  %v3685_v45 = vadd.f32 %v3631_v31, %v3561_v8  ;;  %v5195_v0 = vmul.f32 %v7040_v56, %v8003_v28  ;;  %v8527_v41 = vmul.f32 %v8454_v4, %v8003_v28  ;;  %v8553_v42 = vld [vmem:[%s7442_s10 + $0x68] sm:$0xff] }
  0xa8   : > { %15698 = vst [vmem:[#allocation138_spill] sm:$0xff] %v8517_v55  ;;  %v8532_v50 = vsel %vm4125_vm4, %v4622_v35, %v14747_v19  ;;  %v8537_v8 = vsel %vm4125_vm4, %v4746_v30, %v14745_v21  ;;  %v5319_v31 = vmul.f32 %v7042_v7, %v8031_v1  ;;  %v8542_v57 = vmul.f32 %v8464_v38, %v8031_v1  ;;  %v8564_v19 = vld [vmem:[%s7442_s10 + $0x28] sm:$0x3f] }
  0xa9   : > { %15699 = vst [vmem:[#allocation139_spill] sm:$0xff] %v8527_v41  ;;  %v3809_v56 = vadd.f32 %v3755_v20, %v3685_v45  ;;  %v4995_v54 = vrot.slane %v4946_v2, 6  ;;  %v14749_v29 = vrot.slane %v8508_v49, 6  ;;  %v5119_v27 = vrot.slane %v5071_v12, 6  ;;  %15701 = vst [vmem:[#allocation141_spill] sm:$0xff] %v8553_v42 }
  0xaa   : > { %15700 = vst [vmem:[#allocation140_spill] sm:$0xff] %v8542_v57  ;;  %v8548_v35 = vsel %vm4125_vm4, %v4870_v47, %v14746_v40  ;;  %v5443_v7 = vmul.f32 %v7044_v24, %v8039_v60  ;;  %v8557_v21 = vmul.f32 %v8553_v42, %v8039_v60  ;;  %v5243_v2 = vrot.slane %v5195_v0, 6  ;;  %v8577_v0 = vld [vmem:[%s7442_s10 + $0x80] sm:$0xff]  ;;  %v8639_v49 = vld [vmem:[%s7442_s10 + $0xb8] sm:$0x3f] }
  0xab   : > { %v3933_v20 = vadd.f32 %v3879_v62, %v3809_v56  ;;  %v352_v47 = vmul.f32 %v8436_v34, %v7432_v14  ;;  %v5367_v45 = vrot.slane %v5319_v31, 6  ;;  %v388_v24 = vmul.f32 %v8454_v4, %v7436_v15  ;;  %15703 = vst [vmem:[#allocation143_spill] sm:$0xff] %v8577_v0  ;;  %v8585_v12 = vld [vmem:[%s7442_s10 + $0x40] sm:$0x3f]  ;;  %15713 = vst [vmem:[#allocation147_spill] sm:$0xff] %v8639_v49  ;;  %v8644_v14 = vld [vmem:[%s7442_s10 + $0xb0] sm:$0xff] }
  0xac   : > { %15702 = vst [vmem:[#allocation142_spill] sm:$0xff] %v8557_v21  ;;  %v424_v9 = vmul.f32 %v8464_v38, %v7440_v16  ;;  %v8573_v62 = vsel %vm4994_vm5, %v4995_v54, %v14749_v29  ;;  %v5567_v34 = vmul.f32 %v7045_v6, %v8043_v39  ;;  %v8581_v31 = vmul.f32 %v8577_v0, %v8043_v39 }
  0xad   : > { %v4057_v30 = vadd.f32 %v4003_v3, %v3933_v20  ;;  %v5491_v56 = vrot.slane %v5443_v7, 6  ;;  %v404_v3 = vadd.f32 %v388_v24, %v352_v47  ;;  %v460_v54 = vmul.f32 %v8553_v42, %v7446_v17  ;;  %15715 = vst [vmem:[#allocation148_spill] sm:$0xff] %v8644_v14 }
  0xae   : > { %15704 = vst [vmem:[#allocation144_spill] sm:$0xff] %v8581_v31  ;;  %v15705_v6 = vrot.slane %v8517_v55, 6  ;;  %v5691_v16 = vmul.f32 %v7046_v26, %v8088_v48  ;;  %v606_v7 = vmul.f32 %v7450_v18, %v8564_v19  ;;  %v15706_v40 = vrot.slane %v8527_v41, 6  ;;  %v8614_v41 = vld [vmem:[%s7442_s10 + $0x70] sm:$0x3f]  ;;  %v15712_v55 = vld [vmem:[#allocation14_spill] sm:$0xff] }
  0xaf   : > { %v4182_v20 = vadd.f32 %v4128_v52, %v4057_v30  ;;  %v15707_v24 = vrot.slane %v8542_v57, 6  ;;  %v8608_v30 = vld [vmem:[%s7442_s10 + $0x58] sm:$0x3f]  ;;  %v496_v26 = vmul.f32 %v8577_v0, %v15594_v5  ;;  %v5615_v17 = vrot.slane %v5567_v34, 6  ;;  %v8634_v34 = vld [vmem:[%s7442_s10 + $0xa0] sm:$0x3f] }
  0xb0   : > { %v8592_v29 = vsel %vm4994_vm5, %v5119_v27, %v15705_v6  ;;  %v8600_v47 = vsel %vm4994_vm5, %v5243_v2, %v15706_v40  ;;  %v440_v27 = vadd.f32 %v424_v9, %v404_v3  ;;  %v8617_v40 = vld [vmem:[%s7442_s10 + $0x88] sm:$0x3f]  ;;  %v8627_v3 = vld [vmem:[%s7442_s10 + $0x98] sm:$0xff]  ;;  %v5739_v15 = vrot.slane %v5691_v16, 6 }
  0xb1   : > { %v8605_v52 = vsel %vm4994_vm5, %v5367_v45, %v15707_v24  ;;  %v4306_v6 = vadd.f32 %v4252_v13, %v4182_v20  ;;  %v15708_v2 = vld [vmem:[#allocation11_spill] sm:$0xff]  ;;  %v15709_v24 = vrot.slane %v8557_v21, 6  ;;  %15710 = vst [vmem:[#allocation145_spill] sm:$0xff] %v8627_v3  ;;  %v8631_v13 = vmul.f32 %v8627_v3, %v8088_v48  ;;  %v15722_v48 = vld [vmem:[#allocation25_spill] sm:$0xff] }
  0xb2   : > { %v731_v45 = vmul.f32 %v15708_v2, %v8585_v12  ;;  %v476_v20 = vadd.f32 %v460_v54, %v440_v27  ;;  %v532_v57 = vmul.f32 %v8627_v3, %v15712_v55  ;;  %v658_v21 = vrot.slane %v606_v7, 1  ;;  %v15718_v27 = vld [vmem:[#allocation19_spill] sm:$0xff] }
  0xb3   : > { %v8624_v9 = vsel %vm4994_vm5, %v5491_v56, %v15709_v24  ;;  %15711 = vst [vmem:[#allocation146_spill] sm:$0xff] %v8631_v13  ;;  %v4430_v38 = vadd.f32 %v4376_v63, %v4306_v6  ;;  %v15714_v56 = vld [vmem:[#allocation13_spill] sm:$0xff]  ;;  %v568_v46 = vmul.f32 %v8644_v14, %v15716_v37  ;;  %v979_v54 = vmul.f32 %v15717_v23, %v8614_v41 }
  0xb4   : > { %v855_v24 = vmul.f32 %v15714_v56, %v8608_v30  ;;  %v512_v4 = vadd.f32 %v496_v26, %v476_v20  ;;  %v1103_v61 = vmul.f32 %v15718_v27, %v8617_v40  ;;  %v15719_v63 = vrot.slane %v8581_v31, 6  ;;  %v15720_v26 = vld [vmem:[#allocation23_spill] sm:$0xff] }
  0xb5   : > { %v4554_v16 = vadd.f32 %v8522_v10, %v4430_v38  ;;  %v782_v6 = vrot.slane %v731_v45, 1  ;;  %v1227_v20 = vmul.f32 %v15720_v26, %v8634_v34  ;;  %v1351_v25 = vmul.f32 %v15721_v11, %v8639_v49  ;;  %v15723_v10 = vld [vmem:[#allocation15_spill] sm:$0xff]  ;;  %v15725_v45 = vld [vmem:[#allocation26_spill] sm:$0xff]  ;;  %v15726_v11 = vld [vmem:[#allocation17_spill] sm:$0xff] }
  0xb6   : > { %v8656_v7 = vsel %vm4994_vm5, %v5615_v17, %v15719_v63  ;;  %v548_v14 = vadd.f32 %v532_v57, %v512_v4  ;;  %v1475_v39 = vmul.f32 %v15722_v48, %v8564_v19  ;;  %v15724_v31 = vrot.slane %v15723_v10, 1 }
  0xb7   : > { %v4678_v38 = vadd.f32 %v8532_v50, %v4554_v16  ;;  %v906_v63 = vrot.slane %v855_v24, 1  ;;  %v1600_v27 = vmul.f32 %v15725_v45, %v8585_v12  ;;  %v1030_v23 = vrot.slane %v979_v54, 1  ;;  %v15729_v54 = vld [vmem:[#allocation20_spill] sm:$0xff] }
  0xb8   : > { %v659_v17 = vsel %vm649_vm0, %v15724_v31, %v658_v21  ;;  %v584_v26 = vadd.f32 %v568_v46, %v548_v14  ;;  %v1154_v33 = vrot.slane %v1103_v61, 1  ;;  %v1724_v4 = vmul.f32 %v15621_v59, %v8608_v30 }
  0xb9   : > { %v4802_v57 = vadd.f32 %v8537_v8, %v4678_v38  ;;  %v15727_v48 = vrot.slane %v15726_v11, 1  ;;  %v1278_v16 = vrot.slane %v1227_v20, 1  ;;  %v1848_v21 = vmul.f32 %v15624_v22, %v8614_v41  ;;  %v15731_v38 = vld [vmem:[#allocation21_spill] sm:$0xff] }
  0xba   : > { %v709_v31 = vadd.f32 %v659_v17, %v584_v26  ;;  %v1402_v24 = vrot.slane %v1351_v25, 1  ;;  %v1527_v10 = vrot.slane %v1475_v39, 2  ;;  %v1972_v14 = vmul.f32 %v15627_v58, %v8617_v40  ;;  %v15733_v39 = vld [vmem:[#allocation22_spill] sm:$0xff] }
  0xbb   : > { %v783_v50 = vsel %vm649_vm0, %v15727_v48, %v782_v6  ;;  %v4926_v46 = vadd.f32 %v8548_v35, %v4802_v57  ;;  %v15728_v61 = vrot.slane %v8631_v13, 6  ;;  %v15730_v11 = vrot.slane %v15729_v54, 1  ;;  %v15735_v57 = vld [vmem:[#allocation27_spill] sm:$0xff] }
  0xbc   : > { %v1651_v6 = vrot.slane %v1600_v27, 2  ;;  %v833_v20 = vadd.f32 %v783_v50, %v709_v31  ;;  %v15732_v22 = vrot.slane %v15731_v38, 1  ;;  %v15734_v26 = vrot.slane %v15733_v39, 1  ;;  %v15738_v31 = vld [vmem:[#allocation29_spill] sm:$0xff] }
  0xbd   : > { %v5741_v8 = vsel %vm4994_vm5, %v5739_v15, %v15728_v61  ;;  %v907_v48 = vsel %vm649_vm0, %v15730_v11, %v906_v63  ;;  %v1775_v58 = vrot.slane %v1724_v4, 2  ;;  %v5051_v35 = vadd.f32 %v8573_v62, %v4926_v46  ;;  %v15737_v63 = vld [vmem:[#allocation35_spill] sm:$0xff] }
  0xbe   : > { %v1031_v25 = vsel %vm649_vm0, %v15732_v22, %v1030_v23  ;;  %v1155_v17 = vsel %vm649_vm0, %v15734_v26, %v1154_v33  ;;  %v15736_v13 = vrot.slane %v15735_v57, 1  ;;  %v1899_v61 = vrot.slane %v1848_v21, 2  ;;  %v15740_v23 = vld [vmem:[#allocation30_spill] sm:$0xff]  ;;  %v15742_v46 = vld [vmem:[#allocation31_spill] sm:$0xff]  ;;  %v15746_v26 = vld [vmem:[#allocation32_spill] sm:$0xff] }
  0xbf   : > { %v2096_v27 = vmul.f32 %v15737_v63, %v8634_v34  ;;  %v957_v50 = vadd.f32 %v907_v48, %v833_v20  ;;  %v15739_v54 = vrot.slane %v15738_v31, 1  ;;  %v15741_v11 = vrot.slane %v15740_v23, 2  ;;  %v15745_v48 = vld [vmem:[#allocation39_spill] sm:$0xff] }
  0xc0   : > { %v1279_v15 = vsel %vm649_vm0, %v15736_v13, %v1278_v16  ;;  %v2023_v4 = vrot.slane %v1972_v14, 2  ;;  %v5175_v62 = vadd.f32 %v8592_v29, %v5051_v35  ;;  %v15743_v38 = vrot.slane %v15742_v46, 2  ;;  %v15744_v16 = vld [vmem:[#allocation38_spill] sm:$0xff]  ;;  %v15752_v46 = vld [vmem:[#allocation47_spill] sm:$0xff] }
  0xc1   : > { %v1403_v22 = vsel %vm649_vm0, %v15739_v54, %v1402_v24  ;;  %v1528_v33 = vsel %vm1518_vm1, %v15741_v11, %v1527_v10  ;;  %v2220_v21 = vmul.f32 %v15744_v16, %v8639_v49  ;;  %v2344_v20 = vmul.f32 %v15745_v48, %v8564_v19  ;;  %v15748_v10 = vld [vmem:[#allocation40_spill] sm:$0xff]  ;;  %v15749_v29 = vld [vmem:[#allocation42_spill] sm:$0xff] }
  0xc2   : > { %v1652_v13 = vsel %vm1518_vm1, %v15743_v38, %v1651_v6  ;;  %v1081_v39 = vadd.f32 %v1031_v25, %v957_v50  ;;  %v15747_v24 = vrot.slane %v15746_v26, 2  ;;  %v2469_v14 = vmul.f32 %v15748_v10, %v8585_v12  ;;  %v15750_v6 = vld [vmem:[#allocation36_spill] sm:$0xff]  ;;  %v15753_v38 = vld [vmem:[#allocation37_spill] sm:$0xff] }
  0xc3   : > { %v2593_v35 = vmul.f32 %v15749_v29, %v8608_v30  ;;  %v5299_v31 = vadd.f32 %v8600_v47, %v5175_v62  ;;  %v15751_v54 = vrot.slane %v15750_v6, 2  ;;  %v2147_v11 = vrot.slane %v2096_v27, 2  ;;  %v15756_v29 = vld [vmem:[#allocation49_spill] sm:$0xff] }
  0xc4   : > { %v1776_v57 = vsel %vm1518_vm1, %v15747_v24, %v1775_v58  ;;  %v2717_v25 = vmul.f32 %v15752_v46, %v8614_v41  ;;  %v1205_v50 = vadd.f32 %v1155_v17, %v1081_v39  ;;  %v15754_v26 = vrot.slane %v15753_v38, 2  ;;  %v15755_v24 = vld [vmem:[#allocation48_spill] sm:$0xff]  ;;  %v15757_v38 = vld [vmem:[#allocation41_spill] sm:$0xff] }
  0xc5   : > { %v1900_v23 = vsel %vm1518_vm1, %v15751_v54, %v1899_v61  ;;  %v2841_v10 = vmul.f32 %v15755_v24, %v8617_v40  ;;  %v2965_v48 = vmul.f32 %v15756_v29, %v8634_v34  ;;  %v5423_v47 = vadd.f32 %v8605_v52, %v5299_v31  ;;  %v15759_v52 = vld [vmem:[#allocation54_spill] sm:$0xff] }
  0xc6   : > { %v2024_v58 = vsel %vm1518_vm1, %v15754_v26, %v2023_v4  ;;  %v2271_v62 = vrot.slane %v2220_v21, 2  ;;  %v2396_v6 = vrot.slane %v2344_v20, 3  ;;  %v3089_v61 = vmul.f32 %v15653_v51, %v8639_v49  ;;  %v15765_v51 = vld [vmem:[#allocation45_spill] sm:$0xff] }
  0xc7   : > { %v1329_v27 = vadd.f32 %v1279_v15, %v1205_v50  ;;  %v2520_v54 = vrot.slane %v2469_v14, 3  ;;  %v2644_v17 = vrot.slane %v2593_v35, 3  ;;  %v3213_v39 = vmul.f32 %v15656_v36, %v8564_v19  ;;  %v15760_v15 = vld [vmem:[#allocation56_spill] sm:$0xff]  ;;  %v15761_v50 = vld [vmem:[#allocation43_spill] sm:$0xff] }
  0xc8   : > { %v5547_v4 = vadd.f32 %v8624_v9, %v5423_v47  ;;  %v15758_v26 = vrot.slane %v15757_v38, 2  ;;  %v2768_v29 = vrot.slane %v2717_v25, 3  ;;  %v3338_v21 = vmul.f32 %v15759_v52, %v8585_v12  ;;  %v15763_v47 = vld [vmem:[#allocation44_spill] sm:$0xff] }
  0xc9   : > { %v1453_v20 = vadd.f32 %v1403_v22, %v1329_v27  ;;  %v2892_v31 = vrot.slane %v2841_v10, 3  ;;  %v3016_v46 = vrot.slane %v2965_v48, 3  ;;  %v3462_v14 = vmul.f32 %v15760_v15, %v8608_v30  ;;  %v15767_v48 = vld [vmem:[#allocation46_spill] sm:$0xff] }
  0xca   : > { %v2148_v24 = vsel %vm1518_vm1, %v15758_v26, %v2147_v11  ;;  %v5671_v35 = vadd.f32 %v8656_v7, %v5547_v4  ;;  %v15762_v36 = vrot.slane %v15761_v50, 2  ;;  %v15764_v38 = vrot.slane %v15763_v47, 3  ;;  %v15769_v50 = vld [vmem:[#allocation50_spill] sm:$0xff]  ;;  %v15774_v47 = vld [vmem:[#allocation55_spill] sm:$0xff] }
  0xcb   : > { %v3140_v25 = vrot.slane %v3089_v61, 3  ;;  %v1578_v26 = vadd.f32 %v1528_v33, %v1453_v20  ;;  %v15766_v52 = vrot.slane %v15765_v51, 3  ;;  %v15768_v10 = vrot.slane %v15767_v48, 3  ;;  %v15771_v33 = vld [vmem:[#allocation61_spill] sm:$0xff]  ;;  %v15772_v20 = vld [vmem:[#allocation51_spill] sm:$0xff] }
  0xcc   : > { %v2272_v9 = vsel %vm1518_vm1, %v15762_v36, %v2271_v62  ;;  %v2397_v11 = vsel %vm2387_vm2, %v15764_v38, %v2396_v6  ;;  %v3265_v7 = vrot.slane %v3213_v39, 4  ;;  %v5795_v4 = vadd.f32 %v5741_v8, %v5671_v35  ;;  %v15776_v35 = vld [vmem:[#allocation108_spill] sm:$0xff] }
  0xcd   : > { %v8757_v22 = vsel %vm2387_vm2, %v15766_v52, %v2520_v54  ;;  %v8762_v27 = vsel %vm2387_vm2, %v15768_v10, %v2644_v17  ;;  %v15770_v36 = vrot.slane %v15769_v50, 3  ;;  %v3389_v6 = vrot.slane %v3338_v21, 4 }
  0xce   : > { %v3586_v61 = vmul.f32 %v15771_v33, %v8614_v41  ;;  %v1702_v51 = vadd.f32 %v1652_v13, %v1578_v26  ;;  %v15773_v54 = vrot.slane %v15772_v20, 3  ;;  %v15775_v17 = vrot.slane %v15774_v47, 3  ;;  %v15780_v13 = vld [vmem:[#allocation62_spill] sm:$0xff] }
  0xcf   : > { %v8767_v62 = vsel %vm2387_vm2, %v15770_v36, %v2768_v29  ;;  %v3513_v8 = vrot.slane %v3462_v14, 4  ;;  %v8782_v38 = vadd.f32 %v15776_v35, %v5795_v4  ;;  %v15778_v29 = vld [vmem:[#allocation57_spill] sm:$0xff]  ;;  %v3710_v26 = vmul.f32 %v15780_v13, %v8617_v40  ;;  %v15782_v36 = vld [vmem:[#allocation58_spill] sm:$0xff]  ;;  %v15786_v35 = vld [vmem:[#allocation68_spill] sm:$0xff] }
  0xd0   : > { %v8774_v52 = vsel %vm2387_vm2, %v15773_v54, %v2892_v31  ;;  %v8779_v39 = vsel %vm2387_vm2, %v15775_v17, %v3016_v46  ;;  %v15779_v21 = vrot.slane %v15778_v29, 3  ;;  %v15781_v31 = vld [vmem:[#allocation63_spill] sm:$0xff]  ;;  %v1826_v50 = vadd.f32 %v1776_v57, %v1702_v51  ;;  %v15784_v14 = vld [vmem:[#allocation66_spill] sm:$0xff] }
  0xd1   : > { %15777 = vst [vmem:[#allocation15_spill] sm:$0xff] %v8782_v38  ;;  %v3834_v10 = vmul.f32 %v15781_v31, %v8634_v34  ;;  %v15783_v20 = vrot.slane %v15782_v36, 4  ;;  %v3958_v4 = vmul.f32 %v15784_v14, %v8639_v49  ;;  %v15785_v54 = vld [vmem:[#allocation67_spill] sm:$0xff]  ;;  %v3637_v17 = vrot.slane %v3586_v61, 4  ;;  %v15787_v57 = vld [vmem:[#allocation70_spill] sm:$0xff]  ;;  %v15791_v31 = vld [vmem:[#allocation76_spill] sm:$0xff] }
  0xd2   : > { %v8787_v48 = vsel %vm2387_vm2, %v15779_v21, %v3140_v25  ;;  %v4082_v47 = vmul.f32 %v15785_v54, %v8564_v19  ;;  %v5835_v25 = vsel %vm5834_vm6, %v8782_v38, 0.0  ;;  %v4207_v29 = vmul.f32 %v15786_v35, %v8585_v12  ;;  %v15790_v14 = vld [vmem:[#allocation75_spill] sm:$0xff] }
  0xd3   : > { %v8796_v46 = vsel %vm3256_vm3, %v15783_v20, %v3265_v7  ;;  %v4331_v51 = vmul.f32 %v15787_v57, %v8608_v30  ;;  %5836 = vadd.xlane.f32.xlu0 %v5835_v25  ;;  %v1950_v21 = vadd.f32 %v1900_v23, %v1826_v50  ;;  %v15788_v7 = vld [vmem:[#allocation59_spill] sm:$0xff]  ;;  %v4455_v54 = vmul.f32 %v15790_v14, %v8614_v41 }
  0xd4   : > { %v15789_v36 = vrot.slane %v15788_v7, 4  ;;  %v4579_v38 = vmul.f32 %v15791_v31, %v8617_v40  ;;  %v3761_v61 = vrot.slane %v3710_v26, 4  ;;  %v3885_v13 = vrot.slane %v3834_v10, 4  ;;  %v15794_v31 = vld [vmem:[#allocation64_spill] sm:$0xff] }
  0xd5   : > { %v4703_v35 = vmul.f32 %v7951_v32, %v8634_v34  ;;  %v4827_v25 = vmul.f32 %v7971_v53, %v8639_v49  ;;  %v2074_v23 = vadd.f32 %v2024_v58, %v1950_v21  ;;  %v4009_v50 = vrot.slane %v3958_v4, 4 }
  0xd6   : > { %v8811_v20 = vsel %vm3256_vm3, %v15789_v36, %v3389_v6  ;;  %v4134_v7 = vrot.slane %v4082_v47, 5  ;;  %v4951_v6 = vmul.f32 %v7975_v44, %v8564_v19  ;;  %v15792_v36 = vld [vmem:[#allocation60_spill] sm:$0xff]  ;;  %v15795_v26 = vrot.slane %v15794_v31, 4  ;;  %v15796_v47 = vld [vmem:[#allocation65_spill] sm:$0xff] }
  0xd7   : > { %v15793_v57 = vrot.slane %v15792_v36, 4  ;;  %v4258_v32 = vrot.slane %v4207_v29, 5  ;;  %v4382_v33 = vrot.slane %v4331_v51, 5  ;;  %v2198_v15 = vadd.f32 %v2148_v24, %v2074_v23  ;;  %v15800_v24 = vld [vmem:[#allocation71_spill] sm:$0xff]  ;;  %v15802_v23 = vld [vmem:[#allocation72_spill] sm:$0xff] }
  0xd8   : > { %v8831_v10 = vsel %vm3256_vm3, %v15795_v26, %v3637_v17  ;;  %v4506_v53 = vrot.slane %v4455_v54, 5  ;;  %v4630_v58 = vrot.slane %v4579_v38, 5  ;;  %v5076_v4 = vmul.f32 %v7979_v43, %v8585_v12 }
  0xd9   : > { %v8826_v14 = vsel %vm3256_vm3, %v15793_v57, %v3513_v8  ;;  %v15797_v21 = vrot.slane %v15796_v47, 4  ;;  %v15798_v8 = vld [vmem:[#allocation69_spill] sm:$0xff]  ;;  %v4754_v17 = vrot.slane %v4703_v35, 5  ;;  %v4878_v29 = vrot.slane %v4827_v25, 5 }
  0xda   : > { %v15799_v57 = vrot.slane %v15798_v8, 4  ;;  %v2322_v51 = vadd.f32 %v2272_v9, %v2198_v15  ;;  %v15801_v54 = vrot.slane %v15800_v24, 4  ;;  %v15803_v26 = vrot.slane %v15802_v23, 5  ;;  %v15810_v24 = vld [vmem:[#allocation79_spill] sm:$0xff] }
  0xdb   : > { %v8838_v36 = vsel %vm3256_vm3, %v15797_v21, %v3761_v61  ;;  %v5003_v61 = vrot.slane %v4951_v6, 6  ;;  %v15804_v21 = vld [vmem:[#allocation73_spill] sm:$0xff]  ;;  %v494_v9 = vmul.f32 %v8553_v42, %v15594_v5  ;;  %v530_v25 = vmul.f32 %v8577_v0, %v15712_v55  ;;  %v15821_v55 = vld [vmem:[#allocation87_spill] sm:$0xff] }
  0xdc   : > { %v8843_v31 = vsel %vm3256_vm3, %v15799_v57, %v3885_v13  ;;  %v8848_v38 = vsel %vm3256_vm3, %v15801_v54, %v4009_v50  ;;  %v8853_v47 = vsel %vm4125_vm4, %v15803_v26, %v4134_v7  ;;  %v15805_v8 = vrot.slane %v15804_v21, 5  ;;  %v15806_v13 = vld [vmem:[#allocation74_spill] sm:$0xff]  ;;  %v15812_v26 = vld [vmem:[#allocation83_spill] sm:$0xff] }
  0xdd   : > { %v15807_v35 = vrot.slane %v15806_v13, 5  ;;  %v2447_v50 = vadd.f32 %v2397_v11, %v2322_v51  ;;  %v15808_v7 = vld [vmem:[#allocation78_spill] sm:$0xff]  ;;  %v5127_v23 = vrot.slane %v5076_v4, 6  ;;  %v15813_v21 = vrot.slane %v15812_v26, 5  ;;  %v15814_v13 = vld [vmem:[#allocation85_spill] sm:$0xff]  ;;  %v15825_v5 = vld [vmem:[#allocation95_spill] sm:$0xff] }
  0xde   : > { %v8858_v43 = vsel %vm4125_vm4, %v15805_v8, %v4258_v32  ;;  %v15809_v57 = vrot.slane %v15808_v7, 5  ;;  %v15811_v32 = vrot.slane %v15810_v24, 5  ;;  %v15815_v11 = vrot.slane %v15814_v13, 5  ;;  %v15817_v4 = vld [vmem:[#allocation86_spill] sm:$0xff] }
  0xdf   : > { %v8863_v15 = vsel %vm4125_vm4, %v15807_v35, %v4382_v33  ;;  %v8880_v33 = vld [vmem:[%s7442_s10 + $0x10] sm:$0x3f]  ;;  %v8885_v8 = vsel %vm4125_vm4, %v15813_v21, %v4754_v17  ;;  %v566_v7 = vmul.f32 %v8627_v3, %v15716_v37  ;;  %v5200_v17 = vmul.f32 %v8003_v28, %v8608_v30  ;;  %v15819_v21 = vld [vmem:[#allocation18_spill] sm:$0xff]  ;;  %v15824_v3 = vld [vmem:[#allocation23_spill] sm:$0xff] }
  0xe0   : > { %v8872_v6 = vsel %vm4125_vm4, %v15809_v57, %v4506_v53  ;;  %v8877_v54 = vsel %vm4125_vm4, %v15811_v32, %v4630_v58  ;;  %v8890_v51 = vsel %vm4125_vm4, %v15815_v11, %v4878_v29  ;;  %v15816_v53 = vld [vmem:[#allocation119_spill] sm:$0xff]  ;;  %v2571_v58 = vadd.f32 %v8757_v22, %v2447_v50 }
  0xe1   : > { %v510_v35 = vadd.f32 %v494_v9, %v15816_v53  ;;  %v15818_v57 = vrot.slane %v15817_v4, 6  ;;  %v5324_v32 = vmul.f32 %v8031_v1, %v8614_v41  ;;  %v603_v9 = vmul.f32 %v7450_v18, %v8880_v33  ;;  %v15820_v11 = vld [vmem:[#allocation19_spill] sm:$0xff] }
  0xe2   : > { %v728_v26 = vmul.f32 %v15708_v2, %v8564_v19  ;;  %v852_v22 = vmul.f32 %v15714_v56, %v8585_v12  ;;  %v2695_v50 = vadd.f32 %v8762_v27, %v2571_v58  ;;  %v976_v13 = vmul.f32 %v15819_v21, %v8608_v30  ;;  %v15823_v27 = vld [vmem:[#allocation91_spill] sm:$0xff] }
  0xe3   : > { %v8899_v24 = vsel %vm4994_vm5, %v15818_v57, %v5003_v61  ;;  %v546_v29 = vadd.f32 %v530_v25, %v510_v35  ;;  %v5448_v61 = vmul.f32 %v8039_v60, %v8617_v40  ;;  %v1100_v25 = vmul.f32 %v15820_v11, %v8614_v41 }
  0xe4   : > { %v653_v35 = vrot.slane %v603_v9, 1  ;;  %v777_v4 = vrot.slane %v728_v26, 1  ;;  %v901_v57 = vrot.slane %v852_v22, 1  ;;  %v2819_v37 = vadd.f32 %v8767_v62, %v2695_v50  ;;  %v15828_v26 = vld [vmem:[#allocation98_spill] sm:$0xff] }
  0xe5   : > { %v582_v53 = vadd.f32 %v566_v7, %v546_v29  ;;  %v15822_v2 = vrot.slane %v15821_v55, 6  ;;  %v5572_v58 = vmul.f32 %v15823_v27, %v8634_v34  ;;  %v1224_v21 = vmul.f32 %v15824_v3, %v8617_v40  ;;  %v15826_v7 = vld [vmem:[#allocation97_spill] sm:$0xff]  ;;  %v15830_v27 = vld [vmem:[#allocation99_spill] sm:$0xff] }
  0xe6   : > { %v5696_v11 = vmul.f32 %v15825_v5, %v8639_v49  ;;  %v15827_v29 = vrot.slane %v15826_v7, 1  ;;  %v15829_v62 = vrot.slane %v15828_v26, 1  ;;  %v1025_v22 = vrot.slane %v976_v13, 1  ;;  %v15832_v7 = vld [vmem:[#allocation24_spill] sm:$0xff]  ;;  %v15833_v13 = vld [vmem:[#allocation25_spill] sm:$0xff] }
  0xe7   : > { %v8922_v56 = vsel %vm4994_vm5, %v15822_v2, %v5127_v23  ;;  %v2943_v2 = vadd.f32 %v8774_v52, %v2819_v37  ;;  %v5251_v23 = vrot.slane %v5200_v17, 6  ;;  %v5375_v50 = vrot.slane %v5324_v32, 6  ;;  %v15834_v37 = vld [vmem:[#allocation100_spill] sm:$0xff] }
  0xe8   : > { %v654_v9 = vsel %vm649_vm0, %v15827_v29, %v653_v35  ;;  %v778_v55 = vsel %vm649_vm0, %v15829_v62, %v777_v4  ;;  %v5499_v0 = vrot.slane %v5448_v61, 6  ;;  %v15831_v3 = vrot.slane %v15830_v27, 1  ;;  %v15836_v61 = vld [vmem:[#allocation33_spill] sm:$0xff]  ;;  %v15838_v27 = vld [vmem:[#allocation88_spill] sm:$0xff] }
  0xe9   : > { %v707_v18 = vadd.f32 %v654_v9, %v582_v53  ;;  %v1149_v5 = vrot.slane %v1100_v25, 1  ;;  %v1348_v49 = vmul.f32 %v15832_v7, %v8634_v34  ;;  %v3067_v35 = vadd.f32 %v8779_v39, %v2943_v2  ;;  %v15837_v53 = vld [vmem:[#allocation34_spill] sm:$0xff] }
  0xea   : > { %v902_v42 = vsel %vm649_vm0, %v15831_v3, %v901_v57  ;;  %v1273_v26 = vrot.slane %v1224_v21, 1  ;;  %v1472_v4 = vmul.f32 %v15833_v13, %v8880_v33  ;;  %v15835_v52 = vrot.slane %v15834_v37, 1 }
  0xeb   : > { %v831_v29 = vadd.f32 %v778_v55, %v707_v18  ;;  %v1597_v32 = vmul.f32 %v15725_v45, %v8564_v19  ;;  %v1721_v3 = vmul.f32 %v15621_v59, %v8585_v12  ;;  %v1845_v25 = vmul.f32 %v15836_v61, %v8608_v30 }
  0xec   : > { %v1026_v17 = vsel %vm649_vm0, %v15835_v52, %v1025_v22  ;;  %v3191_v39 = vadd.f32 %v8787_v48, %v3067_v35  ;;  %v5623_v18 = vrot.slane %v5572_v58, 6  ;;  %v1969_v57 = vmul.f32 %v15837_v53, %v8614_v41  ;;  %v15840_v22 = vld [vmem:[#allocation101_spill] sm:$0xff]  ;;  %v15842_v58 = vld [vmem:[#allocation102_spill] sm:$0xff] }
  0xed   : > { %v955_v21 = vadd.f32 %v902_v42, %v831_v29  ;;  %v15839_v9 = vrot.slane %v15838_v27, 6  ;;  %v5747_v55 = vrot.slane %v5696_v11, 6  ;;  %v15841_v2 = vrot.slane %v15840_v22, 1  ;;  %v15844_v22 = vld [vmem:[#allocation92_spill] sm:$0xff] }
  0xee   : > { %v1397_v52 = vrot.slane %v1348_v49, 1  ;;  %v3316_v61 = vadd.f32 %v8796_v46, %v3191_v39  ;;  %v1522_v48 = vrot.slane %v1472_v4, 2  ;;  %v2093_v42 = vmul.f32 %v15737_v63, %v8617_v40  ;;  %v15846_v4 = vld [vmem:[#allocation93_spill] sm:$0xff] }
  0xef   : > { %v8960_v62 = vsel %vm4994_vm5, %v15839_v9, %v5251_v23  ;;  %v1150_v37 = vsel %vm649_vm0, %v15841_v2, %v1149_v5  ;;  %v1079_v59 = vadd.f32 %v1026_v17, %v955_v21  ;;  %v15843_v35 = vrot.slane %v15842_v58, 1  ;;  %v15848_v21 = vld [vmem:[#allocation94_spill] sm:$0xff] }
  0xf0   : > { %v1646_v27 = vrot.slane %v1597_v32, 2  ;;  %v1770_v23 = vrot.slane %v1721_v3, 2  ;;  %v1894_v9 = vrot.slane %v1845_v25, 2  ;;  %v3440_v11 = vadd.f32 %v8811_v20, %v3316_v61  ;;  %v15850_v32 = vld [vmem:[#allocation96_spill] sm:$0xff]  ;;  %v15852_v61 = vld [vmem:[#allocation103_spill] sm:$0xff] }
  0xf1   : > { %v1274_v29 = vsel %vm649_vm0, %v15843_v35, %v1273_v26  ;;  %v15845_v53 = vrot.slane %v15844_v22, 6  ;;  %v1203_v46 = vadd.f32 %v1150_v37, %v1079_v59  ;;  %v2018_v5 = vrot.slane %v1969_v57, 2  ;;  %v15854_v57 = vld [vmem:[#allocation104_spill] sm:$0xff]  ;;  %v15856_v35 = vld [vmem:[#allocation105_spill] sm:$0xff] }
  0xf2   : > { %v15847_v17 = vrot.slane %v15846_v4, 6  ;;  %v15849_v2 = vrot.slane %v15848_v21, 6  ;;  %v15851_v3 = vrot.slane %v15850_v32, 6  ;;  %v3564_v25 = vadd.f32 %v8826_v14, %v3440_v11  ;;  %v15858_v4 = vld [vmem:[#allocation106_spill] sm:$0xff]  ;;  %v15860_v21 = vld [vmem:[#allocation107_spill] sm:$0xff] }
  0xf3   : > { %v8975_v49 = vsel %vm4994_vm5, %v15845_v53, %v5375_v50  ;;  %v15853_v50 = vrot.slane %v15852_v61, 1  ;;  %v1327_v53 = vadd.f32 %v1274_v29, %v1203_v46  ;;  %v2142_v58 = vrot.slane %v2093_v42, 2  ;;  %v15866_v61 = vld [vmem:[#allocation42_spill] sm:$0xff] }
  0xf4   : > { %v8980_v39 = vsel %vm4994_vm5, %v15847_v17, %v5499_v0  ;;  %v8985_v26 = vsel %vm4994_vm5, %v15849_v2, %v5623_v18  ;;  %v8990_v20 = vsel %vm4994_vm5, %v15851_v3, %v5747_v55  ;;  %v15855_v0 = vrot.slane %v15854_v57, 2  ;;  %v15865_v3 = vld [vmem:[#allocation40_spill] sm:$0xff] }
  0xf5   : > { %v1398_v59 = vsel %vm649_vm0, %v15853_v50, %v1397_v52  ;;  %v15857_v18 = vrot.slane %v15856_v35, 2  ;;  %v15859_v17 = vrot.slane %v15858_v4, 2  ;;  %v15861_v2 = vrot.slane %v15860_v21, 2  ;;  %v15872_v21 = vld [vmem:[#allocation52_spill] sm:$0xff] }
  0xf6   : > { %v1523_v37 = vsel %vm1518_vm1, %v15855_v0, %v1522_v48  ;;  %v2217_v14 = vmul.f32 %v15744_v16, %v8634_v34  ;;  %v3688_v29 = vadd.f32 %v8831_v10, %v3564_v25  ;;  %v1451_v11 = vadd.f32 %v1398_v59, %v1327_v53  ;;  %v15862_v48 = vld [vmem:[#allocation109_spill] sm:$0xff]  ;;  %v15868_v0 = vld [vmem:[#allocation48_spill] sm:$0xff]  ;;  %v15869_v53 = vld [vmem:[#allocation110_spill] sm:$0xff] }
  0xf7   : > { %v1647_v22 = vsel %vm1518_vm1, %v15857_v18, %v1646_v27  ;;  %v1771_v55 = vsel %vm1518_vm1, %v15859_v17, %v1770_v23  ;;  %v1895_v52 = vsel %vm1518_vm1, %v15861_v2, %v1894_v9  ;;  %v15863_v42 = vrot.slane %v15862_v48, 2  ;;  %v15864_v27 = vld [vmem:[#allocation39_spill] sm:$0xff]  ;;  %v15871_v18 = vld [vmem:[#allocation49_spill] sm:$0xff]  ;;  %v15877_v16 = vld [vmem:[#allocation112_spill] sm:$0xff] }
  0xf8   : > { %v2341_v32 = vmul.f32 %v15864_v27, %v8880_v33  ;;  %v2466_v23 = vmul.f32 %v15865_v3, %v8564_v19  ;;  %v2590_v50 = vmul.f32 %v15866_v61, %v8585_v12  ;;  %v15867_v9 = vld [vmem:[#allocation47_spill] sm:$0xff]  ;;  %v2838_v10 = vmul.f32 %v15868_v0, %v8614_v41  ;;  %v15873_v48 = vld [vmem:[#allocation53_spill] sm:$0xff] }
  0xf9   : > { %v2019_v46 = vsel %vm1518_vm1, %v15863_v42, %v2018_v5  ;;  %v2714_v57 = vmul.f32 %v15867_v9, %v8608_v30  ;;  %v3812_v59 = vadd.f32 %v8838_v36, %v3688_v29  ;;  %v1576_v25 = vadd.f32 %v1523_v37, %v1451_v11  ;;  %v15874_v9 = vld [vmem:[#allocation54_spill] sm:$0xff]  ;;  %v15875_v11 = vld [vmem:[#allocation56_spill] sm:$0xff] }
  0xfa   : > { %v15870_v5 = vrot.slane %v15869_v53, 2  ;;  %v2962_v4 = vmul.f32 %v15871_v18, %v8617_v40  ;;  %v2266_v17 = vrot.slane %v2217_v14, 2  ;;  %v3086_v2 = vmul.f32 %v15872_v21, %v8634_v34 }
  0xfb   : > { %v3210_v42 = vmul.f32 %v15873_v48, %v8880_v33  ;;  %v3335_v0 = vmul.f32 %v15874_v9, %v8564_v19  ;;  %v3936_v36 = vadd.f32 %v8843_v31, %v3812_v59  ;;  %v1700_v37 = vadd.f32 %v1647_v22, %v1576_v25  ;;  %v15876_v48 = vld [vmem:[#allocation61_spill] sm:$0xff] }
  0xfc   : > { %v2143_v35 = vsel %vm1518_vm1, %v15870_v5, %v2142_v58  ;;  %v2391_v29 = vrot.slane %v2341_v32, 3  ;;  %v3459_v58 = vmul.f32 %v15875_v11, %v8585_v12  ;;  %v2515_v53 = vrot.slane %v2466_v23, 3 }
  0xfd   : > { %v2639_v5 = vrot.slane %v2590_v50, 3  ;;  %v2763_v18 = vrot.slane %v2714_v57, 3  ;;  %v2887_v14 = vrot.slane %v2838_v10, 3  ;;  %v4060_v61 = vadd.f32 %v8848_v38, %v3936_v36  ;;  %v15879_v50 = vld [vmem:[#allocation113_spill] sm:$0xff] }
  0xfe   : > { %v1824_v21 = vadd.f32 %v1771_v55, %v1700_v37  ;;  %v3011_v3 = vrot.slane %v2962_v4, 3  ;;  %v3583_v27 = vmul.f32 %v15876_v48, %v8608_v30  ;;  %v15878_v9 = vrot.slane %v15877_v16, 2  ;;  %v15881_v55 = vld [vmem:[#allocation114_spill] sm:$0xff]  ;;  %v15883_v37 = vld [vmem:[#allocation115_spill] sm:$0xff] }
  0xff   : > { %v3135_v22 = vrot.slane %v3086_v2, 3  ;;  %v3260_v32 = vrot.slane %v3210_v42, 4  ;;  %v3384_v59 = vrot.slane %v3335_v0, 4  ;;  %v4185_v25 = vadd.f32 %v8853_v47, %v4060_v61  ;;  %v15887_v2 = vld [vmem:[#allocation117_spill] sm:$0xff]  ;;  %v15889_v42 = vld [vmem:[#allocation118_spill] sm:$0xff] }
 0x100   : > { %v2267_v31 = vsel %vm1518_vm1, %v15878_v9, %v2266_v17  ;;  %v1948_v23 = vadd.f32 %v1895_v52, %v1824_v21  ;;  %v15880_v57 = vrot.slane %v15879_v50, 3  ;;  %v3508_v38 = vrot.slane %v3459_v58, 4  ;;  %v15885_v9 = vld [vmem:[#allocation116_spill] sm:$0xff] }
 0x101   : > { %v15882_v4 = vrot.slane %v15881_v55, 3  ;;  %v15884_v48 = vrot.slane %v15883_v37, 3  ;;  %v15886_v17 = vrot.slane %v15885_v9, 3  ;;  %v15888_v47 = vrot.slane %v15887_v2, 3  ;;  %v15891_v50 = vld [vmem:[#allocation120_spill] sm:$0xff]  ;;  %v15900_v9 = vld [vmem:[#allocation63_spill] sm:$0xff] }
 0x102   : > { %v2392_v10 = vsel %vm2387_vm2, %v15880_v57, %v2391_v29  ;;  %v4309_v61 = vadd.f32 %v8858_v43, %v4185_v25  ;;  %v2072_v21 = vadd.f32 %v2019_v46, %v1948_v23  ;;  %v15890_v29 = vrot.slane %v15889_v42, 3  ;;  %v15897_v46 = vld [vmem:[#allocation62_spill] sm:$0xff]  ;;  %v15898_v23 = vld [vmem:[#allocation123_spill] sm:$0xff]  ;;  %v15903_v42 = vld [vmem:[#allocation68_spill] sm:$0xff] }
 0x103   : > { %v2516_v36 = vsel %vm2387_vm2, %v15882_v4, %v2515_v53  ;;  %v2640_v16 = vsel %vm2387_vm2, %v15884_v48, %v2639_v5  ;;  %v2764_v0 = vsel %vm2387_vm2, %v15886_v17, %v2763_v18  ;;  %v2888_v52 = vsel %vm2387_vm2, %v15888_v47, %v2887_v14  ;;  %v15893_v5 = vld [vmem:[#allocation121_spill] sm:$0xff]  ;;  %v15895_v14 = vld [vmem:[#allocation122_spill] sm:$0xff] }
 0x104   : > { %v9065_v58 = vsel %vm2387_vm2, %v15890_v29, %v3011_v3  ;;  %v3632_v53 = vrot.slane %v3583_v27, 4  ;;  %v15892_v57 = vrot.slane %v15891_v50, 3  ;;  %v15894_v18 = vrot.slane %v15893_v5, 4  ;;  %v15901_v17 = vld [vmem:[#allocation66_spill] sm:$0xff]  ;;  %v15907_v5 = vld [vmem:[#allocation75_spill] sm:$0xff] }
 0x105   : > { %v15896_v4 = vrot.slane %v15895_v14, 4  ;;  %v3707_v3 = vmul.f32 %v15897_v46, %v8614_v41  ;;  %v4433_v27 = vadd.f32 %v8863_v15, %v4309_v61  ;;  %v2196_v25 = vadd.f32 %v2143_v35, %v2072_v21  ;;  %v15904_v15 = vld [vmem:[#allocation70_spill] sm:$0xff]  ;;  %v15912_v46 = vld [vmem:[#allocation125_spill] sm:$0xff] }
 0x106   : > { %v9070_v48 = vsel %vm2387_vm2, %v15892_v57, %v3135_v22  ;;  %v9075_v55 = vsel %vm3256_vm3, %v15894_v18, %v3260_v32  ;;  %v15899_v37 = vrot.slane %v15898_v23, 4  ;;  %v3831_v32 = vmul.f32 %v15900_v9, %v8617_v40 }
 0x107   : > { %v9080_v43 = vsel %vm3256_vm3, %v15896_v4, %v3384_v59  ;;  %v3955_v2 = vmul.f32 %v15901_v17, %v8634_v34  ;;  %v15902_v59 = vld [vmem:[#allocation67_spill] sm:$0xff]  ;;  %v4204_v29 = vmul.f32 %v15903_v42, %v8564_v19  ;;  %v4328_v35 = vmul.f32 %v15904_v15, %v8585_v12  ;;  %v15908_v4 = vld [vmem:[#allocation76_spill] sm:$0xff] }
 0x108   : > { %v9088_v22 = vsel %vm3256_vm3, %v15899_v37, %v3508_v38  ;;  %v4079_v47 = vmul.f32 %v15902_v59, %v8880_v33  ;;  %v4557_v61 = vadd.f32 %v8872_v6, %v4433_v27  ;;  %v2320_v21 = vadd.f32 %v2267_v31, %v2196_v25  ;;  %v15905_v38 = vld [vmem:[#allocation124_spill] sm:$0xff]  ;;  %v15909_v37 = vld [vmem:[#allocation77_spill] sm:$0xff] }
 0x109   : > { %v15906_v50 = vrot.slane %v15905_v38, 4  ;;  %v4452_v18 = vmul.f32 %v15907_v5, %v8608_v30  ;;  %v3756_v14 = vrot.slane %v3707_v3, 4  ;;  %v4576_v23 = vmul.f32 %v15908_v4, %v8614_v41  ;;  %v15910_v15 = vld [vmem:[#allocation80_spill] sm:$0xff] }
 0x10a   : > { %v4700_v42 = vmul.f32 %v15909_v37, %v8617_v40  ;;  %v4824_v59 = vmul.f32 %v15910_v15, %v8634_v34  ;;  %v4681_v6 = vadd.f32 %v8877_v54, %v4557_v61  ;;  %v2445_v31 = vadd.f32 %v2392_v10, %v2320_v21  ;;  %v15911_v37 = vld [vmem:[#allocation82_spill] sm:$0xff] }
 0x10b   : > { %v9104_v57 = vsel %vm3256_vm3, %v15906_v50, %v3632_v53  ;;  %v3880_v27 = vrot.slane %v3831_v32, 4  ;;  %v4948_v53 = vmul.f32 %v7975_v44, %v8880_v33  ;;  %v4004_v25 = vrot.slane %v3955_v2, 4 }
 0x10c   : > { %v4129_v38 = vrot.slane %v4079_v47, 5  ;;  %v4253_v50 = vrot.slane %v4204_v29, 5  ;;  %v4377_v3 = vrot.slane %v4328_v35, 5  ;;  %v4805_v5 = vadd.f32 %v8885_v8, %v4681_v6  ;;  %v15914_v47 = vld [vmem:[#allocation126_spill] sm:$0xff]  ;;  %v15916_v35 = vld [vmem:[#allocation127_spill] sm:$0xff]  ;;  %v15924_v6 = vld [vmem:[#allocation133_spill] sm:$0xff] }
 0x10d   : > { %v2569_v4 = vadd.f32 %v2516_v36, %v2445_v31  ;;  %v4501_v17 = vrot.slane %v4452_v18, 5  ;;  %v5073_v9 = vmul.f32 %v15911_v37, %v8564_v19  ;;  %v15913_v15 = vrot.slane %v15912_v46, 4  ;;  %v15918_v46 = vld [vmem:[#allocation128_spill] sm:$0xff] }
 0x10e   : > { %v4625_v10 = vrot.slane %v4576_v23, 5  ;;  %v4749_v32 = vrot.slane %v4700_v42, 5  ;;  %v4873_v61 = vrot.slane %v4824_v59, 5  ;;  %v4929_v33 = vadd.f32 %v8890_v51, %v4805_v5  ;;  %v15920_v59 = vld [vmem:[#allocation129_spill] sm:$0xff] }
 0x10f   : > { %v9123_v54 = vsel %vm3256_vm3, %v15913_v15, %v3756_v14  ;;  %v2693_v2 = vadd.f32 %v2640_v16, %v2569_v4  ;;  %v15915_v29 = vrot.slane %v15914_v47, 4  ;;  %v4998_v36 = vrot.slane %v4948_v53, 6  ;;  %v15922_v16 = vld [vmem:[#allocation131_spill] sm:$0xff] }
 0x110   : > { %v15917_v21 = vrot.slane %v15916_v35, 4  ;;  %v15919_v15 = vrot.slane %v15918_v46, 5  ;;  %v15921_v42 = vrot.slane %v15920_v59, 5  ;;  %v15923_v5 = vrot.slane %v15922_v16, 5  ;;  %v15934_v46 = vld [vmem:[#allocation137_spill] sm:$0xff]  ;;  %v15938_v16 = vld [vmem:[#allocation8_spill] sm:$0xff] }
 0x111   : > { %v9129_v8 = vsel %vm3256_vm3, %v15915_v29, %v3880_v27  ;;  %v5054_v4 = vadd.f32 %v8899_v24, %v4929_v33  ;;  %v2817_v23 = vadd.f32 %v2764_v0, %v2693_v2  ;;  %v15925_v31 = vrot.slane %v15924_v6, 5  ;;  %v15932_v0 = vld [vmem:[#allocation6_spill] sm:$0xff] }
 0x112   : > { %v9134_v19 = vsel %vm3256_vm3, %v15917_v21, %v4004_v25  ;;  %v9139_v18 = vsel %vm4125_vm4, %v15919_v15, %v4129_v38  ;;  %v9144_v51 = vsel %vm4125_vm4, %v15921_v42, %v4253_v50  ;;  %v9149_v14 = vsel %vm4125_vm4, %v15923_v5, %v4377_v3  ;;  %v15926_v25 = vld [vmem:[#allocation134_spill] sm:$0xff]  ;;  %v15928_v50 = vld [vmem:[#allocation135_spill] sm:$0xff]  ;;  %v15930_v3 = vld [vmem:[#allocation136_spill] sm:$0xff] }
 0x113   : > { %v9155_v27 = vsel %vm4125_vm4, %v15925_v31, %v4501_v17  ;;  %v5122_v53 = vrot.slane %v5073_v9, 6  ;;  %v15927_v38 = vrot.slane %v15926_v25, 5  ;;  %v15929_v29 = vrot.slane %v15928_v50, 5  ;;  %v15933_v33 = vld [vmem:[#allocation130_spill] sm:$0xff]  ;;  %v15939_v5 = vld [vmem:[#allocation141_spill] sm:$0xff] }
 0x114   : > { %v15931_v21 = vrot.slane %v15930_v3, 5  ;;  %v354_v17 = vmul.f32 %v15933_v33, %v15932_v0  ;;  %v5178_v9 = vadd.f32 %v8922_v56, %v5054_v4  ;;  %v2941_v2 = vadd.f32 %v2888_v52, %v2817_v23  ;;  %v15936_v56 = vld [vmem:[#allocation7_spill] sm:$0xff]  ;;  %v15937_v52 = vld [vmem:[#allocation132_spill] sm:$0xff]  ;;  %v15940_v6 = vld [vmem:[#allocation138_spill] sm:$0xff] }
 0x115   : > { %v9160_v47 = vsel %vm4125_vm4, %v15927_v38, %v4625_v10  ;;  %v9165_v35 = vsel %vm4125_vm4, %v15929_v29, %v4749_v32  ;;  %v15935_v15 = vrot.slane %v15934_v46, 6  ;;  %v9182_v32 = vmul.f32 %v8003_v28, %v8585_v12  ;;  %v15942_v38 = vld [vmem:[#allocation91_spill] sm:$0xff]  ;;  %v15943_v3 = vld [vmem:[#allocation9_spill] sm:$0xff]  ;;  %v15953_v0 = vld [vmem:[#allocation14_spill] sm:$0xff] }
 0x116   : > { %v9170_v24 = vsel %vm4125_vm4, %v15931_v21, %v4873_v61  ;;  %v9186_v61 = vmul.f32 %v8031_v1, %v8608_v30  ;;  %v9190_v59 = vmul.f32 %v8039_v60, %v8614_v41  ;;  %v390_v42 = vmul.f32 %v15937_v52, %v15936_v56  ;;  %v15944_v21 = vld [vmem:[#allocation143_spill] sm:$0xff]  ;;  %v15954_v1 = vld [vmem:[#allocation148_spill] sm:$0xff] }
 0x117   : > { %v9178_v10 = vsel %vm4994_vm5, %v15935_v15, %v4998_v36  ;;  %v426_v36 = vmul.f32 %v15939_v5, %v15938_v16  ;;  %v5302_v4 = vadd.f32 %v8960_v62, %v5178_v9  ;;  %v3065_v23 = vadd.f32 %v9065_v58, %v2941_v2  ;;  %v15945_v15 = vld [vmem:[#allocation10_spill] sm:$0xff]  ;;  %v9218_v9 = vld [vmem:[%s7442_s10 + $0xc8] sm:$0xff]  ;;  %v15948_v2 = vld [vmem:[#allocation12_spill] sm:$0xff] }
 0x118   : > { %v15941_v31 = vrot.slane %v15940_v6, 6  ;;  %v9205_v50 = vmul.f32 %v15942_v38, %v8617_v40  ;;  %v406_v29 = vadd.f32 %v390_v42, %v354_v17  ;;  %v462_v46 = vmul.f32 %v15944_v21, %v15943_v3  ;;  %15947 = vst [vmem:[#allocation20_spill] sm:$0xff] %v9218_v9  ;;  %v15949_v6 = vld [vmem:[#allocation145_spill] sm:$0xff]  ;;  %v15950_v17 = vld [vmem:[#allocation11_spill] sm:$0xff] }
 0x119   : > { %v9211_v60 = vmul.f32 %v15933_v33, %v15945_v15  ;;  %v609_v62 = vmul.f32 %v15945_v15, %v8585_v12  ;;  %v5426_v58 = vadd.f32 %v8975_v49, %v5302_v4  ;;  %v9224_v42 = vmul.f32 %v15937_v52, %v15950_v17  ;;  %v15958_v28 = vld [vmem:[#allocation19_spill] sm:$0xff] }
 0x11a   : > { %v9201_v25 = vsel %vm4994_vm5, %v15941_v31, %v5122_v53  ;;  %v3189_v53 = vadd.f32 %v9070_v48, %v3065_v23  ;;  %v498_v31 = vmul.f32 %v15949_v6, %v15948_v2  ;;  %v442_v38 = vadd.f32 %v426_v36, %v406_v29  ;;  %v15951_v23 = vld [vmem:[#allocation13_spill] sm:$0xff]  ;;  %v15955_v29 = vld [vmem:[#allocation16_spill] sm:$0xff] }
 0x11b   : > { %15946 = vst [vmem:[#allocation17_spill] sm:$0xff] %v9211_v60  ;;  %v663_v16 = vrot.slane %v609_v62, 1  ;;  %v734_v15 = vmul.f32 %v15950_v17, %v8608_v30  ;;  %v5550_v49 = vadd.f32 %v8980_v39, %v5426_v58  ;;  %v9234_v2 = vmul.f32 %v15939_v5, %v15951_v23 }
 0x11c   : > { %v3314_v48 = vadd.f32 %v9075_v55, %v3189_v53  ;;  %v478_v56 = vadd.f32 %v462_v46, %v442_v38  ;;  %v534_v36 = vmul.f32 %v15954_v1, %v15953_v0  ;;  %v570_v62 = vmul.f32 %v15955_v29, %v9218_v9  ;;  %v15956_v53 = vld [vmem:[#allocation18_spill] sm:$0xff] }
 0x11d   : > { %15952 = vst [vmem:[#allocation21_spill] sm:$0xff] %v9234_v2  ;;  %v858_v3 = vmul.f32 %v15951_v23, %v8614_v41  ;;  %v5674_v39 = vadd.f32 %v8985_v26, %v5550_v49  ;;  %v9247_v4 = vmul.f32 %v15944_v21, %v15956_v53  ;;  %v15957_v46 = vrot.slane %v9211_v60, 1 }
 0x11e   : > { %v3438_v55 = vadd.f32 %v9080_v43, %v3314_v48  ;;  %v514_v38 = vadd.f32 %v498_v31, %v478_v56  ;;  %v787_v29 = vrot.slane %v734_v15, 1  ;;  %v982_v23 = vmul.f32 %v15956_v53, %v8617_v40  ;;  %v9267_v15 = vld [vmem:[%s14546_s2] ss:$0 sm:$0xff] }
 0x11f   : > { %v664_v0 = vsel %vm649_vm0, %v15957_v46, %v663_v16  ;;  %v5798_v26 = vadd.f32 %v8990_v20, %v5674_v39  ;;  %v911_v48 = vrot.slane %v858_v3, 1  ;;  %v9260_v56 = vmul.f32 %v15949_v6, %v15958_v28  ;;  %15960 = vst [vmem:[#allocation27_spill] sm:$0xff] %v9267_v15  ;;  %v9274_v3 = vld [vmem:[%s7442_s10 + $0xd0] sm:$0x3f]  ;;  %v15965_v46 = vld [vmem:[#allocation147_spill] sm:$0xff] }
 0x120   : > { %v3562_v43 = vadd.f32 %v9088_v22, %v3438_v55  ;;  %v550_v58 = vadd.f32 %v534_v36, %v514_v38  ;;  %v1106_v16 = vmul.f32 %v15958_v28, %v8634_v34  ;;  %15962 = vst [vmem:[#allocation30_spill] sm:$0xff] %v9274_v3  ;;  %v1035_v31 = vrot.slane %v982_v23, 1  ;;  %v15963_v36 = vld [vmem:[#allocation23_spill] sm:$0xff] }
 0x121   : > { %15959 = vst [vmem:[#allocation22_spill] sm:$0xff] %v9260_v56  ;;  %v9270_v20 = vadd.f32 %v9267_v15, %v5798_v26  ;;  %v9278_v39 = vmul.f32 %v15954_v1, %v15963_v36  ;;  %v1230_v17 = vmul.f32 %v15963_v36, %v15965_v46  ;;  %v9285_v49 = vmul.f32 %v15832_v7, %v9218_v9 }
 0x122   : > { %v3686_v22 = vadd.f32 %v9104_v57, %v3562_v43  ;;  %v586_v38 = vadd.f32 %v570_v62, %v550_v58  ;;  %v15967_v23 = vrot.slane %v9224_v42, 1  ;;  %v15968_v60 = vrot.slane %v9234_v2, 1 }
 0x123   : > { %15961 = vst [vmem:[#allocation29_spill] sm:$0xff] %v9270_v20  ;;  %15964 = vst [vmem:[#allocation31_spill] sm:$0xff] %v9278_v39  ;;  %v5844_v57 = vsel %vm5834_vm6, %v9270_v20, 0.0  ;;  %v14825_v55 = vrot.slane %v9260_v56, 1  ;;  %v1159_v36 = vrot.slane %v1106_v16, 1  ;;  %v1354_v28 = vmul.f32 %v15832_v7, %v9274_v3 }
 0x124   : > { %15966 = vst [vmem:[#allocation32_spill] sm:$0xff] %v9285_v49  ;;  %v3810_v26 = vadd.f32 %v9123_v54, %v3686_v22  ;;  %v788_v43 = vsel %vm649_vm0, %v15967_v23, %v787_v29  ;;  %v912_v62 = vsel %vm649_vm0, %v15968_v60, %v911_v48  ;;  %5845 = vadd.xlane.f32.xlu1 %v5844_v57  ;;  %v15969_v54 = vrot.slane %v9247_v4, 1 }
 0x125   : > { %v711_v58 = vadd.f32 %v664_v0, %v586_v38  ;;  %v14827_v29 = vrot.slane %v9278_v39, 1  ;;  %v1283_v23 = vrot.slane %v1230_v17, 1  ;;  %v9307_v0 = vmul.f32 %v15933_v33, %v15833_v13  ;;  %v9322_v33 = vld [vmem:[%s14545_s1 + $0x30] ss:$0 sm:$0xff] }
 0x126   : > { %v3934_v20 = vadd.f32 %v9129_v8, %v3810_v26  ;;  %v1036_v22 = vsel %vm649_vm0, %v15969_v54, %v1035_v31  ;;  %v1478_v48 = vmul.f32 %v15833_v13, %v8585_v12  ;;  %v1407_v8 = vrot.slane %v1354_v28, 1  ;;  %15972 = vst [vmem:[#allocation41_spill] sm:$0xff] %v9322_v33  ;;  %v15973_v28 = vld [vmem:[#allocation28_spill] sm:$0xff] }
 0x127   : > { %v835_v2 = vadd.f32 %v788_v43, %v711_v58  ;;  %15970 = vst [vmem:[#allocation36_spill] sm:$0xff] %v9307_v0  ;;  %v9314_v38 = vmul.f32 %v15937_v52, %v15725_v45  ;;  %v1603_v17 = vmul.f32 %v15725_v45, %v8608_v30  ;;  %v5494_v31 = vrot.slane %v9190_v59, 6 }
 0x128   : > { %v4058_v16 = vadd.f32 %v9134_v19, %v3934_v20  ;;  %v9326_v57 = vmul.f32 %v9322_v33, %v8634_v34  ;;  %v9330_v20 = vmul.f32 %v15939_v5, %v15973_v28  ;;  %v5618_v26 = vrot.slane %v9205_v50, 6 }
 0x129   : > { %15971 = vst [vmem:[#allocation37_spill] sm:$0xff] %v9314_v38  ;;  %v959_v19 = vadd.f32 %v912_v62, %v835_v2  ;;  %v1160_v59 = vsel %vm649_vm0, %v14825_v55, %v1159_v36  ;;  %v1727_v43 = vmul.f32 %v15973_v28, %v8614_v41  ;;  %v1284_v2 = vsel %vm649_vm0, %v14827_v29, %v1283_v23 }
 0x12a   : > { %15974 = vst [vmem:[#allocation43_spill] sm:$0xff] %v9330_v20  ;;  %v4183_v52 = vadd.f32 %v9139_v18, %v4058_v16  ;;  %v14830_v62 = vrot.slane %v9307_v0, 2  ;;  %v1532_v54 = vrot.slane %v1478_v48, 2  ;;  %v15975_v18 = vrot.slane %v9285_v49, 1  ;;  %v15993_v49 = vld [vmem:[#allocation40_spill] sm:$0xff] }
 0x12b   : > { %v1083_v58 = vadd.f32 %v1036_v22, %v959_v19  ;;  %v1656_v36 = vrot.slane %v1603_v17, 2  ;;  %v15976_v22 = vld [vmem:[#allocation33_spill] sm:$0xff]  ;;  %v15979_v17 = vrot.slane %v9182_v32, 6  ;;  %v9369_v16 = vmul.f32 %v15954_v1, %v15737_v63  ;;  %v15983_v32 = vld [vmem:[#allocation38_spill] sm:$0xff] }
 0x12c   : > { %v4307_v60 = vadd.f32 %v9144_v51, %v4183_v52  ;;  %v1408_v50 = vsel %vm649_vm0, %v15975_v18, %v1407_v8  ;;  %v9351_v19 = vmul.f32 %v15944_v21, %v15976_v22  ;;  %v1851_v23 = vmul.f32 %v15976_v22, %v8617_v40  ;;  %v15977_v52 = vld [vmem:[#allocation34_spill] sm:$0xff] }
 0x12d   : > { %v1207_v55 = vadd.f32 %v1160_v59, %v1083_v58  ;;  %v1780_v51 = vrot.slane %v1727_v43, 2  ;;  %v9358_v29 = vmul.f32 %v15949_v6, %v15977_v52  ;;  %v1975_v8 = vmul.f32 %v15977_v52, %v8634_v34  ;;  %v15980_v59 = vld [vmem:[#allocation139_spill] sm:$0xff]  ;;  %15982 = vst [vmem:[#allocation45_spill] sm:$0xff] %v9369_v16 }
 0x12e   : > { %v4431_v48 = vadd.f32 %v9149_v14, %v4307_v60  ;;  %v15981_v58 = vrot.slane %v15980_v59, 6  ;;  %v2099_v14 = vmul.f32 %v15737_v63, %v15965_v46  ;;  %v1533_v43 = vsel %vm1518_vm1, %v14830_v62, %v1532_v54  ;;  %v9411_v62 = vld [vmem:[%s7442_s10 + $0x50] sm:$0xff] }
 0x12f   : > { %15978 = vst [vmem:[#allocation44_spill] sm:$0xff] %v9358_v29  ;;  %v1331_v56 = vadd.f32 %v1284_v2, %v1207_v55  ;;  %v9379_v59 = vmul.f32 %v15983_v32, %v9218_v9  ;;  %v2223_v55 = vmul.f32 %v15983_v32, %v9274_v3  ;;  %v1904_v39 = vrot.slane %v1851_v23, 2  ;;  %15992 = vst [vmem:[#allocation51_spill] sm:$0xff] %v9411_v62 }
 0x130   : > { %v5247_v18 = vsel %vm4994_vm5, %v15981_v58, %v15979_v17  ;;  %v4555_v60 = vadd.f32 %v9155_v27, %v4431_v48  ;;  %v15985_v17 = vrot.slane %v9314_v38, 2  ;;  %v15986_v48 = vrot.slane %v9330_v20, 2  ;;  %v9394_v38 = vld [vmem:[%s7442_s10 + $0x38] sm:$0xff] }
 0x131   : > { %15984 = vst [vmem:[#allocation46_spill] sm:$0xff] %v9379_v59  ;;  %v1455_v2 = vadd.f32 %v1408_v50, %v1331_v56  ;;  %v2028_v0 = vrot.slane %v1975_v8, 2  ;;  %v2152_v50 = vrot.slane %v2099_v14, 2  ;;  %v15989_v8 = vrot.slane %v9186_v61, 6 }
 0x132   : > { %v1657_v58 = vsel %vm1518_vm1, %v15985_v17, %v1656_v36  ;;  %v4679_v27 = vadd.f32 %v9160_v47, %v4555_v60  ;;  %v1781_v54 = vsel %vm1518_vm1, %v15986_v48, %v1780_v51  ;;  %v15987_v36 = vld [vmem:[#allocation39_spill] sm:$0xff]  ;;  %v2276_v60 = vrot.slane %v2223_v55, 2 }
 0x133   : > { %v1580_v63 = vadd.f32 %v1533_v43, %v1455_v2  ;;  %v9398_v17 = vmul.f32 %v9394_v38, %v15987_v36  ;;  %v2347_v51 = vmul.f32 %v15987_v36, %v8585_v12  ;;  %v15990_v43 = vld [vmem:[#allocation140_spill] sm:$0xff]  ;;  %v5742_v48 = vrot.slane %v9326_v57, 6 }
 0x134   : > { %v4803_v47 = vadd.f32 %v9165_v35, %v4679_v27  ;;  %v15991_v2 = vrot.slane %v15990_v43, 6  ;;  %v9415_v35 = vmul.f32 %v9411_v62, %v15993_v49  ;;  %v15995_v27 = vld [vmem:[#allocation142_spill] sm:$0xff]  ;;  %v15997_v61 = vrot.slane %v9351_v19, 2 }
 0x135   : > { %15988 = vst [vmem:[#allocation50_spill] sm:$0xff] %v9398_v17  ;;  %v1704_v56 = vadd.f32 %v1657_v58, %v1580_v63  ;;  %v15996_v23 = vrot.slane %v15995_v27, 6  ;;  %v2472_v57 = vmul.f32 %v15993_v49, %v8608_v30  ;;  %v15998_v63 = vld [vmem:[#allocation144_spill] sm:$0xff]  ;;  %v16000_v20 = vrot.slane %v9358_v29, 2 }
 0x136   : > { %v5371_v14 = vsel %vm4994_vm5, %v15991_v2, %v15989_v8  ;;  %15994 = vst [vmem:[#allocation55_spill] sm:$0xff] %v9415_v35  ;;  %v4927_v55 = vadd.f32 %v9170_v24, %v4803_v47  ;;  %v1905_v43 = vsel %vm1518_vm1, %v15997_v61, %v1904_v39  ;;  %v15999_v58 = vrot.slane %v15998_v63, 6 }
 0x137   : > { %v5495_v12 = vsel %vm4994_vm5, %v15996_v23, %v5494_v31  ;;  %v1828_v2 = vadd.f32 %v1781_v54, %v1704_v56  ;;  %v2029_v24 = vsel %vm1518_vm1, %v16000_v20, %v2028_v0  ;;  %v16001_v47 = vrot.slane %v9369_v16, 2  ;;  %v16003_v54 = vld [vmem:[#allocation42_spill] sm:$0xff] }
 0x138   : > { %v5619_v8 = vsel %vm4994_vm5, %v15999_v58, %v5618_v26  ;;  %v5052_v23 = vadd.f32 %v9178_v10, %v4927_v55  ;;  %v16002_v39 = vrot.slane %v9379_v59, 2  ;;  %v14836_v30 = vrot.slane %v9398_v17, 3  ;;  %v16040_v59 = vld [vmem:[#allocation67_spill] sm:$0xff] }
 0x139   : > { %v2153_v31 = vsel %vm1518_vm1, %v16001_v47, %v2152_v50  ;;  %v2401_v61 = vrot.slane %v2347_v51, 3  ;;  %v1952_v63 = vadd.f32 %v1905_v43, %v1828_v2  ;;  %v14842_v26 = vrot.slane %v9415_v35, 3  ;;  %v16005_v50 = vld [vmem:[#allocation47_spill] sm:$0xff]  ;;  %v16007_v43 = vld [vmem:[#allocation48_spill] sm:$0xff]  ;;  %v16009_v2 = vld [vmem:[#allocation49_spill] sm:$0xff] }
 0x13a   : > { %v2277_v27 = vsel %vm1518_vm1, %v16002_v39, %v2276_v60  ;;  %v9443_v56 = vmul.f32 %v15939_v5, %v16003_v54  ;;  %v2596_v0 = vmul.f32 %v16003_v54, %v8614_v41  ;;  %v5176_v20 = vadd.f32 %v9201_v25, %v5052_v23 }
 0x13b   : > { %v2525_v10 = vrot.slane %v2472_v57, 3  ;;  %v9450_v55 = vmul.f32 %v15944_v21, %v16005_v50  ;;  %v2720_v60 = vmul.f32 %v16005_v50, %v8617_v40  ;;  %v2076_v51 = vadd.f32 %v2029_v24, %v1952_v63  ;;  %v16011_v57 = vld [vmem:[#allocation52_spill] sm:$0xff]  ;;  %v16013_v24 = vld [vmem:[#allocation146_spill] sm:$0xff] }
 0x13c   : > { %16004 = vst [vmem:[#allocation108_spill] sm:$0xff] %v9443_v56  ;;  %v9456_v58 = vmul.f32 %v15949_v6, %v16007_v43  ;;  %v2844_v5 = vmul.f32 %v16007_v43, %v8634_v34  ;;  %v9462_v41 = vmul.f32 %v15954_v1, %v16009_v2  ;;  %v5300_v25 = vadd.f32 %v5247_v18, %v5176_v20 }
 0x13d   : > { %16006 = vst [vmem:[#allocation57_spill] sm:$0xff] %v9450_v55  ;;  %v2968_v21 = vmul.f32 %v16009_v2, %v15965_v46  ;;  %v9468_v47 = vmul.f32 %v16011_v57, %v9218_v9  ;;  %v3092_v40 = vmul.f32 %v16011_v57, %v9274_v3  ;;  %v2200_v6 = vadd.f32 %v2153_v31, %v2076_v51 }
 0x13e   : > { %16008 = vst [vmem:[#allocation58_spill] sm:$0xff] %v9456_v58  ;;  %16010 = vst [vmem:[#allocation59_spill] sm:$0xff] %v9462_v41  ;;  %v2402_v34 = vsel %vm2387_vm2, %v14836_v30, %v2401_v61  ;;  %v2649_v1 = vrot.slane %v2596_v0, 3  ;;  %v5424_v18 = vadd.f32 %v5371_v14, %v5300_v25  ;;  %v2526_v46 = vsel %vm2387_vm2, %v14842_v26, %v2525_v10  ;;  %v16015_v10 = vld [vmem:[#allocation53_spill] sm:$0xff] }
 0x13f   : > { %16012 = vst [vmem:[#allocation60_spill] sm:$0xff] %v9468_v47  ;;  %v14841_v23 = vrot.slane %v9450_v55, 3  ;;  %v2773_v39 = vrot.slane %v2720_v60, 3  ;;  %v2324_v63 = vadd.f32 %v2277_v27, %v2200_v6  ;;  %v14840_v20 = vrot.slane %v9456_v58, 3  ;;  %v9491_v27 = vld [vmem:[%s7442_s10 + $0x40] sm:$0x3f] }
 0x140   : > { %v2897_v31 = vrot.slane %v2844_v5, 3  ;;  %v14839_v51 = vrot.slane %v9462_v41, 3  ;;  %v5548_v17 = vadd.f32 %v5495_v12, %v5424_v18  ;;  %v3021_v61 = vrot.slane %v2968_v21, 3  ;;  %v16018_v6 = vld [vmem:[#allocation54_spill] sm:$0xff]  ;;  %v9570_v58 = vld [vmem:[%s7442_s10 + $0xb8] sm:$0x3f] }
 0x141   : > { %v14838_v30 = vrot.slane %v9468_v47, 3  ;;  %v3145_v0 = vrot.slane %v3092_v40, 3  ;;  %v16014_v14 = vrot.slane %v16013_v24, 6  ;;  %v2449_v35 = vadd.f32 %v2402_v34, %v2324_v63  ;;  %v9516_v63 = vld [vmem:[%s7442_s10 + $0x58] sm:$0x3f]  ;;  %v16034_v47 = vld [vmem:[#allocation63_spill] sm:$0xff] }
 0x142   : > { %v9488_v60 = vmul.f32 %v9394_v38, %v16015_v10  ;;  %v3216_v5 = vmul.f32 %v9491_v27, %v16015_v10  ;;  %v5672_v12 = vadd.f32 %v5619_v8, %v5548_v17  ;;  %v16017_v21 = vrot.slane %v9443_v56, 3  ;;  %16020 = vst [vmem:[#allocation69_spill] sm:$0xff] %v9516_v63  ;;  %16036 = vst [vmem:[#allocation97_spill] sm:$0xff] %v9570_v58 }
 0x143   : > { %v5743_v25 = vsel %vm4994_vm5, %v16014_v14, %v5742_v48  ;;  %v9500_v48 = vmul.f32 %v9411_v62, %v16018_v6  ;;  %v2573_v34 = vadd.f32 %v2526_v46, %v2449_v35  ;;  %v2774_v24 = vsel %vm2387_vm2, %v14841_v23, %v2773_v39  ;;  %v16030_v23 = vld [vmem:[#allocation62_spill] sm:$0xff]  ;;  %v9563_v46 = vld [vmem:[%s7442_s10 + $0xb0] sm:$0xff] }
 0x144   : > { %16016 = vst [vmem:[#allocation64_spill] sm:$0xff] %v9488_v60  ;;  %v2650_v40 = vsel %vm2387_vm2, %v16017_v21, %v2649_v1  ;;  %v5796_v18 = vadd.f32 %v5743_v25, %v5672_v12  ;;  %v2898_v17 = vsel %vm2387_vm2, %v14840_v20, %v2897_v31  ;;  %v3022_v8 = vsel %vm2387_vm2, %v14839_v51, %v3021_v61  ;;  %v9525_v25 = vld [vmem:[%s7442_s10 + $0x68] sm:$0xff]  ;;  %v9549_v20 = vld [vmem:[%s7442_s10 + $0x98] sm:$0xff] }
 0x145   : > { %16019 = vst [vmem:[#allocation65_spill] sm:$0xff] %v9500_v48  ;;  %v3146_v1 = vsel %vm2387_vm2, %v14838_v30, %v3145_v0  ;;  %v2697_v35 = vadd.f32 %v2650_v40, %v2573_v34  ;;  %v3270_v39 = vrot.slane %v3216_v5, 4  ;;  %v3341_v31 = vmul.f32 %v9516_v63, %v16018_v6  ;;  %16022 = vst [vmem:[#allocation72_spill] sm:$0xff] %v9525_v25  ;;  %v9532_v5 = vld [vmem:[%s7442_s10 + $0x70] sm:$0x3f]  ;;  %v9537_v40 = vld [vmem:[%s7442_s10 + $0x80] sm:$0xff] }
 0x146   : > { %v9521_v14 = vadd.f32 %v9267_v15, %v5796_v18  ;;  %v9529_v0 = vmul.f32 %v9525_v25, %v15875_v11  ;;  %16024 = vst [vmem:[#allocation74_spill] sm:$0xff] %v9532_v5  ;;  %v3465_v12 = vmul.f32 %v9532_v5, %v15875_v11  ;;  %16025 = vst [vmem:[#allocation78_spill] sm:$0xff] %v9537_v40  ;;  %v16026_v34 = vld [vmem:[#allocation61_spill] sm:$0xff]  ;;  %v9544_v30 = vld [vmem:[%s7442_s10 + $0x88] sm:$0x3f]  ;;  %v16039_v15 = vrot.slane %v9488_v60, 4 }
 0x147   : > { %v2821_v21 = vadd.f32 %v2774_v24, %v2697_v35  ;;  %v9541_v18 = vmul.f32 %v9537_v40, %v16026_v34  ;;  %16028 = vst [vmem:[#allocation83_spill] sm:$0xff] %v9544_v30  ;;  %v3589_v51 = vmul.f32 %v9544_v30, %v16026_v34  ;;  %16029 = vst [vmem:[#allocation85_spill] sm:$0xff] %v9549_v20  ;;  %v9558_v35 = vld [vmem:[%s7442_s10 + $0xa0] sm:$0x3f]  ;;  %v3394_v56 = vrot.slane %v3341_v31, 4 }
 0x148   : > { %16021 = vst [vmem:[#allocation71_spill] sm:$0xff] %v9521_v14  ;;  %16023 = vst [vmem:[#allocation73_spill] sm:$0xff] %v9529_v0  ;;  %v9553_v26 = vmul.f32 %v9549_v20, %v16030_v23  ;;  %v5838_v24 = vsel %vm5834_vm6, %v9521_v14, 0.0  ;;  %v3713_v61 = vmul.f32 %v9558_v35, %v16030_v23  ;;  %v9567_v41 = vmul.f32 %v9563_v46, %v16034_v47  ;;  %v16037_v14 = vld [vmem:[#allocation66_spill] sm:$0xff] }
 0x149   : > { %16027 = vst [vmem:[#allocation79_spill] sm:$0xff] %v9541_v18  ;;  %16032 = vst [vmem:[#allocation86_spill] sm:$0xff] %v9558_v35  ;;  %v3837_v55 = vmul.f32 %v9570_v58, %v16034_v47  ;;  %5839 = vadd.xlane.f32.xlu0 %v5838_v24  ;;  %v2945_v34 = vadd.f32 %v2898_v17, %v2821_v21  ;;  %v9576_v11 = vmul.f32 %v16037_v14, %v9218_v9 }
 0x14a   : > { %16031 = vst [vmem:[#allocation119_spill] sm:$0xff] %v9553_v26  ;;  %16033 = vst [vmem:[#allocation87_spill] sm:$0xff] %v9563_v46  ;;  %v3961_v23 = vmul.f32 %v16037_v14, %v9274_v3  ;;  %v3271_v6 = vsel %vm3256_vm3, %v16039_v15, %v3270_v39  ;;  %v9586_v16 = vmul.f32 %v9394_v38, %v16040_v59  ;;  %v3518_v21 = vrot.slane %v3465_v12, 4 }
 0x14b   : > { %16035 = vst [vmem:[#allocation95_spill] sm:$0xff] %v9567_v41  ;;  %16038 = vst [vmem:[#allocation98_spill] sm:$0xff] %v9576_v11  ;;  %v4085_v17 = vmul.f32 %v9491_v27, %v16040_v59  ;;  %v3069_v31 = vadd.f32 %v3022_v8, %v2945_v34  ;;  %v14866_v24 = vrot.slane %v9541_v18, 4  ;;  %v3642_v47 = vrot.slane %v3589_v51, 4  ;;  %v16043_v34 = vld [vmem:[#allocation68_spill] sm:$0xff]  ;;  %v16053_v18 = vld [vmem:[#allocation77_spill] sm:$0xff] }
 0x14c   : > { %16041 = vst [vmem:[#allocation99_spill] sm:$0xff] %v9586_v16  ;;  %v14865_v14 = vrot.slane %v9553_v26, 4  ;;  %v3766_v57 = vrot.slane %v3713_v61, 4  ;;  %v3890_v15 = vrot.slane %v3837_v55, 4  ;;  %v16042_v10 = vrot.slane %v9500_v48, 4 }
 0x14d   : > { %v3193_v39 = vadd.f32 %v3146_v1, %v3069_v31  ;;  %v14872_v2 = vrot.slane %v9576_v11, 4  ;;  %v4014_v43 = vrot.slane %v3961_v23, 4  ;;  %v4139_v12 = vrot.slane %v4085_v17, 5  ;;  %v16046_v31 = vld [vmem:[#allocation70_spill] sm:$0xff] }
 0x14e   : > { %v3395_v29 = vsel %vm3256_vm3, %v16042_v10, %v3394_v56  ;;  %v9600_v51 = vmul.f32 %v9411_v62, %v16043_v34  ;;  %v4210_v61 = vmul.f32 %v9516_v63, %v16043_v34  ;;  %v16044_v55 = vrot.slane %v9529_v0, 4 }
 0x14f   : > { %v3318_v60 = vadd.f32 %v3271_v6, %v3193_v39  ;;  %v3643_v56 = vsel %vm3256_vm3, %v14866_v24, %v3642_v47  ;;  %v3767_v23 = vsel %vm3256_vm3, %v14865_v14, %v3766_v57  ;;  %v16045_v10 = vrot.slane %v9567_v41, 4  ;;  %v16048_v39 = vld [vmem:[#allocation75_spill] sm:$0xff]  ;;  %v16050_v57 = vld [vmem:[#allocation76_spill] sm:$0xff] }
 0x150   : > { %v3519_v1 = vsel %vm3256_vm3, %v16044_v55, %v3518_v21  ;;  %v9618_v8 = vmul.f32 %v9525_v25, %v16046_v31  ;;  %v4334_v6 = vmul.f32 %v9532_v5, %v16046_v31  ;;  %v9624_v55 = vmul.f32 %v9537_v40, %v16048_v39 }
 0x151   : > { %v3891_v17 = vsel %vm3256_vm3, %v16045_v10, %v3890_v15  ;;  %v3442_v21 = vadd.f32 %v3395_v29, %v3318_v60  ;;  %v4458_v47 = vmul.f32 %v9544_v30, %v16048_v39  ;;  %v9630_v14 = vmul.f32 %v9549_v20, %v16050_v57 }
 0x152   : > { %16047 = vst [vmem:[#allocation100_spill] sm:$0xff] %v9618_v8  ;;  %16049 = vst [vmem:[#allocation88_spill] sm:$0xff] %v9624_v55  ;;  %v4015_v15 = vsel %vm3256_vm3, %v14872_v2, %v4014_v43  ;;  %v16052_v10 = vrot.slane %v9586_v16, 5  ;;  %v4263_v60 = vrot.slane %v4210_v61, 5  ;;  %v4582_v26 = vmul.f32 %v9558_v35, %v16050_v57  ;;  %v16055_v16 = vld [vmem:[#allocation80_spill] sm:$0xff] }
 0x153   : > { %16051 = vst [vmem:[#allocation101_spill] sm:$0xff] %v9630_v14  ;;  %v3566_v41 = vadd.f32 %v3519_v1, %v3442_v21  ;;  %v9643_v0 = vmul.f32 %v9563_v46, %v16053_v18  ;;  %v4706_v11 = vmul.f32 %v9570_v58, %v16053_v18  ;;  %v4387_v2 = vrot.slane %v4334_v6, 5 }
 0x154   : > { %v4140_v24 = vsel %vm4125_vm4, %v16052_v10, %v4139_v12  ;;  %v9650_v12 = vmul.f32 %v16055_v16, %v9218_v9  ;;  %v4830_v61 = vmul.f32 %v16055_v16, %v9274_v3  ;;  %v4511_v10 = vrot.slane %v4458_v47, 5 }
 0x155   : > { %16054 = vst [vmem:[#allocation102_spill] sm:$0xff] %v9643_v0  ;;  %v3690_v1 = vadd.f32 %v3643_v56, %v3566_v41  ;;  %v9658_v48 = vmul.f32 %v9394_v38, %v7975_v44  ;;  %v4954_v6 = vmul.f32 %v9491_v27, %v7975_v44  ;;  %v9664_v43 = vmul.f32 %v9411_v62, %v15911_v37  ;;  %v16060_v27 = vld [vmem:[#allocation84_spill] sm:$0xff] }
 0x156   : > { %16056 = vst [vmem:[#allocation92_spill] sm:$0xff] %v9650_v12  ;;  %v5079_v16 = vmul.f32 %v9516_v63, %v15911_v37  ;;  %v4635_v56 = vrot.slane %v4582_v26, 5  ;;  %v14884_v47 = vrot.slane %v9643_v0, 5  ;;  %v4759_v21 = vrot.slane %v4706_v11, 5 }
 0x157   : > { %16057 = vst [vmem:[#allocation93_spill] sm:$0xff] %v9658_v48  ;;  %16058 = vst [vmem:[#allocation94_spill] sm:$0xff] %v9664_v43  ;;  %v3814_v41 = vadd.f32 %v3767_v23, %v3690_v1  ;;  %v16059_v29 = vrot.slane %v9600_v51, 5  ;;  %v4883_v57 = vrot.slane %v4830_v61, 5  ;;  %v9675_v44 = vmul.f32 %v9525_v25, %v16060_v27 }
 0x158   : > { %v16062_v63 = vrot.slane %v9618_v8, 5  ;;  %v16063_v23 = vrot.slane %v9624_v55, 5  ;;  %v5008_v61 = vrot.slane %v4954_v6, 6  ;;  %v5132_v18 = vrot.slane %v5079_v16, 6  ;;  %v9704_v16 = vld [vmem:[%s7442_s10 + $0x30] sm:$0xff] }
 0x159   : > { %v4264_v38 = vsel %vm4125_vm4, %v16059_v29, %v4263_v60  ;;  %16061 = vst [vmem:[#allocation96_spill] sm:$0xff] %v9675_v44  ;;  %v3938_v62 = vadd.f32 %v3891_v17, %v3814_v41  ;;  %v5203_v29 = vmul.f32 %v9532_v5, %v16060_v27  ;;  %v16064_v41 = vrot.slane %v9630_v14, 5  ;;  %v16070_v27 = vld [vmem:[#allocation7_spill] sm:$0xff] }
 0x15a   : > { %v4388_v26 = vsel %vm4125_vm4, %v16062_v63, %v4387_v2  ;;  %v4512_v11 = vsel %vm4125_vm4, %v16063_v23, %v4511_v10  ;;  %v4760_v63 = vsel %vm4125_vm4, %v14884_v47, %v4759_v21  ;;  %v16065_v10 = vld [vmem:[#allocation89_spill] sm:$0xff]  ;;  %v16067_v60 = vrot.slane %v9650_v12, 5  ;;  %v9709_v47 = vld [vmem:[%s7442_s10 + $0x48] sm:$0xff]  ;;  %v9714_v12 = vld [vmem:[%s7442_s10 + $0x60] sm:$0xff] }
 0x15b   : > { %v4062_v17 = vadd.f32 %v4015_v15, %v3938_v62  ;;  %v4636_v2 = vsel %vm4125_vm4, %v16064_v41, %v4635_v56  ;;  %v9695_v23 = vmul.f32 %v9537_v40, %v16065_v10  ;;  %v5327_v62 = vmul.f32 %v9544_v30, %v16065_v10  ;;  %v16068_v15 = vld [vmem:[#allocation6_spill] sm:$0xff]  ;;  %16069 = vst [vmem:[#allocation104_spill] sm:$0xff] %v9709_v47  ;;  %v9734_v40 = vld [vmem:[%s7442_s10 + $0x78] sm:$0xff] }
 0x15c   : > { %v4884_v6 = vsel %vm4125_vm4, %v16067_v60, %v4883_v57  ;;  %v353_v56 = vmul.f32 %v9704_v16, %v16068_v15  ;;  %v5256_v41 = vrot.slane %v5203_v29, 6  ;;  %v389_v5 = vmul.f32 %v9709_v47, %v16070_v27  ;;  %16071 = vst [vmem:[#allocation105_spill] sm:$0xff] %v9714_v12  ;;  %v16072_v57 = vld [vmem:[#allocation8_spill] sm:$0xff]  ;;  %v16075_v29 = vld [vmem:[#allocation90_spill] sm:$0xff] }
 0x15d   : > { %16066 = vst [vmem:[#allocation103_spill] sm:$0xff] %v9695_v23  ;;  %v4187_v21 = vadd.f32 %v4140_v24, %v4062_v17  ;;  %v425_v60 = vmul.f32 %v9714_v12, %v16072_v57  ;;  %v16073_v1 = vrot.slane %v9658_v48, 6  ;;  %v16074_v30 = vrot.slane %v9664_v43, 6 }
 0x15e   : > { %v9728_v17 = vmul.f32 %v9549_v20, %v16075_v29  ;;  %v5451_v0 = vmul.f32 %v9558_v35, %v16075_v29  ;;  %v405_v48 = vadd.f32 %v389_v5, %v353_v56  ;;  %v5380_v43 = vrot.slane %v5327_v62, 6  ;;  %v16080_v29 = vld [vmem:[#allocation10_spill] sm:$0xff]  ;;  %v9750_v35 = vld [vmem:[%s7442_s10 + $0x90] sm:$0xff] }
 0x15f   : > { %v5009_v10 = vsel %vm4994_vm5, %v16073_v1, %v5008_v61  ;;  %v9724_v24 = vsel %vm4994_vm5, %v16074_v30, %v5132_v18  ;;  %v4311_v14 = vadd.f32 %v4264_v38, %v4187_v21  ;;  %v16077_v61 = vld [vmem:[#allocation9_spill] sm:$0xff]  ;;  %v16078_v30 = vld [vmem:[#allocation91_spill] sm:$0xff]  ;;  %v607_v38 = vmul.f32 %v9704_v16, %v16080_v29  ;;  %v16082_v62 = vld [vmem:[#allocation12_spill] sm:$0xff] }
 0x160   : > { %16076 = vst [vmem:[#allocation106_spill] sm:$0xff] %v9728_v17  ;;  %v461_v1 = vmul.f32 %v9734_v40, %v16077_v61  ;;  %v9740_v18 = vmul.f32 %v9563_v46, %v16078_v30  ;;  %v5575_v20 = vmul.f32 %v9570_v58, %v16078_v30  ;;  %v16081_v5 = vrot.slane %v9675_v44, 6  ;;  %v9760_v58 = vld [vmem:[%s7442_s10 + $0xc0] sm:$0xff]  ;;  %v16086_v29 = vld [vmem:[#allocation13_spill] sm:$0xff] }
 0x161   : > { %v4435_v21 = vadd.f32 %v4388_v26, %v4311_v14  ;;  %v441_v55 = vadd.f32 %v425_v60, %v405_v48  ;;  %v497_v61 = vmul.f32 %v9750_v35, %v16082_v62  ;;  %v5504_v57 = vrot.slane %v5451_v0, 6  ;;  %v16084_v14 = vld [vmem:[#allocation11_spill] sm:$0xff]  ;;  %v16085_v60 = vld [vmem:[#allocation14_spill] sm:$0xff] }
 0x162   : > { %16079 = vst [vmem:[#allocation107_spill] sm:$0xff] %v9740_v18  ;;  %v5257_v56 = vsel %vm4994_vm5, %v16081_v5, %v5256_v41  ;;  %v9757_v30 = vmul.f32 %v9322_v33, %v9218_v9  ;;  %v732_v26 = vmul.f32 %v9709_v47, %v16084_v14  ;;  %v9765_v48 = vld [vmem:[%s7442_s10 + $0xa8] sm:$0xff]  ;;  %v856_v46 = vmul.f32 %v9714_v12, %v16086_v29 }
 0x163   : > { %v4559_v44 = vadd.f32 %v4512_v11, %v4435_v21  ;;  %v477_v41 = vadd.f32 %v461_v1, %v441_v55  ;;  %v533_v5 = vmul.f32 %v9765_v48, %v16085_v60  ;;  %v16087_v0 = vrot.slane %v9695_v23, 6  ;;  %v16088_v1 = vld [vmem:[#allocation16_spill] sm:$0xff]  ;;  %v16089_v29 = vld [vmem:[#allocation19_spill] sm:$0xff] }
 0x164   : > { %16083 = vst [vmem:[#allocation109_spill] sm:$0xff] %v9757_v30  ;;  %v5628_v8 = vrot.slane %v5575_v20, 6  ;;  %v660_v25 = vrot.slane %v607_v38, 1  ;;  %v5699_v55 = vmul.f32 %v9322_v33, %v9274_v3  ;;  %v569_v21 = vmul.f32 %v16088_v1, %v9760_v58  ;;  %v16093_v33 = vld [vmem:[#allocation23_spill] sm:$0xff] }
 0x165   : > { %v5381_v9 = vsel %vm4994_vm5, %v16087_v0, %v5380_v43  ;;  %v4683_v27 = vadd.f32 %v4636_v2, %v4559_v44  ;;  %v513_v11 = vadd.f32 %v497_v61, %v477_v41  ;;  %v784_v60 = vrot.slane %v732_v26, 1  ;;  %v16091_v61 = vld [vmem:[#allocation17_spill] sm:$0xff] }
 0x166   : > { %v980_v23 = vmul.f32 %v9734_v40, %v15956_v53  ;;  %v1104_v43 = vmul.f32 %v9750_v35, %v16089_v29  ;;  %v16090_v20 = vrot.slane %v9728_v17, 6  ;;  %v908_v38 = vrot.slane %v856_v46, 1 }
 0x167   : > { %v4807_v0 = vadd.f32 %v4760_v63, %v4683_v27  ;;  %v549_v2 = vadd.f32 %v533_v5, %v513_v11  ;;  %v16092_v41 = vrot.slane %v16091_v61, 1  ;;  %v1228_v26 = vmul.f32 %v9765_v48, %v16093_v33  ;;  %v16096_v33 = vld [vmem:[#allocation21_spill] sm:$0xff] }
 0x168   : > { %v5505_v44 = vsel %vm4994_vm5, %v16090_v20, %v5504_v57  ;;  %v1352_v14 = vmul.f32 %v15832_v7, %v9760_v58  ;;  %v1476_v3 = vmul.f32 %v9704_v16, %v15833_v13  ;;  %v16094_v63 = vrot.slane %v9740_v18, 6  ;;  %v16121_v18 = vld [vmem:[#allocation46_spill] sm:$0xff] }
 0x169   : > { %v662_v62 = vsel %vm649_vm0, %v660_v25, %v16092_v41  ;;  %v4931_v27 = vadd.f32 %v4884_v6, %v4807_v0  ;;  %v585_v5 = vadd.f32 %v569_v21, %v549_v2  ;;  %v1601_v46 = vmul.f32 %v9709_v47, %v15725_v45 }
 0x16a   : > { %v5629_v57 = vsel %vm4994_vm5, %v16094_v63, %v5628_v8  ;;  %v5752_v11 = vrot.slane %v5699_v55, 6  ;;  %v16095_v25 = vrot.slane %v9224_v42, 1  ;;  %v1032_v61 = vrot.slane %v980_v23, 1 }
 0x16b   : > { %v1156_v41 = vrot.slane %v1104_v43, 1  ;;  %v5056_v17 = vadd.f32 %v5009_v10, %v4931_v27  ;;  %v710_v7 = vadd.f32 %v662_v62, %v585_v5  ;;  %v16097_v13 = vrot.slane %v16096_v33, 1  ;;  %v16103_v5 = vld [vmem:[#allocation31_spill] sm:$0xff] }
 0x16c   : > { %v786_v20 = vsel %vm649_vm0, %v784_v60, %v16095_v25  ;;  %v1725_v8 = vmul.f32 %v9714_v12, %v15973_v28  ;;  %v1280_v21 = vrot.slane %v1228_v26, 1  ;;  %v1404_v0 = vrot.slane %v1352_v14, 1  ;;  %v16100_v14 = vld [vmem:[#allocation22_spill] sm:$0xff]  ;;  %v16102_v26 = vld [vmem:[#allocation35_spill] sm:$0xff] }
 0x16d   : > { %v910_v6 = vsel %vm649_vm0, %v908_v38, %v16097_v13  ;;  %v1529_v2 = vrot.slane %v1476_v3, 2  ;;  %v1849_v55 = vmul.f32 %v9734_v40, %v15976_v22  ;;  %v5180_v42 = vadd.f32 %v9724_v24, %v5056_v17 }
 0x16e   : > { %v834_v60 = vadd.f32 %v786_v20, %v710_v7  ;;  %v1653_v23 = vrot.slane %v1601_v46, 2  ;;  %v1973_v10 = vmul.f32 %v9750_v35, %v15977_v52  ;;  %v16098_v33 = vrot.slane %v9757_v30, 6 }
 0x16f   : > { %v16099_v62 = vrot.slane %v9247_v4, 1  ;;  %v16101_v3 = vrot.slane %v16100_v14, 1  ;;  %v2097_v24 = vmul.f32 %v9765_v48, %v16102_v26  ;;  %v5304_v7 = vadd.f32 %v5257_v56, %v5180_v42  ;;  %v16105_v4 = vld [vmem:[#allocation32_spill] sm:$0xff] }
 0x170   : > { %v5753_v13 = vsel %vm4994_vm5, %v16098_v33, %v5752_v11  ;;  %v958_v17 = vadd.f32 %v910_v6, %v834_v60  ;;  %v1777_v27 = vrot.slane %v1725_v8, 2  ;;  %v2221_v63 = vmul.f32 %v15983_v32, %v9760_v58  ;;  %v16109_v6 = vld [vmem:[#allocation37_spill] sm:$0xff] }
 0x171   : > { %v1034_v43 = vsel %vm649_vm0, %v1032_v61, %v16099_v62  ;;  %v1158_v38 = vsel %vm649_vm0, %v1156_v41, %v16101_v3  ;;  %v16104_v46 = vrot.slane %v16103_v5, 1  ;;  %v16106_v25 = vrot.slane %v16105_v4, 1  ;;  %v16107_v61 = vld [vmem:[#allocation36_spill] sm:$0xff] }
 0x172   : > { %v16108_v33 = vrot.slane %v16107_v61, 2  ;;  %v1901_v62 = vrot.slane %v1849_v55, 2  ;;  %v5428_v14 = vadd.f32 %v5381_v9, %v5304_v7  ;;  %v1082_v56 = vadd.f32 %v1034_v43, %v958_v17  ;;  %v16111_v55 = vld [vmem:[#allocation43_spill] sm:$0xff]  ;;  %v16114_v17 = vld [vmem:[#allocation48_spill] sm:$0xff] }
 0x173   : > { %v1282_v11 = vsel %vm649_vm0, %v1280_v21, %v16104_v46  ;;  %v1406_v20 = vsel %vm649_vm0, %v1404_v0, %v16106_v25  ;;  %v16110_v8 = vrot.slane %v16109_v6, 2  ;;  %v2025_v60 = vrot.slane %v1973_v10, 2  ;;  %v16115_v25 = vld [vmem:[#allocation49_spill] sm:$0xff] }
 0x174   : > { %v1531_v41 = vsel %vm1518_vm1, %v1529_v2, %v16108_v33  ;;  %v2149_v3 = vrot.slane %v2097_v24, 2  ;;  %v2345_v21 = vmul.f32 %v9704_v16, %v15987_v36  ;;  %v2470_v5 = vmul.f32 %v9709_v47, %v15993_v49  ;;  %v16116_v33 = vld [vmem:[#allocation44_spill] sm:$0xff] }
 0x175   : > { %v1655_v42 = vsel %vm1518_vm1, %v1653_v23, %v16110_v8  ;;  %v2594_v0 = vmul.f32 %v9714_v12, %v16003_v54  ;;  %v5552_v46 = vadd.f32 %v5505_v44, %v5428_v14  ;;  %v1206_v2 = vadd.f32 %v1158_v38, %v1082_v56  ;;  %v16119_v56 = vld [vmem:[#allocation45_spill] sm:$0xff] }
 0x176   : > { %v16112_v9 = vrot.slane %v16111_v55, 2  ;;  %v2273_v7 = vrot.slane %v2221_v63, 2  ;;  %v16113_v23 = vrot.slane %v9351_v19, 2  ;;  %v2718_v24 = vmul.f32 %v9734_v40, %v16005_v50  ;;  %v16118_v63 = vld [vmem:[#allocation52_spill] sm:$0xff] }
 0x177   : > { %v2842_v4 = vmul.f32 %v9750_v35, %v16114_v17  ;;  %v2966_v61 = vmul.f32 %v9765_v48, %v16115_v25  ;;  %v5676_v44 = vadd.f32 %v5629_v57, %v5552_v46  ;;  %v1330_v38 = vadd.f32 %v1282_v11, %v1206_v2  ;;  %v16123_v11 = vld [vmem:[#allocation53_spill] sm:$0xff]  ;;  %v16191_v17 = vld [vmem:[#allocation14_spill] sm:$0xff] }
 0x178   : > { %v1779_v43 = vsel %vm1518_vm1, %v1777_v27, %v16112_v9  ;;  %v1903_v10 = vsel %vm1518_vm1, %v1901_v62, %v16113_v23  ;;  %v16117_v14 = vrot.slane %v16116_v33, 2  ;;  %v3090_v19 = vmul.f32 %v16118_v63, %v9760_v58  ;;  %v16125_v63 = vld [vmem:[#allocation27_spill] sm:$0xff] }
 0x179   : > { %v16120_v62 = vrot.slane %v16119_v56, 2  ;;  %v2398_v8 = vrot.slane %v2345_v21, 3  ;;  %v2522_v55 = vrot.slane %v2470_v5, 3  ;;  %v2646_v9 = vrot.slane %v2594_v0, 3 }
 0x17a   : > { %v2027_v27 = vsel %vm1518_vm1, %v2025_v60, %v16117_v14  ;;  %v5800_v23 = vadd.f32 %v5753_v13, %v5676_v44  ;;  %v1454_v30 = vadd.f32 %v1406_v20, %v1330_v38  ;;  %v16122_v25 = vrot.slane %v16121_v18, 2  ;;  %v16124_v14 = vld [vmem:[#allocation54_spill] sm:$0xff]  ;;  %v16127_v13 = vld [vmem:[#allocation56_spill] sm:$0xff] }
 0x17b   : > { %v2151_v6 = vsel %vm1518_vm1, %v2149_v3, %v16120_v62  ;;  %v3214_v46 = vmul.f32 %v9704_v16, %v16123_v11  ;;  %v2770_v60 = vrot.slane %v2718_v24, 3  ;;  %v2894_v2 = vrot.slane %v2842_v4, 3  ;;  %v16128_v18 = vld [vmem:[#allocation50_spill] sm:$0xff]  ;;  %v16132_v4 = vld [vmem:[#allocation108_spill] sm:$0xff] }
 0x17c   : > { %v2275_v57 = vsel %vm1518_vm1, %v2273_v7, %v16122_v25  ;;  %v3018_v33 = vrot.slane %v2966_v61, 3  ;;  %v3339_v56 = vmul.f32 %v9709_v47, %v16124_v14  ;;  %v9873_v3 = vadd.f32 %v16125_v63, %v5800_v23  ;;  %v16130_v25 = vld [vmem:[#allocation55_spill] sm:$0xff]  ;;  %v16134_v63 = vld [vmem:[#allocation61_spill] sm:$0xff]  ;;  %v16135_v23 = vld [vmem:[#allocation62_spill] sm:$0xff] }
 0x17d   : > { %v1579_v21 = vadd.f32 %v1531_v41, %v1454_v30  ;;  %v3142_v5 = vrot.slane %v3090_v19, 3  ;;  %v3463_v20 = vmul.f32 %v9714_v12, %v16127_v13  ;;  %v16129_v0 = vrot.slane %v16128_v18, 3  ;;  %v16136_v18 = vld [vmem:[#allocation57_spill] sm:$0xff]  ;;  %v16157_v13 = vld [vmem:[#allocation119_spill] sm:$0xff] }
 0x17e   : > { %16126 = vst [vmem:[#allocation110_spill] sm:$0xff] %v9873_v3  ;;  %v16131_v44 = vrot.slane %v16130_v25, 3  ;;  %v16133_v61 = vrot.slane %v16132_v4, 3  ;;  %v3587_v30 = vmul.f32 %v9734_v40, %v16134_v63  ;;  %v5850_v41 = vsel %vm5834_vm6, %v9873_v3, 0.0  ;;  %v16138_v25 = vld [vmem:[#allocation58_spill] sm:$0xff]  ;;  %v16160_v14 = vld [vmem:[#allocation95_spill] sm:$0xff] }
 0x17f   : > { %v2400_v7 = vsel %vm2387_vm2, %v2398_v8, %v16129_v0  ;;  %v1703_v19 = vadd.f32 %v1655_v42, %v1579_v21  ;;  %v3267_v62 = vrot.slane %v3214_v46, 4  ;;  %v3711_v8 = vmul.f32 %v9750_v35, %v16135_v23  ;;  %5851 = vadd.xlane.f32.xlu1 %v5850_v41  ;;  %v16141_v46 = vld [vmem:[#allocation59_spill] sm:$0xff]  ;;  %v16143_v41 = vld [vmem:[#allocation60_spill] sm:$0xff] }
 0x180   : > { %v2524_v24 = vsel %vm2387_vm2, %v2522_v55, %v16131_v44  ;;  %v9886_v38 = vsel %vm2387_vm2, %v2646_v9, %v16133_v61  ;;  %v16137_v0 = vrot.slane %v16136_v18, 3  ;;  %v16139_v9 = vrot.slane %v16138_v25, 3  ;;  %v16140_v61 = vld [vmem:[#allocation63_spill] sm:$0xff] }
 0x181   : > { %v3391_v4 = vrot.slane %v3339_v56, 4  ;;  %v3835_v3 = vmul.f32 %v9765_v48, %v16140_v61  ;;  %v1827_v42 = vadd.f32 %v1779_v43, %v1703_v19  ;;  %v16142_v21 = vrot.slane %v16141_v46, 3  ;;  %v16146_v46 = vld [vmem:[#allocation64_spill] sm:$0xff]  ;;  %v16155_v61 = vld [vmem:[#allocation79_spill] sm:$0xff] }
 0x182   : > { %v9897_v55 = vsel %vm2387_vm2, %v2770_v60, %v16137_v0  ;;  %v9902_v44 = vsel %vm2387_vm2, %v2894_v2, %v16139_v9  ;;  %v16144_v18 = vrot.slane %v16143_v41, 3  ;;  %v3515_v0 = vrot.slane %v3463_v20, 4  ;;  %v16145_v2 = vld [vmem:[#allocation66_spill] sm:$0xff] }
 0x183   : > { %v9909_v23 = vsel %vm2387_vm2, %v3018_v33, %v16142_v21  ;;  %v3639_v25 = vrot.slane %v3587_v30, 4  ;;  %v3959_v9 = vmul.f32 %v16145_v2, %v9760_v58  ;;  %v4083_v56 = vmul.f32 %v9704_v16, %v16040_v59  ;;  %v16149_v2 = vld [vmem:[#allocation77_spill] sm:$0xff] }
 0x184   : > { %v9914_v60 = vsel %vm2387_vm2, %v3142_v5, %v16144_v18  ;;  %v4208_v43 = vmul.f32 %v9709_v47, %v16043_v34  ;;  %v1951_v19 = vadd.f32 %v1903_v10, %v1827_v42  ;;  %v16147_v33 = vrot.slane %v16146_v46, 4  ;;  %v16148_v18 = vld [vmem:[#allocation76_spill] sm:$0xff]  ;;  %v16150_v42 = vld [vmem:[#allocation65_spill] sm:$0xff] }
 0x185   : > { %v3763_v41 = vrot.slane %v3711_v8, 4  ;;  %v4332_v5 = vmul.f32 %v9714_v12, %v16046_v31  ;;  %v3887_v20 = vrot.slane %v3835_v3, 4  ;;  %v4456_v30 = vmul.f32 %v9734_v40, %v16048_v39  ;;  %v16152_v8 = vld [vmem:[#allocation73_spill] sm:$0xff]  ;;  %v16154_v3 = vld [vmem:[#allocation80_spill] sm:$0xff] }
 0x186   : > { %v9925_v21 = vsel %vm3256_vm3, %v3267_v62, %v16147_v33  ;;  %v4580_v59 = vmul.f32 %v9750_v35, %v16148_v18  ;;  %v4704_v34 = vmul.f32 %v9765_v48, %v16149_v2  ;;  %v2075_v10 = vadd.f32 %v2027_v27, %v1951_v19 }
 0x187   : > { %v16151_v46 = vrot.slane %v16150_v42, 4  ;;  %v16153_v33 = vrot.slane %v16152_v8, 4  ;;  %v4828_v39 = vmul.f32 %v16154_v3, %v9760_v58  ;;  %v16156_v63 = vrot.slane %v16155_v61, 4 }
 0x188   : > { %v4011_v2 = vrot.slane %v3959_v9, 4  ;;  %v4136_v27 = vrot.slane %v4083_v56, 5  ;;  %v4260_v19 = vrot.slane %v4208_v43, 5  ;;  %v2199_v42 = vadd.f32 %v2151_v6, %v2075_v10 }
 0x189   : > { %v9938_v62 = vsel %vm3256_vm3, %v3391_v4, %v16151_v46  ;;  %v9943_v31 = vsel %vm3256_vm3, %v3515_v0, %v16153_v33  ;;  %v9950_v18 = vsel %vm3256_vm3, %v3639_v25, %v16156_v63  ;;  %v16158_v4 = vrot.slane %v16157_v13, 4  ;;  %v16159_v0 = vld [vmem:[#allocation81_spill] sm:$0xff]  ;;  %v16162_v13 = vld [vmem:[#allocation51_spill] sm:$0xff] }
 0x18a   : > { %v4384_v8 = vrot.slane %v4332_v5, 5  ;;  %v4952_v33 = vmul.f32 %v9704_v16, %v16159_v0  ;;  %v16161_v3 = vrot.slane %v16160_v14, 4  ;;  %v4508_v63 = vrot.slane %v4456_v30, 5  ;;  %v16163_v5 = vld [vmem:[#allocation98_spill] sm:$0xff]  ;;  %v16165_v14 = vld [vmem:[#allocation99_spill] sm:$0xff] }
 0x18b   : > { %v9955_v46 = vsel %vm3256_vm3, %v3763_v41, %v16158_v4  ;;  %v4632_v25 = vrot.slane %v4580_v59, 5  ;;  %v4756_v9 = vrot.slane %v4704_v34, 5  ;;  %v2323_v56 = vadd.f32 %v2275_v57, %v2199_v42  ;;  %v16169_v57 = vld [vmem:[#allocation72_spill] sm:$0xff] }
 0x18c   : > { %v9962_v61 = vsel %vm3256_vm3, %v3887_v20, %v16161_v3  ;;  %v4880_v43 = vrot.slane %v4828_v39, 5  ;;  %v9966_v6 = vmul.f32 %v9709_v47, %v15911_v37  ;;  %v356_v41 = vmul.f32 %v16162_v13, %v16068_v15  ;;  %v16168_v39 = vld [vmem:[#allocation7_spill] sm:$0xff]  ;;  %v16170_v4 = vld [vmem:[#allocation100_spill] sm:$0xff] }
 0x18d   : > { %v16164_v10 = vrot.slane %v16163_v5, 4  ;;  %v16166_v20 = vrot.slane %v16165_v14, 5  ;;  %v16167_v59 = vrot.slane %v9600_v51, 5  ;;  %v392_v3 = vmul.f32 %v16169_v57, %v16168_v39  ;;  %v16173_v14 = vld [vmem:[#allocation78_spill] sm:$0xff] }
 0x18e   : > { %v2448_v42 = vadd.f32 %v2400_v7, %v2323_v56  ;;  %v16171_v47 = vrot.slane %v16170_v4, 5  ;;  %v16180_v7 = vld [vmem:[#allocation102_spill] sm:$0xff]  ;;  %v16183_v4 = vld [vmem:[#allocation92_spill] sm:$0xff] }
 0x18f   : > { %v9973_v16 = vsel %vm3256_vm3, %v4011_v2, %v16164_v10  ;;  %v9978_v30 = vsel %vm4125_vm4, %v4136_v27, %v16166_v20  ;;  %v9983_v34 = vsel %vm4125_vm4, %v4260_v19, %v16167_v59  ;;  %v5005_v2 = vrot.slane %v4952_v33, 6  ;;  %v16172_v10 = vld [vmem:[#allocation8_spill] sm:$0xff]  ;;  %v16177_v19 = vld [vmem:[#allocation101_spill] sm:$0xff] }
 0x190   : > { %v9990_v5 = vsel %vm4125_vm4, %v4384_v8, %v16171_v47  ;;  %v428_v27 = vmul.f32 %v16173_v14, %v16172_v10  ;;  %v16174_v20 = vld [vmem:[#allocation88_spill] sm:$0xff]  ;;  %v16178_v59 = vrot.slane %v16177_v19, 5  ;;  %v16181_v56 = vrot.slane %v16180_v7, 5 }
 0x191   : > { %v16175_v15 = vrot.slane %v16174_v20, 5  ;;  %v408_v8 = vadd.f32 %v392_v3, %v356_v41  ;;  %v2572_v33 = vadd.f32 %v2524_v24, %v2448_v42  ;;  %v16184_v37 = vrot.slane %v16183_v4, 5  ;;  %v16187_v20 = vld [vmem:[#allocation85_spill] sm:$0xff]  ;;  %v16190_v7 = vld [vmem:[#allocation20_spill] sm:$0xff]  ;;  %v16196_v3 = vld [vmem:[#allocation11_spill] sm:$0xff] }
 0x192   : > { %v10002_v39 = vsel %vm4125_vm4, %v4632_v25, %v16178_v59  ;;  %v10007_v47 = vsel %vm4125_vm4, %v4756_v9, %v16181_v56  ;;  %v16188_v25 = vld [vmem:[#allocation12_spill] sm:$0xff]  ;;  %v16189_v59 = vld [vmem:[#allocation87_spill] sm:$0xff]  ;;  %v536_v9 = vmul.f32 %v16191_v17, %v16190_v7  ;;  %v16192_v56 = vld [vmem:[#allocation10_spill] sm:$0xff]  ;;  %v10033_v42 = vmul.f32 %v16169_v57, %v16196_v3 }
 0x193   : > { %v9997_v51 = vsel %vm4125_vm4, %v4508_v63, %v16175_v15  ;;  %16179 = vst [vmem:[#allocation113_spill] sm:$0xff] %v10002_v39  ;;  %16182 = vst [vmem:[#allocation114_spill] sm:$0xff] %v10007_v47  ;;  %v10012_v10 = vsel %vm4125_vm4, %v4880_v43, %v16184_v37  ;;  %v5129_v15 = vrot.slane %v9966_v6, 6  ;;  %v16186_v63 = vld [vmem:[#allocation9_spill] sm:$0xff]  ;;  %v444_v0 = vadd.f32 %v428_v27, %v408_v8  ;;  %v10027_v37 = vld [vmem:[%s7442_s10 + $0xe0] sm:$0xff] }
 0x194   : > { %16176 = vst [vmem:[#allocation112_spill] sm:$0xff] %v9997_v51  ;;  %16185 = vst [vmem:[#allocation115_spill] sm:$0xff] %v10012_v10  ;;  %v464_v19 = vmul.f32 %v16187_v20, %v16186_v63  ;;  %v500_v11 = vmul.f32 %v16189_v59, %v16188_v25  ;;  %v10023_v24 = vmul.f32 %v16162_v13, %v16192_v56  ;;  %v16195_v43 = vld [vmem:[#allocation69_spill] sm:$0xff]  ;;  %v16198_v27 = vld [vmem:[#allocation74_spill] sm:$0xff] }
 0x195   : > { %v2696_v41 = vadd.f32 %v9886_v38, %v2572_v33  ;;  %16194 = vst [vmem:[#allocation117_spill] sm:$0xff] %v10027_v37  ;;  %v612_v6 = vmul.f32 %v16195_v43, %v16192_v56  ;;  %16197 = vst [vmem:[#allocation118_spill] sm:$0xff] %v10033_v42  ;;  %v737_v8 = vmul.f32 %v16198_v27, %v16196_v3  ;;  %v16199_v25 = vld [vmem:[#allocation13_spill] sm:$0xff]  ;;  %v16201_v38 = vld [vmem:[#allocation83_spill] sm:$0xff] }
 0x196   : > { %16193 = vst [vmem:[#allocation116_spill] sm:$0xff] %v10023_v24  ;;  %v480_v4 = vadd.f32 %v464_v19, %v444_v0  ;;  %v10040_v63 = vmul.f32 %v16173_v14, %v16199_v25  ;;  %v861_v33 = vmul.f32 %v16201_v38, %v16199_v25  ;;  %v16202_v51 = vld [vmem:[#allocation93_spill] sm:$0xff]  ;;  %v572_v17 = vmul.f32 %v16088_v1, %v10027_v37 }
 0x197   : > { %v2820_v10 = vadd.f32 %v9897_v55, %v2696_v41  ;;  %v668_v56 = vrot.slane %v612_v6, 1  ;;  %v792_v39 = vrot.slane %v737_v8, 1  ;;  %v16203_v50 = vrot.slane %v16202_v51, 6  ;;  %v16206_v41 = vld [vmem:[#allocation84_spill] sm:$0xff]  ;;  %v16207_v51 = vld [vmem:[#allocation86_spill] sm:$0xff] }
 0x198   : > { %16200 = vst [vmem:[#allocation120_spill] sm:$0xff] %v10040_v63  ;;  %v516_v19 = vadd.f32 %v500_v11, %v480_v4  ;;  %v10055_v3 = vmul.f32 %v16187_v20, %v15956_v53  ;;  %v10060_v6 = vmul.f32 %v9714_v12, %v16206_v41  ;;  %v16208_v11 = vrot.slane %v10023_v24, 1  ;;  %v16215_v12 = vld [vmem:[#allocation30_spill] sm:$0xff] }
 0x199   : > { %v10049_v0 = vsel %vm4994_vm5, %v5005_v2, %v16203_v50  ;;  %v2944_v55 = vadd.f32 %v9902_v44, %v2820_v10  ;;  %v985_v50 = vmul.f32 %v16207_v51, %v15956_v53  ;;  %v916_v47 = vrot.slane %v861_v33, 1  ;;  %v10074_v10 = vld [vmem:[%s7442_s10 + $0xe8] sm:$0x3f]  ;;  %v16212_v53 = vld [vmem:[#allocation97_spill] sm:$0xff] }
 0x19a   : > { %16204 = vst [vmem:[#allocation121_spill] sm:$0xff] %v10049_v0  ;;  %16205 = vst [vmem:[#allocation122_spill] sm:$0xff] %v10055_v3  ;;  %v552_v2 = vadd.f32 %v536_v9, %v516_v19  ;;  %v669_v4 = vsel %vm649_vm0, %v16208_v11, %v668_v56  ;;  %v10070_v1 = vmul.f32 %v16189_v59, %v16089_v29  ;;  %v16211_v25 = vrot.slane %v10033_v42, 1  ;;  %v16213_v19 = vld [vmem:[#allocation23_spill] sm:$0xff] }
 0x19b   : > { %v3068_v44 = vadd.f32 %v9909_v23, %v2944_v55  ;;  %16210 = vst [vmem:[#allocation124_spill] sm:$0xff] %v10074_v10  ;;  %v1109_v9 = vmul.f32 %v16212_v53, %v16089_v29  ;;  %v10083_v24 = vmul.f32 %v16213_v19, %v16190_v7  ;;  %v1040_v11 = vrot.slane %v985_v50, 1  ;;  %v16223_v7 = vld [vmem:[#allocation89_spill] sm:$0xff] }
 0x19c   : > { %16209 = vst [vmem:[#allocation123_spill] sm:$0xff] %v10070_v1  ;;  %v793_v8 = vsel %vm649_vm0, %v16211_v25, %v792_v39  ;;  %v588_v56 = vadd.f32 %v572_v17, %v552_v2  ;;  %v1233_v23 = vmul.f32 %v16213_v19, %v16215_v12  ;;  %v16216_v39 = vld [vmem:[#allocation24_spill] sm:$0xff]  ;;  %v16218_v2 = vrot.slane %v10040_v63, 1 }
 0x19d   : > { %16214 = vst [vmem:[#allocation125_spill] sm:$0xff] %v10083_v24  ;;  %v3192_v55 = vadd.f32 %v9914_v60, %v3068_v44  ;;  %v1164_v41 = vrot.slane %v1109_v9, 1  ;;  %v10092_v25 = vmul.f32 %v16216_v39, %v10027_v37  ;;  %v1357_v17 = vmul.f32 %v16216_v39, %v10074_v10  ;;  %v16219_v44 = vld [vmem:[#allocation25_spill] sm:$0xff] }
 0x19e   : > { %v713_v29 = vadd.f32 %v669_v4, %v588_v56  ;;  %v1288_v0 = vrot.slane %v1233_v23, 1  ;;  %v917_v60 = vsel %vm649_vm0, %v16218_v2, %v916_v47  ;;  %v10103_v9 = vmul.f32 %v16162_v13, %v16219_v44  ;;  %v16221_v4 = vld [vmem:[#allocation94_spill] sm:$0xff] }
 0x19f   : > { %16217 = vst [vmem:[#allocation126_spill] sm:$0xff] %v10092_v25  ;;  %v3317_v50 = vadd.f32 %v9925_v21, %v3192_v55  ;;  %v1481_v42 = vmul.f32 %v16195_v43, %v16219_v44  ;;  %v16222_v56 = vrot.slane %v16221_v4, 6  ;;  %v10114_v33 = vmul.f32 %v9734_v40, %v16223_v7 }
 0x1a0   : > { %16220 = vst [vmem:[#allocation127_spill] sm:$0xff] %v10103_v9  ;;  %v837_v21 = vadd.f32 %v793_v8, %v713_v29  ;;  %v10118_v47 = vmul.f32 %v16169_v57, %v15725_v45  ;;  %v16225_v2 = vrot.slane %v10055_v3, 1  ;;  %v16226_v44 = vrot.slane %v10070_v1, 1 }
 0x1a1   : > { %v10110_v23 = vsel %vm4994_vm5, %v5129_v15, %v16222_v56  ;;  %v3441_v55 = vadd.f32 %v9938_v62, %v3317_v50  ;;  %v1606_v15 = vmul.f32 %v16198_v27, %v15725_v45  ;;  %v16227_v8 = vrot.slane %v10083_v24, 1 }
 0x1a2   : > { %16224 = vst [vmem:[#allocation128_spill] sm:$0xff] %v10118_v47  ;;  %v1041_v63 = vsel %vm649_vm0, %v16225_v2, %v1040_v11  ;;  %v961_v56 = vadd.f32 %v917_v60, %v837_v21  ;;  %v1165_v29 = vsel %vm649_vm0, %v16226_v44, %v1164_v41  ;;  %v1412_v19 = vrot.slane %v1357_v17, 1  ;;  %v16232_v21 = vld [vmem:[#allocation91_spill] sm:$0xff] }
 0x1a3   : > { %v1289_v39 = vsel %vm649_vm0, %v16227_v8, %v1288_v0  ;;  %v3565_v62 = vadd.f32 %v9943_v31, %v3441_v55  ;;  %v14956_v50 = vrot.slane %v10103_v9, 2  ;;  %v1537_v11 = vrot.slane %v1481_v42, 2  ;;  %v16231_v42 = vld [vmem:[#allocation90_spill] sm:$0xff]  ;;  %v10179_v9 = vld [vmem:[%s7442_s10 + $0xc8] sm:$0xff] }
 0x1a4   : > { %v1085_v4 = vadd.f32 %v1041_v63, %v961_v56  ;;  %v1661_v3 = vrot.slane %v1606_v15, 2  ;;  %v10138_v60 = vmul.f32 %v16173_v14, %v15973_v28  ;;  %v1730_v41 = vmul.f32 %v16201_v38, %v15973_v28  ;;  %16235 = vst [vmem:[#allocation134_spill] sm:$0xff] %v10179_v9 }
 0x1a5   : > { %v3689_v44 = vadd.f32 %v9950_v18, %v3565_v62  ;;  %v10145_v0 = vmul.f32 %v16187_v20, %v15976_v22  ;;  %v1854_v31 = vmul.f32 %v16207_v51, %v15976_v22  ;;  %v10151_v63 = vmul.f32 %v16189_v59, %v15977_v52 }
 0x1a6   : > { %16228 = vst [vmem:[#allocation129_spill] sm:$0xff] %v10138_v60  ;;  %v10155_v17 = vmul.f32 %v9750_v35, %v16231_v42  ;;  %v10159_v55 = vmul.f32 %v9765_v48, %v16232_v21  ;;  %v1209_v18 = vadd.f32 %v1165_v29, %v1085_v4  ;;  %v1978_v15 = vmul.f32 %v16212_v53, %v15977_v52 }
 0x1a7   : > { %16229 = vst [vmem:[#allocation131_spill] sm:$0xff] %v10145_v0  ;;  %16230 = vst [vmem:[#allocation133_spill] sm:$0xff] %v10151_v63  ;;  %v3813_v56 = vadd.f32 %v9955_v46, %v3689_v44  ;;  %v5253_v8 = vrot.slane %v10060_v6, 6  ;;  %v16233_v62 = vrot.slane %v10092_v25, 1  ;;  %v1538_v24 = vsel %vm1518_vm1, %v14956_v50, %v1537_v11 }
 0x1a8   : > { %v1333_v1 = vadd.f32 %v1289_v39, %v1209_v18  ;;  %v16234_v22 = vrot.slane %v10118_v47, 2  ;;  %v14957_v29 = vrot.slane %v10138_v60, 2  ;;  %v1785_v52 = vrot.slane %v1730_v41, 2  ;;  %v16239_v41 = vld [vmem:[#allocation41_spill] sm:$0xff] }
 0x1a9   : > { %v1413_v2 = vsel %vm649_vm0, %v16233_v62, %v1412_v19  ;;  %v3937_v46 = vadd.f32 %v9962_v61, %v3813_v56  ;;  %v14959_v6 = vrot.slane %v10145_v0, 2  ;;  %v1909_v44 = vrot.slane %v1854_v31, 2  ;;  %v16249_v0 = vld [vmem:[#allocation48_spill] sm:$0xff] }
 0x1aa   : > { %v1662_v4 = vsel %vm1518_vm1, %v16234_v22, %v1661_v3  ;;  %v14958_v25 = vrot.slane %v10151_v63, 2  ;;  %v1457_v19 = vadd.f32 %v1413_v2, %v1333_v1  ;;  %v2033_v62 = vrot.slane %v1978_v15, 2 }
 0x1ab   : > { %v10183_v39 = vmul.f32 %v10179_v9, %v16102_v26  ;;  %v2102_v22 = vmul.f32 %v16102_v26, %v16215_v12  ;;  %v4061_v3 = vadd.f32 %v9973_v16, %v3937_v46  ;;  %v10190_v61 = vmul.f32 %v15983_v32, %v10027_v37 }
 0x1ac   : > { %v2226_v11 = vmul.f32 %v15983_v32, %v10074_v10  ;;  %v10196_v1 = vmul.f32 %v16162_v13, %v15987_v36  ;;  %v5377_v2 = vrot.slane %v10114_v33, 6  ;;  %v10201_v31 = vmul.f32 %v16239_v41, %v9760_v58 }
 0x1ad   : > { %16236 = vst [vmem:[#allocation135_spill] sm:$0xff] %v10183_v39  ;;  %16237 = vst [vmem:[#allocation136_spill] sm:$0xff] %v10190_v61  ;;  %v1582_v12 = vadd.f32 %v1538_v24, %v1457_v19  ;;  %v2350_v16 = vmul.f32 %v16195_v43, %v15987_v36  ;;  %v4186_v18 = vadd.f32 %v9978_v30, %v4061_v3  ;;  %v5501_v15 = vrot.slane %v10155_v17, 6 }
 0x1ae   : > { %16238 = vst [vmem:[#allocation130_spill] sm:$0xff] %v10196_v1  ;;  %v1786_v56 = vsel %vm1518_vm1, %v14957_v29, %v1785_v52  ;;  %v1910_v33 = vsel %vm1518_vm1, %v14959_v6, %v1909_v44  ;;  %v2034_v24 = vsel %vm1518_vm1, %v14958_v25, %v2033_v62  ;;  %v14962_v19 = vrot.slane %v10183_v39, 2 }
 0x1af   : > { %v1706_v46 = vadd.f32 %v1662_v4, %v1582_v12  ;;  %v2157_v41 = vrot.slane %v2102_v22, 2  ;;  %v4310_v30 = vadd.f32 %v9983_v34, %v4186_v18  ;;  %v2281_v3 = vrot.slane %v2226_v11, 2  ;;  %v16241_v11 = vld [vmem:[#allocation47_spill] sm:$0xff] }
 0x1b0   : > { %v2406_v29 = vrot.slane %v2350_v16, 3  ;;  %v10222_v44 = vmul.f32 %v16169_v57, %v15993_v49  ;;  %v2475_v4 = vmul.f32 %v16198_v27, %v15993_v49  ;;  %v10229_v22 = vmul.f32 %v16173_v14, %v16003_v54  ;;  %v16243_v16 = vld [vmem:[#allocation96_spill] sm:$0xff] }
 0x1b1   : > { %v1830_v52 = vadd.f32 %v1786_v56, %v1706_v46  ;;  %v4434_v62 = vadd.f32 %v9990_v5, %v4310_v30  ;;  %v2599_v34 = vmul.f32 %v16201_v38, %v16003_v54  ;;  %v10235_v12 = vmul.f32 %v16187_v20, %v16241_v11  ;;  %v16245_v30 = vld [vmem:[#allocation112_spill] sm:$0xff] }
 0x1b2   : > { %16240 = vst [vmem:[#allocation137_spill] sm:$0xff] %v10229_v22  ;;  %v16244_v18 = vrot.slane %v16243_v16, 6  ;;  %v5625_v46 = vrot.slane %v10159_v55, 6  ;;  %v2723_v5 = vmul.f32 %v16207_v51, %v16241_v11  ;;  %v5749_v50 = vrot.slane %v10201_v31, 6  ;;  %v16262_v11 = vld [vmem:[#allocation107_spill] sm:$0xff] }
 0x1b3   : > { %16242 = vst [vmem:[#allocation132_spill] sm:$0xff] %v10235_v12  ;;  %v1954_v25 = vadd.f32 %v1910_v33, %v1830_v52  ;;  %v4558_v6 = vadd.f32 %v16245_v30, %v4434_v62  ;;  %v2158_v17 = vsel %vm1518_vm1, %v14962_v19, %v2157_v41  ;;  %v16246_v63 = vrot.slane %v10190_v61, 2  ;;  %v16248_v62 = vld [vmem:[#allocation113_spill] sm:$0xff]  ;;  %v16259_v41 = vld [vmem:[#allocation106_spill] sm:$0xff] }
 0x1b4   : > { %v5255_v56 = vsel %vm4994_vm5, %v5253_v8, %v16244_v18  ;;  %v16247_v55 = vrot.slane %v10196_v1, 3  ;;  %v2530_v18 = vrot.slane %v2475_v4, 3  ;;  %v2654_v39 = vrot.slane %v2599_v34, 3  ;;  %v16261_v1 = vld [vmem:[#allocation115_spill] sm:$0xff] }
 0x1b5   : > { %v2282_v16 = vsel %vm1518_vm1, %v16246_v63, %v2281_v3  ;;  %v2078_v8 = vadd.f32 %v2034_v24, %v1954_v25  ;;  %v4682_v30 = vadd.f32 %v16248_v62, %v4558_v6  ;;  %v2778_v61 = vrot.slane %v2723_v5, 3  ;;  %v16252_v3 = vld [vmem:[#allocation49_spill] sm:$0xff]  ;;  %v10270_v6 = vld [vmem:[%s7442_s10 + $0xd0] sm:$0x3f] }
 0x1b6   : > { %v2407_v33 = vsel %vm2387_vm2, %v16247_v55, %v2406_v29  ;;  %v10260_v63 = vmul.f32 %v16189_v59, %v16249_v0  ;;  %v2847_v25 = vmul.f32 %v16212_v53, %v16249_v0  ;;  %v16251_v29 = vld [vmem:[#allocation114_spill] sm:$0xff]  ;;  %v10267_v4 = vmul.f32 %v10179_v9, %v16252_v3  ;;  %16254 = vst [vmem:[#allocation143_spill] sm:$0xff] %v10270_v6 }
 0x1b7   : > { %v2202_v19 = vadd.f32 %v2158_v17, %v2078_v8  ;;  %v4806_v24 = vadd.f32 %v16251_v29, %v4682_v30  ;;  %v2971_v34 = vmul.f32 %v10270_v6, %v16252_v3  ;;  %v16255_v17 = vld [vmem:[#allocation52_spill] sm:$0xff]  ;;  %v16257_v8 = vld [vmem:[#allocation103_spill] sm:$0xff]  ;;  %v16260_v31 = vrot.slane %v16259_v41, 6 }
 0x1b8   : > { %16250 = vst [vmem:[#allocation141_spill] sm:$0xff] %v10260_v63  ;;  %16253 = vst [vmem:[#allocation138_spill] sm:$0xff] %v10267_v4  ;;  %v10276_v5 = vmul.f32 %v16255_v17, %v10027_v37  ;;  %v16258_v55 = vrot.slane %v16257_v8, 6  ;;  %v3095_v52 = vmul.f32 %v16255_v17, %v10074_v10  ;;  %v16263_v3 = vrot.slane %v16262_v11, 6 }
 0x1b9   : > { %v5503_v30 = vsel %vm4994_vm5, %v5501_v15, %v16260_v31  ;;  %v2326_v29 = vadd.f32 %v2282_v16, %v2202_v19  ;;  %v4930_v0 = vadd.f32 %v16261_v1, %v4806_v24  ;;  %v16264_v47 = vrot.slane %v10222_v44, 3  ;;  %v16267_v31 = vld [vmem:[#allocation121_spill] sm:$0xff] }
 0x1ba   : > { %16256 = vst [vmem:[#allocation145_spill] sm:$0xff] %v10276_v5  ;;  %v5379_v62 = vsel %vm4994_vm5, %v5377_v2, %v16258_v55  ;;  %v5627_v60 = vsel %vm4994_vm5, %v5625_v46, %v16263_v3  ;;  %v16265_v2 = vrot.slane %v10229_v22, 3  ;;  %v16266_v15 = vrot.slane %v10235_v12, 3  ;;  %v16268_v22 = vld [vmem:[#allocation53_spill] sm:$0xff] }
 0x1bb   : > { %v2531_v8 = vsel %vm2387_vm2, %v16264_v47, %v2530_v18  ;;  %v2451_v55 = vadd.f32 %v2407_v33, %v2326_v29  ;;  %v14975_v16 = vrot.slane %v10260_v63, 3  ;;  %v2902_v1 = vrot.slane %v2847_v25, 3  ;;  %v16270_v29 = vld [vmem:[#allocation54_spill] sm:$0xff] }
 0x1bc   : > { %v2655_v41 = vsel %vm2387_vm2, %v16265_v2, %v2654_v39  ;;  %v2779_v19 = vsel %vm2387_vm2, %v16266_v15, %v2778_v61  ;;  %v5055_v11 = vadd.f32 %v16267_v31, %v4930_v0  ;;  %v14976_v46 = vrot.slane %v10267_v4, 3  ;;  %v16279_v4 = vld [vmem:[#allocation62_spill] sm:$0xff] }
 0x1bd   : > { %v3026_v24 = vrot.slane %v2971_v34, 3  ;;  %v2575_v47 = vadd.f32 %v2531_v8, %v2451_v55  ;;  %v3150_v18 = vrot.slane %v3095_v52, 3  ;;  %v10305_v39 = vmul.f32 %v16162_v13, %v16268_v22  ;;  %v16272_v34 = vld [vmem:[#allocation56_spill] sm:$0xff]  ;;  %v16274_v52 = vld [vmem:[#allocation109_spill] sm:$0xff] }
 0x1be   : > { %v3219_v33 = vmul.f32 %v16195_v43, %v16268_v22  ;;  %v5179_v61 = vadd.f32 %v10110_v23, %v5055_v11  ;;  %v10312_v25 = vmul.f32 %v16169_v57, %v16270_v29  ;;  %v3344_v0 = vmul.f32 %v16198_v27, %v16270_v29  ;;  %v16276_v23 = vld [vmem:[#allocation61_spill] sm:$0xff] }
 0x1bf   : > { %16269 = vst [vmem:[#allocation148_spill] sm:$0xff] %v10305_v39  ;;  %v10318_v8 = vmul.f32 %v16173_v14, %v16272_v34  ;;  %v16275_v2 = vrot.slane %v16274_v52, 6  ;;  %v2699_v55 = vadd.f32 %v2655_v41, %v2575_v47  ;;  %v3468_v15 = vmul.f32 %v16201_v38, %v16272_v34 }
 0x1c0   : > { %16271 = vst [vmem:[#allocation147_spill] sm:$0xff] %v10312_v25  ;;  %v10327_v31 = vmul.f32 %v16187_v20, %v16276_v23  ;;  %v5303_v11 = vadd.f32 %v5255_v56, %v5179_v61  ;;  %v2903_v3 = vsel %vm2387_vm2, %v14975_v16, %v2902_v1  ;;  %v3027_v12 = vsel %vm2387_vm2, %v14976_v46, %v3026_v24 }
 0x1c1   : > { %16273 = vst [vmem:[#allocation139_spill] sm:$0xff] %v10318_v8  ;;  %v5751_v13 = vsel %vm4994_vm5, %v5749_v50, %v16275_v2  ;;  %v3592_v50 = vmul.f32 %v16207_v51, %v16276_v23  ;;  %v2823_v41 = vadd.f32 %v2779_v19, %v2699_v55  ;;  %v16278_v47 = vrot.slane %v10276_v5, 3 }
 0x1c2   : > { %16277 = vst [vmem:[#allocation140_spill] sm:$0xff] %v10327_v31  ;;  %v14981_v2 = vrot.slane %v10305_v39, 4  ;;  %v3275_v34 = vrot.slane %v3219_v33, 4  ;;  %v5427_v56 = vadd.f32 %v5379_v62, %v5303_v11  ;;  %v14982_v61 = vrot.slane %v10312_v25, 4  ;;  %v16281_v62 = vld [vmem:[#allocation63_spill] sm:$0xff] }
 0x1c3   : > { %v3151_v52 = vsel %vm2387_vm2, %v16278_v47, %v3150_v18  ;;  %v3399_v63 = vrot.slane %v3344_v0, 4  ;;  %v2947_v16 = vadd.f32 %v2903_v3, %v2823_v41  ;;  %v3523_v24 = vrot.slane %v3468_v15, 4  ;;  %v16283_v15 = vld [vmem:[#allocation66_spill] sm:$0xff] }
 0x1c4   : > { %v10346_v19 = vmul.f32 %v16189_v59, %v16279_v4  ;;  %v5551_v55 = vadd.f32 %v5503_v30, %v5427_v56  ;;  %v3647_v18 = vrot.slane %v3592_v50, 4  ;;  %v3716_v33 = vmul.f32 %v16212_v53, %v16279_v4 }
 0x1c5   : > { %v10352_v11 = vmul.f32 %v10179_v9, %v16281_v62  ;;  %v3071_v0 = vadd.f32 %v3027_v12, %v2947_v16  ;;  %v3840_v3 = vmul.f32 %v10270_v6, %v16281_v62  ;;  %v10358_v41 = vmul.f32 %v16283_v15, %v10027_v37  ;;  %v7073_v12 = vld [vmem:[%s7442_s10 + $0x50] sm:$0xff]  ;;  %v16285_v16 = vld [vmem:[#allocation67_spill] sm:$0xff] }
 0x1c6   : > { %16280 = vst [vmem:[#allocation142_spill] sm:$0xff] %v10346_v19  ;;  %v3964_v47 = vmul.f32 %v16283_v15, %v10074_v10  ;;  %v5675_v30 = vadd.f32 %v5627_v60, %v5551_v55  ;;  %v3276_v50 = vsel %vm3256_vm3, %v14981_v2, %v3275_v34  ;;  %v3400_v56 = vsel %vm3256_vm3, %v14982_v61, %v3399_v63 }
 0x1c7   : > { %16282 = vst [vmem:[#allocation144_spill] sm:$0xff] %v10352_v11  ;;  %16284 = vst [vmem:[#allocation146_spill] sm:$0xff] %v10358_v41  ;;  %v10370_v46 = vmul.f32 %v7073_v12, %v16285_v16  ;;  %v3195_v1 = vadd.f32 %v3151_v52, %v3071_v0  ;;  %v16287_v5 = vrot.slane %v10318_v8, 4  ;;  %v14987_v15 = vrot.slane %v10346_v19, 4 }
 0x1c8   : > { %v4088_v60 = vmul.f32 %v16195_v43, %v16285_v16  ;;  %v5799_v55 = vadd.f32 %v5751_v13, %v5675_v30  ;;  %v16288_v34 = vrot.slane %v10327_v31, 4  ;;  %v3771_v63 = vrot.slane %v3716_v33, 4 }
 0x1c9   : > { %16286 = vst [vmem:[#allocation17_spill] sm:$0xff] %v10370_v46  ;;  %v3524_v62 = vsel %vm3256_vm3, %v16287_v5, %v3523_v24  ;;  %v14985_v61 = vrot.slane %v10352_v11, 4  ;;  %v3320_v25 = vadd.f32 %v3276_v50, %v3195_v1  ;;  %v3895_v39 = vrot.slane %v3840_v3, 4  ;;  %v10386_v5 = vld [vmem:[%s14546_s2] ss:$0 sm:$0xff]  ;;  %v16291_v24 = vld [vmem:[#allocation68_spill] sm:$0xff] }
 0x1ca   : > { %v3648_v2 = vsel %vm3256_vm3, %v16288_v34, %v3647_v18  ;;  %v14986_v52 = vrot.slane %v10358_v41, 4  ;;  %v4019_v0 = vrot.slane %v3964_v47, 4  ;;  %16289 = vst [vmem:[#allocation21_spill] sm:$0xff] %v10386_v5  ;;  %v10389_v43 = vadd.f32 %v10386_v5, %v5799_v55  ;;  %v16293_v47 = vld [vmem:[#allocation70_spill] sm:$0xff]  ;;  %v16295_v34 = vld [vmem:[#allocation75_spill] sm:$0xff] }
 0x1cb   : > { %v10394_v18 = vmul.f32 %v16169_v57, %v16291_v24  ;;  %v4213_v1 = vmul.f32 %v16198_v27, %v16291_v24  ;;  %v3444_v33 = vadd.f32 %v3400_v56, %v3320_v25  ;;  %v4144_v3 = vrot.slane %v4088_v60, 5  ;;  %v16297_v27 = vld [vmem:[#allocation76_spill] sm:$0xff]  ;;  %v16308_v41 = vld [vmem:[#allocation82_spill] sm:$0xff] }
 0x1cc   : > { %16290 = vst [vmem:[#allocation22_spill] sm:$0xff] %v10389_v43  ;;  %v10400_v30 = vmul.f32 %v16173_v14, %v16293_v47  ;;  %v4337_v50 = vmul.f32 %v16201_v38, %v16293_v47  ;;  %v5847_v55 = vsel %vm5834_vm6, %v10389_v43, 0.0  ;;  %v10408_v13 = vmul.f32 %v16187_v20, %v16295_v34 }
 0x1cd   : > { %16292 = vst [vmem:[#allocation31_spill] sm:$0xff] %v10394_v18  ;;  %v4461_v57 = vmul.f32 %v16207_v51, %v16295_v34  ;;  %v10414_v25 = vmul.f32 %v16189_v59, %v16297_v27  ;;  %5848 = vadd.xlane.f32.xlu0 %v5847_v55  ;;  %v3568_v14 = vadd.f32 %v3524_v62, %v3444_v33  ;;  %v4268_v60 = vrot.slane %v4213_v1, 5  ;;  %v16299_v55 = vld [vmem:[#allocation77_spill] sm:$0xff] }
 0x1ce   : > { %16294 = vst [vmem:[#allocation32_spill] sm:$0xff] %v10400_v30  ;;  %16296 = vst [vmem:[#allocation36_spill] sm:$0xff] %v10408_v13  ;;  %v3772_v38 = vsel %vm3256_vm3, %v14987_v15, %v3771_v63  ;;  %v3896_v56 = vsel %vm3256_vm3, %v14985_v61, %v3895_v39  ;;  %v4585_v20 = vmul.f32 %v16212_v53, %v16297_v27  ;;  %v16301_v33 = vrot.slane %v10370_v46, 5  ;;  %v10456_v46 = vld [vmem:[%s7442_s10 + $0x68] sm:$0xff] }
 0x1cf   : > { %16298 = vst [vmem:[#allocation37_spill] sm:$0xff] %v10414_v25  ;;  %v4020_v51 = vsel %vm3256_vm3, %v14986_v52, %v4019_v0  ;;  %v10430_v62 = vmul.f32 %v10179_v9, %v16299_v55  ;;  %v3692_v63 = vadd.f32 %v3648_v2, %v3568_v14  ;;  %v4709_v53 = vmul.f32 %v10270_v6, %v16299_v55  ;;  %v16302_v2 = vld [vmem:[#allocation80_spill] sm:$0xff]  ;;  %v16333_v55 = vld [vmem:[#allocation9_spill] sm:$0xff] }
 0x1d0   : > { %v4145_v39 = vsel %vm4125_vm4, %v16301_v33, %v4144_v3  ;;  %v4392_v0 = vrot.slane %v4337_v50, 5  ;;  %v4516_v1 = vrot.slane %v4461_v57, 5  ;;  %v4640_v43 = vrot.slane %v4585_v20, 5  ;;  %v16305_v57 = vld [vmem:[#allocation81_spill] sm:$0xff]  ;;  %16307 = vst [vmem:[#allocation46_spill] sm:$0xff] %v10456_v46 }
 0x1d1   : > { %16300 = vst [vmem:[#allocation43_spill] sm:$0xff] %v10430_v62  ;;  %v3816_v59 = vadd.f32 %v3772_v38, %v3692_v63  ;;  %v10442_v14 = vmul.f32 %v16302_v2, %v10027_v37  ;;  %v4833_v3 = vmul.f32 %v16302_v2, %v10074_v10  ;;  %v16304_v33 = vrot.slane %v10394_v18, 5  ;;  %v7075_v38 = vld [vmem:[%s7442_s10 + $0x58] sm:$0x3f]  ;;  %v10463_v18 = vld [vmem:[%s7442_s10 + $0x70] sm:$0x3f] }
 0x1d2   : > { %v10451_v61 = vmul.f32 %v7073_v12, %v16305_v57  ;;  %v4957_v20 = vmul.f32 %v7075_v38, %v16305_v57  ;;  %v4764_v15 = vrot.slane %v4709_v53, 5  ;;  %v10460_v11 = vmul.f32 %v10456_v46, %v16308_v41  ;;  %16310 = vst [vmem:[#allocation50_spill] sm:$0xff] %v10463_v18  ;;  %v10474_v53 = vld [vmem:[%s7442_s10 + $0x80] sm:$0xff]  ;;  %v16314_v38 = vld [vmem:[#allocation84_spill] sm:$0xff]  ;;  %v10481_v46 = vld [vmem:[%s7442_s10 + $0x88] sm:$0x3f] }
 0x1d3   : > { %16303 = vst [vmem:[#allocation44_spill] sm:$0xff] %v10442_v14  ;;  %v4269_v50 = vsel %vm4125_vm4, %v16304_v33, %v4268_v60  ;;  %v3940_v63 = vadd.f32 %v3896_v56, %v3816_v59  ;;  %v5082_v60 = vmul.f32 %v10463_v18, %v16308_v41  ;;  %v16311_v12 = vrot.slane %v10400_v30, 5  ;;  %16313 = vst [vmem:[#allocation55_spill] sm:$0xff] %v10474_v53  ;;  %v16325_v57 = vld [vmem:[#allocation104_spill] sm:$0xff] }
 0x1d4   : > { %16306 = vst [vmem:[#allocation45_spill] sm:$0xff] %v10451_v61  ;;  %16309 = vst [vmem:[#allocation27_spill] sm:$0xff] %v10460_v11  ;;  %v16312_v56 = vrot.slane %v10408_v13, 5  ;;  %v10478_v52 = vmul.f32 %v10474_v53, %v16314_v38  ;;  %v5206_v19 = vmul.f32 %v10481_v46, %v16314_v38  ;;  %v16317_v30 = vrot.slane %v10414_v25, 5  ;;  %v10491_v53 = vld [vmem:[%s7442_s10 + $0x98] sm:$0xff]  ;;  %v10508_v38 = vld [vmem:[%s7442_s10 + $0xb0] sm:$0xff] }
 0x1d5   : > { %v4393_v33 = vsel %vm4125_vm4, %v16311_v12, %v4392_v0  ;;  %16316 = vst [vmem:[#allocation57_spill] sm:$0xff] %v10481_v46  ;;  %v4064_v18 = vadd.f32 %v4020_v51, %v3940_v63  ;;  %v5013_v13 = vrot.slane %v4957_v20, 6  ;;  %16318 = vst [vmem:[#allocation58_spill] sm:$0xff] %v10491_v53  ;;  %v10495_v41 = vmul.f32 %v10491_v53, %v16223_v7  ;;  %v10498_v46 = vld [vmem:[%s7442_s10 + $0xa0] sm:$0x3f]  ;;  %v16329_v20 = vld [vmem:[#allocation8_spill] sm:$0xff] }
 0x1d6   : > { %v4517_v59 = vsel %vm4125_vm4, %v16312_v56, %v4516_v1  ;;  %16315 = vst [vmem:[#allocation108_spill] sm:$0xff] %v10478_v52  ;;  %v4641_v0 = vsel %vm4125_vm4, %v16317_v30, %v4640_v43  ;;  %v4888_v1 = vrot.slane %v4833_v3, 5  ;;  %16320 = vst [vmem:[#allocation60_spill] sm:$0xff] %v10498_v46  ;;  %v5330_v51 = vmul.f32 %v10498_v46, %v16223_v7  ;;  %v16324_v53 = vld [vmem:[#allocation6_spill] sm:$0xff] }
 0x1d7   : > { %16319 = vst [vmem:[#allocation59_spill] sm:$0xff] %v10495_v41  ;;  %v4189_v63 = vadd.f32 %v4145_v39, %v4064_v18  ;;  %v16321_v43 = vrot.slane %v10430_v62, 5  ;;  %v5137_v56 = vrot.slane %v5082_v60, 6  ;;  %v5261_v12 = vrot.slane %v5206_v19, 6  ;;  %16322 = vst [vmem:[#allocation64_spill] sm:$0xff] %v10508_v38  ;;  %v16328_v60 = vld [vmem:[#allocation105_spill] sm:$0xff] }
 0x1d8   : > { %v10512_v25 = vmul.f32 %v10508_v38, %v16231_v42  ;;  %v355_v7 = vmul.f32 %v16325_v57, %v16324_v53  ;;  %v10517_v39 = vld [vmem:[%s7442_s10 + $0xb8] sm:$0x3f]  ;;  %v427_v19 = vmul.f32 %v9734_v40, %v16329_v20  ;;  %v16330_v62 = vrot.slane %v10442_v14, 5 }
 0x1d9   : > { %v4765_v30 = vsel %vm4125_vm4, %v16321_v43, %v4764_v15  ;;  %v4313_v18 = vadd.f32 %v4269_v50, %v4189_v63  ;;  %16326 = vst [vmem:[#allocation73_spill] sm:$0xff] %v10517_v39  ;;  %v5454_v15 = vmul.f32 %v10517_v39, %v16231_v42  ;;  %v16327_v43 = vld [vmem:[#allocation7_spill] sm:$0xff]  ;;  %v16331_v38 = vrot.slane %v10451_v61, 6 }
 0x1da   : > { %16323 = vst [vmem:[#allocation65_spill] sm:$0xff] %v10512_v25  ;;  %v391_v3 = vmul.f32 %v16328_v60, %v16327_v43  ;;  %v4889_v46 = vsel %vm4125_vm4, %v16330_v62, %v4888_v1  ;;  %v15023_v50 = vrot.slane %v10495_v41, 6  ;;  %v5385_v63 = vrot.slane %v5330_v51, 6  ;;  %v16341_v1 = vld [vmem:[#allocation14_spill] sm:$0xff] }
 0x1db   : > { %v5014_v53 = vsel %vm4994_vm5, %v16331_v38, %v5013_v13  ;;  %v4437_v2 = vadd.f32 %v4393_v33, %v4313_v18  ;;  %v16332_v42 = vrot.slane %v10460_v11, 6  ;;  %v463_v20 = vmul.f32 %v9750_v35, %v16333_v55  ;;  %v16336_v33 = vld [vmem:[#allocation10_spill] sm:$0xff] }
 0x1dc   : > { %v407_v43 = vadd.f32 %v391_v3, %v355_v7  ;;  %v16334_v14 = vrot.slane %v10478_v52, 6  ;;  %v10543_v13 = vmul.f32 %v10179_v9, %v16232_v21  ;;  %v610_v38 = vmul.f32 %v16325_v57, %v16336_v33  ;;  %v16337_v7 = vld [vmem:[#allocation12_spill] sm:$0xff]  ;;  %v16344_v33 = vld [vmem:[#allocation19_spill] sm:$0xff] }
 0x1dd   : > { %v5138_v39 = vsel %vm4994_vm5, %v16332_v42, %v5137_v56  ;;  %v4561_v51 = vadd.f32 %v4517_v59, %v4437_v2  ;;  %v5509_v18 = vrot.slane %v5454_v15, 6  ;;  %v499_v56 = vmul.f32 %v9765_v48, %v16337_v7  ;;  %v10564_v59 = vld [vmem:[%s7442_s10 + $0xd8] sm:$0xff]  ;;  %v16340_v15 = vld [vmem:[#allocation11_spill] sm:$0xff] }
 0x1de   : > { %v5262_v62 = vsel %vm4994_vm5, %v16334_v14, %v5261_v12  ;;  %16335 = vst [vmem:[#allocation79_spill] sm:$0xff] %v10543_v13  ;;  %v443_v42 = vadd.f32 %v427_v19, %v407_v43  ;;  %v5386_v3 = vsel %vm4994_vm5, %v15023_v50, %v5385_v63  ;;  %v5578_v14 = vmul.f32 %v10270_v6, %v16232_v21  ;;  %v10557_v12 = vld [vmem:[%s14545_s1 + $0x30] ss:$0 sm:$0xff]  ;;  %v16342_v21 = vld [vmem:[#allocation13_spill] sm:$0xff]  ;;  %v16343_v6 = vld [vmem:[#allocation18_spill] sm:$0xff] }
 0x1df   : > { %16338 = vst [vmem:[#allocation119_spill] sm:$0xff] %v10557_v12  ;;  %v10561_v2 = vmul.f32 %v10557_v12, %v10027_v37  ;;  %v735_v43 = vmul.f32 %v16328_v60, %v16340_v15  ;;  %v4685_v19 = vadd.f32 %v4641_v0, %v4561_v51  ;;  %v5702_v63 = vmul.f32 %v10557_v12, %v10074_v10  ;;  %v16345_v0 = vld [vmem:[#allocation16_spill] sm:$0xff] }
 0x1e0   : > { %v479_v50 = vadd.f32 %v463_v20, %v443_v42  ;;  %v535_v41 = vmul.f32 %v16341_v1, %v9760_v58  ;;  %v665_v52 = vrot.slane %v610_v38, 1  ;;  %v859_v11 = vmul.f32 %v9734_v40, %v16342_v21  ;;  %v16346_v20 = vld [vmem:[#allocation23_spill] sm:$0xff] }
 0x1e1   : > { %16339 = vst [vmem:[#allocation95_spill] sm:$0xff] %v10561_v2  ;;  %v983_v61 = vmul.f32 %v9750_v35, %v16343_v6  ;;  %v1107_v37 = vmul.f32 %v9765_v48, %v16344_v33  ;;  %v4809_v9 = vadd.f32 %v4765_v30, %v4685_v19  ;;  %v571_v51 = vmul.f32 %v16345_v0, %v10564_v59 }
 0x1e2   : > { %v515_v15 = vadd.f32 %v499_v56, %v479_v50  ;;  %v1231_v42 = vmul.f32 %v16346_v20, %v9760_v58  ;;  %v16347_v12 = vrot.slane %v10512_v25, 6  ;;  %v15042_v10 = vrot.slane %v10543_v13, 6  ;;  %v16348_v50 = vld [vmem:[#allocation116_spill] sm:$0xff] }
 0x1e3   : > { %v5633_v21 = vrot.slane %v5578_v14, 6  ;;  %v789_v1 = vrot.slane %v735_v43, 1  ;;  %v4933_v6 = vadd.f32 %v4889_v46, %v4809_v9  ;;  %v15041_v7 = vrot.slane %v10561_v2, 6  ;;  %v16351_v14 = vld [vmem:[#allocation118_spill] sm:$0xff]  ;;  %v16353_v46 = vld [vmem:[#allocation25_spill] sm:$0xff]  ;;  %v10666_v2 = vld [vmem:[%s7442_s10 + $0xa8] sm:$0xff] }
 0x1e4   : > { %v5510_v38 = vsel %vm4994_vm5, %v16347_v12, %v5509_v18  ;;  %v5757_v33 = vrot.slane %v5702_v63, 6  ;;  %v551_v30 = vadd.f32 %v535_v41, %v515_v15  ;;  %v16349_v56 = vrot.slane %v16348_v50, 1  ;;  %v16350_v18 = vld [vmem:[#allocation24_spill] sm:$0xff]  ;;  %v16356_v63 = vld [vmem:[#allocation122_spill] sm:$0xff] }
 0x1e5   : > { %v913_v0 = vrot.slane %v859_v11, 1  ;;  %v1037_v55 = vrot.slane %v983_v61, 1  ;;  %v1161_v20 = vrot.slane %v1107_v37, 1  ;;  %v5058_v31 = vadd.f32 %v5014_v53, %v4933_v6  ;;  %v16354_v53 = vld [vmem:[#allocation120_spill] sm:$0xff] }
 0x1e6   : > { %v667_v19 = vsel %vm649_vm0, %v665_v52, %v16349_v56  ;;  %v587_v25 = vadd.f32 %v571_v51, %v551_v30  ;;  %v1285_v8 = vrot.slane %v1231_v42, 1  ;;  %v1355_v12 = vmul.f32 %v16350_v18, %v10564_v59  ;;  %v16358_v42 = vld [vmem:[#allocation33_spill] sm:$0xff]  ;;  %v16379_v13 = vld [vmem:[#allocation48_spill] sm:$0xff] }
 0x1e7   : > { %v16352_v43 = vrot.slane %v16351_v14, 1  ;;  %v1479_v41 = vmul.f32 %v16325_v57, %v16353_v46  ;;  %v1604_v15 = vmul.f32 %v16328_v60, %v15725_v45  ;;  %v1728_v61 = vmul.f32 %v9734_v40, %v15973_v28 }
 0x1e8   : > { %v5182_v37 = vadd.f32 %v5138_v39, %v5058_v31  ;;  %v5634_v6 = vsel %vm4994_vm5, %v15042_v10, %v5633_v21  ;;  %v5758_v11 = vsel %vm4994_vm5, %v15041_v7, %v5757_v33  ;;  %v712_v52 = vadd.f32 %v667_v19, %v587_v25  ;;  %v16359_v31 = vld [vmem:[#allocation34_spill] sm:$0xff]  ;;  %v16360_v33 = vld [vmem:[#allocation123_spill] sm:$0xff] }
 0x1e9   : > { %v791_v9 = vsel %vm649_vm0, %v789_v1, %v16352_v43  ;;  %v16355_v1 = vrot.slane %v16354_v53, 1  ;;  %v16357_v51 = vrot.slane %v16356_v63, 1  ;;  %v1852_v40 = vmul.f32 %v9750_v35, %v16358_v42 }
 0x1ea   : > { %v1976_v21 = vmul.f32 %v9765_v48, %v16359_v31  ;;  %v5306_v39 = vadd.f32 %v5262_v62, %v5182_v37  ;;  %v836_v30 = vadd.f32 %v791_v9, %v712_v52  ;;  %v16361_v25 = vrot.slane %v16360_v33, 1  ;;  %v16365_v37 = vld [vmem:[#allocation126_spill] sm:$0xff] }
 0x1eb   : > { %v915_v57 = vsel %vm649_vm0, %v913_v0, %v16355_v1  ;;  %v1039_v60 = vsel %vm649_vm0, %v1037_v55, %v16357_v51  ;;  %v1409_v56 = vrot.slane %v1355_v12, 1  ;;  %v16362_v0 = vld [vmem:[#allocation125_spill] sm:$0xff]  ;;  %v1534_v55 = vrot.slane %v1479_v41, 2  ;;  %v10628_v12 = vld [vmem:[%s7442_s10 + $0x48] sm:$0xff]  ;;  %v10633_v41 = vld [vmem:[%s7442_s10 + $0x60] sm:$0xff] }
 0x1ec   : > { %v1163_v50 = vsel %vm649_vm0, %v1161_v20, %v16361_v25  ;;  %v16363_v19 = vrot.slane %v16362_v0, 1  ;;  %v1658_v43 = vrot.slane %v1604_v15, 2  ;;  %v1782_v35 = vrot.slane %v1728_v61, 2  ;;  %16364 = vst [vmem:[#allocation51_spill] sm:$0xff] %v10633_v41  ;;  %v16368_v51 = vld [vmem:[#allocation127_spill] sm:$0xff]  ;;  %v10655_v0 = vld [vmem:[%s7442_s10 + $0x90] sm:$0xff] }
 0x1ed   : > { %v5430_v53 = vadd.f32 %v5386_v3, %v5306_v39  ;;  %v960_v1 = vadd.f32 %v915_v57, %v836_v30  ;;  %v2100_v48 = vmul.f32 %v16102_v26, %v9760_v58  ;;  %v2224_v62 = vmul.f32 %v15983_v32, %v10564_v59  ;;  %v10641_v57 = vld [vmem:[%s7442_s10 + $0x78] sm:$0xff]  ;;  %v16370_v39 = vld [vmem:[#allocation128_spill] sm:$0xff] }
 0x1ee   : > { %v1287_v14 = vsel %vm649_vm0, %v1285_v8, %v16363_v19  ;;  %v1906_v9 = vrot.slane %v1852_v40, 2  ;;  %v2030_v20 = vrot.slane %v1976_v21, 2  ;;  %v2348_v8 = vmul.f32 %v10628_v12, %v15987_v36  ;;  %16367 = vst [vmem:[#allocation98_spill] sm:$0xff] %v10641_v57 }
 0x1ef   : > { %v2473_v3 = vmul.f32 %v10633_v41, %v15993_v49  ;;  %v5554_v15 = vadd.f32 %v5510_v38, %v5430_v53  ;;  %v1084_v61 = vadd.f32 %v1039_v60, %v960_v1  ;;  %v16366_v58 = vrot.slane %v16365_v37, 1  ;;  %v16372_v38 = vld [vmem:[#allocation129_spill] sm:$0xff] }
 0x1f0   : > { %v2597_v63 = vmul.f32 %v10641_v57, %v16003_v54  ;;  %v16369_v40 = vrot.slane %v16368_v51, 2  ;;  %v16371_v30 = vrot.slane %v16370_v39, 2  ;;  %v16373_v60 = vrot.slane %v16372_v38, 2  ;;  %v16377_v39 = vld [vmem:[#allocation133_spill] sm:$0xff] }
 0x1f1   : > { %v1411_v52 = vsel %vm649_vm0, %v1409_v56, %v16366_v58  ;;  %v16374_v56 = vld [vmem:[#allocation47_spill] sm:$0xff]  ;;  %v5678_v53 = vadd.f32 %v5634_v6, %v5554_v15  ;;  %v1208_v1 = vadd.f32 %v1163_v50, %v1084_v61  ;;  %v2154_v37 = vrot.slane %v2100_v48, 2  ;;  %v10671_v48 = vld [vmem:[%s7442_s10 + $0xc0] sm:$0xff] }
 0x1f2   : > { %v1536_v21 = vsel %vm1518_vm1, %v1534_v55, %v16369_v40  ;;  %v1660_v33 = vsel %vm1518_vm1, %v1658_v43, %v16371_v30  ;;  %v1784_v25 = vsel %vm1518_vm1, %v1782_v35, %v16373_v60  ;;  %v2721_v19 = vmul.f32 %v10655_v0, %v16374_v56  ;;  %v16375_v55 = vld [vmem:[#allocation131_spill] sm:$0xff] }
 0x1f3   : > { %v2278_v58 = vrot.slane %v2224_v62, 2  ;;  %v16376_v51 = vrot.slane %v16375_v55, 2  ;;  %v16378_v43 = vrot.slane %v16377_v39, 2  ;;  %v2403_v38 = vrot.slane %v2348_v8, 3  ;;  %v16380_v62 = vld [vmem:[#allocation49_spill] sm:$0xff]  ;;  %v16382_v8 = vld [vmem:[#allocation135_spill] sm:$0xff] }
 0x1f4   : > { %v2527_v35 = vrot.slane %v2473_v3, 3  ;;  %v5802_v60 = vadd.f32 %v5758_v11, %v5678_v53  ;;  %v1332_v7 = vadd.f32 %v1287_v14, %v1208_v1  ;;  %v2651_v10 = vrot.slane %v2597_v63, 3  ;;  %v16384_v63 = vld [vmem:[#allocation136_spill] sm:$0xff]  ;;  %v16386_v1 = vld [vmem:[#allocation130_spill] sm:$0xff] }
 0x1f5   : > { %v1908_v40 = vsel %vm1518_vm1, %v1906_v9, %v16376_v51  ;;  %v2032_v30 = vsel %vm1518_vm1, %v2030_v20, %v16378_v43  ;;  %v2845_v6 = vmul.f32 %v10666_v2, %v16379_v13  ;;  %v2775_v50 = vrot.slane %v2721_v19, 3  ;;  %v16460_v13 = vld [vmem:[#allocation18_spill] sm:$0xff] }
 0x1f6   : > { %v2969_v9 = vmul.f32 %v10671_v48, %v16380_v62  ;;  %v3093_v15 = vmul.f32 %v16255_v17, %v10564_v59  ;;  %v3217_v20 = vmul.f32 %v10628_v12, %v16268_v22  ;;  %v10680_v11 = vadd.f32 %v10386_v5, %v5802_v60  ;;  %v16392_v5 = vld [vmem:[#allocation63_spill] sm:$0xff]  ;;  %v16436_v17 = vld [vmem:[#allocation36_spill] sm:$0xff] }
 0x1f7   : > { %v1456_v14 = vadd.f32 %v1411_v52, %v1332_v7  ;;  %v16383_v3 = vrot.slane %v16382_v8, 2  ;;  %v16385_v19 = vrot.slane %v16384_v63, 2  ;;  %v16387_v55 = vrot.slane %v16386_v1, 3  ;;  %v16389_v52 = vld [vmem:[#allocation56_spill] sm:$0xff] }
 0x1f8   : > { %16381 = vst [vmem:[#allocation99_spill] sm:$0xff] %v10680_v11  ;;  %v16388_v39 = vrot.slane %v10222_v44, 3  ;;  %v3342_v7 = vmul.f32 %v10633_v41, %v16270_v29  ;;  %v3466_v60 = vmul.f32 %v10641_v57, %v16389_v52  ;;  %v3023_v63 = vrot.slane %v2969_v9, 3  ;;  %v16434_v29 = vld [vmem:[#allocation9_spill] sm:$0xff] }
 0x1f9   : > { %v2156_v61 = vsel %vm1518_vm1, %v2154_v37, %v16383_v3  ;;  %v2280_v53 = vsel %vm1518_vm1, %v2278_v58, %v16385_v19  ;;  %v2405_v51 = vsel %vm2387_vm2, %v2403_v38, %v16387_v55  ;;  %v5856_v37 = vsel %vm5834_vm6, %v10680_v11, 0.0  ;;  %v16390_v38 = vld [vmem:[#allocation137_spill] sm:$0xff]  ;;  %v16394_v11 = vld [vmem:[#allocation132_spill] sm:$0xff] }
 0x1fa   : > { %v10694_v43 = vsel %vm2387_vm2, %v2527_v35, %v16388_v39  ;;  %v1581_v8 = vadd.f32 %v1536_v21, %v1456_v14  ;;  %v2899_v58 = vrot.slane %v2845_v6, 3  ;;  %v3590_v3 = vmul.f32 %v10655_v0, %v16276_v23  ;;  %5857 = vadd.xlane.f32.xlu1 %v5856_v37  ;;  %v16393_v6 = vld [vmem:[#allocation66_spill] sm:$0xff] }
 0x1fb   : > { %v16391_v44 = vrot.slane %v16390_v38, 3  ;;  %v3147_v19 = vrot.slane %v3093_v15, 3  ;;  %v3272_v1 = vrot.slane %v3217_v20, 4  ;;  %v3714_v39 = vmul.f32 %v10666_v2, %v16279_v4  ;;  %v16396_v15 = vld [vmem:[#allocation141_spill] sm:$0xff]  ;;  %v16398_v4 = vld [vmem:[#allocation138_spill] sm:$0xff] }
 0x1fc   : > { %v1705_v55 = vadd.f32 %v1660_v33, %v1581_v8  ;;  %v3838_v21 = vmul.f32 %v10671_v48, %v16392_v5  ;;  %v3962_v14 = vmul.f32 %v16393_v6, %v10564_v59  ;;  %v16395_v37 = vrot.slane %v16394_v11, 3 }
 0x1fd   : > { %v10707_v35 = vsel %vm2387_vm2, %v2651_v10, %v16391_v44  ;;  %v3396_v10 = vrot.slane %v3342_v7, 4  ;;  %v3520_v44 = vrot.slane %v3466_v60, 4  ;;  %v4086_v9 = vmul.f32 %v10628_v12, %v16285_v16  ;;  %v16400_v7 = vld [vmem:[#allocation145_spill] sm:$0xff]  ;;  %v16404_v16 = vld [vmem:[#allocation147_spill] sm:$0xff] }
 0x1fe   : > { %v10718_v38 = vsel %vm2387_vm2, %v2775_v50, %v16395_v37  ;;  %v1829_v33 = vadd.f32 %v1784_v25, %v1705_v55  ;;  %v16397_v20 = vrot.slane %v16396_v15, 3  ;;  %v3644_v5 = vrot.slane %v3590_v3, 4  ;;  %v16402_v25 = vld [vmem:[#allocation148_spill] sm:$0xff] }
 0x1ff   : > { %v4211_v6 = vmul.f32 %v10633_v41, %v16291_v24  ;;  %v16399_v11 = vrot.slane %v16398_v4, 3  ;;  %v16401_v60 = vrot.slane %v16400_v7, 3  ;;  %v16403_v55 = vrot.slane %v16402_v25, 4  ;;  %v16406_v25 = vld [vmem:[#allocation139_spill] sm:$0xff] }
 0x200   : > { %v10725_v8 = vsel %vm2387_vm2, %v2899_v58, %v16397_v20  ;;  %v4335_v58 = vmul.f32 %v10641_v57, %v16293_v47  ;;  %v1953_v3 = vadd.f32 %v1908_v40, %v1829_v33  ;;  %v3768_v20 = vrot.slane %v3714_v39, 4  ;;  %v16408_v39 = vld [vmem:[#allocation140_spill] sm:$0xff] }
 0x201   : > { %v10732_v50 = vsel %vm2387_vm2, %v3023_v63, %v16399_v11  ;;  %v10737_v37 = vsel %vm2387_vm2, %v3147_v19, %v16401_v60  ;;  %v10742_v15 = vsel %vm3256_vm3, %v3272_v1, %v16403_v55  ;;  %v3892_v24 = vrot.slane %v3838_v21, 4 }
 0x202   : > { %v4016_v4 = vrot.slane %v3962_v14, 4  ;;  %v16405_v63 = vrot.slane %v16404_v16, 4  ;;  %v4141_v7 = vrot.slane %v4086_v9, 5  ;;  %v4459_v19 = vmul.f32 %v10655_v0, %v16295_v34  ;;  %v16410_v9 = vld [vmem:[#allocation77_spill] sm:$0xff] }
 0x203   : > { %v4583_v1 = vmul.f32 %v10666_v2, %v16297_v27  ;;  %v2077_v60 = vadd.f32 %v2032_v30, %v1953_v3  ;;  %v16407_v55 = vrot.slane %v16406_v25, 4  ;;  %v16409_v21 = vrot.slane %v16408_v39, 4  ;;  %v16412_v27 = vld [vmem:[#allocation81_spill] sm:$0xff]  ;;  %v16413_v25 = vld [vmem:[#allocation142_spill] sm:$0xff]  ;;  %v16415_v39 = vld [vmem:[#allocation144_spill] sm:$0xff] }
 0x204   : > { %v10749_v11 = vsel %vm3256_vm3, %v3396_v10, %v16405_v63  ;;  %v4265_v14 = vrot.slane %v4211_v6, 5  ;;  %v4389_v10 = vrot.slane %v4335_v58, 5  ;;  %v4707_v33 = vmul.f32 %v10671_v48, %v16410_v9  ;;  %v16411_v63 = vld [vmem:[#allocation80_spill] sm:$0xff]  ;;  %v16417_v58 = vld [vmem:[#allocation146_spill] sm:$0xff] }
 0x205   : > { %v10758_v40 = vsel %vm3256_vm3, %v3520_v44, %v16407_v55  ;;  %v10763_v16 = vsel %vm3256_vm3, %v3644_v5, %v16409_v21  ;;  %v4831_v34 = vmul.f32 %v16411_v63, %v10564_v59  ;;  %v4955_v30 = vmul.f32 %v10628_v12, %v16412_v27  ;;  %v16419_v63 = vld [vmem:[#allocation17_spill] sm:$0xff]  ;;  %v16426_v27 = vld [vmem:[#allocation7_spill] sm:$0xff] }
 0x206   : > { %v2201_v3 = vadd.f32 %v2156_v61, %v2077_v60  ;;  %v16414_v44 = vrot.slane %v16413_v25, 4  ;;  %v16416_v5 = vrot.slane %v16415_v39, 4  ;;  %v16418_v21 = vrot.slane %v16417_v58, 4  ;;  %v16422_v39 = vld [vmem:[#allocation31_spill] sm:$0xff]  ;;  %v16424_v58 = vld [vmem:[#allocation6_spill] sm:$0xff] }
 0x207   : > { %v16420_v47 = vrot.slane %v16419_v63, 5  ;;  %v4513_v61 = vrot.slane %v4459_v19, 5  ;;  %v4637_v60 = vrot.slane %v4583_v1, 5  ;;  %v16427_v63 = vld [vmem:[#allocation55_spill] sm:$0xff]  ;;  %v4761_v1 = vrot.slane %v4707_v33, 5  ;;  %v16442_v33 = vld [vmem:[#allocation84_spill] sm:$0xff] }
 0x208   : > { %v10774_v55 = vsel %vm3256_vm3, %v3768_v20, %v16414_v44  ;;  %v10779_v6 = vsel %vm3256_vm3, %v3892_v24, %v16416_v5  ;;  %v10784_v9 = vsel %vm3256_vm3, %v4016_v4, %v16418_v21  ;;  %v16421_v20 = vld [vmem:[#allocation82_spill] sm:$0xff]  ;;  %v2325_v44 = vadd.f32 %v2280_v53, %v2201_v3  ;;  %v10810_v3 = vld [vmem:[%s7442_s10 + $0xf8] sm:$0xff] }
 0x209   : > { %v10789_v12 = vsel %vm4125_vm4, %v4141_v7, %v16420_v47  ;;  %v10793_v25 = vmul.f32 %v10633_v41, %v16421_v20  ;;  %v16423_v24 = vrot.slane %v16422_v39, 5  ;;  %v16425_v4 = vld [vmem:[#allocation46_spill] sm:$0xff]  ;;  %v394_v23 = vmul.f32 %v16427_v63, %v16426_v27  ;;  %v16428_v47 = vld [vmem:[#allocation32_spill] sm:$0xff]  ;;  %16431 = vst [vmem:[#allocation100_spill] sm:$0xff] %v10810_v3 }
 0x20a   : > { %v358_v21 = vmul.f32 %v16425_v4, %v16424_v58  ;;  %v16429_v7 = vrot.slane %v16428_v47, 5  ;;  %v4885_v41 = vrot.slane %v4831_v34, 5  ;;  %v5010_v20 = vrot.slane %v4955_v30, 6  ;;  %v16435_v58 = vld [vmem:[#allocation64_spill] sm:$0xff] }
 0x20b   : > { %v10798_v5 = vsel %vm4125_vm4, %v4265_v14, %v16423_v24  ;;  %v2450_v53 = vadd.f32 %v2405_v51, %v2325_v44  ;;  %v16432_v14 = vld [vmem:[#allocation8_spill] sm:$0xff]  ;;  %v16433_v24 = vld [vmem:[#allocation58_spill] sm:$0xff]  ;;  %v466_v22 = vmul.f32 %v16435_v58, %v16434_v29  ;;  %v16437_v27 = vrot.slane %v16436_v17, 5 }
 0x20c   : > { %v10807_v19 = vsel %vm4125_vm4, %v4389_v10, %v16429_v7  ;;  %v410_v39 = vadd.f32 %v394_v23, %v358_v21  ;;  %v430_v52 = vmul.f32 %v16433_v24, %v16432_v14  ;;  %v16439_v10 = vld [vmem:[#allocation37_spill] sm:$0xff]  ;;  %v5134_v51 = vrot.slane %v10793_v25, 6  ;;  %v16443_v21 = vld [vmem:[#allocation12_spill] sm:$0xff]  ;;  %v16444_v29 = vld [vmem:[#allocation134_spill] sm:$0xff] }
 0x20d   : > { %16430 = vst [vmem:[#allocation72_spill] sm:$0xff] %v10807_v19  ;;  %v10819_v47 = vsel %vm4125_vm4, %v4513_v61, %v16437_v27  ;;  %v16440_v7 = vrot.slane %v16439_v10, 5  ;;  %v10829_v23 = vmul.f32 %v10641_v57, %v16442_v33  ;;  %v2574_v30 = vadd.f32 %v10694_v43, %v2450_v53  ;;  %v16445_v14 = vld [vmem:[#allocation117_spill] sm:$0xff]  ;;  %v16446_v27 = vld [vmem:[#allocation14_spill] sm:$0xff]  ;;  %v16447_v10 = vld [vmem:[#allocation16_spill] sm:$0xff] }
 0x20e   : > { %16438 = vst [vmem:[#allocation78_spill] sm:$0xff] %v10819_v47  ;;  %v446_v44 = vadd.f32 %v430_v52, %v410_v39  ;;  %v502_v17 = vmul.f32 %v16444_v29, %v16443_v21  ;;  %v538_v61 = vmul.f32 %v16446_v27, %v16445_v14  ;;  %v574_v62 = vmul.f32 %v16447_v10, %v10810_v3  ;;  %v16450_v25 = vld [vmem:[#allocation50_spill] sm:$0xff]  ;;  %v16451_v33 = vld [vmem:[#allocation11_spill] sm:$0xff]  ;;  %v16453_v39 = vld [vmem:[#allocation57_spill] sm:$0xff] }
 0x20f   : > { %v10824_v34 = vsel %vm4125_vm4, %v4637_v60, %v16440_v7  ;;  %v16448_v60 = vld [vmem:[#allocation10_spill] sm:$0xff]  ;;  %v10846_v43 = vmul.f32 %v16427_v63, %v16451_v33  ;;  %v2698_v52 = vadd.f32 %v10707_v35, %v2574_v30  ;;  %v740_v27 = vmul.f32 %v16453_v39, %v16451_v33  ;;  %v16454_v21 = vld [vmem:[#allocation13_spill] sm:$0xff]  ;;  %v16457_v30 = vld [vmem:[#allocation43_spill] sm:$0xff] }
 0x210   : > { %16441 = vst [vmem:[#allocation88_spill] sm:$0xff] %v10824_v34  ;;  %v10840_v7 = vmul.f32 %v16425_v4, %v16448_v60  ;;  %v615_v57 = vmul.f32 %v16450_v25, %v16448_v60  ;;  %v482_v53 = vadd.f32 %v466_v22, %v446_v44  ;;  %v10853_v10 = vmul.f32 %v16433_v24, %v16454_v21  ;;  %v16456_v60 = vld [vmem:[#allocation60_spill] sm:$0xff]  ;;  %v16462_v47 = vld [vmem:[#allocation73_spill] sm:$0xff] }
 0x211   : > { %16452 = vst [vmem:[#allocation102_spill] sm:$0xff] %v10846_v43  ;;  %v864_v56 = vmul.f32 %v16456_v60, %v16454_v21  ;;  %v2822_v19 = vadd.f32 %v10718_v38, %v2698_v52  ;;  %v797_v22 = vrot.slane %v740_v27, 1  ;;  %v16458_v44 = vrot.slane %v16457_v30, 5  ;;  %v16465_v30 = vld [vmem:[#allocation19_spill] sm:$0xff] }
 0x212   : > { %16449 = vst [vmem:[#allocation101_spill] sm:$0xff] %v10840_v7  ;;  %16455 = vst [vmem:[#allocation92_spill] sm:$0xff] %v10853_v10  ;;  %v673_v34 = vrot.slane %v615_v57, 1  ;;  %v518_v54 = vadd.f32 %v502_v17, %v482_v53  ;;  %v10868_v57 = vmul.f32 %v16435_v58, %v16460_v13  ;;  %v988_v21 = vmul.f32 %v16462_v47, %v16460_v13  ;;  %v16463_v17 = vld [vmem:[#allocation44_spill] sm:$0xff] }
 0x213   : > { %v10864_v33 = vsel %vm4125_vm4, %v4761_v1, %v16458_v44  ;;  %v921_v49 = vrot.slane %v864_v56, 1  ;;  %v2946_v38 = vadd.f32 %v10725_v8, %v2822_v19  ;;  %v16464_v52 = vrot.slane %v16463_v17, 5  ;;  %v16467_v56 = vld [vmem:[#allocation45_spill] sm:$0xff]  ;;  %v10897_v17 = vld [vmem:[%s7442_s10 + $0x100] sm:$0x3f] }
 0x214   : > { %16459 = vst [vmem:[#allocation85_spill] sm:$0xff] %v10864_v33  ;;  %16461 = vst [vmem:[#allocation87_spill] sm:$0xff] %v10868_v57  ;;  %v554_v53 = vadd.f32 %v538_v61, %v518_v54  ;;  %v10880_v1 = vmul.f32 %v16444_v29, %v16465_v30  ;;  %v16468_v44 = vrot.slane %v16467_v56, 6  ;;  %v16469_v33 = vrot.slane %v10840_v7, 1 }
 0x215   : > { %v10876_v27 = vsel %vm4125_vm4, %v4885_v41, %v16464_v52  ;;  %v16470_v8 = vrot.slane %v10846_v43, 1  ;;  %v16471_v41 = vld [vmem:[#allocation143_spill] sm:$0xff]  ;;  %v3070_v61 = vadd.f32 %v10732_v50, %v2946_v38  ;;  %16472 = vst [vmem:[#allocation69_spill] sm:$0xff] %v10897_v17  ;;  %v16473_v56 = vrot.slane %v10853_v10, 1 }
 0x216   : > { %16466 = vst [vmem:[#allocation20_spill] sm:$0xff] %v10880_v1  ;;  %v10885_v35 = vsel %vm4994_vm5, %v5010_v20, %v16468_v44  ;;  %v674_v13 = vsel %vm649_vm0, %v16469_v33, %v673_v34  ;;  %v1112_v54 = vmul.f32 %v16471_v41, %v16465_v30  ;;  %v590_v52 = vadd.f32 %v574_v62, %v554_v53  ;;  %v16474_v44 = vld [vmem:[#allocation23_spill] sm:$0xff] }
 0x217   : > { %v798_v19 = vsel %vm649_vm0, %v16470_v8, %v797_v22  ;;  %v922_v20 = vsel %vm649_vm0, %v16473_v56, %v921_v49  ;;  %v10904_v7 = vmul.f32 %v16474_v44, %v16445_v14  ;;  %v15070_v34 = vrot.slane %v10868_v57, 1  ;;  %v16476_v8 = vld [vmem:[#allocation124_spill] sm:$0xff]  ;;  %v16479_v22 = vld [vmem:[#allocation27_spill] sm:$0xff] }
 0x218   : > { %v1045_v33 = vrot.slane %v988_v21, 1  ;;  %v1236_v43 = vmul.f32 %v16474_v44, %v16476_v8  ;;  %v3194_v50 = vadd.f32 %v10737_v37, %v3070_v61  ;;  %v715_v38 = vadd.f32 %v674_v13, %v590_v52 }
 0x219   : > { %16475 = vst [vmem:[#allocation74_spill] sm:$0xff] %v10904_v7  ;;  %v1169_v62 = vrot.slane %v1112_v54, 1  ;;  %v10913_v53 = vmul.f32 %v16350_v18, %v10810_v3  ;;  %v1360_v56 = vmul.f32 %v16350_v18, %v10897_v17  ;;  %v10920_v21 = vmul.f32 %v16425_v4, %v16353_v46 }
 0x21a   : > { %v1293_v14 = vrot.slane %v1236_v43, 1  ;;  %v3319_v8 = vadd.f32 %v10742_v15, %v3194_v50  ;;  %v16480_v37 = vrot.slane %v16479_v22, 6  ;;  %v839_v54 = vadd.f32 %v798_v19, %v715_v38  ;;  %v16482_v22 = vld [vmem:[#allocation89_spill] sm:$0xff] }
 0x21b   : > { %16477 = vst [vmem:[#allocation83_spill] sm:$0xff] %v10913_v53  ;;  %16478 = vst [vmem:[#allocation93_spill] sm:$0xff] %v10920_v21  ;;  %v1484_v61 = vmul.f32 %v16450_v25, %v16353_v46  ;;  %v5258_v43 = vrot.slane %v10829_v23, 6  ;;  %v1046_v52 = vsel %vm649_vm0, %v15070_v34, %v1045_v33  ;;  %v10936_v49 = vmul.f32 %v16427_v63, %v15725_v45 }
 0x21c   : > { %v10926_v13 = vsel %vm4994_vm5, %v5134_v51, %v16480_v37  ;;  %v1609_v15 = vmul.f32 %v16453_v39, %v15725_v45  ;;  %v3443_v51 = vadd.f32 %v10749_v11, %v3319_v8  ;;  %v10943_v19 = vmul.f32 %v10655_v0, %v16482_v22 }
 0x21d   : > { %16481 = vst [vmem:[#allocation86_spill] sm:$0xff] %v10936_v49  ;;  %v963_v50 = vadd.f32 %v922_v20, %v839_v54  ;;  %v16483_v23 = vrot.slane %v10880_v1, 1  ;;  %v16484_v33 = vrot.slane %v10904_v7, 1  ;;  %v15076_v34 = vrot.slane %v10913_v53, 1 }
 0x21e   : > { %v1417_v57 = vrot.slane %v1360_v56, 1  ;;  %v15082_v10 = vrot.slane %v10920_v21, 2  ;;  %v3567_v11 = vadd.f32 %v10758_v40, %v3443_v51  ;;  %v1542_v45 = vrot.slane %v1484_v61, 2 }
 0x21f   : > { %v1170_v38 = vsel %vm649_vm0, %v16483_v23, %v1169_v62  ;;  %v1294_v37 = vsel %vm649_vm0, %v16484_v33, %v1293_v14  ;;  %v1087_v8 = vadd.f32 %v1046_v52, %v963_v50  ;;  %v1666_v20 = vrot.slane %v1609_v15, 2  ;;  %v16487_v23 = vld [vmem:[#allocation90_spill] sm:$0xff]  ;;  %v16488_v15 = vld [vmem:[#allocation91_spill] sm:$0xff] }
 0x220   : > { %v10957_v54 = vmul.f32 %v16433_v24, %v15973_v28  ;;  %v1733_v62 = vmul.f32 %v16456_v60, %v15973_v28  ;;  %v10963_v14 = vmul.f32 %v16435_v58, %v16358_v42  ;;  %v3691_v56 = vadd.f32 %v10763_v16, %v3567_v11  ;;  %v16490_v11 = vld [vmem:[#allocation119_spill] sm:$0xff]  ;;  %v11000_v28 = vld [vmem:[%s7442_s10 + $0xe0] sm:$0xff] }
 0x221   : > { %v10968_v40 = vmul.f32 %v10666_v2, %v16487_v23  ;;  %v1211_v61 = vadd.f32 %v1170_v38, %v1087_v8  ;;  %v1857_v52 = vmul.f32 %v16462_v47, %v16358_v42  ;;  %v10974_v51 = vmul.f32 %v10671_v48, %v16488_v15  ;;  %16492 = vst [vmem:[#allocation41_spill] sm:$0xff] %v11000_v28 }
 0x222   : > { %16485 = vst [vmem:[#allocation97_spill] sm:$0xff] %v10957_v54  ;;  %16486 = vst [vmem:[#allocation30_spill] sm:$0xff] %v10963_v14  ;;  %v1418_v50 = vsel %vm649_vm0, %v15076_v34, %v1417_v57  ;;  %v10981_v16 = vmul.f32 %v16444_v29, %v16359_v31  ;;  %v1981_v33 = vmul.f32 %v16471_v41, %v16359_v31  ;;  %v16491_v57 = vrot.slane %v10936_v49, 2 }
 0x223   : > { %v3815_v38 = vadd.f32 %v10774_v55, %v3691_v56  ;;  %v10988_v8 = vmul.f32 %v16490_v11, %v10564_v59  ;;  %v1335_v46 = vadd.f32 %v1294_v37, %v1211_v61  ;;  %v1543_v53 = vsel %vm1518_vm1, %v15082_v10, %v1542_v45  ;;  %v11008_v10 = vld [vmem:[%s7442_s10 + $0xe8] sm:$0x3f] }
 0x224   : > { %16489 = vst [vmem:[#allocation94_spill] sm:$0xff] %v10981_v16  ;;  %v1667_v34 = vsel %vm1518_vm1, %v16491_v57, %v1666_v20  ;;  %v15083_v7 = vrot.slane %v10957_v54, 2  ;;  %v1790_v1 = vrot.slane %v1733_v62, 2  ;;  %v1914_v42 = vrot.slane %v1857_v52, 2  ;;  %16494 = vst [vmem:[#allocation112_spill] sm:$0xff] %v11008_v10 }
 0x225   : > { %v3939_v55 = vadd.f32 %v10779_v6, %v3815_v38  ;;  %v1459_v56 = vadd.f32 %v1418_v50, %v1335_v46  ;;  %v11004_v37 = vmul.f32 %v11000_v28, %v16102_v26  ;;  %v2038_v61 = vrot.slane %v1981_v33, 2  ;;  %v16496_v6 = vld [vmem:[#allocation108_spill] sm:$0xff] }
 0x226   : > { %v2105_v20 = vmul.f32 %v11008_v10, %v16102_v26  ;;  %v11014_v62 = vmul.f32 %v15983_v32, %v10810_v3  ;;  %v16497_v52 = vrot.slane %v16496_v6, 6  ;;  %v5382_v38 = vrot.slane %v10943_v19, 6 }
 0x227   : > { %16493 = vst [vmem:[#allocation96_spill] sm:$0xff] %v11004_v37  ;;  %v4063_v46 = vadd.f32 %v10784_v9, %v3939_v55  ;;  %v1584_v57 = vadd.f32 %v1543_v53, %v1459_v56  ;;  %v1791_v33 = vsel %vm1518_vm1, %v15083_v7, %v1790_v1  ;;  %v2229_v45 = vmul.f32 %v15983_v32, %v10897_v17 }
 0x228   : > { %16495 = vst [vmem:[#allocation113_spill] sm:$0xff] %v11014_v62  ;;  %v11020_v50 = vsel %vm4994_vm5, %v5258_v43, %v16497_v52  ;;  %v11030_v31 = vmul.f32 %v16425_v4, %v15987_v36  ;;  %v2353_v9 = vmul.f32 %v16450_v25, %v15987_v36  ;;  %v16499_v53 = vrot.slane %v10963_v14, 2 }
 0x229   : > { %v4188_v43 = vadd.f32 %v10789_v12, %v4063_v46  ;;  %v1708_v19 = vadd.f32 %v1667_v34, %v1584_v57  ;;  %v16500_v1 = vrot.slane %v10981_v16, 2  ;;  %v15090_v52 = vrot.slane %v11004_v37, 2  ;;  %v16501_v12 = vld [vmem:[#allocation40_spill] sm:$0xff]  ;;  %v16506_v57 = vld [vmem:[#allocation47_spill] sm:$0xff] }
 0x22a   : > { %16498 = vst [vmem:[#allocation114_spill] sm:$0xff] %v11030_v31  ;;  %v1915_v56 = vsel %vm1518_vm1, %v16499_v53, %v1914_v42  ;;  %v2162_v7 = vrot.slane %v2105_v20, 2  ;;  %v11047_v46 = vmul.f32 %v16427_v63, %v16501_v12  ;;  %v2478_v34 = vmul.f32 %v16453_v39, %v16501_v12  ;;  %v16505_v20 = vld [vmem:[#allocation72_spill] sm:$0xff]  ;;  %v16509_v16 = vld [vmem:[#allocation59_spill] sm:$0xff] }
 0x22b   : > { %v2039_v6 = vsel %vm1518_vm1, %v16500_v1, %v2038_v61  ;;  %v4312_v49 = vadd.f32 %v10798_v5, %v4188_v43  ;;  %v1832_v21 = vadd.f32 %v1791_v33, %v1708_v19  ;;  %v2286_v42 = vrot.slane %v2229_v45, 2  ;;  %v16503_v61 = vld [vmem:[#allocation42_spill] sm:$0xff]  ;;  %v16513_v12 = vld [vmem:[#allocation88_spill] sm:$0xff] }
 0x22c   : > { %16502 = vst [vmem:[#allocation103_spill] sm:$0xff] %v11047_v46  ;;  %v2411_v53 = vrot.slane %v2353_v9, 3  ;;  %v11054_v1 = vmul.f32 %v16433_v24, %v16503_v61  ;;  %v5630_v5 = vrot.slane %v10974_v51, 6  ;;  %v2602_v43 = vmul.f32 %v16456_v60, %v16503_v61 }
 0x22d   : > { %v4436_v55 = vadd.f32 %v16505_v20, %v4312_v49  ;;  %v1956_v33 = vadd.f32 %v1915_v56, %v1832_v21  ;;  %v5754_v19 = vrot.slane %v10988_v8, 6  ;;  %v2163_v45 = vsel %vm1518_vm1, %v15090_v52, %v2162_v7  ;;  %v16508_v49 = vld [vmem:[#allocation78_spill] sm:$0xff] }
 0x22e   : > { %16504 = vst [vmem:[#allocation106_spill] sm:$0xff] %v11054_v1  ;;  %v11066_v9 = vmul.f32 %v16435_v58, %v16506_v57  ;;  %v2726_v54 = vmul.f32 %v16462_v47, %v16506_v57  ;;  %v15094_v21 = vrot.slane %v11047_v46, 3  ;;  %v2535_v56 = vrot.slane %v2478_v34, 3 }
 0x22f   : > { %v4560_v20 = vadd.f32 %v16508_v49, %v4436_v55  ;;  %v2080_v51 = vadd.f32 %v2039_v6, %v1956_v33  ;;  %v16510_v14 = vrot.slane %v16509_v16, 6  ;;  %v16511_v37 = vrot.slane %v11014_v62, 2  ;;  %v16514_v49 = vld [vmem:[#allocation48_spill] sm:$0xff] }
 0x230   : > { %16507 = vst [vmem:[#allocation115_spill] sm:$0xff] %v11066_v9  ;;  %v16512_v52 = vrot.slane %v11030_v31, 3  ;;  %v2659_v33 = vrot.slane %v2602_v43, 3  ;;  %v11085_v34 = vmul.f32 %v16444_v29, %v16514_v49  ;;  %v2783_v16 = vrot.slane %v2726_v54, 3  ;;  %v16519_v43 = vld [vmem:[#allocation52_spill] sm:$0xff] }
 0x231   : > { %v5384_v8 = vsel %vm4994_vm5, %v5382_v38, %v16510_v14  ;;  %v2287_v7 = vsel %vm1518_vm1, %v16511_v37, %v2286_v42  ;;  %v4684_v55 = vadd.f32 %v16513_v12, %v4560_v20  ;;  %v2204_v6 = vadd.f32 %v2163_v45, %v2080_v51  ;;  %v16516_v38 = vld [vmem:[#allocation49_spill] sm:$0xff] }
 0x232   : > { %v2412_v61 = vsel %vm2387_vm2, %v16512_v52, %v2411_v53  ;;  %16515 = vst [vmem:[#allocation107_spill] sm:$0xff] %v11085_v34  ;;  %v15100_v14 = vrot.slane %v11066_v9, 3  ;;  %v2850_v37 = vmul.f32 %v16471_v41, %v16514_v49  ;;  %v11092_v42 = vmul.f32 %v11000_v28, %v16516_v38  ;;  %v16518_v52 = vld [vmem:[#allocation85_spill] sm:$0xff] }
 0x233   : > { %v4808_v53 = vadd.f32 %v16518_v52, %v4684_v55  ;;  %v2328_v57 = vadd.f32 %v2287_v7, %v2204_v6  ;;  %v2536_v12 = vsel %vm2387_vm2, %v15094_v21, %v2535_v56  ;;  %v2974_v29 = vmul.f32 %v11008_v10, %v16516_v38  ;;  %v16521_v20 = vld [vmem:[#allocation53_spill] sm:$0xff] }
 0x234   : > { %16517 = vst [vmem:[#allocation121_spill] sm:$0xff] %v11092_v42  ;;  %v11102_v54 = vmul.f32 %v16519_v43, %v10810_v3  ;;  %v3098_v45 = vmul.f32 %v16519_v43, %v10897_v17  ;;  %v11108_v51 = vmul.f32 %v16425_v4, %v16521_v20  ;;  %v3222_v7 = vmul.f32 %v16450_v25, %v16521_v20  ;;  %v16524_v43 = vld [vmem:[#allocation54_spill] sm:$0xff] }
 0x235   : > { %v4932_v55 = vadd.f32 %v10876_v27, %v4808_v53  ;;  %v2453_v56 = vadd.f32 %v2412_v61, %v2328_v57  ;;  %v16523_v6 = vrot.slane %v11054_v1, 3  ;;  %v2784_v46 = vsel %vm2387_vm2, %v15100_v14, %v2783_v16  ;;  %v16526_v14 = vld [vmem:[#allocation65_spill] sm:$0xff]  ;;  %v16533_v53 = vld [vmem:[#allocation95_spill] sm:$0xff] }
 0x236   : > { %16520 = vst [vmem:[#allocation109_spill] sm:$0xff] %v11102_v54  ;;  %16522 = vst [vmem:[#allocation104_spill] sm:$0xff] %v11108_v51  ;;  %v2907_v31 = vrot.slane %v2850_v37, 3  ;;  %v11123_v38 = vmul.f32 %v16427_v63, %v16524_v43  ;;  %v3031_v61 = vrot.slane %v2974_v29, 3  ;;  %v3280_v16 = vrot.slane %v3222_v7, 4 }
 0x237   : > { %v2660_v52 = vsel %vm2387_vm2, %v16523_v6, %v2659_v33  ;;  %v5057_v27 = vadd.f32 %v10885_v35, %v4932_v55  ;;  %v2577_v57 = vadd.f32 %v2536_v12, %v2453_v56  ;;  %v3347_v33 = vmul.f32 %v16453_v39, %v16524_v43  ;;  %v16529_v12 = vld [vmem:[#allocation56_spill] sm:$0xff]  ;;  %v16531_v55 = vld [vmem:[#allocation79_spill] sm:$0xff] }
 0x238   : > { %16525 = vst [vmem:[#allocation105_spill] sm:$0xff] %v11123_v38  ;;  %v3155_v6 = vrot.slane %v3098_v45, 3  ;;  %v16527_v62 = vrot.slane %v16526_v14, 6  ;;  %v16528_v9 = vrot.slane %v10968_v40, 6  ;;  %v11138_v29 = vmul.f32 %v16433_v24, %v16529_v12 }
 0x239   : > { %v5181_v37 = vadd.f32 %v10926_v13, %v5057_v27  ;;  %v2701_v35 = vadd.f32 %v2660_v52, %v2577_v57  ;;  %v16532_v56 = vrot.slane %v16531_v55, 6  ;;  %v16534_v21 = vrot.slane %v16533_v53, 6  ;;  %v16539_v55 = vld [vmem:[#allocation61_spill] sm:$0xff] }
 0x23a   : > { %v5508_v1 = vsel %vm4994_vm5, %v16528_v9, %v16527_v62  ;;  %16530 = vst [vmem:[#allocation116_spill] sm:$0xff] %v11138_v29  ;;  %v16535_v14 = vrot.slane %v11085_v34, 3  ;;  %v15106_v62 = vrot.slane %v11123_v38, 4  ;;  %v3404_v52 = vrot.slane %v3347_v33, 4 }
 0x23b   : > { %v5632_v45 = vsel %vm4994_vm5, %v5630_v5, %v16532_v56  ;;  %v5756_v13 = vsel %vm4994_vm5, %v5754_v19, %v16534_v21  ;;  %v5305_v9 = vadd.f32 %v11020_v50, %v5181_v37  ;;  %v2825_v7 = vadd.f32 %v2784_v46, %v2701_v35  ;;  %v16541_v56 = vld [vmem:[#allocation62_spill] sm:$0xff] }
 0x23c   : > { %v2908_v40 = vsel %vm2387_vm2, %v16535_v14, %v2907_v31  ;;  %v3471_v27 = vmul.f32 %v16456_v60, %v16529_v12  ;;  %v16536_v5 = vrot.slane %v11092_v42, 3  ;;  %v16537_v53 = vrot.slane %v11102_v54, 3  ;;  %v16543_v14 = vld [vmem:[#allocation63_spill] sm:$0xff]  ;;  %v16545_v37 = vld [vmem:[#allocation66_spill] sm:$0xff] }
 0x23d   : > { %v16538_v21 = vrot.slane %v11108_v51, 4  ;;  %v11164_v50 = vmul.f32 %v16435_v58, %v16539_v55  ;;  %v5429_v46 = vadd.f32 %v5384_v8, %v5305_v9  ;;  %v2949_v33 = vadd.f32 %v2908_v40, %v2825_v7  ;;  %v16547_v54 = vld [vmem:[#allocation67_spill] sm:$0xff] }
 0x23e   : > { %v3032_v57 = vsel %vm2387_vm2, %v16536_v5, %v3031_v61  ;;  %v3156_v19 = vsel %vm2387_vm2, %v16537_v53, %v3155_v6  ;;  %v3595_v35 = vmul.f32 %v16462_v47, %v16539_v55  ;;  %v11170_v61 = vld [vmem:[%s7442_s10 + $0xc8] sm:$0xff]  ;;  %v11180_v5 = vmul.f32 %v11000_v28, %v16543_v14 }
 0x23f   : > { %v3281_v31 = vsel %vm3256_vm3, %v16538_v21, %v3280_v16  ;;  %16540 = vst [vmem:[#allocation118_spill] sm:$0xff] %v11164_v50  ;;  %v11174_v6 = vmul.f32 %v11170_v61, %v16541_v56  ;;  %v3719_v16 = vmul.f32 %v16471_v41, %v16541_v56  ;;  %v3843_v8 = vmul.f32 %v11008_v10, %v16543_v14 }
 0x240   : > { %16544 = vst [vmem:[#allocation122_spill] sm:$0xff] %v11180_v5  ;;  %v5553_v40 = vadd.f32 %v5508_v1, %v5429_v46  ;;  %v3073_v9 = vadd.f32 %v3032_v57, %v2949_v33  ;;  %v3405_v7 = vsel %vm3256_vm3, %v15106_v62, %v3404_v52  ;;  %v3528_v53 = vrot.slane %v3471_v27, 4 }
 0x241   : > { %16542 = vst [vmem:[#allocation120_spill] sm:$0xff] %v11174_v6  ;;  %v11190_v51 = vmul.f32 %v16545_v37, %v10810_v3  ;;  %v3967_v41 = vmul.f32 %v16545_v37, %v10897_v17  ;;  %v11196_v42 = vmul.f32 %v16425_v4, %v16547_v54  ;;  %v3652_v46 = vrot.slane %v3595_v35, 4  ;;  %v16550_v35 = vld [vmem:[#allocation68_spill] sm:$0xff] }
 0x242   : > { %v5677_v1 = vadd.f32 %v5632_v45, %v5553_v40  ;;  %v3197_v57 = vadd.f32 %v3156_v19, %v3073_v9  ;;  %v4091_v52 = vmul.f32 %v16450_v25, %v16547_v54  ;;  %v15112_v27 = vrot.slane %v11174_v6, 4  ;;  %v16551_v9 = vld [vmem:[#allocation21_spill] sm:$0xff] }
 0x243   : > { %16546 = vst [vmem:[#allocation123_spill] sm:$0xff] %v11190_v51  ;;  %16548 = vst [vmem:[#allocation125_spill] sm:$0xff] %v11196_v42  ;;  %v3776_v33 = vrot.slane %v3719_v16, 4  ;;  %v3900_v21 = vrot.slane %v3843_v8, 4  ;;  %v16549_v37 = vrot.slane %v11138_v29, 4  ;;  %v15115_v56 = vrot.slane %v11190_v51, 4 }
 0x244   : > { %v5801_v38 = vadd.f32 %v5756_v13, %v5677_v1  ;;  %v3322_v34 = vadd.f32 %v3281_v31, %v3197_v57  ;;  %v4024_v45 = vrot.slane %v3967_v41, 4  ;;  %v15118_v19 = vrot.slane %v11196_v42, 5  ;;  %v16564_v29 = vld [vmem:[#allocation81_spill] sm:$0xff] }
 0x245   : > { %v3529_v14 = vsel %vm3256_vm3, %v16549_v37, %v3528_v53  ;;  %v11209_v40 = vmul.f32 %v16427_v63, %v16550_v35  ;;  %v4149_v8 = vrot.slane %v4091_v52, 5  ;;  %v4216_v13 = vmul.f32 %v16453_v39, %v16550_v35  ;;  %v16556_v52 = vld [vmem:[#allocation75_spill] sm:$0xff]  ;;  %v16566_v35 = vld [vmem:[#allocation82_spill] sm:$0xff] }
 0x246   : > { %v11212_v16 = vadd.f32 %v16551_v9, %v5801_v38  ;;  %v3446_v62 = vadd.f32 %v3405_v7, %v3322_v34  ;;  %v16553_v31 = vrot.slane %v11164_v50, 4  ;;  %v3777_v53 = vsel %vm3256_vm3, %v15112_v27, %v3776_v33  ;;  %v16555_v38 = vld [vmem:[#allocation70_spill] sm:$0xff] }
 0x247   : > { %v16554_v41 = vrot.slane %v11180_v5, 4  ;;  %v11227_v34 = vmul.f32 %v16433_v24, %v16555_v38  ;;  %v11235_v9 = vmul.f32 %v16435_v58, %v16556_v52  ;;  %v4150_v27 = vsel %vm4125_vm4, %v15118_v19, %v4149_v8  ;;  %v16562_v5 = vld [vmem:[#allocation80_spill] sm:$0xff] }
 0x248   : > { %16552 = vst [vmem:[#allocation126_spill] sm:$0xff] %v11212_v16  ;;  %v3653_v37 = vsel %vm3256_vm3, %v16553_v31, %v3652_v46  ;;  %v5853_v7 = vsel %vm5834_vm6, %v11212_v16, 0.0  ;;  %v3570_v57 = vadd.f32 %v3529_v14, %v3446_v62  ;;  %v4340_v46 = vmul.f32 %v16456_v60, %v16555_v38 }
 0x249   : > { %v3901_v1 = vsel %vm3256_vm3, %v16554_v41, %v3900_v21  ;;  %5854 = vadd.xlane.f32.xlu0 %v5853_v7  ;;  %v4025_v21 = vsel %vm3256_vm3, %v15115_v56, %v4024_v45  ;;  %v4464_v31 = vmul.f32 %v16462_v47, %v16556_v52  ;;  %v16557_v41 = vld [vmem:[#allocation76_spill] sm:$0xff]  ;;  %v4273_v16 = vrot.slane %v4216_v13, 5  ;;  %v16560_v56 = vld [vmem:[#allocation77_spill] sm:$0xff] }
 0x24a   : > { %v11245_v62 = vmul.f32 %v11170_v61, %v16557_v41  ;;  %v3694_v14 = vadd.f32 %v3653_v37, %v3570_v57  ;;  %v11251_v7 = vld [vmem:[%s7442_s10 + $0xd0] sm:$0x3f]  ;;  %v11257_v33 = vmul.f32 %v11000_v28, %v16560_v56  ;;  %v4712_v51 = vmul.f32 %v11008_v10, %v16560_v56 }
 0x24b   : > { %16559 = vst [vmem:[#allocation128_spill] sm:$0xff] %v11251_v7  ;;  %v4588_v45 = vmul.f32 %v11251_v7, %v16557_v41  ;;  %v11263_v37 = vmul.f32 %v16562_v5, %v10810_v3  ;;  %v4836_v8 = vmul.f32 %v16562_v5, %v10897_v17  ;;  %v4397_v19 = vrot.slane %v4340_v46, 5 }
 0x24c   : > { %16558 = vst [vmem:[#allocation127_spill] sm:$0xff] %v11245_v62  ;;  %16561 = vst [vmem:[#allocation129_spill] sm:$0xff] %v11257_v33  ;;  %v3818_v13 = vadd.f32 %v3777_v53, %v3694_v14  ;;  %v4521_v6 = vrot.slane %v4464_v31, 5  ;;  %v11272_v41 = vmul.f32 %v16425_v4, %v16564_v29  ;;  %v4960_v56 = vmul.f32 %v16450_v25, %v16564_v29 }
 0x24d   : > { %16563 = vst [vmem:[#allocation131_spill] sm:$0xff] %v11263_v37  ;;  %v4645_v38 = vrot.slane %v4588_v45, 5  ;;  %v11278_v53 = vmul.f32 %v16427_v63, %v16566_v35  ;;  %v5085_v46 = vmul.f32 %v16453_v39, %v16566_v35  ;;  %v4769_v14 = vrot.slane %v4712_v51, 5 }
 0x24e   : > { %16565 = vst [vmem:[#allocation133_spill] sm:$0xff] %v11272_v41  ;;  %v3942_v52 = vadd.f32 %v3901_v1, %v3818_v13  ;;  %v4893_v42 = vrot.slane %v4836_v8, 5  ;;  %v16568_v57 = vrot.slane %v11209_v40, 5  ;;  %v16569_v1 = vld [vmem:[#allocation84_spill] sm:$0xff]  ;;  %v16571_v39 = vrot.slane %v11227_v34, 5 }
 0x24f   : > { %16567 = vst [vmem:[#allocation135_spill] sm:$0xff] %v11278_v53  ;;  %v11289_v45 = vmul.f32 %v16433_v24, %v16569_v1  ;;  %v5209_v63 = vmul.f32 %v16456_v60, %v16569_v1  ;;  %v16572_v51 = vrot.slane %v11235_v9, 5  ;;  %v5142_v31 = vrot.slane %v5085_v46, 6  ;;  %v16579_v46 = vld [vmem:[#allocation7_spill] sm:$0xff] }
 0x250   : > { %v4066_v4 = vadd.f32 %v4025_v21, %v3942_v52  ;;  %v4274_v25 = vsel %vm4125_vm4, %v16568_v57, %v4273_v16  ;;  %v4398_v13 = vsel %vm4125_vm4, %v16571_v39, %v4397_v19  ;;  %v5018_v21 = vrot.slane %v4960_v56, 6  ;;  %v16577_v56 = vld [vmem:[#allocation6_spill] sm:$0xff] }
 0x251   : > { %16570 = vst [vmem:[#allocation136_spill] sm:$0xff] %v11289_v45  ;;  %v4522_v8 = vsel %vm4125_vm4, %v16572_v51, %v4521_v6  ;;  %v16573_v16 = vrot.slane %v11245_v62, 5  ;;  %v16574_v60 = vrot.slane %v11257_v33, 5  ;;  %v16575_v19 = vrot.slane %v11263_v37, 5  ;;  %v16580_v57 = vld [vmem:[#allocation98_spill] sm:$0xff] }
 0x252   : > { %v4191_v50 = vadd.f32 %v4150_v27, %v4066_v4  ;;  %v11312_v6 = vmul.f32 %v16435_v58, %v16482_v22  ;;  %v16578_v27 = vld [vmem:[#allocation51_spill] sm:$0xff]  ;;  %v393_v52 = vmul.f32 %v16580_v57, %v16579_v46  ;;  %v11326_v58 = vmul.f32 %v11170_v61, %v16487_v23  ;;  %v16587_v33 = vld [vmem:[#allocation10_spill] sm:$0xff] }
 0x253   : > { %v4646_v24 = vsel %vm4125_vm4, %v16573_v16, %v4645_v38  ;;  %v4770_v1 = vsel %vm4125_vm4, %v16574_v60, %v4769_v14  ;;  %v4894_v39 = vsel %vm4125_vm4, %v16575_v19, %v4893_v42  ;;  %v357_v4 = vmul.f32 %v16578_v27, %v16577_v56  ;;  %v16583_v19 = vld [vmem:[#allocation8_spill] sm:$0xff] }
 0x254   : > { %16576 = vst [vmem:[#allocation130_spill] sm:$0xff] %v11312_v6  ;;  %v4315_v51 = vadd.f32 %v4274_v25, %v4191_v50  ;;  %v5266_v16 = vrot.slane %v5209_v63, 6  ;;  %v16581_v14 = vrot.slane %v11272_v41, 6  ;;  %v5333_v42 = vmul.f32 %v16462_v47, %v16482_v22  ;;  %16582 = vst [vmem:[#allocation137_spill] sm:$0xff] %v11326_v58  ;;  %v16585_v41 = vld [vmem:[#allocation9_spill] sm:$0xff] }
 0x255   : > { %v429_v50 = vmul.f32 %v10655_v0, %v16583_v19  ;;  %v16584_v63 = vrot.slane %v11278_v53, 6  ;;  %v409_v37 = vadd.f32 %v393_v52, %v357_v4  ;;  %v5457_v47 = vmul.f32 %v11251_v7, %v16487_v23  ;;  %v16589_v4 = vld [vmem:[#allocation12_spill] sm:$0xff] }
 0x256   : > { %v5019_v60 = vsel %vm4994_vm5, %v16581_v14, %v5018_v21  ;;  %v4439_v25 = vadd.f32 %v4398_v13, %v4315_v51  ;;  %v465_v21 = vmul.f32 %v10666_v2, %v16585_v41  ;;  %v11340_v22 = vmul.f32 %v11000_v28, %v16488_v15  ;;  %v11353_v7 = vld [vmem:[%s7442_s10 + $0xf0] sm:$0xff]  ;;  %v16590_v28 = vld [vmem:[#allocation11_spill] sm:$0xff] }
 0x257   : > { %v5143_v38 = vsel %vm4994_vm5, %v16584_v63, %v5142_v31  ;;  %v613_v13 = vmul.f32 %v16578_v27, %v16587_v33  ;;  %v16588_v53 = vrot.slane %v11289_v45, 6  ;;  %v445_v52 = vadd.f32 %v429_v50, %v409_v37 }
 0x258   : > { %16586 = vst [vmem:[#allocation132_spill] sm:$0xff] %v11340_v22  ;;  %v4563_v51 = vadd.f32 %v4522_v8, %v4439_v25  ;;  %v501_v63 = vmul.f32 %v10671_v48, %v16589_v4  ;;  %v5390_v14 = vrot.slane %v5333_v42, 6  ;;  %v5581_v23 = vmul.f32 %v11008_v10, %v16488_v15  ;;  %v16593_v15 = vld [vmem:[#allocation13_spill] sm:$0xff]  ;;  %v16596_v4 = vld [vmem:[#allocation18_spill] sm:$0xff] }
 0x259   : > { %v5267_v31 = vsel %vm4994_vm5, %v16588_v53, %v5266_v16  ;;  %v738_v33 = vmul.f32 %v16580_v57, %v16590_v28  ;;  %v11359_v25 = vmul.f32 %v16490_v11, %v10810_v3  ;;  %v481_v37 = vadd.f32 %v465_v21, %v445_v52  ;;  %v16592_v53 = vld [vmem:[#allocation14_spill] sm:$0xff] }
 0x25a   : > { %v4687_v8 = vadd.f32 %v4646_v24, %v4563_v51  ;;  %v537_v16 = vmul.f32 %v16592_v53, %v10564_v59  ;;  %v5514_v42 = vrot.slane %v5457_v47, 6  ;;  %v5705_v50 = vmul.f32 %v16490_v11, %v10897_v17  ;;  %v16594_v51 = vld [vmem:[#allocation16_spill] sm:$0xff] }
 0x25b   : > { %16591 = vst [vmem:[#allocation141_spill] sm:$0xff] %v11359_v25  ;;  %v670_v62 = vrot.slane %v613_v13, 1  ;;  %v862_v45 = vmul.f32 %v10655_v0, %v16593_v15  ;;  %v517_v24 = vadd.f32 %v501_v63, %v481_v37  ;;  %v573_v3 = vmul.f32 %v16594_v51, %v11353_v7 }
 0x25c   : > { %v4811_v10 = vadd.f32 %v4770_v1, %v4687_v8  ;;  %v16595_v21 = vrot.slane %v11312_v6, 6  ;;  %v5638_v53 = vrot.slane %v5581_v23, 6  ;;  %v794_v47 = vrot.slane %v738_v33, 1  ;;  %v16597_v8 = vld [vmem:[#allocation101_spill] sm:$0xff] }
 0x25d   : > { %v986_v11 = vmul.f32 %v10666_v2, %v16596_v4  ;;  %v553_v15 = vadd.f32 %v537_v16, %v517_v24  ;;  %v1110_v1 = vmul.f32 %v10671_v48, %v16465_v30  ;;  %v5762_v63 = vrot.slane %v5705_v50, 6 }
 0x25e   : > { %v5391_v52 = vsel %vm4994_vm5, %v16595_v21, %v5390_v14  ;;  %v4935_v13 = vadd.f32 %v4894_v39, %v4811_v10  ;;  %v16598_v37 = vrot.slane %v16597_v8, 1  ;;  %v918_v6 = vrot.slane %v862_v45, 1  ;;  %v16601_v21 = vld [vmem:[#allocation102_spill] sm:$0xff] }
 0x25f   : > { %v1234_v23 = vmul.f32 %v16474_v44, %v10564_v59  ;;  %v16599_v14 = vrot.slane %v11326_v58, 6  ;;  %v589_v39 = vadd.f32 %v573_v3, %v553_v15  ;;  %v1358_v16 = vmul.f32 %v16350_v18, %v11353_v7 }
 0x260   : > { %v672_v28 = vsel %vm649_vm0, %v670_v62, %v16598_v37  ;;  %v5060_v33 = vadd.f32 %v5019_v60, %v4935_v13  ;;  %v16600_v24 = vrot.slane %v11340_v22, 6  ;;  %v16602_v8 = vrot.slane %v16601_v21, 1  ;;  %v16603_v37 = vld [vmem:[#allocation25_spill] sm:$0xff]  ;;  %v16606_v22 = vld [vmem:[#allocation92_spill] sm:$0xff] }
 0x261   : > { %v5515_v10 = vsel %vm4994_vm5, %v16599_v14, %v5514_v42  ;;  %v1042_v45 = vrot.slane %v986_v11, 1  ;;  %v1482_v60 = vmul.f32 %v16578_v27, %v16603_v37  ;;  %v714_v17 = vadd.f32 %v672_v28, %v589_v39  ;;  %v16604_v42 = vld [vmem:[#allocation26_spill] sm:$0xff]  ;;  %v16609_v28 = vld [vmem:[#allocation33_spill] sm:$0xff] }
 0x262   : > { %v5639_v50 = vsel %vm4994_vm5, %v16600_v24, %v5638_v53  ;;  %v796_v62 = vsel %vm649_vm0, %v794_v47, %v16602_v8  ;;  %v5184_v13 = vadd.f32 %v5143_v38, %v5060_v33  ;;  %v1166_v58 = vrot.slane %v1110_v1, 1  ;;  %v16608_v47 = vld [vmem:[#allocation28_spill] sm:$0xff]  ;;  %v16610_v33 = vld [vmem:[#allocation87_spill] sm:$0xff] }
 0x263   : > { %v1607_v3 = vmul.f32 %v16580_v57, %v16604_v42  ;;  %v16605_v15 = vrot.slane %v11359_v25, 6  ;;  %v16607_v53 = vrot.slane %v16606_v22, 1  ;;  %v1290_v21 = vrot.slane %v1234_v23, 1 }
 0x264   : > { %v1731_v11 = vmul.f32 %v10655_v0, %v16608_v47  ;;  %v5308_v8 = vadd.f32 %v5267_v31, %v5184_v13  ;;  %v838_v37 = vadd.f32 %v796_v62, %v714_v17  ;;  %v1414_v38 = vrot.slane %v1358_v16, 1  ;;  %v16615_v62 = vld [vmem:[#allocation74_spill] sm:$0xff] }
 0x265   : > { %v5763_v14 = vsel %vm4994_vm5, %v16605_v15, %v5762_v63  ;;  %v920_v24 = vsel %vm649_vm0, %v918_v6, %v16607_v53  ;;  %v1855_v1 = vmul.f32 %v10666_v2, %v16609_v28  ;;  %v16611_v39 = vrot.slane %v16610_v33, 1  ;;  %v16612_v63 = vld [vmem:[#allocation34_spill] sm:$0xff]  ;;  %v16613_v53 = vld [vmem:[#allocation20_spill] sm:$0xff] }
 0x266   : > { %v1539_v42 = vrot.slane %v1482_v60, 2  ;;  %v1979_v22 = vmul.f32 %v10671_v48, %v16612_v63  ;;  %v2103_v6 = vmul.f32 %v16102_v26, %v10564_v59  ;;  %v5432_v23 = vadd.f32 %v5391_v52, %v5308_v8  ;;  %v16617_v52 = vld [vmem:[#allocation83_spill] sm:$0xff] }
 0x267   : > { %v1044_v25 = vsel %vm649_vm0, %v1042_v45, %v16611_v39  ;;  %v962_v15 = vadd.f32 %v920_v24, %v838_v37  ;;  %v16614_v31 = vrot.slane %v16613_v53, 1  ;;  %v1663_v16 = vrot.slane %v1607_v3, 2 }
 0x268   : > { %v16616_v13 = vrot.slane %v16615_v62, 1  ;;  %v1787_v28 = vrot.slane %v1731_v11, 2  ;;  %v2227_v45 = vmul.f32 %v15983_v32, %v11353_v7  ;;  %v2351_v60 = vmul.f32 %v16578_v27, %v15987_v36  ;;  %v16621_v11 = vld [vmem:[#allocation40_spill] sm:$0xff]  ;;  %v16622_v36 = vld [vmem:[#allocation86_spill] sm:$0xff] }
 0x269   : > { %v1168_v17 = vsel %vm649_vm0, %v1166_v58, %v16614_v31  ;;  %v5556_v39 = vadd.f32 %v5515_v10, %v5432_v23  ;;  %v1086_v59 = vadd.f32 %v1044_v25, %v962_v15  ;;  %v16618_v37 = vrot.slane %v16617_v52, 1  ;;  %v16619_v58 = vld [vmem:[#allocation93_spill] sm:$0xff]  ;;  %v16624_v23 = vld [vmem:[#allocation42_spill] sm:$0xff] }
 0x26a   : > { %v1292_v33 = vsel %vm649_vm0, %v1290_v21, %v16616_v13  ;;  %v1911_v8 = vrot.slane %v1855_v1, 2  ;;  %v16620_v3 = vrot.slane %v16619_v58, 2  ;;  %v2035_v31 = vrot.slane %v1979_v22, 2  ;;  %v16625_v1 = vld [vmem:[#allocation97_spill] sm:$0xff] }
 0x26b   : > { %v1416_v24 = vsel %vm649_vm0, %v1414_v38, %v16618_v37  ;;  %v2159_v21 = vrot.slane %v2103_v6, 2  ;;  %v2476_v62 = vmul.f32 %v16580_v57, %v16621_v11  ;;  %v5680_v13 = vadd.f32 %v5639_v50, %v5556_v39  ;;  %v16627_v6 = vld [vmem:[#allocation47_spill] sm:$0xff]  ;;  %v16628_v50 = vld [vmem:[#allocation30_spill] sm:$0xff] }
 0x26c   : > { %v1541_v53 = vsel %vm1518_vm1, %v1539_v42, %v16620_v3  ;;  %v1210_v32 = vadd.f32 %v1168_v17, %v1086_v59  ;;  %v16623_v10 = vrot.slane %v16622_v36, 2  ;;  %v2600_v38 = vmul.f32 %v10655_v0, %v16624_v23  ;;  %v16630_v39 = vld [vmem:[#allocation94_spill] sm:$0xff] }
 0x26d   : > { %v16626_v15 = vrot.slane %v16625_v1, 2  ;;  %v2283_v42 = vrot.slane %v2227_v45, 2  ;;  %v2408_v22 = vrot.slane %v2351_v60, 3  ;;  %v2724_v37 = vmul.f32 %v10666_v2, %v16627_v6  ;;  %v16632_v1 = vld [vmem:[#allocation96_spill] sm:$0xff] }
 0x26e   : > { %v1665_v25 = vsel %vm1518_vm1, %v1663_v16, %v16623_v10  ;;  %v5804_v58 = vadd.f32 %v5763_v14, %v5680_v13  ;;  %v1334_v3 = vadd.f32 %v1292_v33, %v1210_v32  ;;  %v16629_v17 = vrot.slane %v16628_v50, 2  ;;  %v16635_v14 = vld [vmem:[#allocation49_spill] sm:$0xff]  ;;  %v11462_v33 = vld [vmem:[%s14546_s2] ss:$0 sm:$0xff]  ;;  %v16638_v50 = vld [vmem:[#allocation52_spill] sm:$0xff] }
 0x26f   : > { %v1789_v52 = vsel %vm1518_vm1, %v1787_v28, %v16626_v15  ;;  %v2848_v16 = vmul.f32 %v10671_v48, %v16514_v49  ;;  %v16631_v59 = vrot.slane %v16630_v39, 2  ;;  %v16633_v28 = vrot.slane %v16632_v1, 2  ;;  %v11455_v15 = vld [vmem:[%s7442_s10 + $0xd8] sm:$0xff]  ;;  %16636 = vst [vmem:[#allocation145_spill] sm:$0xff] %v11462_v33 }
 0x270   : > { %v1913_v36 = vsel %vm1518_vm1, %v1911_v8, %v16629_v17  ;;  %v2532_v60 = vrot.slane %v2476_v62, 3  ;;  %16634 = vst [vmem:[#allocation138_spill] sm:$0xff] %v11455_v15  ;;  %v2972_v32 = vmul.f32 %v11455_v15, %v16635_v14  ;;  %v11465_v8 = vadd.f32 %v11462_v33, %v5804_v58  ;;  %v16648_v33 = vld [vmem:[#allocation115_spill] sm:$0xff] }
 0x271   : > { %v2037_v10 = vsel %vm1518_vm1, %v2035_v31, %v16631_v59  ;;  %v2161_v45 = vsel %vm1518_vm1, %v2159_v21, %v16633_v28  ;;  %v1458_v13 = vadd.f32 %v1416_v24, %v1334_v3  ;;  %v2656_v31 = vrot.slane %v2600_v38, 3  ;;  %v16639_v21 = vld [vmem:[#allocation113_spill] sm:$0xff]  ;;  %v16641_v59 = vld [vmem:[#allocation114_spill] sm:$0xff] }
 0x272   : > { %16637 = vst [vmem:[#allocation148_spill] sm:$0xff] %v11465_v8  ;;  %v3096_v17 = vmul.f32 %v16638_v50, %v11353_v7  ;;  %v16640_v62 = vrot.slane %v16639_v21, 2  ;;  %v16642_v1 = vrot.slane %v16641_v59, 3  ;;  %v2780_v14 = vrot.slane %v2724_v37, 3  ;;  %v16643_v21 = vld [vmem:[#allocation103_spill] sm:$0xff]  ;;  %v16656_v50 = vld [vmem:[#allocation68_spill] sm:$0xff] }
 0x273   : > { %v3220_v49 = vmul.f32 %v16578_v27, %v16521_v20  ;;  %v5862_v24 = vsel %vm5834_vm6, %v11465_v8, 0.0  ;;  %v1583_v38 = vadd.f32 %v1541_v53, %v1458_v13  ;;  %v2904_v58 = vrot.slane %v2848_v16, 3  ;;  %v16645_v8 = vld [vmem:[#allocation106_spill] sm:$0xff] }
 0x274   : > { %v2285_v39 = vsel %vm1518_vm1, %v2283_v42, %v16640_v62  ;;  %v11475_v28 = vsel %vm2387_vm2, %v2408_v22, %v16642_v1  ;;  %v3345_v3 = vmul.f32 %v16580_v57, %v16524_v43  ;;  %5863 = vadd.xlane.f32.xlu1 %v5862_v24  ;;  %v16644_v42 = vrot.slane %v16643_v21, 3  ;;  %v16647_v24 = vld [vmem:[#allocation62_spill] sm:$0xff]  ;;  %v16654_v43 = vld [vmem:[#allocation121_spill] sm:$0xff] }
 0x275   : > { %v3028_v22 = vrot.slane %v2972_v32, 3  ;;  %v3469_v37 = vmul.f32 %v10655_v0, %v16529_v12  ;;  %v3593_v59 = vmul.f32 %v10666_v2, %v16539_v55  ;;  %v1707_v1 = vadd.f32 %v1665_v25, %v1583_v38  ;;  %v16651_v55 = vld [vmem:[#allocation66_spill] sm:$0xff]  ;;  %v16652_v38 = vld [vmem:[#allocation107_spill] sm:$0xff] }
 0x276   : > { %v11486_v62 = vsel %vm2387_vm2, %v2532_v60, %v16644_v42  ;;  %v16646_v53 = vrot.slane %v16645_v8, 3  ;;  %v3152_v13 = vrot.slane %v3096_v17, 3  ;;  %v3717_v21 = vmul.f32 %v10671_v48, %v16647_v24  ;;  %v16650_v42 = vld [vmem:[#allocation63_spill] sm:$0xff] }
 0x277   : > { %v16649_v60 = vrot.slane %v16648_v33, 3  ;;  %v3841_v12 = vmul.f32 %v11455_v15, %v16650_v42  ;;  %v3965_v25 = vmul.f32 %v16651_v55, %v11353_v7  ;;  %v4089_v8 = vmul.f32 %v16578_v27, %v16547_v54  ;;  %v16657_v27 = vld [vmem:[#allocation109_spill] sm:$0xff] }
 0x278   : > { %v11495_v16 = vsel %vm2387_vm2, %v2656_v31, %v16646_v53  ;;  %v1831_v31 = vadd.f32 %v1789_v52, %v1707_v1  ;;  %v16653_v17 = vrot.slane %v16652_v38, 3  ;;  %v3277_v24 = vrot.slane %v3220_v49, 4  ;;  %v16659_v38 = vld [vmem:[#allocation70_spill] sm:$0xff] }
 0x279   : > { %v11502_v32 = vsel %vm2387_vm2, %v2780_v14, %v16649_v60  ;;  %v3401_v33 = vrot.slane %v3345_v3, 4  ;;  %v16655_v14 = vrot.slane %v16654_v43, 3  ;;  %v3525_v42 = vrot.slane %v3469_v37, 4 }
 0x27a   : > { %v11513_v53 = vsel %vm2387_vm2, %v2904_v58, %v16653_v17  ;;  %v3649_v20 = vrot.slane %v3593_v59, 4  ;;  %v4214_v55 = vmul.f32 %v16580_v57, %v16656_v50  ;;  %v1955_v6 = vadd.f32 %v1913_v36, %v1831_v31  ;;  %v16663_v36 = vld [vmem:[#allocation105_spill] sm:$0xff] }
 0x27b   : > { %v11518_v60 = vsel %vm2387_vm2, %v3028_v22, %v16655_v14  ;;  %v16658_v52 = vrot.slane %v16657_v27, 3  ;;  %v3773_v58 = vrot.slane %v3717_v21, 4  ;;  %v4338_v49 = vmul.f32 %v10655_v0, %v16659_v38  ;;  %v16660_v22 = vld [vmem:[#allocation75_spill] sm:$0xff]  ;;  %v16661_v14 = vld [vmem:[#allocation104_spill] sm:$0xff]  ;;  %v16707_v38 = vld [vmem:[#allocation133_spill] sm:$0xff] }
 0x27c   : > { %v3897_v3 = vrot.slane %v3841_v12, 4  ;;  %v4021_v43 = vrot.slane %v3965_v25, 4  ;;  %v4146_v17 = vrot.slane %v4089_v8, 5  ;;  %v4462_v37 = vmul.f32 %v10666_v2, %v16660_v22  ;;  %v16665_v21 = vld [vmem:[#allocation76_spill] sm:$0xff]  ;;  %v16668_v2 = vld [vmem:[#allocation118_spill] sm:$0xff] }
 0x27d   : > { %v11525_v1 = vsel %vm2387_vm2, %v3152_v13, %v16658_v52  ;;  %v2079_v59 = vadd.f32 %v2037_v10, %v1955_v6  ;;  %v16662_v54 = vrot.slane %v16661_v14, 4  ;;  %v16664_v31 = vrot.slane %v16663_v36, 4  ;;  %v16666_v12 = vld [vmem:[#allocation116_spill] sm:$0xff] }
 0x27e   : > { %v4586_v0 = vmul.f32 %v10671_v48, %v16665_v21  ;;  %v16667_v25 = vrot.slane %v16666_v12, 4  ;;  %v16669_v6 = vrot.slane %v16668_v2, 4  ;;  %v4270_v10 = vrot.slane %v4214_v55, 5  ;;  %v16671_v52 = vld [vmem:[#allocation120_spill] sm:$0xff]  ;;  %v16675_v55 = vld [vmem:[#allocation123_spill] sm:$0xff] }
 0x27f   : > { %v11534_v57 = vsel %vm3256_vm3, %v3277_v24, %v16662_v54  ;;  %v11539_v13 = vsel %vm3256_vm3, %v3401_v33, %v16664_v31  ;;  %v16670_v24 = vld [vmem:[#allocation77_spill] sm:$0xff]  ;;  %v2203_v27 = vadd.f32 %v2161_v45, %v2079_v59  ;;  %v16672_v14 = vrot.slane %v16671_v52, 4  ;;  %v16673_v31 = vld [vmem:[#allocation122_spill] sm:$0xff]  ;;  %v16706_v21 = vld [vmem:[#allocation128_spill] sm:$0xff] }
 0x280   : > { %v11546_v8 = vsel %vm3256_vm3, %v3525_v42, %v16667_v25  ;;  %v11551_v54 = vsel %vm3256_vm3, %v3649_v20, %v16669_v6  ;;  %v4710_v33 = vmul.f32 %v11455_v15, %v16670_v24  ;;  %v4394_v36 = vrot.slane %v4338_v49, 5  ;;  %v16677_v59 = vld [vmem:[#allocation125_spill] sm:$0xff] }
 0x281   : > { %v11558_v48 = vsel %vm3256_vm3, %v3773_v58, %v16672_v14  ;;  %v4834_v42 = vmul.f32 %v16562_v5, %v11353_v7  ;;  %v16674_v12 = vrot.slane %v16673_v31, 4  ;;  %v16676_v25 = vrot.slane %v16675_v55, 4  ;;  %v7097_v14 = vld [vmem:[%s7442_s10 + $0x60] sm:$0xff]  ;;  %v16702_v5 = vld [vmem:[#allocation13_spill] sm:$0xff] }
 0x282   : > { %v16678_v2 = vrot.slane %v16677_v59, 5  ;;  %v4518_v49 = vrot.slane %v4462_v37, 5  ;;  %v2327_v6 = vadd.f32 %v2285_v39, %v2203_v27  ;;  %v4642_v52 = vrot.slane %v4586_v0, 5  ;;  %v11592_v37 = vld [vmem:[%s7442_s10 + $0x80] sm:$0xff]  ;;  %v11597_v0 = vld [vmem:[%s7442_s10 + $0x98] sm:$0xff] }
 0x283   : > { %v11565_v20 = vsel %vm3256_vm3, %v3897_v3, %v16674_v12  ;;  %v11570_v45 = vsel %vm3256_vm3, %v4021_v43, %v16676_v25  ;;  %v4958_v31 = vmul.f32 %v7097_v14, %v16564_v29  ;;  %v11580_v3 = vld [vmem:[%s7442_s10 + $0x78] sm:$0xff]  ;;  %v16680_v43 = vrot.slane %v11209_v40, 5  ;;  %16681 = vst [vmem:[#allocation139_spill] sm:$0xff] %v11597_v0 }
 0x284   : > { %v11575_v58 = vsel %vm4125_vm4, %v4146_v17, %v16678_v2  ;;  %16679 = vst [vmem:[#allocation147_spill] sm:$0xff] %v11580_v3  ;;  %v11584_v12 = vmul.f32 %v11580_v3, %v16566_v35  ;;  %v4766_v17 = vrot.slane %v4710_v33, 5  ;;  %v360_v39 = vmul.f32 %v11592_v37, %v16577_v56  ;;  %v11608_v2 = vld [vmem:[%s7442_s10 + $0xb0] sm:$0xff]  ;;  %v16688_v3 = vld [vmem:[#allocation129_spill] sm:$0xff] }
 0x285   : > { %v11589_v55 = vsel %vm4125_vm4, %v4270_v10, %v16680_v43  ;;  %v396_v27 = vmul.f32 %v11597_v0, %v16579_v46  ;;  %v2452_v25 = vadd.f32 %v11475_v28, %v2327_v6  ;;  %v16682_v59 = vrot.slane %v11227_v34, 5  ;;  %v11618_v46 = vld [vmem:[%s7442_s10 + $0x90] sm:$0xff] }
 0x286   : > { %v4890_v10 = vrot.slane %v4834_v42, 5  ;;  %v432_v33 = vmul.f32 %v11608_v2, %v16583_v19  ;;  %v16683_v14 = vrot.slane %v11235_v9, 5  ;;  %16684 = vst [vmem:[#allocation140_spill] sm:$0xff] %v11618_v46  ;;  %v16685_v28 = vld [vmem:[#allocation84_spill] sm:$0xff]  ;;  %v468_v42 = vmul.f32 %v11170_v61, %v16585_v41  ;;  %v16692_v41 = vld [vmem:[#allocation10_spill] sm:$0xff] }
 0x287   : > { %v11605_v40 = vsel %vm4125_vm4, %v4394_v36, %v16682_v59  ;;  %v11622_v34 = vmul.f32 %v11618_v46, %v16685_v28  ;;  %v412_v36 = vadd.f32 %v396_v27, %v360_v39  ;;  %v2576_v6 = vadd.f32 %v11486_v62, %v2452_v25  ;;  %v16686_v59 = vld [vmem:[#allocation127_spill] sm:$0xff]  ;;  %v16690_v39 = vld [vmem:[#allocation12_spill] sm:$0xff]  ;;  %v16691_v27 = vld [vmem:[#allocation41_spill] sm:$0xff] }
 0x288   : > { %v11615_v43 = vsel %vm4125_vm4, %v4518_v49, %v16683_v14  ;;  %v16687_v19 = vrot.slane %v16686_v59, 5  ;;  %v5015_v49 = vrot.slane %v4958_v31, 6  ;;  %v5139_v14 = vrot.slane %v11584_v12, 6  ;;  %v11649_v31 = vld [vmem:[%s7442_s10 + $0x88] sm:$0x3f]  ;;  %v16700_v59 = vld [vmem:[#allocation100_spill] sm:$0xff] }
 0x289   : > { %v16689_v56 = vrot.slane %v16688_v3, 5  ;;  %v448_v28 = vadd.f32 %v432_v33, %v412_v36  ;;  %v504_v35 = vmul.f32 %v16691_v27, %v16690_v39  ;;  %v11642_v62 = vmul.f32 %v11592_v37, %v16692_v41  ;;  %v16698_v33 = vld [vmem:[#allocation131_spill] sm:$0xff]  ;;  %v16701_v39 = vld [vmem:[#allocation14_spill] sm:$0xff] }
 0x28a   : > { %v11630_v9 = vsel %vm4125_vm4, %v4642_v52, %v16687_v19  ;;  %v2700_v19 = vadd.f32 %v11495_v16, %v2576_v6  ;;  %v11646_v52 = vld [vmem:[%s7442_s10 + $0x110] sm:$0xff]  ;;  %v618_v3 = vmul.f32 %v11649_v31, %v16692_v41  ;;  %v16699_v36 = vrot.slane %v16698_v33, 5 }
 0x28b   : > { %v11636_v46 = vsel %vm4125_vm4, %v4766_v17, %v16689_v56  ;;  %16693 = vst [vmem:[#allocation142_spill] sm:$0xff] %v11642_v62  ;;  %16694 = vst [vmem:[#allocation144_spill] sm:$0xff] %v11646_v52  ;;  %v16695_v56 = vld [vmem:[#allocation11_spill] sm:$0xff]  ;;  %v11658_v17 = vld [vmem:[%s7442_s10 + $0xa0] sm:$0x3f]  ;;  %v484_v6 = vadd.f32 %v468_v42, %v448_v28  ;;  %v540_v29 = vmul.f32 %v16701_v39, %v16700_v59  ;;  %v5263_v28 = vrot.slane %v11622_v34, 6 }
 0x28c   : > { %v11655_v12 = vmul.f32 %v11597_v0, %v16695_v56  ;;  %16697 = vst [vmem:[#allocation17_spill] sm:$0xff] %v11658_v17  ;;  %v743_v25 = vmul.f32 %v11658_v17, %v16695_v56  ;;  %v11665_v16 = vsel %vm4125_vm4, %v4890_v10, %v16699_v36  ;;  %v11671_v41 = vmul.f32 %v11608_v2, %v16702_v5  ;;  %v11676_v56 = vld [vmem:[%s7442_s10 + $0xb8] sm:$0x3f] }
 0x28d   : > { %v2824_v24 = vadd.f32 %v11502_v32, %v2700_v19  ;;  %v678_v22 = vrot.slane %v618_v3, 1  ;;  %16704 = vst [vmem:[#allocation46_spill] sm:$0xff] %v11676_v56  ;;  %v867_v10 = vmul.f32 %v11676_v56, %v16702_v5  ;;  %v520_v42 = vadd.f32 %v504_v35, %v484_v6 }
 0x28e   : > { %16696 = vst [vmem:[#allocation146_spill] sm:$0xff] %v11655_v12  ;;  %16703 = vst [vmem:[#allocation31_spill] sm:$0xff] %v11671_v41  ;;  %v576_v33 = vmul.f32 %v16594_v51, %v11646_v52  ;;  %v11685_v36 = vmul.f32 %v11170_v61, %v16596_v4  ;;  %v802_v3 = vrot.slane %v743_v25, 1  ;;  %v991_v39 = vmul.f32 %v16706_v21, %v16596_v4 }
 0x28f   : > { %v2948_v32 = vadd.f32 %v11513_v53, %v2824_v24  ;;  %v16708_v5 = vrot.slane %v16707_v38, 6  ;;  %v556_v35 = vadd.f32 %v540_v29, %v520_v42  ;;  %v11699_v51 = vmul.f32 %v16691_v27, %v16465_v30  ;;  %v11703_v24 = vld [vmem:[%s7442_s10 + $0x118] sm:$0x3f]  ;;  %v16712_v38 = vld [vmem:[#allocation112_spill] sm:$0xff] }
 0x290   : > { %16705 = vst [vmem:[#allocation55_spill] sm:$0xff] %v11685_v36  ;;  %16710 = vst [vmem:[#allocation58_spill] sm:$0xff] %v11703_v24  ;;  %v16711_v25 = vrot.slane %v11642_v62, 1  ;;  %v926_v4 = vrot.slane %v867_v10, 1  ;;  %v1050_v42 = vrot.slane %v991_v39, 1  ;;  %v11713_v6 = vmul.f32 %v16474_v44, %v16700_v59  ;;  %v16719_v10 = vld [vmem:[#allocation89_spill] sm:$0xff] }
 0x291   : > { %v11694_v34 = vsel %vm4994_vm5, %v5015_v49, %v16708_v5  ;;  %16709 = vst [vmem:[#allocation32_spill] sm:$0xff] %v11699_v51  ;;  %v3072_v53 = vadd.f32 %v11518_v60, %v2948_v32  ;;  %v1115_v5 = vmul.f32 %v16712_v38, %v16465_v30  ;;  %v592_v29 = vadd.f32 %v576_v33, %v556_v35  ;;  %v16724_v30 = vld [vmem:[#allocation25_spill] sm:$0xff] }
 0x292   : > { %v679_v19 = vsel %vm649_vm0, %v16711_v25, %v678_v22  ;;  %16713 = vst [vmem:[#allocation64_spill] sm:$0xff] %v11713_v6  ;;  %v16714_v32 = vrot.slane %v11655_v12, 1  ;;  %v16715_v25 = vld [vmem:[#allocation69_spill] sm:$0xff]  ;;  %v11724_v39 = vmul.f32 %v16350_v18, %v11646_v52  ;;  %v1363_v59 = vmul.f32 %v16350_v18, %v11703_v24  ;;  %v16722_v18 = vld [vmem:[#allocation90_spill] sm:$0xff] }
 0x293   : > { %v3196_v60 = vadd.f32 %v11525_v1, %v3072_v53  ;;  %v1239_v62 = vmul.f32 %v16474_v44, %v16715_v25  ;;  %v717_v33 = vadd.f32 %v679_v19, %v592_v29  ;;  %v1174_v35 = vrot.slane %v1115_v5, 1  ;;  %v16717_v53 = vld [vmem:[#allocation135_spill] sm:$0xff]  ;;  %v11745_v25 = vld [vmem:[%s7442_s10 + $0xc0] sm:$0xff] }
 0x294   : > { %v803_v22 = vsel %vm649_vm0, %v16714_v32, %v802_v3  ;;  %16716 = vst [vmem:[#allocation36_spill] sm:$0xff] %v11724_v39  ;;  %v16718_v49 = vrot.slane %v16717_v53, 6  ;;  %v11735_v32 = vld [vmem:[%s7442_s10 + $0xa8] sm:$0xff]  ;;  %v16720_v5 = vrot.slane %v11671_v41, 1  ;;  %16721 = vst [vmem:[#allocation37_spill] sm:$0xff] %v11745_v25  ;;  %v11758_v41 = vmul.f32 %v11592_v37, %v16724_v30  ;;  %v16727_v53 = vld [vmem:[#allocation26_spill] sm:$0xff] }
 0x295   : > { %v3321_v1 = vadd.f32 %v11534_v57, %v3196_v60  ;;  %v11739_v19 = vmul.f32 %v11735_v32, %v16719_v10  ;;  %v11749_v57 = vmul.f32 %v11745_v25, %v16722_v18  ;;  %v841_v60 = vadd.f32 %v803_v22, %v717_v33 }
 0x296   : > { %v11732_v3 = vsel %vm4994_vm5, %v5139_v14, %v16718_v49  ;;  %v927_v29 = vsel %vm649_vm0, %v16720_v5, %v926_v4  ;;  %v16723_v14 = vrot.slane %v11685_v36, 1  ;;  %v1298_v44 = vrot.slane %v1239_v62, 1  ;;  %16725 = vst [vmem:[#allocation134_spill] sm:$0xff] %v11758_v41 }
 0x297   : > { %v3445_v12 = vadd.f32 %v11539_v13, %v3321_v1  ;;  %v1487_v4 = vmul.f32 %v11649_v31, %v16724_v30  ;;  %v965_v5 = vadd.f32 %v927_v29, %v841_v60  ;;  %v16726_v25 = vrot.slane %v11699_v51, 1  ;;  %v16730_v29 = vld [vmem:[#allocation136_spill] sm:$0xff] }
 0x298   : > { %v1051_v49 = vsel %vm649_vm0, %v16723_v14, %v1050_v42  ;;  %v1422_v42 = vrot.slane %v1363_v59, 1  ;;  %v11769_v13 = vmul.f32 %v11597_v0, %v16727_v53  ;;  %v1612_v62 = vmul.f32 %v11658_v17, %v16727_v53 }
 0x299   : > { %v1175_v22 = vsel %vm649_vm0, %v16726_v25, %v1174_v35  ;;  %v3569_v14 = vadd.f32 %v11546_v8, %v3445_v12  ;;  %v11775_v1 = vmul.f32 %v11608_v2, %v16608_v47  ;;  %v16731_v60 = vrot.slane %v16730_v29, 6  ;;  %v16732_v25 = vld [vmem:[#allocation91_spill] sm:$0xff] }
 0x29a   : > { %16728 = vst [vmem:[#allocation117_spill] sm:$0xff] %v11769_v13  ;;  %v11784_v59 = vmul.f32 %v11455_v15, %v16732_v25  ;;  %v1089_v8 = vadd.f32 %v1051_v49, %v965_v5  ;;  %v1736_v12 = vmul.f32 %v11676_v56, %v16608_v47  ;;  %v16733_v51 = vrot.slane %v11713_v6, 1  ;;  %v16735_v15 = vld [vmem:[#allocation33_spill] sm:$0xff]  ;;  %v11839_v6 = vld [vmem:[%s7442_s10 + $0x100] sm:$0x3f] }
 0x29b   : > { %16729 = vst [vmem:[#allocation50_spill] sm:$0xff] %v11775_v1  ;;  %v11780_v35 = vsel %vm4994_vm5, %v5263_v28, %v16731_v60  ;;  %v3693_v33 = vadd.f32 %v11551_v54, %v3569_v14  ;;  %v15196_v53 = vrot.slane %v11758_v41, 2  ;;  %v1547_v29 = vrot.slane %v1487_v4, 2  ;;  %16740 = vst [vmem:[#allocation73_spill] sm:$0xff] %v11839_v6 }
 0x29c   : > { %v1299_v36 = vsel %vm649_vm0, %v16733_v51, %v1298_v44  ;;  %v1213_v30 = vadd.f32 %v1175_v22, %v1089_v8  ;;  %v16734_v28 = vrot.slane %v11724_v39, 1  ;;  %v11798_v49 = vmul.f32 %v11170_v61, %v16735_v15 }
 0x29d   : > { %v1860_v5 = vmul.f32 %v16706_v21, %v16735_v15  ;;  %v3817_v54 = vadd.f32 %v11558_v48, %v3693_v33  ;;  %v1671_v51 = vrot.slane %v1612_v62, 2  ;;  %v1795_v14 = vrot.slane %v1736_v12, 2  ;;  %v11816_v33 = vld [vmem:[%s14545_s1 + $0x30] ss:$0 sm:$0xff] }
 0x29e   : > { %v1423_v60 = vsel %vm649_vm0, %v16734_v28, %v1422_v42  ;;  %16736 = vst [vmem:[#allocation57_spill] sm:$0xff] %v11798_v49  ;;  %v1337_v22 = vadd.f32 %v1299_v36, %v1213_v30  ;;  %v11807_v42 = vmul.f32 %v16691_v27, %v16612_v63  ;;  %v1984_v8 = vmul.f32 %v16712_v38, %v16612_v63 }
 0x29f   : > { %v3941_v28 = vadd.f32 %v11565_v20, %v3817_v54  ;;  %v5387_v48 = vrot.slane %v11739_v19, 6  ;;  %16737 = vst [vmem:[#allocation60_spill] sm:$0xff] %v11816_v33  ;;  %v11820_v30 = vmul.f32 %v11816_v33, %v11353_v7  ;;  %v1548_v36 = vsel %vm1518_vm1, %v15196_v53, %v1547_v29  ;;  %v11827_v20 = vld [vmem:[%s7442_s10 + $0xf8] sm:$0xff] }
 0x2a0   : > { %v1461_v62 = vadd.f32 %v1423_v60, %v1337_v22  ;;  %v1919_v4 = vrot.slane %v1860_v5, 2  ;;  %16738 = vst [vmem:[#allocation43_spill] sm:$0xff] %v11827_v20  ;;  %v11831_v19 = vmul.f32 %v11827_v20, %v16102_v26  ;;  %v5511_v44 = vrot.slane %v11749_v57, 6  ;;  %v16742_v57 = vld [vmem:[#allocation38_spill] sm:$0xff] }
 0x2a1   : > { %v4065_v54 = vadd.f32 %v11570_v45, %v3941_v28  ;;  %v16739_v39 = vrot.slane %v11769_v13, 2  ;;  %v2108_v29 = vmul.f32 %v11839_v6, %v16102_v26  ;;  %v16741_v5 = vrot.slane %v11775_v1, 2 }
 0x2a2   : > { %v1586_v60 = vadd.f32 %v1548_v36, %v1461_v62  ;;  %v2043_v12 = vrot.slane %v1984_v8, 2  ;;  %v11850_v28 = vmul.f32 %v16742_v57, %v11646_v52  ;;  %v16745_v62 = vrot.slane %v11798_v49, 2 }
 0x2a3   : > { %v1672_v41 = vsel %vm1518_vm1, %v16739_v39, %v1671_v51  ;;  %v1796_v22 = vsel %vm1518_vm1, %v16741_v5, %v1795_v14  ;;  %v4190_v45 = vadd.f32 %v11575_v58, %v4065_v54  ;;  %v2232_v39 = vmul.f32 %v16742_v57, %v11703_v24  ;;  %v16743_v51 = vld [vmem:[#allocation39_spill] sm:$0xff] }
 0x2a4   : > { %v11856_v13 = vmul.f32 %v11592_v37, %v16743_v51  ;;  %v1710_v36 = vadd.f32 %v1672_v41, %v1586_v60  ;;  %v1920_v14 = vsel %vm1518_vm1, %v16745_v62, %v1919_v4  ;;  %v2356_v58 = vmul.f32 %v11649_v31, %v16743_v51 }
 0x2a5   : > { %v4314_v54 = vadd.f32 %v11589_v55, %v4190_v45  ;;  %v2167_v5 = vrot.slane %v2108_v29, 2  ;;  %v11867_v53 = vmul.f32 %v11597_v0, %v16621_v11  ;;  %v2481_v1 = vmul.f32 %v11658_v17, %v16621_v11 }
 0x2a6   : > { %16744 = vst [vmem:[#allocation44_spill] sm:$0xff] %v11856_v13  ;;  %v5635_v41 = vrot.slane %v11784_v59, 6  ;;  %v5759_v60 = vrot.slane %v11820_v30, 6  ;;  %v1834_v4 = vadd.f32 %v1796_v22, %v1710_v36  ;;  %v16747_v62 = vrot.slane %v11807_v42, 2  ;;  %v16750_v36 = vld [vmem:[#allocation130_spill] sm:$0xff] }
 0x2a7   : > { %16746 = vst [vmem:[#allocation45_spill] sm:$0xff] %v11867_v53  ;;  %v4438_v49 = vadd.f32 %v11605_v40, %v4314_v54  ;;  %v2291_v29 = vrot.slane %v2232_v39, 2  ;;  %v2416_v57 = vrot.slane %v2356_v58, 3  ;;  %v11881_v11 = vmul.f32 %v11608_v2, %v16624_v23 }
 0x2a8   : > { %v2044_v8 = vsel %vm1518_vm1, %v16747_v62, %v2043_v12  ;;  %v1958_v51 = vadd.f32 %v1920_v14, %v1834_v4  ;;  %v2605_v59 = vmul.f32 %v11676_v56, %v16624_v23  ;;  %v16749_v12 = vrot.slane %v11831_v19, 2  ;;  %v16752_v4 = vld [vmem:[#allocation47_spill] sm:$0xff] }
 0x2a9   : > { %16748 = vst [vmem:[#allocation143_spill] sm:$0xff] %v11881_v11  ;;  %v4562_v30 = vadd.f32 %v11615_v43, %v4438_v49  ;;  %v2540_v39 = vrot.slane %v2481_v1, 3  ;;  %v16751_v54 = vrot.slane %v16750_v36, 6  ;;  %v11895_v62 = vmul.f32 %v11170_v61, %v16752_v4  ;;  %v16754_v49 = vld [vmem:[#allocation137_spill] sm:$0xff] }
 0x2aa   : > { %v2168_v40 = vsel %vm1518_vm1, %v16749_v12, %v2167_v5  ;;  %v2082_v58 = vadd.f32 %v2044_v8, %v1958_v51  ;;  %v2729_v45 = vmul.f32 %v16706_v21, %v16752_v4  ;;  %v16755_v55 = vrot.slane %v16754_v49, 6  ;;  %v16756_v12 = vld [vmem:[#allocation132_spill] sm:$0xff] }
 0x2ab   : > { %v5389_v14 = vsel %vm4994_vm5, %v5387_v48, %v16751_v54  ;;  %16753 = vst [vmem:[#allocation124_spill] sm:$0xff] %v11895_v62  ;;  %v4686_v43 = vadd.f32 %v11630_v9, %v4562_v30  ;;  %v16757_v1 = vrot.slane %v16756_v12, 6  ;;  %v16758_v48 = vrot.slane %v11850_v28, 2 }
 0x2ac   : > { %v5513_v5 = vsel %vm4994_vm5, %v5511_v44, %v16755_v55  ;;  %v2206_v8 = vadd.f32 %v2168_v40, %v2082_v58  ;;  %v16759_v54 = vrot.slane %v11856_v13, 3  ;;  %v15204_v9 = vrot.slane %v11881_v11, 3  ;;  %v16769_v58 = vld [vmem:[#allocation54_spill] sm:$0xff] }
 0x2ad   : > { %v11906_v36 = vsel %vm4994_vm5, %v5635_v41, %v16757_v1  ;;  %v2292_v51 = vsel %vm1518_vm1, %v16758_v48, %v2291_v29  ;;  %v2664_v30 = vrot.slane %v2605_v59, 3  ;;  %v4810_v49 = vadd.f32 %v11636_v46, %v4686_v43  ;;  %v16761_v41 = vld [vmem:[#allocation48_spill] sm:$0xff]  ;;  %v16763_v1 = vld [vmem:[#allocation49_spill] sm:$0xff] }
 0x2ae   : > { %v2417_v22 = vsel %vm2387_vm2, %v16759_v54, %v2416_v57  ;;  %v16760_v44 = vrot.slane %v11867_v53, 3  ;;  %v11921_v12 = vmul.f32 %v16691_v27, %v16761_v41  ;;  %v2853_v29 = vmul.f32 %v16712_v38, %v16761_v41  ;;  %v16765_v43 = vld [vmem:[#allocation52_spill] sm:$0xff] }
 0x2af   : > { %v2330_v40 = vadd.f32 %v2292_v51, %v2206_v8  ;;  %v2788_v57 = vrot.slane %v2729_v45, 3  ;;  %v11928_v59 = vmul.f32 %v11827_v20, %v16763_v1  ;;  %v4934_v46 = vadd.f32 %v11665_v16, %v4810_v49  ;;  %v16767_v51 = vld [vmem:[#allocation53_spill] sm:$0xff] }
 0x2b0   : > { %v2541_v55 = vsel %vm2387_vm2, %v16760_v44, %v2540_v39  ;;  %16762 = vst [vmem:[#allocation27_spill] sm:$0xff] %v11921_v12  ;;  %v2977_v39 = vmul.f32 %v11839_v6, %v16763_v1  ;;  %v11935_v27 = vmul.f32 %v16765_v43, %v11646_v52  ;;  %v3101_v38 = vmul.f32 %v16765_v43, %v11703_v24 }
 0x2b1   : > { %16764 = vst [vmem:[#allocation119_spill] sm:$0xff] %v11928_v59  ;;  %v2455_v48 = vadd.f32 %v2417_v22, %v2330_v40  ;;  %v2665_v45 = vsel %vm2387_vm2, %v15204_v9, %v2664_v30  ;;  %v11944_v8 = vmul.f32 %v11592_v37, %v16767_v51  ;;  %v3225_v16 = vmul.f32 %v11649_v31, %v16767_v51 }
 0x2b2   : > { %16766 = vst [vmem:[#allocation108_spill] sm:$0xff] %v11935_v27  ;;  %v5059_v54 = vadd.f32 %v11694_v34, %v4934_v46  ;;  %v2912_v44 = vrot.slane %v2853_v29, 3  ;;  %v11952_v53 = vmul.f32 %v11597_v0, %v16769_v58  ;;  %v16771_v40 = vrot.slane %v11895_v62, 3 }
 0x2b3   : > { %16768 = vst [vmem:[#allocation72_spill] sm:$0xff] %v11944_v8  ;;  %v2579_v22 = vadd.f32 %v2541_v55, %v2455_v48  ;;  %v3350_v11 = vmul.f32 %v11658_v17, %v16769_v58  ;;  %v3036_v34 = vrot.slane %v2977_v39, 3  ;;  %v15210_v46 = vrot.slane %v11935_v27, 3  ;;  %v16772_v55 = vld [vmem:[#allocation56_spill] sm:$0xff]  ;;  %v16787_v27 = vld [vmem:[#allocation66_spill] sm:$0xff] }
 0x2b4   : > { %16770 = vst [vmem:[#allocation78_spill] sm:$0xff] %v11952_v53  ;;  %v2789_v30 = vsel %vm2387_vm2, %v16771_v40, %v2788_v57  ;;  %v5183_v13 = vadd.f32 %v11732_v3, %v5059_v54  ;;  %v3160_v29 = vrot.slane %v3101_v38, 3  ;;  %v3285_v43 = vrot.slane %v3225_v16, 4  ;;  %v16774_v40 = vld [vmem:[#allocation141_spill] sm:$0xff] }
 0x2b5   : > { %v2703_v49 = vadd.f32 %v2665_v45, %v2579_v22  ;;  %v11965_v48 = vmul.f32 %v11608_v2, %v16772_v55  ;;  %v16775_v9 = vrot.slane %v16774_v40, 6  ;;  %v16776_v3 = vrot.slane %v11921_v12, 3  ;;  %v16777_v22 = vld [vmem:[#allocation61_spill] sm:$0xff] }
 0x2b6   : > { %v5307_v57 = vadd.f32 %v11780_v35, %v5183_v13  ;;  %v15217_v38 = vrot.slane %v11952_v53, 4  ;;  %v3409_v16 = vrot.slane %v3350_v11, 4  ;;  %v3474_v54 = vmul.f32 %v11676_v56, %v16772_v55 }
 0x2b7   : > { %16773 = vst [vmem:[#allocation59_spill] sm:$0xff] %v11965_v48  ;;  %v5761_v62 = vsel %vm4994_vm5, %v5759_v60, %v16775_v9  ;;  %v2913_v39 = vsel %vm2387_vm2, %v16776_v3, %v2912_v44  ;;  %v2827_v45 = vadd.f32 %v2789_v30, %v2703_v49  ;;  %v11979_v51 = vmul.f32 %v11170_v61, %v16777_v22  ;;  %v11994_v3 = vld [vmem:[%s7442_s10 + $0xe0] sm:$0xff] }
 0x2b8   : > { %v5431_v13 = vadd.f32 %v5389_v14, %v5307_v57  ;;  %v16779_v35 = vrot.slane %v11928_v59, 3  ;;  %v3161_v9 = vsel %vm2387_vm2, %v15210_v46, %v3160_v29  ;;  %v3598_v49 = vmul.f32 %v16706_v21, %v16777_v22  ;;  %16781 = vst [vmem:[#allocation85_spill] sm:$0xff] %v11994_v3  ;;  %v16782_v14 = vld [vmem:[#allocation62_spill] sm:$0xff]  ;;  %v16785_v46 = vld [vmem:[#allocation63_spill] sm:$0xff] }
 0x2b9   : > { %16778 = vst [vmem:[#allocation88_spill] sm:$0xff] %v11979_v51  ;;  %v2951_v11 = vadd.f32 %v2913_v39, %v2827_v45  ;;  %v16780_v44 = vrot.slane %v11944_v8, 4  ;;  %v11998_v57 = vmul.f32 %v11994_v3, %v16782_v14  ;;  %v12007_v39 = vmul.f32 %v11827_v20, %v16785_v46 }
 0x2ba   : > { %v3037_v60 = vsel %vm2387_vm2, %v16779_v35, %v3036_v34  ;;  %v5555_v34 = vadd.f32 %v5513_v5, %v5431_v13  ;;  %v12001_v35 = vld [vmem:[%s7442_s10 + $0xe8] sm:$0x3f]  ;;  %v3533_v40 = vrot.slane %v3474_v54, 4  ;;  %v3657_v8 = vrot.slane %v3598_v49, 4 }
 0x2bb   : > { %v3286_v30 = vsel %vm3256_vm3, %v16780_v44, %v3285_v43  ;;  %16783 = vst [vmem:[#allocation65_spill] sm:$0xff] %v11998_v57  ;;  %16784 = vst [vmem:[#allocation79_spill] sm:$0xff] %v12001_v35  ;;  %v3722_v29 = vmul.f32 %v12001_v35, %v16782_v14  ;;  %v3846_v43 = vmul.f32 %v11839_v6, %v16785_v46  ;;  %v15221_v49 = vrot.slane %v12007_v39, 4 }
 0x2bc   : > { %16786 = vst [vmem:[#allocation95_spill] sm:$0xff] %v12007_v39  ;;  %v3075_v45 = vadd.f32 %v3037_v60, %v2951_v11  ;;  %v3410_v44 = vsel %vm3256_vm3, %v15217_v38, %v3409_v16  ;;  %v5679_v13 = vadd.f32 %v11906_v36, %v5555_v34  ;;  %v12018_v59 = vmul.f32 %v16787_v27, %v11646_v52  ;;  %v16789_v11 = vld [vmem:[#allocation67_spill] sm:$0xff]  ;;  %v16805_v39 = vld [vmem:[#allocation77_spill] sm:$0xff] }
 0x2bd   : > { %v3970_v12 = vmul.f32 %v16787_v27, %v11703_v24  ;;  %v12025_v53 = vmul.f32 %v11592_v37, %v16789_v11  ;;  %v4094_v16 = vmul.f32 %v11649_v31, %v16789_v11  ;;  %v3781_v36 = vrot.slane %v3722_v29, 4  ;;  %v16799_v60 = vld [vmem:[#allocation75_spill] sm:$0xff] }
 0x2be   : > { %16788 = vst [vmem:[#allocation21_spill] sm:$0xff] %v12018_v59  ;;  %v3199_v14 = vadd.f32 %v3161_v9, %v3075_v45  ;;  %v5803_v54 = vadd.f32 %v5761_v62, %v5679_v13  ;;  %v3905_v34 = vrot.slane %v3846_v43, 4  ;;  %v16791_v5 = vrot.slane %v11965_v48, 4  ;;  %v16792_v9 = vld [vmem:[#allocation145_spill] sm:$0xff] }
 0x2bf   : > { %16790 = vst [vmem:[#allocation51_spill] sm:$0xff] %v12025_v53  ;;  %v4029_v46 = vrot.slane %v3970_v12, 4  ;;  %v12039_v22 = vmul.f32 %v11597_v0, %v16656_v50  ;;  %v4154_v13 = vrot.slane %v4094_v16, 5  ;;  %v16796_v12 = vrot.slane %v11998_v57, 4  ;;  %v16797_v16 = vld [vmem:[#allocation70_spill] sm:$0xff] }
 0x2c0   : > { %v3324_v38 = vadd.f32 %v3286_v30, %v3199_v14  ;;  %v3534_v27 = vsel %vm3256_vm3, %v16791_v5, %v3533_v40  ;;  %v12034_v45 = vadd.f32 %v16792_v9, %v5803_v54  ;;  %v4219_v30 = vmul.f32 %v11658_v17, %v16656_v50  ;;  %v16811_v50 = vld [vmem:[#allocation82_spill] sm:$0xff] }
 0x2c1   : > { %16794 = vst [vmem:[#allocation101_spill] sm:$0xff] %v12039_v22  ;;  %v16795_v14 = vrot.slane %v11979_v51, 4  ;;  %v3782_v5 = vsel %vm3256_vm3, %v16796_v12, %v3781_v36  ;;  %v12057_v54 = vmul.f32 %v11608_v2, %v16797_v16  ;;  %v4343_v29 = vmul.f32 %v11676_v56, %v16797_v16  ;;  %v16807_v12 = vld [vmem:[#allocation80_spill] sm:$0xff] }
 0x2c2   : > { %16793 = vst [vmem:[#allocation98_spill] sm:$0xff] %v12034_v45  ;;  %v3448_v62 = vadd.f32 %v3410_v44, %v3324_v38  ;;  %v5859_v40 = vsel %vm5834_vm6, %v12034_v45, 0.0  ;;  %v3906_v38 = vsel %vm3256_vm3, %v15221_v49, %v3905_v34  ;;  %v16802_v34 = vld [vmem:[#allocation76_spill] sm:$0xff]  ;;  %v16804_v49 = vrot.slane %v12025_v53, 5 }
 0x2c3   : > { %v3658_v43 = vsel %vm3256_vm3, %v16795_v14, %v3657_v8  ;;  %5860 = vadd.xlane.f32.xlu0 %v5859_v40  ;;  %16798 = vst [vmem:[#allocation102_spill] sm:$0xff] %v12057_v54  ;;  %v12063_v8 = vmul.f32 %v11170_v61, %v16799_v60  ;;  %v16801_v14 = vrot.slane %v12018_v59, 4  ;;  %v4278_v61 = vrot.slane %v4219_v30, 5 }
 0x2c4   : > { %v3572_v44 = vadd.f32 %v3534_v27, %v3448_v62  ;;  %v4467_v27 = vmul.f32 %v16706_v21, %v16799_v60  ;;  %v12073_v62 = vmul.f32 %v11994_v3, %v16802_v34  ;;  %v4155_v45 = vsel %vm4125_vm4, %v16804_v49, %v4154_v13  ;;  %v16809_v60 = vld [vmem:[#allocation81_spill] sm:$0xff] }
 0x2c5   : > { %16800 = vst [vmem:[#allocation92_spill] sm:$0xff] %v12063_v8  ;;  %v4030_v36 = vsel %vm3256_vm3, %v16801_v14, %v4029_v46  ;;  %v4591_v59 = vmul.f32 %v12001_v35, %v16802_v34  ;;  %v12082_v46 = vmul.f32 %v11827_v20, %v16805_v39  ;;  %v4715_v14 = vmul.f32 %v11839_v6, %v16805_v39 }
 0x2c6   : > { %16803 = vst [vmem:[#allocation87_spill] sm:$0xff] %v12073_v62  ;;  %v3696_v40 = vadd.f32 %v3658_v43, %v3572_v44  ;;  %v12088_v57 = vmul.f32 %v16807_v12, %v11646_v52  ;;  %v4839_v43 = vmul.f32 %v16807_v12, %v11703_v24  ;;  %v4402_v13 = vrot.slane %v4343_v29, 5 }
 0x2c7   : > { %16806 = vst [vmem:[#allocation20_spill] sm:$0xff] %v12082_v46  ;;  %v4526_v53 = vrot.slane %v4467_v27, 5  ;;  %v12097_v51 = vmul.f32 %v11592_v37, %v16809_v60  ;;  %v4963_v39 = vmul.f32 %v11649_v31, %v16809_v60  ;;  %v4650_v16 = vrot.slane %v4591_v59, 5  ;;  %v16821_v27 = vld [vmem:[#allocation6_spill] sm:$0xff] }
 0x2c8   : > { %16808 = vst [vmem:[#allocation74_spill] sm:$0xff] %v12088_v57  ;;  %v3820_v44 = vadd.f32 %v3782_v5, %v3696_v40  ;;  %v12103_v5 = vmul.f32 %v11597_v0, %v16811_v50  ;;  %v5088_v29 = vmul.f32 %v11658_v17, %v16811_v50  ;;  %v4774_v40 = vrot.slane %v4715_v14, 5  ;;  %v16816_v0 = vld [vmem:[#allocation84_spill] sm:$0xff] }
 0x2c9   : > { %16810 = vst [vmem:[#allocation83_spill] sm:$0xff] %v12097_v51  ;;  %v4898_v30 = vrot.slane %v4839_v43, 5  ;;  %v16813_v49 = vrot.slane %v12039_v22, 5  ;;  %v16814_v59 = vrot.slane %v12057_v54, 5  ;;  %v5023_v14 = vrot.slane %v4963_v39, 6 }
 0x2ca   : > { %v3944_v48 = vadd.f32 %v3906_v38, %v3820_v44  ;;  %16812 = vst [vmem:[#allocation93_spill] sm:$0xff] %v12103_v5  ;;  %v16815_v44 = vrot.slane %v12063_v8, 5  ;;  %v12121_v43 = vmul.f32 %v11608_v2, %v16816_v0  ;;  %v5147_v34 = vrot.slane %v5088_v29, 6  ;;  %v12138_v8 = vld [vmem:[%s7442_s10 + $0xc8] sm:$0xff] }
 0x2cb   : > { %v4279_v31 = vsel %vm4125_vm4, %v16813_v49, %v4278_v61  ;;  %v4403_v38 = vsel %vm4125_vm4, %v16814_v59, %v4402_v13  ;;  %v16819_v13 = vrot.slane %v12082_v46, 5  ;;  %16823 = vst [vmem:[#allocation97_spill] sm:$0xff] %v12138_v8  ;;  %v16825_v29 = vld [vmem:[#allocation7_spill] sm:$0xff] }
 0x2cc   : > { %v4068_v37 = vadd.f32 %v4030_v36, %v3944_v48  ;;  %v4527_v17 = vsel %vm4125_vm4, %v16815_v44, %v4526_v53  ;;  %16817 = vst [vmem:[#allocation86_spill] sm:$0xff] %v12121_v43  ;;  %v16818_v36 = vrot.slane %v12073_v62, 5  ;;  %v16820_v53 = vrot.slane %v12088_v57, 5  ;;  %v16834_v57 = vld [vmem:[#allocation10_spill] sm:$0xff] }
 0x2cd   : > { %v4775_v59 = vsel %vm4125_vm4, %v16819_v13, %v4774_v40  ;;  %v5212_v44 = vmul.f32 %v11676_v56, %v16816_v0  ;;  %v16827_v13 = vld [vmem:[#allocation8_spill] sm:$0xff]  ;;  %v16830_v0 = vrot.slane %v12103_v5, 6 }
 0x2ce   : > { %v4193_v48 = vadd.f32 %v4155_v45, %v4068_v37  ;;  %v4651_v61 = vsel %vm4125_vm4, %v16818_v36, %v4650_v16  ;;  %v4899_v39 = vsel %vm4125_vm4, %v16820_v53, %v4898_v30  ;;  %v16822_v45 = vld [vmem:[#allocation147_spill] sm:$0xff]  ;;  %v12142_v16 = vmul.f32 %v12138_v8, %v16719_v10  ;;  %v16826_v36 = vld [vmem:[#allocation140_spill] sm:$0xff] }
 0x2cf   : > { %v359_v37 = vmul.f32 %v16822_v45, %v16821_v27  ;;  %v395_v40 = vmul.f32 %v16826_v36, %v16825_v29  ;;  %v431_v49 = vmul.f32 %v11735_v32, %v16827_v13  ;;  %v16828_v30 = vrot.slane %v12097_v51, 6  ;;  %v16831_v13 = vld [vmem:[#allocation9_spill] sm:$0xff] }
 0x2d0   : > { %v4317_v62 = vadd.f32 %v4279_v31, %v4193_v48  ;;  %16824 = vst [vmem:[#allocation30_spill] sm:$0xff] %v12142_v16  ;;  %v5336_v31 = vmul.f32 %v16706_v21, %v16719_v10  ;;  %v12156_v48 = vmul.f32 %v11994_v3, %v16722_v18  ;;  %v5148_v56 = vsel %vm4994_vm5, %v16830_v0, %v5147_v34  ;;  %v16832_v51 = vld [vmem:[#allocation37_spill] sm:$0xff]  ;;  %v16835_v0 = vld [vmem:[#allocation12_spill] sm:$0xff]  ;;  %v16836_v34 = vld [vmem:[#allocation138_spill] sm:$0xff] }
 0x2d1   : > { %v5024_v53 = vsel %vm4994_vm5, %v16828_v30, %v5023_v14  ;;  %v411_v8 = vadd.f32 %v395_v40, %v359_v37  ;;  %v467_v54 = vmul.f32 %v16832_v51, %v16831_v13  ;;  %v5271_v14 = vrot.slane %v5212_v44, 6 }
 0x2d2   : > { %16829 = vst [vmem:[#allocation94_spill] sm:$0xff] %v12156_v48  ;;  %v4441_v46 = vadd.f32 %v4403_v38, %v4317_v62  ;;  %v5460_v30 = vmul.f32 %v12001_v35, %v16722_v18  ;;  %v12167_v21 = vmul.f32 %v11827_v20, %v16732_v25  ;;  %v616_v10 = vmul.f32 %v16822_v45, %v16834_v57  ;;  %v12178_v35 = vld [vmem:[%s7442_s10 + $0x108] sm:$0xff] }
 0x2d3   : > { %v447_v5 = vadd.f32 %v431_v49, %v411_v8  ;;  %v503_v37 = vmul.f32 %v16836_v34, %v16835_v0  ;;  %v5395_v40 = vrot.slane %v5336_v31, 6  ;;  %v5584_v18 = vmul.f32 %v11839_v6, %v16732_v25  ;;  %v16837_v20 = vld [vmem:[#allocation11_spill] sm:$0xff]  ;;  %v16839_v8 = vld [vmem:[#allocation13_spill] sm:$0xff] }
 0x2d4   : > { %16833 = vst [vmem:[#allocation96_spill] sm:$0xff] %v12167_v21  ;;  %v4565_v62 = vadd.f32 %v4527_v17, %v4441_v46  ;;  %v741_v3 = vmul.f32 %v16826_v36, %v16837_v20  ;;  %v16838_v17 = vld [vmem:[#allocation14_spill] sm:$0xff]  ;;  %v865_v49 = vmul.f32 %v11735_v32, %v16839_v8  ;;  %v5519_v38 = vrot.slane %v5460_v30, 6  ;;  %v16843_v30 = vld [vmem:[#allocation19_spill] sm:$0xff] }
 0x2d5   : > { %v483_v57 = vadd.f32 %v467_v54, %v447_v5  ;;  %v539_v46 = vmul.f32 %v16838_v17, %v11353_v7  ;;  %v12189_v44 = vmul.f32 %v11816_v33, %v11646_v52  ;;  %v675_v25 = vrot.slane %v616_v10, 1  ;;  %v16841_v54 = vld [vmem:[#allocation16_spill] sm:$0xff]  ;;  %v16842_v17 = vld [vmem:[#allocation18_spill] sm:$0xff]  ;;  %v16844_v0 = vld [vmem:[#allocation23_spill] sm:$0xff] }
 0x2d6   : > { %v4689_v13 = vadd.f32 %v4651_v61, %v4565_v62  ;;  %v5708_v20 = vmul.f32 %v11816_v33, %v11703_v24  ;;  %v575_v5 = vmul.f32 %v16841_v54, %v12178_v35  ;;  %v799_v62 = vrot.slane %v741_v3, 1 }
 0x2d7   : > { %16840 = vst [vmem:[#allocation113_spill] sm:$0xff] %v12189_v44  ;;  %v519_v61 = vadd.f32 %v503_v37, %v483_v57  ;;  %v989_v8 = vmul.f32 %v16832_v51, %v16842_v17  ;;  %v1113_v31 = vmul.f32 %v16836_v34, %v16843_v30  ;;  %v1237_v52 = vmul.f32 %v16844_v0, %v11353_v7  ;;  %v16848_v30 = vld [vmem:[#allocation142_spill] sm:$0xff] }
 0x2d8   : > { %v4813_v6 = vadd.f32 %v4775_v59, %v4689_v13  ;;  %v5643_v10 = vrot.slane %v5584_v18, 6  ;;  %v923_v13 = vrot.slane %v865_v49, 1  ;;  %v16845_v33 = vrot.slane %v12121_v43, 6  ;;  %v16850_v49 = vld [vmem:[#allocation146_spill] sm:$0xff] }
 0x2d9   : > { %v555_v59 = vadd.f32 %v539_v46, %v519_v61  ;;  %v16846_v37 = vrot.slane %v12142_v16, 6  ;;  %v16847_v24 = vrot.slane %v12156_v48, 6  ;;  %v16849_v54 = vrot.slane %v16848_v30, 1  ;;  %v16853_v30 = vld [vmem:[#allocation31_spill] sm:$0xff] }
 0x2da   : > { %v4937_v22 = vadd.f32 %v4899_v39, %v4813_v6  ;;  %v5272_v57 = vsel %vm4994_vm5, %v16845_v33, %v5271_v14  ;;  %v15270_v18 = vrot.slane %v12189_v44, 6  ;;  %v5767_v39 = vrot.slane %v5708_v20, 6  ;;  %v16855_v20 = vld [vmem:[#allocation24_spill] sm:$0xff]  ;;  %v16864_v44 = vld [vmem:[#allocation38_spill] sm:$0xff] }
 0x2db   : > { %v5396_v3 = vsel %vm4994_vm5, %v16846_v37, %v5395_v40  ;;  %v5520_v17 = vsel %vm4994_vm5, %v16847_v24, %v5519_v38  ;;  %v677_v0 = vsel %vm649_vm0, %v675_v25, %v16849_v54  ;;  %v591_v46 = vadd.f32 %v575_v5, %v555_v59  ;;  %v16856_v54 = vld [vmem:[#allocation25_spill] sm:$0xff]  ;;  %v16858_v59 = vld [vmem:[#allocation55_spill] sm:$0xff] }
 0x2dc   : > { %v5062_v6 = vadd.f32 %v5024_v53, %v4937_v22  ;;  %v16851_v61 = vrot.slane %v16850_v49, 1  ;;  %v1047_v14 = vrot.slane %v989_v8, 1  ;;  %v1171_v16 = vrot.slane %v1113_v31, 1 }
 0x2dd   : > { %v1295_v40 = vrot.slane %v1237_v52, 1  ;;  %v16852_v48 = vrot.slane %v12167_v21, 6  ;;  %v716_v38 = vadd.f32 %v677_v0, %v591_v46  ;;  %v16854_v25 = vrot.slane %v16853_v30, 1  ;;  %v16860_v46 = vld [vmem:[#allocation32_spill] sm:$0xff] }
 0x2de   : > { %v801_v33 = vsel %vm649_vm0, %v799_v62, %v16851_v61  ;;  %v5186_v37 = vadd.f32 %v5148_v56, %v5062_v6  ;;  %v1361_v53 = vmul.f32 %v16855_v20, %v12178_v35  ;;  %v1485_v5 = vmul.f32 %v16822_v45, %v16856_v54  ;;  %v16857_v62 = vld [vmem:[#allocation26_spill] sm:$0xff] }
 0x2df   : > { %v5644_v24 = vsel %vm4994_vm5, %v16852_v48, %v5643_v10  ;;  %v925_v22 = vsel %vm649_vm0, %v923_v13, %v16854_v25  ;;  %v1610_v8 = vmul.f32 %v16826_v36, %v16857_v62  ;;  %v1734_v52 = vmul.f32 %v11735_v32, %v16608_v47 }
 0x2e0   : > { %v5310_v56 = vadd.f32 %v5272_v57, %v5186_v37  ;;  %v840_v31 = vadd.f32 %v801_v33, %v716_v38  ;;  %v1858_v48 = vmul.f32 %v16832_v51, %v16735_v15  ;;  %v1982_v0 = vmul.f32 %v16836_v34, %v16612_v63  ;;  %v16862_v57 = vld [vmem:[#allocation64_spill] sm:$0xff] }
 0x2e1   : > { %v5768_v10 = vsel %vm4994_vm5, %v15270_v18, %v5767_v39  ;;  %v16859_v13 = vrot.slane %v16858_v59, 1  ;;  %v16861_v49 = vrot.slane %v16860_v46, 1  ;;  %v16863_v33 = vrot.slane %v16862_v57, 1 }
 0x2e2   : > { %v5434_v38 = vadd.f32 %v5396_v3, %v5310_v56  ;;  %v964_v30 = vadd.f32 %v925_v22, %v840_v31  ;;  %v2106_v25 = vmul.f32 %v16102_v26, %v11353_v7  ;;  %v2230_v39 = vmul.f32 %v16864_v44, %v12178_v35 }
 0x2e3   : > { %v1049_v6 = vsel %vm649_vm0, %v1047_v14, %v16859_v13  ;;  %v1173_v61 = vsel %vm649_vm0, %v1171_v16, %v16861_v49  ;;  %v1297_v37 = vsel %vm649_vm0, %v1295_v40, %v16863_v33  ;;  %v1419_v18 = vrot.slane %v1361_v53, 1  ;;  %v16865_v49 = vld [vmem:[#allocation39_spill] sm:$0xff]  ;;  %v16866_v40 = vld [vmem:[#allocation40_spill] sm:$0xff]  ;;  %v16871_v33 = vld [vmem:[#allocation117_spill] sm:$0xff] }
 0x2e4   : > { %v1544_v59 = vrot.slane %v1485_v5, 2  ;;  %v1668_v21 = vrot.slane %v1610_v8, 2  ;;  %v1792_v14 = vrot.slane %v1734_v52, 2  ;;  %v5558_v13 = vadd.f32 %v5520_v17, %v5434_v38  ;;  %v16867_v17 = vld [vmem:[#allocation36_spill] sm:$0xff] }
 0x2e5   : > { %v1088_v46 = vadd.f32 %v1049_v6, %v964_v30  ;;  %v1916_v43 = vrot.slane %v1858_v48, 2  ;;  %v2040_v16 = vrot.slane %v1982_v0, 2  ;;  %v2354_v57 = vmul.f32 %v16822_v45, %v16865_v49  ;;  %v16869_v48 = vld [vmem:[#allocation134_spill] sm:$0xff] }
 0x2e6   : > { %v2479_v3 = vmul.f32 %v16826_v36, %v16866_v40  ;;  %v2603_v7 = vmul.f32 %v11735_v32, %v16624_v23  ;;  %v2727_v22 = vmul.f32 %v16832_v51, %v16752_v4  ;;  %v5682_v53 = vadd.f32 %v5644_v24, %v5558_v13  ;;  %v16873_v23 = vld [vmem:[#allocation50_spill] sm:$0xff] }
 0x2e7   : > { %v1212_v5 = vadd.f32 %v1173_v61, %v1088_v46  ;;  %v2164_v8 = vrot.slane %v2106_v25, 2  ;;  %v2288_v52 = vrot.slane %v2230_v39, 2  ;;  %v16868_v56 = vrot.slane %v16867_v17, 1  ;;  %v16875_v39 = vld [vmem:[#allocation57_spill] sm:$0xff] }
 0x2e8   : > { %v16870_v0 = vrot.slane %v16869_v48, 2  ;;  %v16872_v38 = vrot.slane %v16871_v33, 2  ;;  %v16874_v40 = vrot.slane %v16873_v23, 2  ;;  %v5806_v61 = vadd.f32 %v5768_v10, %v5682_v53 }
 0x2e9   : > { %v1421_v31 = vsel %vm649_vm0, %v1419_v18, %v16868_v56  ;;  %v1336_v25 = vadd.f32 %v1297_v37, %v1212_v5  ;;  %v16876_v13 = vrot.slane %v16875_v39, 2  ;;  %v16877_v18 = vrot.slane %v11807_v42, 2  ;;  %v16883_v5 = vld [vmem:[#allocation44_spill] sm:$0xff] }
 0x2ea   : > { %v1546_v6 = vsel %vm1518_vm1, %v1544_v59, %v16870_v0  ;;  %v1670_v30 = vsel %vm1518_vm1, %v1668_v21, %v16872_v38  ;;  %v1794_v24 = vsel %vm1518_vm1, %v1792_v14, %v16874_v40  ;;  %v2413_v59 = vrot.slane %v2354_v57, 3 }
 0x2eb   : > { %v1918_v46 = vsel %vm1518_vm1, %v1916_v43, %v16876_v13  ;;  %v2042_v17 = vsel %vm1518_vm1, %v2040_v16, %v16877_v18  ;;  %v2537_v56 = vrot.slane %v2479_v3, 3  ;;  %v2661_v48 = vrot.slane %v2603_v7, 3  ;;  %v12289_v16 = vld [vmem:[%s7442_s10 + $0xf0] sm:$0xff]  ;;  %v16882_v3 = vld [vmem:[#allocation53_spill] sm:$0xff] }
 0x2ec   : > { %v2785_v0 = vrot.slane %v2727_v22, 3  ;;  %v12278_v21 = vadd.f32 %v16792_v9, %v5806_v61  ;;  %v1460_v23 = vadd.f32 %v1421_v31, %v1336_v25  ;;  %v16879_v14 = vrot.slane %v11831_v19, 2  ;;  %v16881_v9 = vld [vmem:[#allocation52_spill] sm:$0xff]  ;;  %v16885_v31 = vld [vmem:[#allocation45_spill] sm:$0xff]  ;;  %v16887_v61 = vld [vmem:[#allocation143_spill] sm:$0xff] }
 0x2ed   : > { %v16880_v37 = vrot.slane %v11850_v28, 2  ;;  %v2851_v42 = vmul.f32 %v16836_v34, %v16761_v41  ;;  %v2975_v57 = vmul.f32 %v12289_v16, %v16763_v1  ;;  %v3099_v40 = vmul.f32 %v16881_v9, %v12178_v35  ;;  %v12454_v9 = vld [vmem:[%s7442_s10 + $0xd0] sm:$0x3f]  ;;  %v16948_v41 = vld [vmem:[#allocation18_spill] sm:$0xff] }
 0x2ee   : > { %16878 = vst [vmem:[#allocation114_spill] sm:$0xff] %v12278_v21  ;;  %v2166_v10 = vsel %vm1518_vm1, %v2164_v8, %v16879_v14  ;;  %v3223_v19 = vmul.f32 %v16822_v45, %v16882_v3  ;;  %v5868_v7 = vsel %vm5834_vm6, %v12278_v21, 0.0  ;;  %v1585_v28 = vadd.f32 %v1546_v6, %v1460_v23  ;;  %v16889_v6 = vld [vmem:[#allocation61_spill] sm:$0xff]  ;;  %v16890_v23 = vld [vmem:[#allocation62_spill] sm:$0xff]  ;;  %16947 = vst [vmem:[#allocation104_spill] sm:$0xff] %v12454_v9 }
 0x2ef   : > { %v2290_v43 = vsel %vm1518_vm1, %v2288_v52, %v16880_v37  ;;  %v3348_v22 = vmul.f32 %v16826_v36, %v16769_v58  ;;  %v3472_v53 = vmul.f32 %v11735_v32, %v16772_v55  ;;  %5869 = vadd.xlane.f32.xlu1 %v5868_v7  ;;  %v16884_v8 = vrot.slane %v16883_v5, 3  ;;  %v16891_v37 = vld [vmem:[#allocation63_spill] sm:$0xff]  ;;  %v16895_v55 = vld [vmem:[#allocation68_spill] sm:$0xff]  ;;  %v16896_v58 = vld [vmem:[#allocation70_spill] sm:$0xff] }
 0x2f0   : > { %v16886_v33 = vrot.slane %v16885_v31, 3  ;;  %v16888_v25 = vrot.slane %v16887_v61, 3  ;;  %v3596_v13 = vmul.f32 %v16832_v51, %v16889_v6  ;;  %v1709_v18 = vadd.f32 %v1670_v30, %v1585_v28  ;;  %v16893_v30 = vld [vmem:[#allocation124_spill] sm:$0xff] }
 0x2f1   : > { %v2415_v52 = vsel %vm2387_vm2, %v2413_v59, %v16884_v8  ;;  %v3720_v14 = vmul.f32 %v16836_v34, %v16890_v23  ;;  %v3844_v7 = vmul.f32 %v12289_v16, %v16891_v37  ;;  %v16892_v59 = vld [vmem:[#allocation66_spill] sm:$0xff]  ;;  %v2909_v8 = vrot.slane %v2851_v42, 3 }
 0x2f2   : > { %v2539_v38 = vsel %vm2387_vm2, %v2537_v56, %v16886_v33  ;;  %v12312_v39 = vsel %vm2387_vm2, %v2661_v48, %v16888_v25  ;;  %v3968_v5 = vmul.f32 %v16892_v59, %v12178_v35  ;;  %v3033_v56 = vrot.slane %v2975_v57, 3 }
 0x2f3   : > { %v3157_v31 = vrot.slane %v3099_v40, 3  ;;  %v3282_v33 = vrot.slane %v3223_v19, 4  ;;  %v1833_v61 = vadd.f32 %v1794_v24, %v1709_v18  ;;  %v3406_v48 = vrot.slane %v3348_v22, 4  ;;  %v16897_v22 = vld [vmem:[#allocation27_spill] sm:$0xff] }
 0x2f4   : > { %v3530_v25 = vrot.slane %v3472_v53, 4  ;;  %v4092_v21 = vmul.f32 %v16822_v45, %v16789_v11  ;;  %v16894_v28 = vrot.slane %v16893_v30, 3  ;;  %v3654_v6 = vrot.slane %v3596_v13, 4  ;;  %v16899_v11 = vld [vmem:[#allocation119_spill] sm:$0xff] }
 0x2f5   : > { %v4217_v37 = vmul.f32 %v16826_v36, %v16895_v55  ;;  %v4341_v42 = vmul.f32 %v11735_v32, %v16896_v58  ;;  %v1957_v57 = vadd.f32 %v1918_v46, %v1833_v61  ;;  %v3778_v40 = vrot.slane %v3720_v14, 4  ;;  %v16903_v55 = vld [vmem:[#allocation72_spill] sm:$0xff] }
 0x2f6   : > { %v2787_v23 = vsel %vm2387_vm2, %v2785_v0, %v16894_v28  ;;  %v3902_v19 = vrot.slane %v3844_v7, 4  ;;  %v4026_v24 = vrot.slane %v3968_v5, 4  ;;  %v16898_v53 = vrot.slane %v16897_v22, 3  ;;  %v16901_v0 = vld [vmem:[#allocation108_spill] sm:$0xff]  ;;  %v16905_v7 = vld [vmem:[#allocation78_spill] sm:$0xff] }
 0x2f7   : > { %v16900_v59 = vrot.slane %v16899_v11, 3  ;;  %v16902_v13 = vrot.slane %v16901_v0, 3  ;;  %v16904_v58 = vrot.slane %v16903_v55, 4  ;;  %v2081_v14 = vadd.f32 %v2042_v17, %v1957_v57  ;;  %v16907_v11 = vld [vmem:[#allocation59_spill] sm:$0xff]  ;;  %v16909_v22 = vld [vmem:[#allocation88_spill] sm:$0xff]  ;;  %v16912_v0 = vld [vmem:[#allocation65_spill] sm:$0xff] }
 0x2f8   : > { %v2911_v18 = vsel %vm2387_vm2, %v2909_v8, %v16898_v53  ;;  %v16906_v5 = vrot.slane %v16905_v7, 4  ;;  %v16908_v61 = vrot.slane %v16907_v11, 4  ;;  %v4275_v55 = vrot.slane %v4217_v37, 5  ;;  %v16914_v7 = vld [vmem:[#allocation95_spill] sm:$0xff]  ;;  %v16918_v37 = vld [vmem:[#allocation76_spill] sm:$0xff] }
 0x2f9   : > { %v12337_v30 = vsel %vm2387_vm2, %v3033_v56, %v16900_v59  ;;  %v12342_v28 = vsel %vm2387_vm2, %v3157_v31, %v16902_v13  ;;  %v12347_v46 = vsel %vm3256_vm3, %v3282_v33, %v16904_v58  ;;  %v4151_v56 = vrot.slane %v4092_v21, 5  ;;  %v16911_v33 = vld [vmem:[#allocation75_spill] sm:$0xff] }
 0x2fa   : > { %v12352_v8 = vsel %vm3256_vm3, %v3406_v48, %v16906_v5  ;;  %v12357_v59 = vsel %vm3256_vm3, %v3530_v25, %v16908_v61  ;;  %v16910_v31 = vrot.slane %v16909_v22, 4  ;;  %v4399_v58 = vrot.slane %v4341_v42, 5  ;;  %v16916_v5 = vld [vmem:[#allocation21_spill] sm:$0xff]  ;;  %v16920_v22 = vld [vmem:[#allocation139_spill] sm:$0xff] }
 0x2fb   : > { %v4465_v17 = vmul.f32 %v16832_v51, %v16911_v33  ;;  %v2205_v57 = vadd.f32 %v2166_v10, %v2081_v14  ;;  %v16913_v48 = vrot.slane %v16912_v0, 4  ;;  %v16915_v25 = vrot.slane %v16914_v7, 4  ;;  %v16919_v61 = vld [vmem:[#allocation77_spill] sm:$0xff]  ;;  %v16921_v0 = vld [vmem:[#allocation51_spill] sm:$0xff] }
 0x2fc   : > { %v12362_v53 = vsel %vm3256_vm3, %v3654_v6, %v16910_v31  ;;  %v16917_v11 = vrot.slane %v16916_v5, 4  ;;  %v4589_v42 = vmul.f32 %v16836_v34, %v16918_v37  ;;  %v12385_v10 = vmul.f32 %v12289_v16, %v16919_v61  ;;  %v16932_v61 = vld [vmem:[#allocation85_spill] sm:$0xff] }
 0x2fd   : > { %v12369_v13 = vsel %vm3256_vm3, %v3778_v40, %v16913_v48  ;;  %v12374_v21 = vsel %vm3256_vm3, %v3902_v19, %v16915_v25  ;;  %v12389_v40 = vmul.f32 %v16807_v12, %v12178_v35  ;;  %v12393_v19 = vmul.f32 %v16822_v45, %v16809_v60  ;;  %v16923_v25 = vld [vmem:[#allocation101_spill] sm:$0xff]  ;;  %v16929_v60 = vld [vmem:[#allocation8_spill] sm:$0xff] }
 0x2fe   : > { %v12379_v6 = vsel %vm3256_vm3, %v4026_v24, %v16917_v11  ;;  %v2329_v14 = vadd.f32 %v2290_v43, %v2205_v57  ;;  %v12397_v24 = vmul.f32 %v16826_v36, %v16811_v50  ;;  %v362_v34 = vmul.f32 %v16920_v22, %v16821_v27  ;;  %v16926_v57 = vld [vmem:[#allocation102_spill] sm:$0xff]  ;;  %v16944_v37 = vld [vmem:[#allocation13_spill] sm:$0xff] }
 0x2ff   : > { %v398_v31 = vmul.f32 %v11608_v2, %v16825_v29  ;;  %v16922_v48 = vrot.slane %v16921_v0, 5  ;;  %v16924_v45 = vrot.slane %v16923_v25, 5  ;;  %v16927_v36 = vrot.slane %v16926_v57, 5  ;;  %v16930_v29 = vld [vmem:[#allocation97_spill] sm:$0xff] }
 0x300   : > { %v4523_v11 = vrot.slane %v4465_v17, 5  ;;  %v2454_v27 = vadd.f32 %v2415_v52, %v2329_v14  ;;  %v434_v12 = vmul.f32 %v16930_v29, %v16929_v60  ;;  %v16931_v0 = vld [vmem:[#allocation9_spill] sm:$0xff]  ;;  %v4771_v25 = vrot.slane %v12385_v10, 5  ;;  %v12427_v17 = vld [vmem:[%s7442_s10 + $0x128] sm:$0xff]  ;;  %v16934_v14 = vld [vmem:[#allocation12_spill] sm:$0xff] }
 0x301   : > { %v12406_v7 = vsel %vm4125_vm4, %v4151_v56, %v16922_v48  ;;  %v12411_v43 = vsel %vm4125_vm4, %v4275_v55, %v16924_v45  ;;  %v12416_v5 = vsel %vm4125_vm4, %v4399_v58, %v16927_v36  ;;  %v414_v50 = vadd.f32 %v398_v31, %v362_v34  ;;  %16933 = vst [vmem:[#allocation115_spill] sm:$0xff] %v12427_v17  ;;  %v16935_v34 = vld [vmem:[#allocation43_spill] sm:$0xff]  ;;  %v16936_v36 = vld [vmem:[#allocation144_spill] sm:$0xff]  ;;  %v16937_v60 = vld [vmem:[#allocation14_spill] sm:$0xff] }
 0x302   : > { %16925 = vst [vmem:[#allocation103_spill] sm:$0xff] %v12411_v43  ;;  %16928 = vst [vmem:[#allocation106_spill] sm:$0xff] %v12416_v5  ;;  %v470_v56 = vmul.f32 %v16932_v61, %v16931_v0  ;;  %v4647_v48 = vrot.slane %v4589_v42, 5  ;;  %v2578_v57 = vadd.f32 %v2539_v38, %v2454_v27  ;;  %v506_v31 = vmul.f32 %v16935_v34, %v16934_v14  ;;  %v16938_v42 = vld [vmem:[#allocation10_spill] sm:$0xff]  ;;  %v16940_v55 = vld [vmem:[#allocation17_spill] sm:$0xff] }
 0x303   : > { %v450_v52 = vadd.f32 %v434_v12, %v414_v50  ;;  %v542_v0 = vmul.f32 %v16937_v60, %v16936_v36  ;;  %v12435_v10 = vmul.f32 %v16920_v22, %v16938_v42  ;;  %v621_v45 = vmul.f32 %v16940_v55, %v16938_v42  ;;  %v16941_v27 = vld [vmem:[#allocation11_spill] sm:$0xff]  ;;  %v16943_v12 = vld [vmem:[#allocation46_spill] sm:$0xff]  ;;  %v16946_v22 = vld [vmem:[#allocation16_spill] sm:$0xff] }
 0x304   : > { %v12441_v38 = vmul.f32 %v11608_v2, %v16941_v27  ;;  %v2702_v58 = vadd.f32 %v12312_v39, %v2578_v57  ;;  %v746_v14 = vmul.f32 %v16943_v12, %v16941_v27  ;;  %v12448_v60 = vmul.f32 %v16930_v29, %v16944_v37  ;;  %v16951_v5 = vld [vmem:[#allocation84_spill] sm:$0xff]  ;;  %v16956_v27 = vld [vmem:[#allocation87_spill] sm:$0xff] }
 0x305   : > { %16939 = vst [vmem:[#allocation107_spill] sm:$0xff] %v12435_v10  ;;  %v486_v50 = vadd.f32 %v470_v56, %v450_v52  ;;  %v578_v33 = vmul.f32 %v16946_v22, %v12427_v17  ;;  %v683_v42 = vrot.slane %v621_v45, 1  ;;  %v870_v2 = vmul.f32 %v12454_v9, %v16944_v37  ;;  %v16950_v45 = vld [vmem:[#allocation79_spill] sm:$0xff] }
 0x306   : > { %16942 = vst [vmem:[#allocation121_spill] sm:$0xff] %v12441_v38  ;;  %16945 = vst [vmem:[#allocation109_spill] sm:$0xff] %v12448_v60  ;;  %v2826_v39 = vadd.f32 %v2787_v23, %v2702_v58  ;;  %v807_v52 = vrot.slane %v746_v14, 1  ;;  %v12462_v22 = vmul.f32 %v16932_v61, %v16948_v41  ;;  %v994_v3 = vmul.f32 %v16950_v45, %v16948_v41  ;;  %v16952_v58 = vld [vmem:[#allocation19_spill] sm:$0xff]  ;;  %v16954_v14 = vld [vmem:[#allocation92_spill] sm:$0xff] }
 0x307   : > { %v522_v56 = vadd.f32 %v506_v31, %v486_v50  ;;  %v931_v1 = vrot.slane %v870_v2, 1  ;;  %v12468_v37 = vmul.f32 %v11735_v32, %v16951_v5  ;;  %v12472_v31 = vmul.f32 %v16935_v34, %v16952_v58  ;;  %v12491_v41 = vld [vmem:[%s7442_s10 + $0x130] sm:$0x3f] }
 0x308   : > { %16949 = vst [vmem:[#allocation105_spill] sm:$0xff] %v12462_v22  ;;  %v2950_v4 = vadd.f32 %v2911_v18, %v2826_v39  ;;  %v16955_v50 = vrot.slane %v16954_v14, 5  ;;  %v16957_v57 = vrot.slane %v16956_v27, 5  ;;  %v16958_v18 = vrot.slane %v12435_v10, 1  ;;  %16960 = vst [vmem:[#allocation118_spill] sm:$0xff] %v12491_v41  ;;  %v16962_v27 = vld [vmem:[#allocation23_spill] sm:$0xff] }
 0x309   : > { %v558_v23 = vadd.f32 %v542_v0, %v522_v56  ;;  %16953 = vst [vmem:[#allocation116_spill] sm:$0xff] %v12472_v31  ;;  %v16959_v0 = vld [vmem:[#allocation73_spill] sm:$0xff]  ;;  %v1055_v10 = vrot.slane %v994_v3, 1 }
 0x30a   : > { %v12477_v2 = vsel %vm4125_vm4, %v4523_v11, %v16955_v50  ;;  %v12482_v43 = vsel %vm4125_vm4, %v4647_v48, %v16957_v57  ;;  %v684_v32 = vsel %vm649_vm0, %v16958_v18, %v683_v42  ;;  %v1118_v39 = vmul.f32 %v16959_v0, %v16952_v58 }
 0x30b   : > { %v3074_v56 = vadd.f32 %v12337_v30, %v2950_v4  ;;  %v594_v14 = vadd.f32 %v578_v33, %v558_v23  ;;  %v16961_v11 = vrot.slane %v12441_v38, 1  ;;  %v12498_v48 = vmul.f32 %v16962_v27, %v16936_v36  ;;  %v16965_v4 = vld [vmem:[#allocation58_spill] sm:$0xff]  ;;  %v16975_v36 = vld [vmem:[#allocation83_spill] sm:$0xff] }
 0x30c   : > { %v16964_v57 = vrot.slane %v12448_v60, 1  ;;  %v15294_v18 = vrot.slane %v12462_v22, 1  ;;  %v1242_v30 = vmul.f32 %v16962_v27, %v16965_v4  ;;  %v12511_v60 = vmul.f32 %v16855_v20, %v12427_v17  ;;  %v12517_v4 = vld [vmem:[%s7442_s10 + $0x98] sm:$0xff] }
 0x30d   : > { %v808_v50 = vsel %vm649_vm0, %v16961_v11, %v807_v52  ;;  %16963 = vst [vmem:[#allocation120_spill] sm:$0xff] %v12498_v48  ;;  %v3198_v33 = vadd.f32 %v12342_v28, %v3074_v56  ;;  %v719_v23 = vadd.f32 %v684_v32, %v594_v14  ;;  %v1179_v11 = vrot.slane %v1118_v39, 1  ;;  %v16968_v39 = vld [vmem:[#allocation20_spill] sm:$0xff] }
 0x30e   : > { %v932_v42 = vsel %vm649_vm0, %v16964_v57, %v931_v1  ;;  %v1303_v38 = vrot.slane %v1242_v30, 1  ;;  %16966 = vst [vmem:[#allocation122_spill] sm:$0xff] %v12511_v60  ;;  %v1366_v1 = vmul.f32 %v16855_v20, %v12491_v41  ;;  %v12521_v28 = vmul.f32 %v12517_v4, %v16856_v54 }
 0x30f   : > { %v3323_v3 = vadd.f32 %v12347_v46, %v3198_v33  ;;  %v843_v57 = vadd.f32 %v808_v50, %v719_v23  ;;  %v1490_v32 = vmul.f32 %v16940_v55, %v16856_v54  ;;  %v16969_v56 = vrot.slane %v16968_v39, 5  ;;  %v12534_v46 = vld [vmem:[%s7442_s10 + $0xb0] sm:$0xff]  ;;  %v16972_v23 = vld [vmem:[#allocation74_spill] sm:$0xff] }
 0x310   : > { %16967 = vst [vmem:[#allocation123_spill] sm:$0xff] %v12521_v28  ;;  %v1056_v30 = vsel %vm649_vm0, %v15294_v18, %v1055_v10  ;;  %16970 = vst [vmem:[#allocation125_spill] sm:$0xff] %v12534_v46  ;;  %v12538_v50 = vmul.f32 %v12534_v46, %v16857_v62  ;;  %v1615_v33 = vmul.f32 %v16943_v12, %v16857_v62  ;;  %v16973_v39 = vrot.slane %v16972_v23, 5 }
 0x311   : > { %v12528_v14 = vsel %vm4125_vm4, %v4771_v25, %v16969_v56  ;;  %v3447_v55 = vadd.f32 %v12352_v8, %v3323_v3  ;;  %v16974_v25 = vrot.slane %v12389_v40, 5  ;;  %v16976_v10 = vrot.slane %v16975_v36, 6 }
 0x312   : > { %16971 = vst [vmem:[#allocation127_spill] sm:$0xff] %v12538_v50  ;;  %v16977_v18 = vrot.slane %v12393_v19, 6  ;;  %v967_v22 = vadd.f32 %v932_v42, %v843_v57  ;;  %v16978_v54 = vrot.slane %v12472_v31, 1  ;;  %v16979_v8 = vrot.slane %v12498_v48, 1 }
 0x313   : > { %v12548_v56 = vsel %vm4125_vm4, %v16974_v25, %v16973_v39  ;;  %v15297_v40 = vrot.slane %v12511_v60, 1  ;;  %v1427_v23 = vrot.slane %v1366_v1, 1  ;;  %v3571_v39 = vadd.f32 %v12357_v59, %v3447_v55  ;;  %v16982_v1 = vld [vmem:[#allocation93_spill] sm:$0xff] }
 0x314   : > { %v12555_v52 = vsel %vm4994_vm5, %v16977_v18, %v16976_v10  ;;  %v1180_v12 = vsel %vm649_vm0, %v16978_v54, %v1179_v11  ;;  %v1304_v3 = vsel %vm649_vm0, %v16979_v8, %v1303_v38  ;;  %v1091_v36 = vadd.f32 %v1056_v30, %v967_v22  ;;  %v16986_v8 = vld [vmem:[#allocation89_spill] sm:$0xff] }
 0x315   : > { %v15299_v19 = vrot.slane %v12521_v28, 2  ;;  %v1552_v25 = vrot.slane %v1490_v32, 2  ;;  %v15298_v18 = vrot.slane %v12538_v50, 2  ;;  %v1676_v42 = vrot.slane %v1615_v33, 2 }
 0x316   : > { %v12569_v57 = vmul.f32 %v16930_v29, %v16608_v47  ;;  %v1739_v54 = vmul.f32 %v12454_v9, %v16608_v47  ;;  %v3695_v38 = vadd.f32 %v12362_v53, %v3571_v39  ;;  %v1215_v11 = vadd.f32 %v1180_v12, %v1091_v36 }
 0x317   : > { %v12576_v59 = vmul.f32 %v16932_v61, %v16735_v15  ;;  %v1863_v22 = vmul.f32 %v16950_v45, %v16735_v15  ;;  %v16983_v32 = vrot.slane %v16982_v1, 6  ;;  %v16984_v30 = vrot.slane %v12397_v24, 6 }
 0x318   : > { %16980 = vst [vmem:[#allocation129_spill] sm:$0xff] %v12569_v57  ;;  %v1428_v55 = vsel %vm649_vm0, %v15297_v40, %v1427_v23  ;;  %v12592_v53 = vmul.f32 %v16935_v34, %v16612_v63  ;;  %v1987_v10 = vmul.f32 %v16959_v0, %v16612_v63  ;;  %v3819_v12 = vadd.f32 %v12369_v13, %v3695_v38  ;;  %v12613_v40 = vld [vmem:[%s7442_s10 + $0x110] sm:$0xff]  ;;  %v17004_v63 = vld [vmem:[#allocation47_spill] sm:$0xff] }
 0x319   : > { %16981 = vst [vmem:[#allocation41_spill] sm:$0xff] %v12576_v59  ;;  %v12585_v33 = vsel %vm4994_vm5, %v16984_v30, %v16983_v32  ;;  %v5268_v24 = vrot.slane %v12468_v37, 6  ;;  %v12600_v39 = vmul.f32 %v16832_v51, %v16986_v8  ;;  %v1339_v36 = vadd.f32 %v1304_v3, %v1215_v11  ;;  %16987 = vst [vmem:[#allocation100_spill] sm:$0xff] %v12613_v40  ;;  %v16991_v3 = vld [vmem:[#allocation91_spill] sm:$0xff] }
 0x31a   : > { %16985 = vst [vmem:[#allocation131_spill] sm:$0xff] %v12592_v53  ;;  %v1553_v23 = vsel %vm1518_vm1, %v15299_v19, %v1552_v25  ;;  %v1677_v1 = vsel %vm1518_vm1, %v15298_v18, %v1676_v42  ;;  %v15302_v32 = vrot.slane %v12569_v57, 2  ;;  %v1800_v13 = vrot.slane %v1739_v54, 2  ;;  %v12620_v42 = vld [vmem:[%s7442_s10 + $0x118] sm:$0x3f]  ;;  %v16992_v57 = vld [vmem:[#allocation60_spill] sm:$0xff] }
 0x31b   : > { %v3943_v38 = vadd.f32 %v12374_v21, %v3819_v12  ;;  %v1463_v37 = vadd.f32 %v1428_v55, %v1339_v36  ;;  %v1924_v51 = vrot.slane %v1863_v22, 2  ;;  %v2048_v11 = vrot.slane %v1987_v10, 2  ;;  %16989 = vst [vmem:[#allocation133_spill] sm:$0xff] %v12620_v42  ;;  %v12632_v12 = vld [vmem:[%s7442_s10 + $0xd8] sm:$0xff]  ;;  %v16990_v36 = vld [vmem:[#allocation90_spill] sm:$0xff] }
 0x31c   : > { %v12617_v25 = vmul.f32 %v12613_v40, %v16102_v26  ;;  %v2111_v54 = vmul.f32 %v12620_v42, %v16102_v26  ;;  %v12627_v22 = vmul.f32 %v16864_v44, %v12427_v17  ;;  %v2235_v10 = vmul.f32 %v16864_v44, %v12491_v41 }
 0x31d   : > { %v4067_v21 = vadd.f32 %v12379_v6, %v3943_v38  ;;  %v1588_v55 = vadd.f32 %v1553_v23, %v1463_v37  ;;  %v12636_v18 = vmul.f32 %v12632_v12, %v16990_v36  ;;  %v1801_v19 = vsel %vm1518_vm1, %v15302_v32, %v1800_v13  ;;  %v12646_v23 = vld [vmem:[%s7442_s10 + $0xa0] sm:$0x3f] }
 0x31e   : > { %16988 = vst [vmem:[#allocation128_spill] sm:$0xff] %v12617_v25  ;;  %v12643_v6 = vmul.f32 %v12517_v4, %v16865_v49  ;;  %v2359_v38 = vmul.f32 %v12646_v23, %v16865_v49  ;;  %v12653_v30 = vmul.f32 %v12289_v16, %v16991_v3  ;;  %v12657_v50 = vmul.f32 %v16992_v57, %v12178_v35 }
 0x31f   : > { %v4192_v37 = vadd.f32 %v12406_v7, %v4067_v21  ;;  %v1712_v13 = vadd.f32 %v1677_v1, %v1588_v55  ;;  %v16993_v32 = vrot.slane %v12576_v59, 2  ;;  %v16994_v60 = vrot.slane %v12592_v53, 2  ;;  %v16995_v21 = vld [vmem:[#allocation103_spill] sm:$0xff]  ;;  %v16996_v55 = vld [vmem:[#allocation40_spill] sm:$0xff] }
 0x320   : > { %v15313_v48 = vrot.slane %v12617_v25, 2  ;;  %v2172_v7 = vrot.slane %v2111_v54, 2  ;;  %v2296_v31 = vrot.slane %v2235_v10, 2  ;;  %v2421_v1 = vrot.slane %v2359_v38, 3  ;;  %v17002_v38 = vld [vmem:[#allocation86_spill] sm:$0xff] }
 0x321   : > { %v1925_v28 = vsel %vm1518_vm1, %v16993_v32, %v1924_v51  ;;  %v2049_v49 = vsel %vm1518_vm1, %v16994_v60, %v2048_v11  ;;  %v4316_v44 = vadd.f32 %v16995_v21, %v4192_v37  ;;  %v1836_v26 = vadd.f32 %v1801_v19, %v1712_v13  ;;  %v12674_v32 = vld [vmem:[%s7442_s10 + $0xb8] sm:$0x3f]  ;;  %v16999_v51 = vld [vmem:[#allocation106_spill] sm:$0xff] }
 0x322   : > { %v12671_v59 = vmul.f32 %v12534_v46, %v16996_v55  ;;  %16998 = vst [vmem:[#allocation69_spill] sm:$0xff] %v12674_v32  ;;  %v2484_v60 = vmul.f32 %v12674_v32, %v16996_v55  ;;  %v17000_v37 = vld [vmem:[#allocation42_spill] sm:$0xff]  ;;  %v17003_v13 = vrot.slane %v17002_v38, 6  ;;  %v2173_v57 = vsel %vm1518_vm1, %v15313_v48, %v2172_v7 }
 0x323   : > { %v4440_v11 = vadd.f32 %v16999_v51, %v4316_v44  ;;  %v1960_v54 = vadd.f32 %v1925_v28, %v1836_v26  ;;  %v12681_v19 = vmul.f32 %v16930_v29, %v17000_v37  ;;  %v2608_v10 = vmul.f32 %v12454_v9, %v17000_v37 }
 0x324   : > { %16997 = vst [vmem:[#allocation112_spill] sm:$0xff] %v12671_v59  ;;  %v5270_v21 = vsel %vm4994_vm5, %v5268_v24, %v17003_v13  ;;  %v12693_v53 = vmul.f32 %v16932_v61, %v17004_v63  ;;  %v2732_v26 = vmul.f32 %v16950_v45, %v17004_v63  ;;  %v5392_v28 = vrot.slane %v12600_v39, 6 }
 0x325   : > { %17001 = vst [vmem:[#allocation135_spill] sm:$0xff] %v12681_v19  ;;  %v4564_v44 = vadd.f32 %v12477_v2, %v4440_v11  ;;  %v5516_v51 = vrot.slane %v12636_v18, 6  ;;  %v2084_v38 = vadd.f32 %v2049_v49, %v1960_v54  ;;  %v17006_v24 = vrot.slane %v12627_v22, 2  ;;  %v17008_v11 = vld [vmem:[#allocation48_spill] sm:$0xff] }
 0x326   : > { %17005 = vst [vmem:[#allocation136_spill] sm:$0xff] %v12693_v53  ;;  %v17007_v7 = vrot.slane %v12643_v6, 3  ;;  %v15318_v25 = vrot.slane %v12671_v59, 3  ;;  %v2545_v37 = vrot.slane %v2484_v60, 3  ;;  %v15321_v2 = vrot.slane %v12681_v19, 3  ;;  %v17010_v60 = vld [vmem:[#allocation49_spill] sm:$0xff] }
 0x327   : > { %v2297_v13 = vsel %vm1518_vm1, %v17006_v24, %v2296_v31  ;;  %v4688_v63 = vadd.f32 %v12482_v43, %v4564_v44  ;;  %v2208_v55 = vadd.f32 %v2173_v57, %v2084_v38  ;;  %v2669_v39 = vrot.slane %v2608_v10, 3 }
 0x328   : > { %v2422_v48 = vsel %vm2387_vm2, %v17007_v7, %v2421_v1  ;;  %v15320_v18 = vrot.slane %v12693_v53, 3  ;;  %v2793_v49 = vrot.slane %v2732_v26, 3  ;;  %v12712_v54 = vmul.f32 %v16935_v34, %v17008_v11  ;;  %v17012_v26 = vld [vmem:[#allocation52_spill] sm:$0xff]  ;;  %v17026_v53 = vld [vmem:[#allocation113_spill] sm:$0xff] }
 0x329   : > { %v2856_v31 = vmul.f32 %v16959_v0, %v17008_v11  ;;  %v4812_v1 = vadd.f32 %v12528_v14, %v4688_v63  ;;  %v2332_v24 = vadd.f32 %v2297_v13, %v2208_v55  ;;  %v12719_v43 = vmul.f32 %v12613_v40, %v17010_v60  ;;  %v17014_v14 = vld [vmem:[#allocation30_spill] sm:$0xff] }
 0x32a   : > { %17009 = vst [vmem:[#allocation130_spill] sm:$0xff] %v12712_v54  ;;  %v2980_v57 = vmul.f32 %v12620_v42, %v17010_v60  ;;  %v5640_v10 = vrot.slane %v12653_v30, 6  ;;  %v2546_v34 = vsel %vm2387_vm2, %v15318_v25, %v2545_v37  ;;  %v12729_v44 = vmul.f32 %v17012_v26, %v12427_v17 }
 0x32b   : > { %17011 = vst [vmem:[#allocation137_spill] sm:$0xff] %v12719_v43  ;;  %v3104_v63 = vmul.f32 %v17012_v26, %v12491_v41  ;;  %v4936_v0 = vadd.f32 %v12548_v56, %v4812_v1  ;;  %v17015_v55 = vrot.slane %v17014_v14, 6  ;;  %v5764_v13 = vrot.slane %v12657_v50, 6 }
 0x32c   : > { %17013 = vst [vmem:[#allocation132_spill] sm:$0xff] %v12729_v44  ;;  %v2457_v30 = vadd.f32 %v2422_v48, %v2332_v24  ;;  %v2670_v37 = vsel %vm2387_vm2, %v15321_v2, %v2669_v39  ;;  %v2794_v7 = vsel %vm2387_vm2, %v15320_v18, %v2793_v49  ;;  %v15323_v25 = vrot.slane %v12712_v54, 3  ;;  %v17016_v24 = vld [vmem:[#allocation53_spill] sm:$0xff]  ;;  %v17022_v2 = vld [vmem:[#allocation56_spill] sm:$0xff] }
 0x32d   : > { %v5394_v38 = vsel %vm4994_vm5, %v5392_v28, %v17015_v55  ;;  %v2917_v59 = vrot.slane %v2856_v31, 3  ;;  %v5061_v56 = vadd.f32 %v12555_v52, %v4936_v0  ;;  %v3041_v28 = vrot.slane %v2980_v57, 3  ;;  %v17018_v31 = vld [vmem:[#allocation54_spill] sm:$0xff] }
 0x32e   : > { %v2581_v1 = vadd.f32 %v2546_v34, %v2457_v30  ;;  %v3165_v48 = vrot.slane %v3104_v63, 3  ;;  %v12750_v55 = vmul.f32 %v12517_v4, %v17016_v24  ;;  %v3228_v39 = vmul.f32 %v12646_v23, %v17016_v24  ;;  %v17020_v34 = vld [vmem:[#allocation94_spill] sm:$0xff] }
 0x32f   : > { %v5185_v49 = vadd.f32 %v12585_v33, %v5061_v56  ;;  %v12757_v52 = vmul.f32 %v12534_v46, %v17018_v31  ;;  %v3353_v57 = vmul.f32 %v12674_v32, %v17018_v31  ;;  %v17021_v0 = vrot.slane %v17020_v34, 6  ;;  %v17024_v56 = vld [vmem:[#allocation96_spill] sm:$0xff] }
 0x330   : > { %17017 = vst [vmem:[#allocation141_spill] sm:$0xff] %v12750_v55  ;;  %v2705_v18 = vadd.f32 %v2670_v37, %v2581_v1  ;;  %v2918_v30 = vsel %vm2387_vm2, %v15323_v25, %v2917_v59  ;;  %v12769_v50 = vmul.f32 %v16930_v29, %v17022_v2  ;;  %v3477_v33 = vmul.f32 %v12454_v9, %v17022_v2 }
 0x331   : > { %17019 = vst [vmem:[#allocation145_spill] sm:$0xff] %v12757_v52  ;;  %v5518_v63 = vsel %vm4994_vm5, %v5516_v51, %v17021_v0  ;;  %v5309_v37 = vadd.f32 %v5270_v21, %v5185_v49  ;;  %v17025_v1 = vrot.slane %v17024_v56, 6  ;;  %v17027_v34 = vrot.slane %v17026_v53, 6 }
 0x332   : > { %17023 = vst [vmem:[#allocation147_spill] sm:$0xff] %v12769_v50  ;;  %v2829_v0 = vadd.f32 %v2794_v7, %v2705_v18  ;;  %v17028_v59 = vrot.slane %v12719_v43, 3  ;;  %v17029_v54 = vrot.slane %v12729_v44, 3  ;;  %v15327_v21 = vrot.slane %v12750_v55, 4  ;;  %v17030_v7 = vld [vmem:[#allocation61_spill] sm:$0xff] }
 0x333   : > { %v5642_v14 = vsel %vm4994_vm5, %v5640_v10, %v17025_v1  ;;  %v5766_v51 = vsel %vm4994_vm5, %v5764_v13, %v17027_v34  ;;  %v3290_v49 = vrot.slane %v3228_v39, 4  ;;  %v5433_v56 = vadd.f32 %v5394_v38, %v5309_v37  ;;  %v17033_v39 = vld [vmem:[#allocation62_spill] sm:$0xff]  ;;  %v17036_v37 = vld [vmem:[#allocation63_spill] sm:$0xff] }
 0x334   : > { %v3042_v25 = vsel %vm2387_vm2, %v17028_v59, %v3041_v28  ;;  %v3166_v2 = vsel %vm2387_vm2, %v17029_v54, %v3165_v48  ;;  %v2953_v10 = vadd.f32 %v2918_v30, %v2829_v0  ;;  %v3414_v1 = vrot.slane %v3353_v57, 4  ;;  %v12795_v48 = vld [vmem:[%s7442_s10 + $0xf8] sm:$0xff]  ;;  %v12802_v30 = vld [vmem:[%s7442_s10 + $0x100] sm:$0x3f] }
 0x335   : > { %v3538_v18 = vrot.slane %v3477_v33, 4  ;;  %v12790_v34 = vmul.f32 %v16932_v61, %v17030_v7  ;;  %v3601_v28 = vmul.f32 %v16950_v45, %v17030_v7  ;;  %v5557_v59 = vadd.f32 %v5518_v63, %v5433_v56  ;;  %17032 = vst [vmem:[#allocation37_spill] sm:$0xff] %v12795_v48  ;;  %17035 = vst [vmem:[#allocation142_spill] sm:$0xff] %v12802_v30  ;;  %v17038_v63 = vld [vmem:[#allocation66_spill] sm:$0xff] }
 0x336   : > { %v3077_v54 = vadd.f32 %v3042_v25, %v2953_v10  ;;  %v12799_v38 = vmul.f32 %v12795_v48, %v17033_v39  ;;  %v3725_v57 = vmul.f32 %v12802_v30, %v17033_v39  ;;  %v3291_v33 = vsel %vm3256_vm3, %v15327_v21, %v3290_v49 }
 0x337   : > { %17031 = vst [vmem:[#allocation140_spill] sm:$0xff] %v12790_v34  ;;  %v12811_v0 = vmul.f32 %v12613_v40, %v17036_v37  ;;  %v3849_v25 = vmul.f32 %v12620_v42, %v17036_v37  ;;  %v12817_v56 = vmul.f32 %v17038_v63, %v12427_v17  ;;  %v5681_v10 = vadd.f32 %v5642_v14, %v5557_v59 }
 0x338   : > { %17034 = vst [vmem:[#allocation138_spill] sm:$0xff] %v12799_v38  ;;  %v3201_v13 = vadd.f32 %v3166_v2, %v3077_v54  ;;  %v3973_v53 = vmul.f32 %v17038_v63, %v12491_v41  ;;  %v17040_v55 = vrot.slane %v12757_v52, 4  ;;  %v17041_v21 = vrot.slane %v12769_v50, 4  ;;  %v17042_v52 = vld [vmem:[#allocation67_spill] sm:$0xff] }
 0x339   : > { %17037 = vst [vmem:[#allocation146_spill] sm:$0xff] %v12811_v0  ;;  %17039 = vst [vmem:[#allocation31_spill] sm:$0xff] %v12817_v56  ;;  %v15335_v43 = vrot.slane %v12790_v34, 4  ;;  %v3662_v37 = vrot.slane %v3601_v28, 4  ;;  %v5805_v39 = vadd.f32 %v5766_v51, %v5681_v10  ;;  %v15341_v19 = vrot.slane %v12799_v38, 4  ;;  %v17047_v10 = vld [vmem:[#allocation70_spill] sm:$0xff] }
 0x33a   : > { %v3415_v49 = vsel %vm3256_vm3, %v17040_v55, %v3414_v1  ;;  %v3539_v44 = vsel %vm3256_vm3, %v17041_v21, %v3538_v18  ;;  %v3326_v7 = vadd.f32 %v3291_v33, %v3201_v13  ;;  %v3786_v14 = vrot.slane %v3725_v57, 4  ;;  %v12838_v21 = vld [vmem:[%s14546_s2] ss:$0 sm:$0xff]  ;;  %v17046_v57 = vld [vmem:[#allocation68_spill] sm:$0xff]  ;;  %v17048_v34 = vld [vmem:[#allocation75_spill] sm:$0xff] }
 0x33b   : > { %v15340_v2 = vrot.slane %v12811_v0, 4  ;;  %v3910_v59 = vrot.slane %v3849_v25, 4  ;;  %v12833_v55 = vmul.f32 %v12517_v4, %v17042_v52  ;;  %17044 = vst [vmem:[#allocation26_spill] sm:$0xff] %v12838_v21  ;;  %v12841_v51 = vadd.f32 %v12838_v21, %v5805_v39 }
 0x33c   : > { %v3450_v1 = vadd.f32 %v3415_v49, %v3326_v7  ;;  %v4034_v13 = vrot.slane %v3973_v53, 4  ;;  %v4097_v18 = vmul.f32 %v12646_v23, %v17042_v52  ;;  %v3663_v28 = vsel %vm3256_vm3, %v15335_v43, %v3662_v37  ;;  %v17051_v43 = vld [vmem:[#allocation76_spill] sm:$0xff] }
 0x33d   : > { %17043 = vst [vmem:[#allocation24_spill] sm:$0xff] %v12833_v55  ;;  %17045 = vst [vmem:[#allocation55_spill] sm:$0xff] %v12841_v51  ;;  %v12850_v33 = vmul.f32 %v12534_v46, %v17046_v57  ;;  %v4222_v25 = vmul.f32 %v12674_v32, %v17046_v57  ;;  %v12856_v39 = vmul.f32 %v16930_v29, %v17047_v10  ;;  %v5865_v53 = vsel %vm5834_vm6, %v12841_v51, 0.0 }
 0x33e   : > { %v3574_v7 = vadd.f32 %v3539_v44, %v3450_v1  ;;  %v3787_v49 = vsel %vm3256_vm3, %v15341_v19, %v3786_v14  ;;  %5866 = vadd.xlane.f32.xlu0 %v5865_v53  ;;  %v3911_v37 = vsel %vm3256_vm3, %v15340_v2, %v3910_v59  ;;  %v4346_v54 = vmul.f32 %v12454_v9, %v17047_v10 }
 0x33f   : > { %v12871_v50 = vmul.f32 %v16932_v61, %v17048_v34  ;;  %v17050_v44 = vrot.slane %v12817_v56, 4  ;;  %v4159_v14 = vrot.slane %v4097_v18, 5  ;;  %v4470_v53 = vmul.f32 %v16950_v45, %v17048_v34  ;;  %v17057_v56 = vld [vmem:[#allocation81_spill] sm:$0xff]  ;;  %v17060_v34 = vld [vmem:[#allocation82_spill] sm:$0xff] }
 0x340   : > { %v3698_v51 = vadd.f32 %v3663_v28, %v3574_v7  ;;  %v4283_v2 = vrot.slane %v4222_v25, 5  ;;  %v12882_v0 = vmul.f32 %v12795_v48, %v17051_v43  ;;  %v4594_v28 = vmul.f32 %v12802_v30, %v17051_v43  ;;  %v17053_v7 = vld [vmem:[#allocation77_spill] sm:$0xff] }
 0x341   : > { %17049 = vst [vmem:[#allocation32_spill] sm:$0xff] %v12871_v50  ;;  %v4035_v1 = vsel %vm3256_vm3, %v17050_v44, %v4034_v13  ;;  %v12888_v13 = vmul.f32 %v12613_v40, %v17053_v7  ;;  %v4718_v45 = vmul.f32 %v12620_v42, %v17053_v7  ;;  %v4407_v18 = vrot.slane %v4346_v54, 5  ;;  %v17055_v44 = vld [vmem:[#allocation80_spill] sm:$0xff] }
 0x342   : > { %17052 = vst [vmem:[#allocation64_spill] sm:$0xff] %v12882_v0  ;;  %v3822_v61 = vadd.f32 %v3787_v49, %v3698_v51  ;;  %v12895_v19 = vmul.f32 %v17055_v44, %v12427_v17  ;;  %v4842_v51 = vmul.f32 %v17055_v44, %v12491_v41  ;;  %v4531_v59 = vrot.slane %v4470_v53, 5 }
 0x343   : > { %17054 = vst [vmem:[#allocation36_spill] sm:$0xff] %v12888_v13  ;;  %v12901_v43 = vmul.f32 %v12517_v4, %v17057_v56  ;;  %v4966_v38 = vmul.f32 %v12646_v23, %v17057_v56  ;;  %v17059_v54 = vrot.slane %v12833_v55, 5  ;;  %v12911_v10 = vmul.f32 %v12534_v46, %v17060_v34 }
 0x344   : > { %17056 = vst [vmem:[#allocation134_spill] sm:$0xff] %v12895_v19  ;;  %v3946_v49 = vadd.f32 %v3911_v37, %v3822_v61  ;;  %v5091_v37 = vmul.f32 %v12674_v32, %v17060_v34  ;;  %v4655_v4 = vrot.slane %v4594_v28, 5  ;;  %v15356_v61 = vrot.slane %v12888_v13, 5  ;;  %v12975_v34 = vld [vmem:[%s7442_s10 + $0xe8] sm:$0x3f] }
 0x345   : > { %17058 = vst [vmem:[#allocation117_spill] sm:$0xff] %v12901_v43  ;;  %v4160_v25 = vsel %vm4125_vm4, %v17059_v54, %v4159_v14  ;;  %17061 = vst [vmem:[#allocation50_spill] sm:$0xff] %v12911_v10  ;;  %v4779_v44 = vrot.slane %v4718_v45, 5  ;;  %v17062_v23 = vrot.slane %v12850_v33, 5  ;;  %v17063_v14 = vrot.slane %v12856_v39, 5 }
 0x346   : > { %v4070_v53 = vadd.f32 %v4035_v1, %v3946_v49  ;;  %v15358_v7 = vrot.slane %v12895_v19, 5  ;;  %v4903_v46 = vrot.slane %v4842_v51, 5  ;;  %v17064_v32 = vrot.slane %v12871_v50, 5  ;;  %v17066_v51 = vld [vmem:[#allocation6_spill] sm:$0xff]  ;;  %v17075_v19 = vld [vmem:[#allocation9_spill] sm:$0xff]  ;;  %17077 = vst [vmem:[#allocation27_spill] sm:$0xff] %v12975_v34 }
 0x347   : > { %v4284_v56 = vsel %vm4125_vm4, %v17062_v23, %v4283_v2  ;;  %v4408_v54 = vsel %vm4125_vm4, %v17063_v14, %v4407_v18  ;;  %v5028_v45 = vrot.slane %v4966_v38, 6  ;;  %v5152_v49 = vrot.slane %v5091_v37, 6  ;;  %v12933_v18 = vld [vmem:[%s7442_s10 + $0x90] sm:$0xff]  ;;  %v17069_v37 = vld [vmem:[#allocation7_spill] sm:$0xff] }
 0x348   : > { %v4195_v55 = vadd.f32 %v4160_v25, %v4070_v53  ;;  %v4532_v1 = vsel %vm4125_vm4, %v17064_v32, %v4531_v59  ;;  %v12930_v23 = vmul.f32 %v16930_v29, %v16951_v5  ;;  %v361_v25 = vmul.f32 %v12933_v18, %v17066_v51  ;;  %v12944_v59 = vld [vmem:[%s7442_s10 + $0xa8] sm:$0xff] }
 0x349   : > { %v17067_v14 = vrot.slane %v12882_v0, 5  ;;  %v4780_v38 = vsel %vm4125_vm4, %v15356_v61, %v4779_v44  ;;  %17068 = vst [vmem:[#allocation44_spill] sm:$0xff] %v12944_v59  ;;  %v397_v29 = vmul.f32 %v12944_v59, %v17069_v37  ;;  %v4904_v2 = vsel %vm4125_vm4, %v15358_v7, %v4903_v46  ;;  %v17073_v44 = vld [vmem:[#allocation8_spill] sm:$0xff] }
 0x34a   : > { %17065 = vst [vmem:[#allocation57_spill] sm:$0xff] %v12930_v23  ;;  %v4319_v53 = vadd.f32 %v4284_v56, %v4195_v55  ;;  %v5215_v56 = vmul.f32 %v12454_v9, %v16951_v5  ;;  %v12954_v55 = vld [vmem:[%s7442_s10 + $0xe0] sm:$0xff]  ;;  %v17074_v13 = vrot.slane %v12901_v43, 6  ;;  %v469_v0 = vmul.f32 %v12632_v12, %v17075_v19 }
 0x34b   : > { %v4656_v32 = vsel %vm4125_vm4, %v17067_v14, %v4655_v4  ;;  %17070 = vst [vmem:[#allocation45_spill] sm:$0xff] %v12954_v55  ;;  %v12958_v4 = vmul.f32 %v12954_v55, %v16986_v8  ;;  %v12961_v14 = vld [vmem:[%s7442_s10 + $0xc0] sm:$0xff]  ;;  %v413_v7 = vadd.f32 %v397_v29, %v361_v25  ;;  %v17076_v50 = vrot.slane %v12911_v10, 6  ;;  %v17080_v25 = vld [vmem:[#allocation12_spill] sm:$0xff] }
 0x34c   : > { %17072 = vst [vmem:[#allocation124_spill] sm:$0xff] %v12961_v14  ;;  %v433_v61 = vmul.f32 %v12961_v14, %v17073_v44  ;;  %v4443_v28 = vadd.f32 %v4408_v54, %v4319_v53  ;;  %v5029_v46 = vsel %vm4994_vm5, %v17074_v13, %v5028_v45  ;;  %v5339_v54 = vmul.f32 %v12975_v34, %v16986_v8  ;;  %v17078_v53 = vld [vmem:[#allocation10_spill] sm:$0xff]  ;;  %v17082_v8 = vld [vmem:[#allocation11_spill] sm:$0xff] }
 0x34d   : > { %17071 = vst [vmem:[#allocation143_spill] sm:$0xff] %v12958_v4  ;;  %v5153_v9 = vsel %vm4994_vm5, %v17076_v50, %v5152_v49  ;;  %v619_v43 = vmul.f32 %v12933_v18, %v17078_v53  ;;  %v12983_v13 = vmul.f32 %v12795_v48, %v16990_v36  ;;  %v505_v29 = vmul.f32 %v12289_v16, %v17080_v25  ;;  %v12991_v10 = vld [vmem:[%s7442_s10 + $0x120] sm:$0xff] }
 0x34e   : > { %v4567_v55 = vadd.f32 %v4532_v1, %v4443_v28  ;;  %v449_v45 = vadd.f32 %v433_v61, %v413_v7  ;;  %v5276_v50 = vrot.slane %v5215_v56, 6  ;;  %v5463_v5 = vmul.f32 %v12802_v30, %v16990_v36  ;;  %17081 = vst [vmem:[#allocation108_spill] sm:$0xff] %v12991_v10  ;;  %v17084_v61 = vld [vmem:[#allocation14_spill] sm:$0xff]  ;;  %v17085_v36 = vld [vmem:[#allocation13_spill] sm:$0xff] }
 0x34f   : > { %17079 = vst [vmem:[#allocation119_spill] sm:$0xff] %v12983_v13  ;;  %v744_v34 = vmul.f32 %v12944_v59, %v17082_v8  ;;  %v12997_v28 = vmul.f32 %v12613_v40, %v16991_v3  ;;  %v541_v53 = vmul.f32 %v17084_v61, %v12178_v35  ;;  %v5400_v56 = vrot.slane %v5339_v54, 6 }
 0x350   : > { %v4691_v1 = vadd.f32 %v4656_v32, %v4567_v55  ;;  %v485_v7 = vadd.f32 %v469_v0, %v449_v45  ;;  %v5587_v49 = vmul.f32 %v12620_v42, %v16991_v3  ;;  %v680_v25 = vrot.slane %v619_v43, 1  ;;  %v17086_v55 = vld [vmem:[#allocation16_spill] sm:$0xff]  ;;  %v17089_v45 = vld [vmem:[#allocation18_spill] sm:$0xff]  ;;  %v17090_v42 = vld [vmem:[#allocation107_spill] sm:$0xff] }
 0x351   : > { %17083 = vst [vmem:[#allocation72_spill] sm:$0xff] %v12997_v28  ;;  %v868_v30 = vmul.f32 %v12961_v14, %v17085_v36  ;;  %v577_v40 = vmul.f32 %v17086_v55, %v12991_v10  ;;  %v5524_v19 = vrot.slane %v5463_v5, 6  ;;  %v13011_v0 = vld [vmem:[%s14545_s1 + $0x30] ss:$0 sm:$0xff]  ;;  %v804_v43 = vrot.slane %v744_v34, 1 }
 0x352   : > { %v4815_v48 = vadd.f32 %v4780_v38, %v4691_v1  ;;  %v521_v32 = vadd.f32 %v505_v29, %v485_v7  ;;  %17087 = vst [vmem:[#allocation78_spill] sm:$0xff] %v13011_v0  ;;  %v13015_v54 = vmul.f32 %v13011_v0, %v12427_v17  ;;  %v992_v38 = vmul.f32 %v12632_v12, %v17089_v45 }
 0x353   : > { %v5711_v29 = vmul.f32 %v13011_v0, %v12491_v41  ;;  %v1116_v5 = vmul.f32 %v12289_v16, %v16952_v58  ;;  %v5648_v3 = vrot.slane %v5587_v49, 6  ;;  %v17091_v55 = vrot.slane %v17090_v42, 1  ;;  %v17094_v41 = vld [vmem:[#allocation121_spill] sm:$0xff] }
 0x354   : > { %17088 = vst [vmem:[#allocation59_spill] sm:$0xff] %v13015_v54  ;;  %v4939_v1 = vadd.f32 %v4904_v2, %v4815_v48  ;;  %v557_v7 = vadd.f32 %v541_v53, %v521_v32  ;;  %v928_v61 = vrot.slane %v868_v30, 1  ;;  %v17092_v17 = vrot.slane %v12930_v23, 6  ;;  %v17111_v23 = vld [vmem:[#allocation40_spill] sm:$0xff] }
 0x355   : > { %v682_v36 = vsel %vm649_vm0, %v680_v25, %v17091_v55  ;;  %v17093_v2 = vrot.slane %v12958_v4, 6  ;;  %v15391_v0 = vrot.slane %v13015_v54, 6  ;;  %v17095_v8 = vrot.slane %v17094_v41, 1 }
 0x356   : > { %v5064_v34 = vadd.f32 %v5029_v46, %v4939_v1  ;;  %v5277_v48 = vsel %vm4994_vm5, %v17092_v17, %v5276_v50  ;;  %v593_v32 = vadd.f32 %v577_v40, %v557_v7  ;;  %v1052_v42 = vrot.slane %v992_v38, 1  ;;  %v17098_v7 = vld [vmem:[#allocation109_spill] sm:$0xff] }
 0x357   : > { %v5401_v53 = vsel %vm4994_vm5, %v17093_v2, %v5400_v56  ;;  %v806_v49 = vsel %vm649_vm0, %v804_v43, %v17095_v8  ;;  %v1240_v30 = vmul.f32 %v16962_v27, %v12178_v35  ;;  %v5772_v25 = vrot.slane %v5711_v29, 6  ;;  %v17100_v29 = vld [vmem:[#allocation25_spill] sm:$0xff] }
 0x358   : > { %v5188_v46 = vadd.f32 %v5153_v9, %v5064_v34  ;;  %v718_v55 = vadd.f32 %v682_v36, %v593_v32  ;;  %v1176_v1 = vrot.slane %v1116_v5, 1  ;;  %v17096_v17 = vrot.slane %v12983_v13, 6 }
 0x359   : > { %v17097_v40 = vrot.slane %v12997_v28, 6  ;;  %v17099_v41 = vrot.slane %v17098_v7, 1  ;;  %v1364_v43 = vmul.f32 %v16855_v20, %v12991_v10  ;;  %v1488_v36 = vmul.f32 %v12933_v18, %v17100_v29 }
 0x35a   : > { %v5525_v50 = vsel %vm4994_vm5, %v17096_v17, %v5524_v19  ;;  %v5312_v38 = vadd.f32 %v5277_v48, %v5188_v46  ;;  %v842_v9 = vadd.f32 %v806_v49, %v718_v55  ;;  %v1613_v5 = vmul.f32 %v12944_v59, %v16857_v62  ;;  %v17101_v19 = vld [vmem:[#allocation105_spill] sm:$0xff]  ;;  %v17103_v46 = vld [vmem:[#allocation116_spill] sm:$0xff] }
 0x35b   : > { %v5649_v56 = vsel %vm4994_vm5, %v17097_v40, %v5648_v3  ;;  %v930_v8 = vsel %vm649_vm0, %v928_v61, %v17099_v41  ;;  %v17102_v34 = vrot.slane %v17101_v19, 1  ;;  %v1300_v3 = vrot.slane %v1240_v30, 1  ;;  %v17105_v41 = vld [vmem:[#allocation34_spill] sm:$0xff]  ;;  %v17106_v30 = vld [vmem:[#allocation35_spill] sm:$0xff] }
 0x35c   : > { %v1737_v32 = vmul.f32 %v12961_v14, %v16608_v47  ;;  %v1861_v61 = vmul.f32 %v12632_v12, %v16735_v15  ;;  %v5436_v17 = vadd.f32 %v5401_v53, %v5312_v38  ;;  %v5773_v48 = vsel %vm4994_vm5, %v15391_v0, %v5772_v25  ;;  %v17108_v25 = vld [vmem:[#allocation120_spill] sm:$0xff] }
 0x35d   : > { %v1054_v2 = vsel %vm649_vm0, %v1052_v42, %v17102_v34  ;;  %v966_v49 = vadd.f32 %v930_v8, %v842_v9  ;;  %v17104_v55 = vrot.slane %v17103_v46, 1  ;;  %v1424_v7 = vrot.slane %v1364_v43, 1  ;;  %v17107_v34 = vld [vmem:[#allocation38_spill] sm:$0xff]  ;;  %v17110_v43 = vld [vmem:[#allocation39_spill] sm:$0xff] }
 0x35e   : > { %v1985_v42 = vmul.f32 %v12289_v16, %v17105_v41  ;;  %v2109_v19 = vmul.f32 %v17106_v30, %v12178_v35  ;;  %v2233_v28 = vmul.f32 %v17107_v34, %v12991_v10  ;;  %v5560_v53 = vadd.f32 %v5525_v50, %v5436_v17  ;;  %v17112_v30 = vld [vmem:[#allocation42_spill] sm:$0xff] }
 0x35f   : > { %v1178_v40 = vsel %vm649_vm0, %v1176_v1, %v17104_v55  ;;  %v1090_v38 = vadd.f32 %v1054_v2, %v966_v49  ;;  %v1549_v54 = vrot.slane %v1488_v36, 2  ;;  %v1673_v13 = vrot.slane %v1613_v5, 2  ;;  %v17113_v2 = vld [vmem:[#allocation122_spill] sm:$0xff] }
 0x360   : > { %v17109_v8 = vrot.slane %v17108_v25, 1  ;;  %v1797_v46 = vrot.slane %v1737_v32, 2  ;;  %v1921_v1 = vrot.slane %v1861_v61, 2  ;;  %v2357_v55 = vmul.f32 %v12933_v18, %v17110_v43  ;;  %v17115_v25 = vld [vmem:[#allocation123_spill] sm:$0xff]  ;;  %v17121_v43 = vld [vmem:[#allocation41_spill] sm:$0xff] }
 0x361   : > { %v5684_v0 = vadd.f32 %v5649_v56, %v5560_v53  ;;  %v1214_v4 = vadd.f32 %v1178_v40, %v1090_v38  ;;  %v2482_v35 = vmul.f32 %v12944_v59, %v17111_v23  ;;  %v2606_v50 = vmul.f32 %v12961_v14, %v17112_v30  ;;  %v17117_v40 = vld [vmem:[#allocation127_spill] sm:$0xff]  ;;  %v17119_v23 = vld [vmem:[#allocation129_spill] sm:$0xff] }
 0x362   : > { %v1302_v9 = vsel %vm649_vm0, %v1300_v3, %v17109_v8  ;;  %v17114_v36 = vrot.slane %v17113_v2, 1  ;;  %v2045_v17 = vrot.slane %v1985_v42, 2  ;;  %v2169_v49 = vrot.slane %v2109_v19, 2 }
 0x363   : > { %v2293_v3 = vrot.slane %v2233_v28, 2  ;;  %v5808_v32 = vadd.f32 %v5773_v48, %v5684_v0  ;;  %v1338_v61 = vadd.f32 %v1302_v9, %v1214_v4  ;;  %v17116_v8 = vrot.slane %v17115_v25, 2  ;;  %v17123_v0 = vld [vmem:[#allocation47_spill] sm:$0xff]  ;;  %v17127_v25 = vld [vmem:[#allocation128_spill] sm:$0xff] }
 0x364   : > { %v1426_v5 = vsel %vm649_vm0, %v1424_v7, %v17114_v36  ;;  %v17118_v53 = vrot.slane %v17117_v40, 2  ;;  %v17120_v30 = vrot.slane %v17119_v23, 2  ;;  %v17122_v7 = vrot.slane %v17121_v43, 2  ;;  %v17125_v36 = vld [vmem:[#allocation131_spill] sm:$0xff]  ;;  %v17132_v40 = vld [vmem:[#allocation112_spill] sm:$0xff] }
 0x365   : > { %v1551_v56 = vsel %vm1518_vm1, %v1549_v54, %v17116_v8  ;;  %v2418_v28 = vrot.slane %v2357_v55, 3  ;;  %v2730_v4 = vmul.f32 %v12632_v12, %v17123_v0  ;;  %v13100_v48 = vadd.f32 %v12838_v21, %v5808_v32  ;;  %v17140_v21 = vld [vmem:[#allocation136_spill] sm:$0xff] }
 0x366   : > { %v1675_v38 = vsel %vm1518_vm1, %v1673_v13, %v17118_v53  ;;  %v1799_v2 = vsel %vm1518_vm1, %v1797_v46, %v17120_v30  ;;  %v1923_v42 = vsel %vm1518_vm1, %v1921_v1, %v17122_v7  ;;  %v1462_v54 = vadd.f32 %v1426_v5, %v1338_v61 }
 0x367   : > { %17124 = vst [vmem:[#allocation88_spill] sm:$0xff] %v13100_v48  ;;  %v2542_v19 = vrot.slane %v2482_v35, 3  ;;  %v2666_v9 = vrot.slane %v2606_v50, 3  ;;  %v17126_v13 = vrot.slane %v17125_v36, 2  ;;  %v17128_v30 = vrot.slane %v17127_v25, 2  ;;  %v13116_v50 = vld [vmem:[%s7442_s10 + $0x108] sm:$0xff] }
 0x368   : > { %v17129_v1 = vrot.slane %v12627_v22, 2  ;;  %v2854_v55 = vmul.f32 %v12289_v16, %v17008_v11  ;;  %v5874_v5 = vsel %vm5834_vm6, %v13100_v48, 0.0  ;;  %v1587_v35 = vadd.f32 %v1551_v56, %v1462_v54  ;;  %17130 = vst [vmem:[#allocation65_spill] sm:$0xff] %v13116_v50  ;;  %v17134_v54 = vld [vmem:[#allocation135_spill] sm:$0xff]  ;;  %v17137_v25 = vld [vmem:[#allocation61_spill] sm:$0xff] }
 0x369   : > { %v2047_v23 = vsel %vm1518_vm1, %v2045_v17, %v17126_v13  ;;  %v2171_v46 = vsel %vm1518_vm1, %v2169_v49, %v17128_v30  ;;  %v2978_v17 = vmul.f32 %v13116_v50, %v17010_v60  ;;  %v3102_v32 = vmul.f32 %v17012_v26, %v12991_v10  ;;  %5875 = vadd.xlane.f32.xlu1 %v5874_v5 }
 0x36a   : > { %v2295_v43 = vsel %vm1518_vm1, %v2293_v3, %v17129_v1  ;;  %v17131_v22 = vrot.slane %v12643_v6, 3  ;;  %v2790_v3 = vrot.slane %v2730_v4, 3  ;;  %v3226_v61 = vmul.f32 %v12933_v18, %v17016_v24  ;;  %v17136_v6 = vld [vmem:[#allocation56_spill] sm:$0xff]  ;;  %v17138_v1 = vld [vmem:[#allocation62_spill] sm:$0xff] }
 0x36b   : > { %v3351_v8 = vmul.f32 %v12944_v59, %v17018_v31  ;;  %v1711_v56 = vadd.f32 %v1675_v38, %v1587_v35  ;;  %v17133_v53 = vrot.slane %v17132_v40, 3  ;;  %v17135_v36 = vrot.slane %v17134_v54, 3  ;;  %v17139_v38 = vld [vmem:[#allocation63_spill] sm:$0xff]  ;;  %v17145_v31 = vld [vmem:[#allocation137_spill] sm:$0xff] }
 0x36c   : > { %v2420_v49 = vsel %vm2387_vm2, %v2418_v28, %v17131_v22  ;;  %v3475_v28 = vmul.f32 %v12961_v14, %v17136_v6  ;;  %v2914_v4 = vrot.slane %v2854_v55, 3  ;;  %v3599_v30 = vmul.f32 %v12632_v12, %v17137_v25 }
 0x36d   : > { %v2544_v7 = vsel %vm2387_vm2, %v2542_v19, %v17133_v53  ;;  %v13135_v13 = vsel %vm2387_vm2, %v2666_v9, %v17135_v36  ;;  %v3723_v5 = vmul.f32 %v12289_v16, %v17138_v1  ;;  %v3847_v35 = vmul.f32 %v13116_v50, %v17139_v38 }
 0x36e   : > { %v1835_v22 = vadd.f32 %v1799_v2, %v1711_v56  ;;  %v3038_v19 = vrot.slane %v2978_v17, 3  ;;  %v3162_v40 = vrot.slane %v3102_v32, 3  ;;  %v3971_v9 = vmul.f32 %v17038_v63, %v12991_v10  ;;  %v17142_v2 = vld [vmem:[#allocation70_spill] sm:$0xff] }
 0x36f   : > { %v3287_v53 = vrot.slane %v3226_v61, 4  ;;  %v3411_v54 = vrot.slane %v3351_v8, 4  ;;  %v4095_v55 = vmul.f32 %v12933_v18, %v17042_v52  ;;  %v4220_v36 = vmul.f32 %v12944_v59, %v17046_v57  ;;  %v17143_v32 = vld [vmem:[#allocation130_spill] sm:$0xff] }
 0x370   : > { %v1959_v48 = vadd.f32 %v1923_v42, %v1835_v22  ;;  %v17141_v1 = vrot.slane %v17140_v21, 3  ;;  %v3535_v38 = vrot.slane %v3475_v28, 4  ;;  %v4344_v17 = vmul.f32 %v12961_v14, %v17142_v2  ;;  %v17147_v21 = vld [vmem:[#allocation132_spill] sm:$0xff] }
 0x371   : > { %v17144_v56 = vrot.slane %v17143_v32, 3  ;;  %v3659_v8 = vrot.slane %v3599_v30, 4  ;;  %v3783_v63 = vrot.slane %v3723_v5, 4  ;;  %v3907_v6 = vrot.slane %v3847_v35, 4  ;;  %v17153_v5 = vld [vmem:[#allocation147_spill] sm:$0xff] }
 0x372   : > { %v2792_v25 = vsel %vm2387_vm2, %v2790_v3, %v17141_v1  ;;  %v2083_v52 = vadd.f32 %v2047_v23, %v1959_v48  ;;  %v17146_v24 = vrot.slane %v17145_v31, 3  ;;  %v17148_v22 = vrot.slane %v17147_v21, 3  ;;  %v17149_v1 = vld [vmem:[#allocation141_spill] sm:$0xff] }
 0x373   : > { %v2916_v61 = vsel %vm2387_vm2, %v2914_v4, %v17144_v56  ;;  %v4031_v28 = vrot.slane %v3971_v9, 4  ;;  %v17150_v2 = vrot.slane %v17149_v1, 4  ;;  %v17151_v4 = vld [vmem:[#allocation145_spill] sm:$0xff]  ;;  %v4156_v31 = vrot.slane %v4095_v55, 5  ;;  %v17155_v9 = vld [vmem:[#allocation75_spill] sm:$0xff] }
 0x374   : > { %v13162_v42 = vsel %vm2387_vm2, %v3038_v19, %v17146_v24  ;;  %v13167_v3 = vsel %vm2387_vm2, %v3162_v40, %v17148_v22  ;;  %v17152_v30 = vrot.slane %v17151_v4, 4  ;;  %v4280_v23 = vrot.slane %v4220_v36, 5  ;;  %v17163_v4 = vld [vmem:[#allocation31_spill] sm:$0xff] }
 0x375   : > { %v13172_v32 = vsel %vm3256_vm3, %v3287_v53, %v17150_v2  ;;  %v2207_v24 = vadd.f32 %v2171_v46, %v2083_v52  ;;  %v17154_v35 = vrot.slane %v17153_v5, 4  ;;  %v4404_v40 = vrot.slane %v4344_v17, 5  ;;  %v17156_v53 = vld [vmem:[#allocation140_spill] sm:$0xff]  ;;  %v17160_v52 = vld [vmem:[#allocation146_spill] sm:$0xff] }
 0x376   : > { %v13177_v48 = vsel %vm3256_vm3, %v3411_v54, %v17152_v30  ;;  %v4468_v56 = vmul.f32 %v12632_v12, %v17155_v9  ;;  %v17157_v2 = vrot.slane %v17156_v53, 4  ;;  %v17158_v54 = vld [vmem:[#allocation138_spill] sm:$0xff]  ;;  %v17161_v46 = vrot.slane %v17160_v52, 4  ;;  %v17188_v9 = vld [vmem:[#allocation13_spill] sm:$0xff] }
 0x377   : > { %v13182_v19 = vsel %vm3256_vm3, %v3535_v38, %v17154_v35  ;;  %v17159_v22 = vrot.slane %v17158_v54, 4  ;;  %v17162_v38 = vld [vmem:[#allocation76_spill] sm:$0xff]  ;;  %v2331_v1 = vadd.f32 %v2295_v43, %v2207_v24  ;;  %v17164_v30 = vrot.slane %v17163_v4, 4 }
 0x378   : > { %v13189_v21 = vsel %vm3256_vm3, %v3659_v8, %v17157_v2  ;;  %v13199_v36 = vsel %vm3256_vm3, %v3907_v6, %v17161_v46  ;;  %v4592_v17 = vmul.f32 %v12289_v16, %v17162_v38  ;;  %v17165_v8 = vld [vmem:[#allocation77_spill] sm:$0xff]  ;;  %v17167_v2 = vld [vmem:[#allocation24_spill] sm:$0xff]  ;;  %v17169_v16 = vrot.slane %v12850_v33, 5 }
 0x379   : > { %v13194_v55 = vsel %vm3256_vm3, %v3783_v63, %v17159_v22  ;;  %v13206_v5 = vsel %vm3256_vm3, %v4031_v28, %v17164_v30  ;;  %v13210_v35 = vmul.f32 %v13116_v50, %v17165_v8  ;;  %v17166_v63 = vld [vmem:[#allocation80_spill] sm:$0xff]  ;;  %v17168_v6 = vrot.slane %v17167_v2, 5  ;;  %v17170_v28 = vld [vmem:[#allocation125_spill] sm:$0xff]  ;;  %v13229_v22 = vld [vmem:[%s7442_s10 + $0xc8] sm:$0xff] }
 0x37a   : > { %v13214_v53 = vmul.f32 %v17166_v63, %v12991_v10  ;;  %v13224_v43 = vsel %vm4125_vm4, %v4280_v23, %v17169_v16  ;;  %v364_v24 = vmul.f32 %v17170_v28, %v17066_v51  ;;  %v400_v52 = vmul.f32 %v13229_v22, %v17069_v37  ;;  %v17173_v33 = vld [vmem:[#allocation45_spill] sm:$0xff]  ;;  %v17191_v10 = vld [vmem:[#allocation32_spill] sm:$0xff] }
 0x37b   : > { %v13219_v54 = vsel %vm4125_vm4, %v4156_v31, %v17168_v6  ;;  %v2456_v46 = vadd.f32 %v2420_v49, %v2331_v1  ;;  %v17171_v4 = vrot.slane %v12856_v39, 5  ;;  %v4528_v30 = vrot.slane %v4468_v56, 5  ;;  %v17174_v6 = vld [vmem:[#allocation81_spill] sm:$0xff]  ;;  %v17178_v1 = vld [vmem:[#allocation84_spill] sm:$0xff] }
 0x37c   : > { %v436_v23 = vmul.f32 %v17173_v33, %v17073_v44  ;;  %v4652_v2 = vrot.slane %v4592_v17, 5  ;;  %v13242_v16 = vmul.f32 %v12933_v18, %v17174_v6  ;;  %v416_v51 = vadd.f32 %v400_v52, %v364_v24  ;;  %v17175_v63 = vld [vmem:[#allocation9_spill] sm:$0xff]  ;;  %v17179_v24 = vld [vmem:[#allocation12_spill] sm:$0xff]  ;;  %v17187_v6 = vld [vmem:[#allocation14_spill] sm:$0xff] }
 0x37d   : > { %v13236_v31 = vsel %vm4125_vm4, %v4404_v40, %v17171_v4  ;;  %v17176_v8 = vld [vmem:[#allocation37_spill] sm:$0xff]  ;;  %v2580_v37 = vadd.f32 %v2544_v7, %v2456_v46  ;;  %v4776_v49 = vrot.slane %v13210_v35, 5  ;;  %v4900_v39 = vrot.slane %v13214_v53, 5  ;;  %v17177_v40 = vld [vmem:[#allocation82_spill] sm:$0xff]  ;;  %v17180_v52 = vld [vmem:[#allocation100_spill] sm:$0xff] }
 0x37e   : > { %17172 = vst [vmem:[#allocation95_spill] sm:$0xff] %v13236_v31  ;;  %v472_v38 = vmul.f32 %v17176_v8, %v17175_v63  ;;  %v13250_v56 = vmul.f32 %v12944_v59, %v17177_v40  ;;  %v13254_v17 = vmul.f32 %v12961_v14, %v17178_v1  ;;  %v13257_v4 = vld [vmem:[%s7442_s10 + $0x140] sm:$0xff]  ;;  %v452_v18 = vadd.f32 %v436_v23, %v416_v51  ;;  %v17183_v53 = vld [vmem:[#allocation69_spill] sm:$0xff]  ;;  %v17184_v59 = vld [vmem:[#allocation11_spill] sm:$0xff] }
 0x37f   : > { %v508_v44 = vmul.f32 %v17180_v52, %v17179_v24  ;;  %v17181_v63 = vld [vmem:[#allocation10_spill] sm:$0xff]  ;;  %v2704_v35 = vadd.f32 %v13135_v13, %v2580_v37  ;;  %v13270_v40 = vmul.f32 %v13229_v22, %v17184_v59  ;;  %v17185_v1 = vld [vmem:[#allocation104_spill] sm:$0xff]  ;;  %v17186_v23 = vld [vmem:[#allocation115_spill] sm:$0xff]  ;;  %v13278_v57 = vmul.f32 %v17173_v33, %v17188_v9 }
 0x380   : > { %v13263_v7 = vmul.f32 %v17170_v28, %v17181_v63  ;;  %v624_v46 = vmul.f32 %v17183_v53, %v17181_v63  ;;  %v749_v14 = vmul.f32 %v17185_v1, %v17184_v59  ;;  %v488_v51 = vadd.f32 %v472_v38, %v452_v18  ;;  %v17189_v37 = vld [vmem:[#allocation27_spill] sm:$0xff]  ;;  %v17190_v63 = vld [vmem:[#allocation16_spill] sm:$0xff] }
 0x381   : > { %v544_v24 = vmul.f32 %v17187_v6, %v17186_v23  ;;  %v873_v13 = vmul.f32 %v17189_v37, %v17188_v9  ;;  %v2828_v26 = vadd.f32 %v2792_v25, %v2704_v35  ;;  %v580_v60 = vmul.f32 %v17190_v63, %v13257_v4  ;;  %v17193_v35 = vld [vmem:[#allocation64_spill] sm:$0xff] }
 0x382   : > { %17182 = vst [vmem:[#allocation21_spill] sm:$0xff] %v13263_v7  ;;  %v688_v0 = vrot.slane %v624_v46, 1  ;;  %v524_v59 = vadd.f32 %v508_v44, %v488_v51  ;;  %v812_v18 = vrot.slane %v749_v14, 1  ;;  %v13288_v6 = vmul.f32 %v17176_v8, %v17089_v45  ;;  %v17195_v44 = vld [vmem:[#allocation142_spill] sm:$0xff] }
 0x383   : > { %v2952_v31 = vadd.f32 %v2916_v61, %v2828_v26  ;;  %v17192_v50 = vrot.slane %v17191_v10, 5  ;;  %v17194_v63 = vrot.slane %v17193_v35, 5  ;;  %v997_v46 = vmul.f32 %v17195_v44, %v17089_v45  ;;  %v13306_v10 = vld [vmem:[%s7442_s10 + $0x148] sm:$0x3f] }
 0x384   : > { %v5025_v14 = vrot.slane %v13242_v16, 6  ;;  %v560_v51 = vadd.f32 %v544_v24, %v524_v59  ;;  %v936_v11 = vrot.slane %v873_v13, 1  ;;  %v5149_v59 = vrot.slane %v13250_v56, 6 }
 0x385   : > { %v13293_v25 = vsel %vm4125_vm4, %v4528_v30, %v17192_v50  ;;  %v13298_v9 = vsel %vm4125_vm4, %v4652_v2, %v17194_v63  ;;  %v3076_v26 = vadd.f32 %v13162_v42, %v2952_v31  ;;  %v17196_v50 = vrot.slane %v13263_v7, 1  ;;  %v17197_v30 = vld [vmem:[#allocation133_spill] sm:$0xff] }
 0x386   : > { %v13313_v63 = vmul.f32 %v17180_v52, %v16952_v58  ;;  %v1121_v2 = vmul.f32 %v17197_v30, %v16952_v58  ;;  %v596_v16 = vadd.f32 %v580_v60, %v560_v51  ;;  %v17198_v24 = vrot.slane %v13270_v40, 1  ;;  %v17200_v58 = vld [vmem:[#allocation36_spill] sm:$0xff] }
 0x387   : > { %v689_v61 = vsel %vm649_vm0, %v17196_v50, %v688_v0  ;;  %v15425_v31 = vrot.slane %v13288_v6, 1  ;;  %v3200_v13 = vadd.f32 %v13167_v3, %v3076_v26  ;;  %v1060_v35 = vrot.slane %v997_v46, 1  ;;  %v17199_v50 = vld [vmem:[#allocation118_spill] sm:$0xff] }
 0x388   : > { %v813_v42 = vsel %vm649_vm0, %v17198_v24, %v812_v18  ;;  %v13325_v0 = vmul.f32 %v16962_v27, %v17186_v23  ;;  %v1245_v38 = vmul.f32 %v16962_v27, %v17199_v50  ;;  %v17201_v7 = vrot.slane %v17200_v58, 5  ;;  %v17204_v24 = vld [vmem:[#allocation134_spill] sm:$0xff] }
 0x389   : > { %v721_v56 = vadd.f32 %v689_v61, %v596_v16  ;;  %v13336_v18 = vmul.f32 %v16855_v20, %v13257_v4  ;;  %v1369_v3 = vmul.f32 %v16855_v20, %v13306_v10  ;;  %v3325_v46 = vadd.f32 %v13172_v32, %v3200_v13 }
 0x38a   : > { %v13332_v60 = vsel %vm4125_vm4, %v4776_v49, %v17201_v7  ;;  %v17203_v23 = vrot.slane %v13278_v57, 1  ;;  %v15421_v26 = vrot.slane %v13313_v63, 1  ;;  %v1184_v58 = vrot.slane %v1121_v2, 1 }
 0x38b   : > { %17202 = vst [vmem:[#allocation139_spill] sm:$0xff] %v13336_v18  ;;  %v17205_v49 = vrot.slane %v17204_v24, 5  ;;  %v845_v61 = vadd.f32 %v813_v42, %v721_v56  ;;  %v13352_v16 = vmul.f32 %v17170_v28, %v17100_v29  ;;  %v1493_v32 = vmul.f32 %v17183_v53, %v17100_v29 }
 0x38c   : > { %v937_v51 = vsel %vm649_vm0, %v17203_v23, %v936_v11  ;;  %v3449_v13 = vadd.f32 %v13177_v48, %v3325_v46  ;;  %v1061_v11 = vsel %vm649_vm0, %v15425_v31, %v1060_v35  ;;  %v15424_v2 = vrot.slane %v13325_v0, 1 }
 0x38d   : > { %v13348_v7 = vsel %vm4125_vm4, %v4900_v39, %v17205_v49  ;;  %17206 = vst [vmem:[#allocation51_spill] sm:$0xff] %v13352_v16  ;;  %v1308_v50 = vrot.slane %v1245_v38, 1  ;;  %v969_v23 = vadd.f32 %v937_v51, %v845_v61  ;;  %v15422_v39 = vrot.slane %v13336_v18, 1 }
 0x38e   : > { %v1432_v42 = vrot.slane %v1369_v3, 1  ;;  %v13364_v56 = vmul.f32 %v13229_v22, %v16857_v62  ;;  %v3573_v24 = vadd.f32 %v13182_v19, %v3449_v13  ;;  %v5273_v49 = vrot.slane %v13254_v17, 6  ;;  %v17209_v19 = vld [vmem:[#allocation117_spill] sm:$0xff] }
 0x38f   : > { %v1185_v48 = vsel %vm649_vm0, %v15421_v26, %v1184_v58  ;;  %v1618_v35 = vmul.f32 %v17185_v1, %v16857_v62  ;;  %v1093_v38 = vadd.f32 %v1061_v11, %v969_v23  ;;  %v15423_v46 = vrot.slane %v13352_v16, 2  ;;  %v17211_v11 = vld [vmem:[#allocation50_spill] sm:$0xff] }
 0x390   : > { %17207 = vst [vmem:[#allocation101_spill] sm:$0xff] %v13364_v56  ;;  %v1557_v51 = vrot.slane %v1493_v32, 2  ;;  %v13376_v3 = vmul.f32 %v17173_v33, %v16608_v47  ;;  %v3697_v61 = vadd.f32 %v13189_v21, %v3573_v24  ;;  %v17210_v13 = vrot.slane %v17209_v19, 6 }
 0x391   : > { %v1309_v58 = vsel %vm649_vm0, %v15424_v2, %v1308_v50  ;;  %v1742_v1 = vmul.f32 %v17189_v37, %v16608_v47  ;;  %v17212_v32 = vrot.slane %v17211_v11, 6  ;;  %v1217_v26 = vadd.f32 %v1185_v48, %v1093_v38 }
 0x392   : > { %17208 = vst [vmem:[#allocation102_spill] sm:$0xff] %v13376_v3  ;;  %v13382_v17 = vsel %vm4994_vm5, %v5025_v14, %v17210_v13  ;;  %v1433_v21 = vsel %vm649_vm0, %v15422_v39, %v1432_v42  ;;  %v15430_v14 = vrot.slane %v13364_v56, 2  ;;  %v3821_v24 = vadd.f32 %v13194_v55, %v3697_v61  ;;  %v17214_v13 = vld [vmem:[#allocation89_spill] sm:$0xff]  ;;  %v13421_v39 = vld [vmem:[%s7442_s10 + $0xf0] sm:$0xff] }
 0x393   : > { %v13392_v23 = vsel %vm4994_vm5, %v5149_v59, %v17212_v32  ;;  %v1681_v50 = vrot.slane %v1618_v35, 2  ;;  %v13401_v19 = vmul.f32 %v17176_v8, %v16735_v15  ;;  %v1866_v59 = vmul.f32 %v17195_v44, %v16735_v15 }
 0x394   : > { %v13407_v48 = vmul.f32 %v12632_v12, %v17214_v13  ;;  %v1341_v38 = vadd.f32 %v1309_v58, %v1217_v26  ;;  %v1558_v42 = vsel %vm1518_vm1, %v15423_v46, %v1557_v51  ;;  %v3945_v35 = vadd.f32 %v13199_v36, %v3821_v24  ;;  %v17216_v12 = vld [vmem:[#allocation90_spill] sm:$0xff]  ;;  %v13428_v51 = vld [vmem:[%s7442_s10 + $0x128] sm:$0xff] }
 0x395   : > { %17213 = vst [vmem:[#allocation97_spill] sm:$0xff] %v13401_v19  ;;  %v1805_v61 = vrot.slane %v1742_v1, 2  ;;  %v13416_v11 = vmul.f32 %v17180_v52, %v17105_v41  ;;  %v1990_v32 = vmul.f32 %v17197_v30, %v17105_v41  ;;  %v13425_v26 = vmul.f32 %v13421_v39, %v17216_v12  ;;  %v17217_v46 = vld [vmem:[#allocation35_spill] sm:$0xff]  ;;  %v13435_v1 = vld [vmem:[%s7442_s10 + $0x130] sm:$0x3f] }
 0x396   : > { %v1465_v58 = vadd.f32 %v1433_v21, %v1341_v38  ;;  %v13432_v36 = vmul.f32 %v13428_v51, %v17217_v46  ;;  %v2114_v24 = vmul.f32 %v13435_v1, %v17217_v46  ;;  %v4069_v2 = vadd.f32 %v13206_v5, %v3945_v35  ;;  %v17219_v38 = vld [vmem:[#allocation57_spill] sm:$0xff]  ;;  %v17224_v46 = vld [vmem:[#allocation91_spill] sm:$0xff] }
 0x397   : > { %17215 = vst [vmem:[#allocation85_spill] sm:$0xff] %v13416_v11  ;;  %v1682_v31 = vsel %vm1518_vm1, %v15430_v14, %v1681_v50  ;;  %v1929_v21 = vrot.slane %v1866_v59, 2  ;;  %v17220_v41 = vrot.slane %v17219_v38, 6  ;;  %v13451_v18 = vmul.f32 %v17107_v34, %v13257_v4 }
 0x398   : > { %17218 = vst [vmem:[#allocation43_spill] sm:$0xff] %v13432_v36  ;;  %v1590_v15 = vadd.f32 %v1558_v42, %v1465_v58  ;;  %v2238_v5 = vmul.f32 %v17107_v34, %v13306_v10  ;;  %v4194_v35 = vadd.f32 %v13219_v54, %v4069_v2  ;;  %v17222_v50 = vrot.slane %v13376_v3, 2  ;;  %v17223_v58 = vld [vmem:[#allocation39_spill] sm:$0xff]  ;;  %v17225_v54 = vld [vmem:[#allocation65_spill] sm:$0xff] }
 0x399   : > { %v13447_v16 = vsel %vm4994_vm5, %v5273_v49, %v17220_v41  ;;  %17221 = vst [vmem:[#allocation144_spill] sm:$0xff] %v13451_v18  ;;  %v2053_v38 = vrot.slane %v1990_v32, 2  ;;  %v2177_v42 = vrot.slane %v2114_v24, 2  ;;  %v13463_v55 = vmul.f32 %v17170_v28, %v17223_v58  ;;  %v17228_v32 = vld [vmem:[#allocation78_spill] sm:$0xff] }
 0x39a   : > { %v1806_v14 = vsel %vm1518_vm1, %v17222_v50, %v1805_v61  ;;  %v1714_v41 = vadd.f32 %v1682_v31, %v1590_v15  ;;  %v4318_v34 = vadd.f32 %v13224_v43, %v4194_v35  ;;  %v13468_v2 = vmul.f32 %v17225_v54, %v17224_v46  ;;  %v17227_v31 = vld [vmem:[#allocation108_spill] sm:$0xff]  ;;  %v17229_v43 = vld [vmem:[#allocation95_spill] sm:$0xff]  ;;  %v17233_v28 = vld [vmem:[#allocation42_spill] sm:$0xff] }
 0x39b   : > { %v17226_v61 = vrot.slane %v13401_v19, 2  ;;  %v2362_v15 = vmul.f32 %v17183_v53, %v17223_v58  ;;  %v13477_v24 = vmul.f32 %v17228_v32, %v17227_v31  ;;  %v2301_v59 = vrot.slane %v2238_v5, 2  ;;  %v17231_v19 = vld [vmem:[#allocation40_spill] sm:$0xff] }
 0x39c   : > { %v1838_v49 = vadd.f32 %v1806_v14, %v1714_v41  ;;  %v4442_v35 = vadd.f32 %v17229_v43, %v4318_v34  ;;  %v17230_v3 = vrot.slane %v13416_v11, 2  ;;  %v5397_v14 = vrot.slane %v13407_v48, 6  ;;  %v17236_v43 = vld [vmem:[#allocation48_spill] sm:$0xff] }
 0x39d   : > { %v1930_v50 = vsel %vm1518_vm1, %v17226_v61, %v1929_v21  ;;  %v13486_v21 = vmul.f32 %v13229_v22, %v17231_v19  ;;  %v13489_v61 = vld [vmem:[%s7442_s10 + $0xd0] sm:$0x3f]  ;;  %v17232_v5 = vrot.slane %v13432_v36, 2  ;;  %v13501_v11 = vmul.f32 %v17173_v33, %v17233_v28 }
 0x39e   : > { %v2054_v56 = vsel %vm1518_vm1, %v17230_v3, %v2053_v38  ;;  %v2487_v58 = vmul.f32 %v13489_v61, %v17231_v19  ;;  %v1962_v41 = vadd.f32 %v1930_v50, %v1838_v49  ;;  %v4566_v3 = vadd.f32 %v13293_v25, %v4442_v35  ;;  %v17235_v50 = vld [vmem:[#allocation47_spill] sm:$0xff] }
 0x39f   : > { %v2178_v34 = vsel %vm1518_vm1, %v17232_v5, %v2177_v42  ;;  %v2426_v38 = vrot.slane %v2362_v15, 3  ;;  %v2611_v47 = vmul.f32 %v17189_v37, %v17233_v28  ;;  %v17234_v48 = vrot.slane %v13451_v18, 2 }
 0x3a0   : > { %v2086_v19 = vadd.f32 %v2054_v56, %v1962_v41  ;;  %v13510_v42 = vmul.f32 %v17176_v8, %v17235_v50  ;;  %v2735_v25 = vmul.f32 %v17195_v44, %v17235_v50  ;;  %v4690_v15 = vadd.f32 %v13298_v9, %v4566_v3 }
 0x3a1   : > { %v2302_v49 = vsel %vm1518_vm1, %v17234_v48, %v2301_v59  ;;  %v2550_v5 = vrot.slane %v2487_v58, 3  ;;  %v13518_v28 = vmul.f32 %v17180_v52, %v17236_v43  ;;  %v5521_v56 = vrot.slane %v13425_v26, 6  ;;  %v17239_v26 = vld [vmem:[#allocation49_spill] sm:$0xff] }
 0x3a2   : > { %v5645_v59 = vrot.slane %v13468_v2, 6  ;;  %v2210_v41 = vadd.f32 %v2178_v34, %v2086_v19  ;;  %v2859_v48 = vmul.f32 %v17197_v30, %v17236_v43  ;;  %v4814_v18 = vadd.f32 %v13332_v60, %v4690_v15 }
 0x3a3   : > { %17237 = vst [vmem:[#allocation17_spill] sm:$0xff] %v13518_v28  ;;  %v17238_v50 = vrot.slane %v13463_v55, 3  ;;  %v15446_v58 = vrot.slane %v13501_v11, 3  ;;  %v2674_v3 = vrot.slane %v2611_v47, 3  ;;  %v2798_v36 = vrot.slane %v2735_v25, 3 }
 0x3a4   : > { %v2334_v35 = vadd.f32 %v2302_v49, %v2210_v41  ;;  %v13532_v2 = vmul.f32 %v13428_v51, %v17239_v26  ;;  %v4938_v19 = vadd.f32 %v13348_v7, %v4814_v18  ;;  %v17241_v30 = vrot.slane %v13486_v21, 3  ;;  %v17244_v7 = vld [vmem:[#allocation143_spill] sm:$0xff] }
 0x3a5   : > { %v2427_v9 = vsel %vm2387_vm2, %v17238_v50, %v2426_v38  ;;  %v2983_v47 = vmul.f32 %v13435_v1, %v17239_v26  ;;  %v2922_v49 = vrot.slane %v2859_v48, 3  ;;  %v17242_v50 = vld [vmem:[#allocation52_spill] sm:$0xff]  ;;  %v17245_v41 = vrot.slane %v17244_v7, 6  ;;  %v17246_v48 = vld [vmem:[#allocation119_spill] sm:$0xff] }
 0x3a6   : > { %17240 = vst [vmem:[#allocation46_spill] sm:$0xff] %v13532_v2  ;;  %v2551_v60 = vsel %vm2387_vm2, %v17241_v30, %v2550_v5  ;;  %v2459_v38 = vadd.f32 %v2427_v9, %v2334_v35  ;;  %v13543_v25 = vmul.f32 %v17242_v50, %v13257_v4  ;;  %v3107_v15 = vmul.f32 %v17242_v50, %v13306_v10  ;;  %v13564_v7 = vld [vmem:[%s7442_s10 + $0xb0] sm:$0xff] }
 0x3a7   : > { %v5063_v18 = vadd.f32 %v13382_v17, %v4938_v19  ;;  %v5399_v5 = vsel %vm4994_vm5, %v5397_v14, %v17245_v41  ;;  %v5769_v30 = vrot.slane %v13477_v24, 6  ;;  %v2675_v35 = vsel %vm2387_vm2, %v15446_v58, %v2674_v3  ;;  %v17249_v24 = vld [vmem:[#allocation53_spill] sm:$0xff] }
 0x3a8   : > { %17243 = vst [vmem:[#allocation79_spill] sm:$0xff] %v13543_v25  ;;  %v17247_v9 = vrot.slane %v17246_v48, 6  ;;  %v2583_v52 = vadd.f32 %v2551_v60, %v2459_v38  ;;  %v17248_v26 = vrot.slane %v13510_v42, 3  ;;  %v15450_v17 = vrot.slane %v13532_v2, 3 }
 0x3a9   : > { %v5187_v19 = vadd.f32 %v13392_v23, %v5063_v18  ;;  %v3046_v14 = vrot.slane %v2983_v47, 3  ;;  %v13568_v41 = vmul.f32 %v13564_v7, %v17249_v24  ;;  %v3231_v3 = vmul.f32 %v17183_v53, %v17249_v24  ;;  %v17252_v47 = vld [vmem:[#allocation54_spill] sm:$0xff] }
 0x3aa   : > { %v5523_v34 = vsel %vm4994_vm5, %v5521_v56, %v17247_v9  ;;  %v2799_v50 = vsel %vm2387_vm2, %v17248_v26, %v2798_v36  ;;  %v2707_v56 = vadd.f32 %v2675_v35, %v2583_v52  ;;  %v17251_v60 = vrot.slane %v13518_v28, 3  ;;  %v17254_v9 = vld [vmem:[#allocation56_spill] sm:$0xff] }
 0x3ab   : > { %17250 = vst [vmem:[#allocation92_spill] sm:$0xff] %v13568_v41  ;;  %v3170_v26 = vrot.slane %v3107_v15, 3  ;;  %v5311_v23 = vadd.f32 %v13447_v16, %v5187_v19  ;;  %v13579_v18 = vmul.f32 %v13229_v22, %v17252_v47  ;;  %v3356_v48 = vmul.f32 %v13489_v61, %v17252_v47  ;;  %v17256_v52 = vld [vmem:[#allocation72_spill] sm:$0xff] }
 0x3ac   : > { %v2923_v38 = vsel %vm2387_vm2, %v17251_v60, %v2922_v49  ;;  %v13585_v53 = vmul.f32 %v17173_v33, %v17254_v9  ;;  %v17257_v35 = vrot.slane %v17256_v52, 6  ;;  %v17258_v60 = vld [vmem:[#allocation59_spill] sm:$0xff]  ;;  %v2831_v16 = vadd.f32 %v2799_v50, %v2707_v56 }
 0x3ad   : > { %17253 = vst [vmem:[#allocation87_spill] sm:$0xff] %v13579_v18  ;;  %v17259_v58 = vrot.slane %v17258_v60, 6  ;;  %v3480_v19 = vmul.f32 %v17189_v37, %v17254_v9  ;;  %v5435_v36 = vadd.f32 %v5399_v5, %v5311_v23  ;;  %v3047_v47 = vsel %vm2387_vm2, %v15450_v17, %v3046_v14  ;;  %v17272_v14 = vld [vmem:[#allocation26_spill] sm:$0xff] }
 0x3ae   : > { %17255 = vst [vmem:[#allocation73_spill] sm:$0xff] %v13585_v53  ;;  %v5647_v49 = vsel %vm4994_vm5, %v5645_v59, %v17257_v35  ;;  %v3295_v52 = vrot.slane %v3231_v3, 4  ;;  %v2955_v24 = vadd.f32 %v2923_v38, %v2831_v16  ;;  %v17260_v59 = vrot.slane %v13543_v25, 3  ;;  %v13611_v38 = vld [vmem:[%s7442_s10 + $0x110] sm:$0xff]  ;;  %v17263_v16 = vld [vmem:[#allocation62_spill] sm:$0xff] }
 0x3af   : > { %v5771_v15 = vsel %vm4994_vm5, %v5769_v30, %v17259_v58  ;;  %v17261_v58 = vld [vmem:[#allocation61_spill] sm:$0xff]  ;;  %v5559_v30 = vadd.f32 %v5523_v34, %v5435_v36  ;;  %v3419_v23 = vrot.slane %v3356_v48, 4  ;;  %v3543_v3 = vrot.slane %v3480_v19, 4  ;;  %v17266_v48 = vld [vmem:[#allocation63_spill] sm:$0xff] }
 0x3b0   : > { %v3171_v35 = vsel %vm2387_vm2, %v17260_v59, %v3170_v26  ;;  %v13604_v50 = vmul.f32 %v17176_v8, %v17261_v58  ;;  %v3604_v5 = vmul.f32 %v17195_v44, %v17261_v58  ;;  %v3079_v60 = vadd.f32 %v3047_v47, %v2955_v24  ;;  %v13618_v59 = vld [vmem:[%s7442_s10 + $0x118] sm:$0x3f]  ;;  %v17268_v58 = vld [vmem:[#allocation66_spill] sm:$0xff] }
 0x3b1   : > { %v13615_v26 = vmul.f32 %v13611_v38, %v17263_v16  ;;  %v3728_v17 = vmul.f32 %v13618_v59, %v17263_v16  ;;  %v5683_v28 = vadd.f32 %v5647_v49, %v5559_v30  ;;  %v17265_v34 = vrot.slane %v13568_v41, 4 }
 0x3b2   : > { %17262 = vst [vmem:[#allocation23_spill] sm:$0xff] %v13604_v50  ;;  %v13627_v24 = vmul.f32 %v13428_v51, %v17266_v48  ;;  %v3852_v47 = vmul.f32 %v13435_v1, %v17266_v48  ;;  %v3203_v19 = vadd.f32 %v3171_v35, %v3079_v60  ;;  %v3667_v56 = vrot.slane %v3604_v5, 4  ;;  %v17277_v5 = vld [vmem:[#allocation70_spill] sm:$0xff] }
 0x3b3   : > { %17264 = vst [vmem:[#allocation58_spill] sm:$0xff] %v13615_v26  ;;  %v3296_v36 = vsel %vm3256_vm3, %v17265_v34, %v3295_v52  ;;  %v13634_v16 = vmul.f32 %v17268_v58, %v13257_v4  ;;  %v5807_v49 = vadd.f32 %v5771_v15, %v5683_v28  ;;  %v17270_v30 = vrot.slane %v13579_v18, 4  ;;  %v17274_v18 = vld [vmem:[#allocation67_spill] sm:$0xff]  ;;  %v17276_v28 = vld [vmem:[#allocation68_spill] sm:$0xff] }
 0x3b4   : > { %17267 = vst [vmem:[#allocation20_spill] sm:$0xff] %v13627_v24  ;;  %v3976_v34 = vmul.f32 %v17268_v58, %v13306_v10  ;;  %v3328_v41 = vadd.f32 %v3296_v36, %v3203_v19  ;;  %v17271_v48 = vrot.slane %v13585_v53, 4  ;;  %v3791_v60 = vrot.slane %v3728_v17, 4  ;;  %v17290_v58 = vld [vmem:[#allocation81_spill] sm:$0xff] }
 0x3b5   : > { %17269 = vst [vmem:[#allocation74_spill] sm:$0xff] %v13634_v16  ;;  %v3420_v52 = vsel %vm3256_vm3, %v17270_v30, %v3419_v23  ;;  %v13646_v25 = vadd.f32 %v17272_v14, %v5807_v49  ;;  %v3915_v15 = vrot.slane %v3852_v47, 4  ;;  %v13651_v23 = vmul.f32 %v13564_v7, %v17274_v18 }
 0x3b6   : > { %v3544_v35 = vsel %vm3256_vm3, %v17271_v48, %v3543_v3  ;;  %v3452_v30 = vadd.f32 %v3420_v52, %v3328_v41  ;;  %v17275_v36 = vrot.slane %v13604_v50, 4  ;;  %v7141_v48 = vld [vmem:[%s7442_s10 + $0xb8] sm:$0x3f]  ;;  %v4039_v49 = vrot.slane %v3976_v34, 4 }
 0x3b7   : > { %17273 = vst [vmem:[#allocation83_spill] sm:$0xff] %v13646_v25  ;;  %v4100_v17 = vmul.f32 %v7141_v48, %v17274_v18  ;;  %v5871_v14 = vsel %vm5834_vm6, %v13646_v25, 0.0  ;;  %v13663_v47 = vmul.f32 %v13229_v22, %v17276_v28  ;;  %v4225_v41 = vmul.f32 %v13489_v61, %v17276_v28 }
 0x3b8   : > { %v3668_v19 = vsel %vm3256_vm3, %v17275_v36, %v3667_v56  ;;  %5872 = vadd.xlane.f32.xlu0 %v5871_v14  ;;  %v3576_v52 = vadd.f32 %v3544_v35, %v3452_v30  ;;  %v13669_v56 = vmul.f32 %v17173_v33, %v17277_v5  ;;  %v17278_v36 = vrot.slane %v13615_v26, 4  ;;  %v17280_v14 = vld [vmem:[#allocation75_spill] sm:$0xff] }
 0x3b9   : > { %v17279_v25 = vrot.slane %v13627_v24, 4  ;;  %v4349_v28 = vmul.f32 %v17189_v37, %v17277_v5  ;;  %v13682_v35 = vmul.f32 %v17176_v8, %v17280_v14  ;;  %v4473_v30 = vmul.f32 %v17195_v44, %v17280_v14  ;;  %v17285_v24 = vld [vmem:[#allocation77_spill] sm:$0xff] }
 0x3ba   : > { %v3792_v3 = vsel %vm3256_vm3, %v17278_v36, %v3791_v60  ;;  %v3700_v50 = vadd.f32 %v3668_v19, %v3576_v52  ;;  %v17282_v26 = vrot.slane %v13634_v16, 4  ;;  %v4164_v36 = vrot.slane %v4100_v17, 5  ;;  %v17283_v52 = vld [vmem:[#allocation76_spill] sm:$0xff] }
 0x3bb   : > { %v3916_v34 = vsel %vm3256_vm3, %v17279_v25, %v3915_v15  ;;  %17281 = vst [vmem:[#allocation93_spill] sm:$0xff] %v13682_v35  ;;  %v4288_v15 = vrot.slane %v4225_v41, 5  ;;  %v13693_v5 = vmul.f32 %v13611_v38, %v17283_v52  ;;  %v4597_v8 = vmul.f32 %v13618_v59, %v17283_v52  ;;  %v17287_v17 = vld [vmem:[#allocation80_spill] sm:$0xff] }
 0x3bc   : > { %v4040_v60 = vsel %vm3256_vm3, %v17282_v26, %v4039_v49  ;;  %v3824_v18 = vadd.f32 %v3792_v3, %v3700_v50  ;;  %v13699_v44 = vmul.f32 %v13428_v51, %v17285_v24  ;;  %v4721_v26 = vmul.f32 %v13435_v1, %v17285_v24 }
 0x3bd   : > { %17284 = vst [vmem:[#allocation60_spill] sm:$0xff] %v13693_v5  ;;  %v13705_v49 = vmul.f32 %v17287_v17, %v13257_v4  ;;  %v4845_v50 = vmul.f32 %v17287_v17, %v13306_v10  ;;  %v4412_v41 = vrot.slane %v4349_v28, 5  ;;  %v4536_v25 = vrot.slane %v4473_v30, 5 }
 0x3be   : > { %17286 = vst [vmem:[#allocation103_spill] sm:$0xff] %v13699_v44  ;;  %v3948_v3 = vadd.f32 %v3916_v34, %v3824_v18  ;;  %v17288_v52 = vrot.slane %v13651_v23, 5  ;;  %v17289_v16 = vrot.slane %v13663_v47, 5  ;;  %v13718_v53 = vmul.f32 %v13564_v7, %v17290_v58 }
 0x3bf   : > { %v4660_v18 = vrot.slane %v4597_v8, 5  ;;  %v4969_v28 = vmul.f32 %v7141_v48, %v17290_v58  ;;  %v4784_v30 = vrot.slane %v4721_v26, 5  ;;  %v17293_v7 = vrot.slane %v13682_v35, 5  ;;  %v13742_v58 = vld [vmem:[%s7442_s10 + $0xd8] sm:$0xff] }
 0x3c0   : > { %v4165_v14 = vsel %vm4125_vm4, %v17288_v52, %v4164_v36  ;;  %v4289_v24 = vsel %vm4125_vm4, %v17289_v16, %v4288_v15  ;;  %17291 = vst [vmem:[#allocation106_spill] sm:$0xff] %v13718_v53  ;;  %v4072_v9 = vadd.f32 %v4040_v60, %v3948_v3  ;;  %v4908_v52 = vrot.slane %v4845_v50, 5  ;;  %v17294_v3 = vld [vmem:[#allocation82_spill] sm:$0xff]  ;;  %v17296_v50 = vld [vmem:[#allocation44_spill] sm:$0xff] }
 0x3c1   : > { %v17292_v16 = vrot.slane %v13669_v56, 5  ;;  %v4537_v60 = vsel %vm4125_vm4, %v17293_v7, %v4536_v25  ;;  %v13733_v48 = vmul.f32 %v13229_v22, %v17294_v3  ;;  %v5094_v26 = vmul.f32 %v13489_v61, %v17294_v3  ;;  %v17295_v36 = vld [vmem:[#allocation6_spill] sm:$0xff]  ;;  %v17299_v25 = vld [vmem:[#allocation8_spill] sm:$0xff] }
 0x3c2   : > { %v4197_v19 = vadd.f32 %v4165_v14, %v4072_v9  ;;  %v363_v9 = vmul.f32 %v17296_v50, %v17295_v36  ;;  %v5033_v34 = vrot.slane %v4969_v28, 6  ;;  %v435_v7 = vmul.f32 %v13742_v58, %v17299_v25 }
 0x3c3   : > { %v4413_v15 = vsel %vm4125_vm4, %v17292_v16, %v4412_v41  ;;  %v17297_v41 = vld [vmem:[#allocation7_spill] sm:$0xff]  ;;  %v17298_v16 = vld [vmem:[#allocation124_spill] sm:$0xff]  ;;  %v17300_v22 = vrot.slane %v13693_v5, 5  ;;  %v17301_v61 = vrot.slane %v13699_v44, 5  ;;  %v17302_v36 = vrot.slane %v13705_v49, 5  ;;  %v7143_v44 = vld [vmem:[%s7442_s10 + $0xf8] sm:$0xff] }
 0x3c4   : > { %v4321_v14 = vadd.f32 %v4289_v24, %v4197_v19  ;;  %v399_v2 = vmul.f32 %v17298_v16, %v17297_v41  ;;  %v17303_v19 = vld [vmem:[#allocation84_spill] sm:$0xff] }
 0x3c5   : > { %v4661_v8 = vsel %vm4125_vm4, %v17300_v22, %v4660_v18  ;;  %v4785_v3 = vsel %vm4125_vm4, %v17301_v61, %v4784_v30  ;;  %v4909_v24 = vsel %vm4125_vm4, %v17302_v36, %v4908_v52  ;;  %v13757_v28 = vmul.f32 %v17173_v33, %v17303_v19  ;;  %v17304_v18 = vld [vmem:[#allocation9_spill] sm:$0xff]  ;;  %v17305_v36 = vld [vmem:[#allocation10_spill] sm:$0xff] }
 0x3c6   : > { %v4445_v41 = vadd.f32 %v4413_v15, %v4321_v14  ;;  %v5218_v25 = vmul.f32 %v17189_v37, %v17303_v19  ;;  %v415_v5 = vadd.f32 %v399_v2, %v363_v9  ;;  %v471_v22 = vmul.f32 %v13421_v39, %v17304_v18  ;;  %v17307_v2 = vld [vmem:[#allocation12_spill] sm:$0xff]  ;;  %v7144_v30 = vld [vmem:[%s7442_s10 + $0x100] sm:$0x3f]  ;;  %v13783_v19 = vld [vmem:[%s7442_s10 + $0x138] sm:$0xff] }
 0x3c7   : > { %v5157_v61 = vrot.slane %v5094_v26, 6  ;;  %v13766_v52 = vmul.f32 %v7143_v44, %v17214_v13  ;;  %v622_v33 = vmul.f32 %v17296_v50, %v17305_v36  ;;  %v17306_v15 = vrot.slane %v13718_v53, 6 }
 0x3c8   : > { %v4569_v35 = vadd.f32 %v4537_v60, %v4445_v41  ;;  %v451_v14 = vadd.f32 %v435_v7, %v415_v5  ;;  %v507_v9 = vmul.f32 %v17225_v54, %v17307_v2  ;;  %v5342_v26 = vmul.f32 %v7144_v30, %v17214_v13  ;;  %v17308_v60 = vld [vmem:[#allocation11_spill] sm:$0xff]  ;;  %v17309_v7 = vld [vmem:[#allocation14_spill] sm:$0xff] }
 0x3c9   : > { %v5034_v37 = vsel %vm4994_vm5, %v17306_v15, %v5033_v34  ;;  %v13780_v44 = vmul.f32 %v13611_v38, %v17216_v12  ;;  %v747_v50 = vmul.f32 %v17298_v16, %v17308_v60  ;;  %v5281_v34 = vrot.slane %v5218_v25, 6  ;;  %v17311_v38 = vld [vmem:[#allocation13_spill] sm:$0xff] }
 0x3ca   : > { %v4693_v41 = vadd.f32 %v4661_v8, %v4569_v35  ;;  %v487_v5 = vadd.f32 %v471_v22, %v451_v14  ;;  %v543_v36 = vmul.f32 %v17309_v7, %v17227_v31  ;;  %v17310_v15 = vrot.slane %v13733_v48, 6  ;;  %v17312_v8 = vld [vmem:[#allocation16_spill] sm:$0xff] }
 0x3cb   : > { %v5403_v30 = vrot.slane %v13766_v52, 6  ;;  %v685_v18 = vrot.slane %v622_v33, 1  ;;  %v871_v53 = vmul.f32 %v13742_v58, %v17311_v38  ;;  %v5466_v16 = vmul.f32 %v13618_v59, %v17216_v12  ;;  %v17316_v38 = vld [vmem:[#allocation19_spill] sm:$0xff] }
 0x3cc   : > { %v5158_v2 = vsel %vm4994_vm5, %v17310_v15, %v5157_v61  ;;  %v4817_v13 = vadd.f32 %v4785_v3, %v4693_v41  ;;  %v523_v35 = vadd.f32 %v507_v9, %v487_v5  ;;  %v579_v25 = vmul.f32 %v17312_v8, %v13783_v19  ;;  %v17411_v52 = vld [vmem:[#allocation15_spill] sm:$0xff] }
 0x3cd   : > { %v5405_v22 = vrot.slane %v5342_v26, 6  ;;  %v5527_v14 = vrot.slane %v13780_v44, 6  ;;  %v809_v60 = vrot.slane %v747_v50, 1  ;;  %v995_v61 = vmul.f32 %v13421_v39, %v17089_v45  ;;  %v17314_v26 = vld [vmem:[#allocation21_spill] sm:$0xff] }
 0x3ce   : > { %v4941_v7 = vadd.f32 %v4909_v24, %v4817_v13  ;;  %v17313_v33 = vrot.slane %v13757_v28, 6  ;;  %v13807_v3 = vmul.f32 %v13428_v51, %v17224_v46  ;;  %v559_v59 = vadd.f32 %v543_v36, %v523_v35 }
 0x3cf   : > { %v5590_v9 = vmul.f32 %v13435_v1, %v17224_v46  ;;  %v17315_v41 = vrot.slane %v17314_v26, 1  ;;  %v933_v5 = vrot.slane %v871_v53, 1  ;;  %v1119_v45 = vmul.f32 %v17225_v54, %v17316_v38 }
 0x3d0   : > { %v5282_v15 = vsel %vm4994_vm5, %v17313_v33, %v5281_v34  ;;  %v5066_v13 = vadd.f32 %v5034_v37, %v4941_v7  ;;  %v5529_v24 = vrot.slane %v5466_v16, 6  ;;  %v13818_v34 = vmul.f32 %v17228_v32, %v13257_v4 }
 0x3d1   : > { %v687_v50 = vsel %vm649_vm0, %v685_v18, %v17315_v41  ;;  %v595_v51 = vadd.f32 %v579_v25, %v559_v59  ;;  %v5714_v36 = vmul.f32 %v17228_v32, %v13306_v10  ;;  %v17317_v1 = vrot.slane %v13270_v40, 1  ;;  %v13844_v59 = vld [vmem:[%s7442_s10 + $0xa8] sm:$0xff] }
 0x3d2   : > { %v1057_v8 = vrot.slane %v995_v61, 1  ;;  %v1243_v53 = vmul.f32 %v16962_v27, %v17227_v31  ;;  %v5190_v18 = vadd.f32 %v5158_v2, %v5066_v13  ;;  %v5406_v37 = vsel %vm4994_vm5, %v5403_v30, %v5405_v22 }
 0x3d3   : > { %v811_v35 = vsel %vm649_vm0, %v809_v60, %v17317_v1  ;;  %v5651_v4 = vrot.slane %v13807_v3, 6  ;;  %v720_v16 = vadd.f32 %v687_v50, %v595_v51  ;;  %v5653_v25 = vrot.slane %v5590_v9, 6 }
 0x3d4   : > { %v17318_v10 = vrot.slane %v13278_v57, 1  ;;  %v1181_v32 = vrot.slane %v1119_v45, 1  ;;  %v1367_v60 = vmul.f32 %v16855_v20, %v13783_v19  ;;  %v5314_v27 = vadd.f32 %v5282_v15, %v5190_v18 }
 0x3d5   : > { %v5530_v31 = vsel %vm4994_vm5, %v5527_v14, %v5529_v24  ;;  %v5775_v2 = vrot.slane %v13818_v34, 6  ;;  %v844_v22 = vadd.f32 %v811_v35, %v720_v16  ;;  %v5777_v61 = vrot.slane %v5714_v36, 6  ;;  %v17325_v16 = vld [vmem:[#allocation33_spill] sm:$0xff] }
 0x3d6   : > { %v935_v40 = vsel %vm649_vm0, %v933_v5, %v17318_v10  ;;  %v17319_v7 = vrot.slane %v13288_v6, 1  ;;  %v1305_v33 = vrot.slane %v1243_v53, 1  ;;  %v1491_v9 = vmul.f32 %v13844_v59, %v17100_v29  ;;  %v13855_v6 = vld [vmem:[%s7442_s10 + $0xc0] sm:$0xff]  ;;  %v17323_v53 = vld [vmem:[#allocation139_spill] sm:$0xff]  ;;  %v17358_v34 = vld [vmem:[#allocation17_spill] sm:$0xff] }
 0x3d7   : > { %v5438_v20 = vadd.f32 %v5406_v37, %v5314_v27  ;;  %v968_v15 = vadd.f32 %v935_v40, %v844_v22  ;;  %v5654_v26 = vsel %vm4994_vm5, %v5651_v4, %v5653_v25  ;;  %v17320_v41 = vrot.slane %v13313_v63, 1  ;;  %v17322_v63 = vld [vmem:[#allocation28_spill] sm:$0xff] }
 0x3d8   : > { %v1059_v57 = vsel %vm649_vm0, %v1057_v8, %v17319_v7  ;;  %v1429_v5 = vrot.slane %v1367_v60, 1  ;;  %v1616_v38 = vmul.f32 %v13855_v6, %v16857_v62  ;;  %v5778_v29 = vsel %vm4994_vm5, %v5775_v2, %v5777_v61  ;;  %v13880_v61 = vld [vmem:[%s14546_s2] ss:$0 sm:$0xff] }
 0x3d9   : > { %v1183_v50 = vsel %vm649_vm0, %v1181_v32, %v17320_v41  ;;  %v5562_v45 = vadd.f32 %v5530_v31, %v5438_v20  ;;  %v1092_v13 = vadd.f32 %v1059_v57, %v968_v15  ;;  %v17321_v24 = vrot.slane %v13325_v0, 1  ;;  %v17326_v0 = vld [vmem:[#allocation51_spill] sm:$0xff]  ;;  %v17328_v31 = vld [vmem:[#allocation34_spill] sm:$0xff] }
 0x3da   : > { %v1554_v36 = vrot.slane %v1491_v9, 2  ;;  %v1740_v1 = vmul.f32 %v13742_v58, %v17322_v63  ;;  %v17324_v18 = vrot.slane %v17323_v53, 1  ;;  %v1678_v37 = vrot.slane %v1616_v38, 2  ;;  %v17331_v41 = vld [vmem:[#allocation35_spill] sm:$0xff] }
 0x3db   : > { %v1307_v51 = vsel %vm649_vm0, %v1305_v33, %v17321_v24  ;;  %v5686_v35 = vadd.f32 %v5654_v26, %v5562_v45  ;;  %v1216_v8 = vadd.f32 %v1183_v50, %v1092_v13  ;;  %v1864_v25 = vmul.f32 %v13421_v39, %v17325_v16  ;;  %v17329_v33 = vld [vmem:[#allocation101_spill] sm:$0xff]  ;;  %v13889_v26 = vld [vmem:[%s7442_s10 + $0x120] sm:$0xff] }
 0x3dc   : > { %v1431_v62 = vsel %vm649_vm0, %v1429_v5, %v17324_v18  ;;  %v17327_v32 = vrot.slane %v17326_v0, 2  ;;  %v1802_v27 = vrot.slane %v1740_v1, 2  ;;  %v1988_v22 = vmul.f32 %v17225_v54, %v17328_v31  ;;  %v17332_v45 = vld [vmem:[#allocation102_spill] sm:$0xff]  ;;  %v17335_v1 = vld [vmem:[#allocation97_spill] sm:$0xff]  ;;  %v17337_v18 = vld [vmem:[#allocation39_spill] sm:$0xff] }
 0x3dd   : > { %v5810_v10 = vadd.f32 %v5778_v29, %v5686_v35  ;;  %v1340_v40 = vadd.f32 %v1307_v51, %v1216_v8  ;;  %v17330_v9 = vrot.slane %v17329_v33, 2  ;;  %v1926_v15 = vrot.slane %v1864_v25, 2  ;;  %v17334_v51 = vld [vmem:[#allocation38_spill] sm:$0xff]  ;;  %v17338_v16 = vld [vmem:[#allocation85_spill] sm:$0xff]  ;;  %v17340_v0 = vld [vmem:[#allocation40_spill] sm:$0xff] }
 0x3de   : > { %v1556_v60 = vsel %vm1518_vm1, %v1554_v36, %v17327_v32  ;;  %v2112_v50 = vmul.f32 %v13889_v26, %v17331_v41  ;;  %v17333_v13 = vrot.slane %v17332_v45, 2  ;;  %v2050_v24 = vrot.slane %v1988_v22, 2  ;;  %v17341_v31 = vld [vmem:[#allocation43_spill] sm:$0xff] }
 0x3df   : > { %v13883_v7 = vadd.f32 %v13880_v61, %v5810_v10  ;;  %v1464_v57 = vadd.f32 %v1431_v62, %v1340_v40  ;;  %v1680_v20 = vsel %vm1518_vm1, %v1678_v37, %v17330_v9  ;;  %v2236_v36 = vmul.f32 %v17334_v51, %v13783_v19  ;;  %v17343_v9 = vld [vmem:[#allocation42_spill] sm:$0xff] }
 0x3e0   : > { %v1804_v29 = vsel %vm1518_vm1, %v1802_v27, %v17333_v13  ;;  %v17336_v35 = vrot.slane %v17335_v1, 2  ;;  %v2174_v53 = vrot.slane %v2112_v50, 2  ;;  %v2360_v62 = vmul.f32 %v13844_v59, %v17337_v18  ;;  %v17344_v50 = vld [vmem:[#allocation144_spill] sm:$0xff]  ;;  %v17346_v13 = vld [vmem:[#allocation47_spill] sm:$0xff] }
 0x3e1   : > { %v5880_v5 = vsel %vm5834_vm6, %v13883_v7, 0.0  ;;  %v1589_v38 = vadd.f32 %v1556_v60, %v1464_v57  ;;  %v17339_v25 = vrot.slane %v17338_v16, 2  ;;  %v2298_v40 = vrot.slane %v2236_v36, 2 }
 0x3e2   : > { %5881 = vadd.xlane.f32.xlu1 %v5880_v5  ;;  %v1928_v8 = vsel %vm1518_vm1, %v1926_v15, %v17336_v35  ;;  %v2485_v32 = vmul.f32 %v13855_v6, %v17340_v0  ;;  %v4843_v60 = vmul.f32 %v17287_v17, %v13783_v19  ;;  %v17342_v22 = vrot.slane %v17341_v31, 2 }
 0x3e3   : > { %v1713_v63 = vadd.f32 %v1680_v20, %v1589_v38  ;;  %v2052_v10 = vsel %vm1518_vm1, %v2050_v24, %v17339_v25  ;;  %v2423_v33 = vrot.slane %v2360_v62, 3  ;;  %v2609_v20 = vmul.f32 %v13742_v58, %v17343_v9  ;;  %v17351_v25 = vld [vmem:[#allocation49_spill] sm:$0xff] }
 0x3e4   : > { %v2176_v57 = vsel %vm1518_vm1, %v2174_v53, %v17342_v22  ;;  %v4905_v15 = vrot.slane %v4843_v60, 5  ;;  %v17345_v5 = vrot.slane %v17344_v50, 2  ;;  %v2547_v45 = vrot.slane %v2485_v32, 3  ;;  %v17352_v32 = vld [vmem:[#allocation29_spill] sm:$0xff] }
 0x3e5   : > { %v1837_v37 = vadd.f32 %v1804_v29, %v1713_v63  ;;  %v2733_v29 = vmul.f32 %v13421_v39, %v17346_v13  ;;  %v17347_v17 = vrot.slane %v13705_v49, 5  ;;  %v17348_v36 = vrot.slane %v13463_v55, 3  ;;  %v17349_v49 = vld [vmem:[#allocation71_spill] sm:$0xff] }
 0x3e6   : > { %v2300_v38 = vsel %vm1518_vm1, %v2298_v40, %v17345_v5  ;;  %v2671_v1 = vrot.slane %v2609_v20, 3  ;;  %v2857_v35 = vmul.f32 %v17225_v54, %v17236_v43  ;;  %v5901_v62 = vmul.f32 %v17349_v49, %v17349_v49 }
 0x3e7   : > { %v1961_v27 = vadd.f32 %v1928_v8, %v1837_v37  ;;  %v13925_v24 = vsel %vm4125_vm4, %v4905_v15, %v17347_v17  ;;  %v2425_v63 = vsel %vm2387_vm2, %v2423_v33, %v17348_v36  ;;  %v7149_v8 = vld [vmem:[%s14545_s1 + $0x30] ss:$0 sm:$0xff]  ;;  %v17350_v37 = vrot.slane %v13486_v21, 3  ;;  %v17355_v15 = vld [vmem:[#allocation110_spill] sm:$0xff] }
 0x3e8   : > { %v5712_v53 = vmul.f32 %v7149_v8, %v13783_v19  ;;  %v2795_v16 = vrot.slane %v2733_v29, 3  ;;  %v5919_v0 = vsel %vm5834_vm6, %v5901_v62, 0.0  ;;  %v5903_v60 = vmul.f32 %v17352_v32, %v17352_v32  ;;  %v17354_v21 = vld [vmem:[#allocation52_spill] sm:$0xff]  ;;  %v17362_v8 = vld [vmem:[#allocation46_spill] sm:$0xff] }
 0x3e9   : > { %v2085_v41 = vadd.f32 %v2052_v10, %v1961_v27  ;;  %v2549_v55 = vsel %vm2387_vm2, %v2547_v45, %v17350_v37  ;;  %v2981_v10 = vmul.f32 %v13889_v26, %v17351_v25  ;;  %v17353_v27 = vrot.slane %v13501_v11, 3  ;;  %5920 = vadd.xlane.f32.xlu1 %v5919_v0  ;;  %v17364_v37 = vld [vmem:[#allocation56_spill] sm:$0xff]  ;;  %v17365_v25 = vld [vmem:[#allocation79_spill] sm:$0xff]  ;;  %v17367_v0 = vld [vmem:[#allocation61_spill] sm:$0xff] }
 0x3ea   : > { %v5774_v40 = vrot.slane %v5712_v53, 6  ;;  %v2919_v22 = vrot.slane %v2857_v35, 3  ;;  %v5925_v20 = vsel %vm5834_vm6, %v5903_v60, 0.0  ;;  %v17356_v11 = vrot.slane %v13510_v42, 3  ;;  %v17361_v42 = vld [vmem:[#allocation99_spill] sm:$0xff] }
 0x3eb   : > { %v2209_v51 = vadd.f32 %v2176_v57, %v2085_v41  ;;  %v2673_v31 = vsel %vm2387_vm2, %v2671_v1, %v17353_v27  ;;  %v3105_v57 = vmul.f32 %v17354_v21, %v13783_v19  ;;  %v5905_v41 = vmul.f32 %v17355_v15, %v17355_v15 }
 0x3ec   : > { %v13954_v33 = vsel %vm4994_vm5, %v5774_v40, %v5775_v2  ;;  %v2797_v50 = vsel %vm2387_vm2, %v2795_v16, %v17356_v11  ;;  %v3043_v5 = vrot.slane %v2981_v10, 3  ;;  %v17359_v29 = vrot.slane %v17358_v34, 3  ;;  %v17371_v11 = vld [vmem:[#allocation62_spill] sm:$0xff] }
 0x3ed   : > { %v2333_v18 = vadd.f32 %v2300_v38, %v2209_v51  ;;  %v17357_v38 = vld [vmem:[#allocation53_spill] sm:$0xff]  ;;  %v3167_v17 = vrot.slane %v3105_v57, 3  ;;  %v17360_v51 = vld [vmem:[#allocation54_spill] sm:$0xff]  ;;  %5926 = vadd.xlane.f32.xlu1 %v5925_v20  ;;  %v5931_v1 = vsel %vm5834_vm6, %v5905_v41, 0.0  ;;  %v5907_v35 = vmul.f32 %v17361_v42, %v17361_v42  ;;  %v17369_v57 = vld [vmem:[#allocation92_spill] sm:$0xff] }
 0x3ee   : > { %v3229_v45 = vmul.f32 %v13844_v59, %v17357_v38  ;;  %v2921_v2 = vsel %vm2387_vm2, %v2919_v22, %v17359_v29  ;;  %v3354_v36 = vmul.f32 %v13855_v6, %v17360_v51  ;;  %v17363_v53 = vrot.slane %v17362_v8, 3  ;;  %v17368_v22 = vld [vmem:[#allocation148_spill] sm:$0xff]  ;;  %v17372_v38 = vld [vmem:[#allocation87_spill] sm:$0xff] }
 0x3ef   : > { %v2458_v43 = vadd.f32 %v2425_v63, %v2333_v18  ;;  %v17366_v10 = vrot.slane %v17365_v25, 3  ;;  %v3602_v60 = vmul.f32 %v13421_v39, %v17367_v0  ;;  %v5909_v21 = vmul.f32 %v17368_v22, %v17368_v22  ;;  %v17374_v29 = vld [vmem:[#allocation63_spill] sm:$0xff] }
 0x3f0   : > { %v3045_v18 = vsel %vm2387_vm2, %v3043_v5, %v17363_v53  ;;  %v3292_v62 = vrot.slane %v3229_v45, 4  ;;  %v17373_v45 = vrot.slane %v17372_v38, 4  ;;  %v17378_v53 = vld [vmem:[#allocation66_spill] sm:$0xff] }
 0x3f1   : > { %v2582_v9 = vadd.f32 %v2549_v55, %v2458_v43  ;;  %v3478_v55 = vmul.f32 %v13742_v58, %v17364_v37  ;;  %v3169_v40 = vsel %vm2387_vm2, %v3167_v17, %v17366_v10  ;;  %v3416_v43 = vrot.slane %v3354_v36, 4  ;;  %5932 = vadd.xlane.f32.xlu1 %v5931_v1  ;;  %v17375_v36 = vld [vmem:[#allocation114_spill] sm:$0xff]  ;;  %v17376_v1 = vld [vmem:[#allocation73_spill] sm:$0xff]  ;;  %v17379_v37 = vld [vmem:[#allocation23_spill] sm:$0xff] }
 0x3f2   : > { %v3664_v34 = vrot.slane %v3602_v60, 4  ;;  %v5943_v51 = vsel %vm5834_vm6, %v5909_v21, 0.0  ;;  %v17381_v10 = vld [vmem:[#allocation67_spill] sm:$0xff]  ;;  %v17382_v60 = vld [vmem:[#allocation88_spill] sm:$0xff] }
 0x3f3   : > { %v2706_v13 = vadd.f32 %v2673_v31, %v2582_v9  ;;  %v5937_v31 = vsel %vm5834_vm6, %v5907_v35, 0.0  ;;  %v17370_v9 = vrot.slane %v17369_v57, 4  ;;  %v3540_v41 = vrot.slane %v3478_v55, 4 }
 0x3f4   : > { %v17377_v35 = vrot.slane %v17376_v1, 4  ;;  %v17380_v55 = vrot.slane %v17379_v37, 4  ;;  %v7150_v37 = vld [vmem:[%s7442_s10 + $0x108] sm:$0xff] }
 0x3f5   : > { %v2830_v63 = vadd.f32 %v2797_v50, %v2706_v13  ;;  %v3294_v20 = vsel %vm3256_vm3, %v3292_v62, %v17370_v9  ;;  %v3726_v50 = vmul.f32 %v17225_v54, %v17371_v11  ;;  %v3418_v13 = vsel %vm3256_vm3, %v3416_v43, %v17373_v45  ;;  %5938 = vadd.xlane.f32.xlu1 %v5937_v31  ;;  %v17383_v31 = vld [vmem:[#allocation58_spill] sm:$0xff]  ;;  %v17385_v9 = vld [vmem:[#allocation68_spill] sm:$0xff] }
 0x3f6   : > { %v3542_v54 = vsel %vm3256_vm3, %v3540_v41, %v17377_v35  ;;  %v17384_v21 = vrot.slane %v17383_v31, 4  ;;  %v17386_v11 = vld [vmem:[#allocation20_spill] sm:$0xff]  ;;  %v17388_v45 = vld [vmem:[#allocation70_spill] sm:$0xff]  ;;  %v17391_v35 = vld [vmem:[#allocation75_spill] sm:$0xff] }
 0x3f7   : > { %v2954_v16 = vadd.f32 %v2921_v2, %v2830_v63  ;;  %v3850_v2 = vmul.f32 %v13889_v26, %v17374_v29  ;;  %v5911_v63 = vmul.f32 %v17375_v36, %v17375_v36  ;;  %v3788_v8 = vrot.slane %v3726_v50, 4 }
 0x3f8   : > { %v17387_v50 = vrot.slane %v17386_v11, 4 }
 0x3f9   : > { %v3078_v27 = vadd.f32 %v3045_v18, %v2954_v16  ;;  %v3974_v18 = vmul.f32 %v17378_v53, %v13783_v19  ;;  %v3666_v16 = vsel %vm3256_vm3, %v3664_v34, %v17380_v55  ;;  %v3912_v25 = vrot.slane %v3850_v2, 4  ;;  %5944 = vadd.xlane.f32.xlu1 %v5943_v51  ;;  %v17393_v55 = vld [vmem:[#allocation76_spill] sm:$0xff] }
 0x3fa   : > { %v5949_v0 = vsel %vm5834_vm6, %v5911_v63, 0.0  ;;  %v3790_v19 = vsel %vm3256_vm3, %v3788_v8, %v17384_v21  ;;  %v5915_v2 = vmul.f32 %v13883_v7, %v13883_v7  ;;  %v17392_v53 = vrot.slane %v13651_v23, 5 }
 0x3fb   : > { %v3202_v5 = vadd.f32 %v3169_v40, %v3078_v27  ;;  %v4098_v40 = vmul.f32 %v13844_v59, %v17381_v10  ;;  %v5913_v27 = vmul.f32 %v17382_v60, %v17382_v60  ;;  %v4036_v57 = vrot.slane %v3974_v18, 4 }
 0x3fc   : > { %v5961_v10 = vsel %vm5834_vm6, %v5915_v2, 0.0  ;;  %v17396_v23 = vrot.slane %v13669_v56, 5 }
 0x3fd   : > { %v3327_v17 = vadd.f32 %v3294_v20, %v3202_v5  ;;  %v4223_v20 = vmul.f32 %v13855_v6, %v17385_v9  ;;  %v3914_v5 = vsel %vm3256_vm3, %v3912_v25, %v17387_v50  ;;  %v4161_v38 = vrot.slane %v4098_v40, 5  ;;  %5950 = vadd.xlane.f32.xlu1 %v5949_v0 }
 0x3fe   : > { %v5955_v29 = vsel %vm5834_vm6, %v5913_v27, 0.0  ;;  %v17394_v40 = vrot.slane %v13663_v47, 5  ;;  %v17395_v27 = vld [vmem:[#allocation77_spill] sm:$0xff] }
 0x3ff   : > { %v3451_v62 = vadd.f32 %v3418_v13, %v3327_v17  ;;  %v4347_v13 = vmul.f32 %v13742_v58, %v17388_v45  ;;  %v17389_v17 = vld [vmem:[#allocation74_spill] sm:$0xff]  ;;  %v4285_v1 = vrot.slane %v4223_v20, 5  ;;  %v4163_v18 = vsel %vm4125_vm4, %v4161_v38, %v17392_v53  ;;  %v17397_v20 = vld [vmem:[#allocation93_spill] sm:$0xff]  ;;  %v17400_v45 = vld [vmem:[#allocation60_spill] sm:$0xff] }
 0x400   : > { %v17390_v51 = vrot.slane %v17389_v17, 4  ;;  %v4719_v31 = vmul.f32 %v13889_v26, %v17395_v27  ;;  %v17399_v47 = vld [vmem:[#allocation81_spill] sm:$0xff]  ;;  %v17403_v17 = vld [vmem:[#allocation103_spill] sm:$0xff]  ;;  %v5588_v27 = vmul.f32 %v13889_v26, %v17224_v46 }
 0x401   : > { %v3575_v43 = vadd.f32 %v3542_v54, %v3451_v62  ;;  %v4471_v54 = vmul.f32 %v13421_v39, %v17391_v35  ;;  %v4409_v62 = vrot.slane %v4347_v13, 5  ;;  %5956 = vadd.xlane.f32.xlu1 %v5955_v29  ;;  %v17401_v13 = vrot.slane %v17400_v45, 5  ;;  %v17402_v29 = vld [vmem:[#allocation82_spill] sm:$0xff]  ;;  %v17405_v35 = vld [vmem:[#allocation84_spill] sm:$0xff] }
 0x402   : > { %v4038_v63 = vsel %vm3256_vm3, %v4036_v57, %v17390_v51  ;;  %v4781_v50 = vrot.slane %v4719_v31, 5  ;;  %v5092_v56 = vmul.f32 %v13855_v6, %v17402_v29  ;;  %v17404_v51 = vrot.slane %v17403_v17, 5 }
 0x403   : > { %v3699_v41 = vadd.f32 %v3666_v16, %v3575_v43  ;;  %v4595_v16 = vmul.f32 %v7150_v37, %v17393_v55  ;;  %v4287_v43 = vsel %vm4125_vm4, %v4285_v1, %v17394_v40  ;;  %v4533_v0 = vrot.slane %v4471_v54, 5  ;;  %v17407_v55 = vld [vmem:[#allocation106_spill] sm:$0xff] }
 0x404   : > { %v5216_v54 = vmul.f32 %v13742_v58, %v17405_v35  ;;  %v5154_v53 = vrot.slane %v5092_v56, 6  ;;  %v6964_v35 = vld [vmem:[%s14547_s3] sm:$0xff]  }
 0x405   : > { %v3823_v34 = vadd.f32 %v3790_v19, %v3699_v41  ;;  %v4411_v19 = vsel %vm4125_vm4, %v4409_v62, %v17396_v23  ;;  %v4657_v57 = vrot.slane %v4595_v16, 5  ;;  %5962 = vadd.xlane.f32.xlu1 %v5961_v10  ;;  %v17398_v41 = vrot.slane %v17397_v20, 5  ;;  %6822 = vmatprep.subr.bf16.mxu0 %v6964_v35 }
 0x406   : > { %v17408_v16 = vrot.slane %v17407_v55, 6  ;;  %v5278_v6 = vrot.slane %v5216_v54, 6  ;;  %v5464_v10 = vmul.f32 %v7150_v37, %v17216_v12  ;;  %6823 = vmatpush3.bf16.msra.mxu0 %v6964_v35  ;;  %v6965_v54 = vld [vmem:[%s14547_s3 + $0x8] sm:$0xff]   ;;  %v5837_v55 = vpop.xlane.xlu0 %5836 }
 0x407   : > { %v3947_v8 = vadd.f32 %v3914_v5, %v3823_v34  ;;  %v4535_v11 = vsel %vm4125_vm4, %v4533_v0, %v17398_v41  ;;  %v4967_v5 = vmul.f32 %v13844_v59, %v17399_v47  ;;  %v4659_v34 = vsel %vm4125_vm4, %v4657_v57, %v17401_v13  ;;  %v17406_v59 = vld [vmem:[#allocation89_spill] sm:$0xff]  ;;  %v17412_v41 = vld [vmem:[#allocation111_spill] sm:$0xff]  ;;  %6824 = vmatprep.subr.bf16.mxu0 %v6965_v54 }
 0x408   : > { %v5526_v23 = vrot.slane %v5464_v10, 6  ;;  %v5902_v3 = vmul.f32 %v17412_v41, %v17412_v41 }
 0x409   : > { %v4071_v25 = vadd.f32 %v4038_v63, %v3947_v8  ;;  %v4783_v63 = vsel %vm4125_vm4, %v4781_v50, %v17404_v51  ;;  %v5030_v1 = vrot.slane %v4967_v5, 6  ;;  %v17414_v50 = vld [vmem:[#allocation126_spill] sm:$0xff] }
 0x40a   : > { %v5906_v47 = vmul.f32 %v17414_v50, %v17414_v50  ;;  %6825 = vmatpush3.bf16.msra.mxu0 %v6965_v54 }
 0x40b   : > { %v4196_v21 = vadd.f32 %v4163_v18, %v4071_v25  ;;  %v5340_v18 = vmul.f32 %v13421_v39, %v17406_v59  ;;  %v5032_v25 = vsel %vm4994_vm5, %v5030_v1, %v17408_v16  ;;  %v17410_v39 = vrot.slane %v13757_v28, 6 }
 0x40c   : > { %v5934_v5 = vsel %vm5834_vm6, %v5906_v47, 0.0 }
 0x40d   : > { %v4320_v9 = vadd.f32 %v4287_v43, %v4196_v21  ;;  %v17409_v43 = vrot.slane %v13733_v48, 6  ;;  %v5402_v58 = vrot.slane %v5340_v18, 6  ;;  %v5280_v21 = vsel %vm4994_vm5, %v5278_v6, %v17410_v39 }
 0x40e   : > { %v5528_v48 = vsel %vm4994_vm5, %v5526_v23, %v5527_v14 }
 0x40f   : > { %v4444_v38 = vadd.f32 %v4411_v19, %v4320_v9  ;;  %v5156_v0 = vsel %vm4994_vm5, %v5154_v53, %v17409_v43  ;;  %v5404_v12 = vsel %vm4994_vm5, %v5402_v58, %v5403_v30  ;;  %v5900_v30 = vmul.f32 %v17411_v52, %v17411_v52 }
 0x411   : > { %v4568_v2 = vadd.f32 %v4535_v11, %v4444_v38  ;;  %v5916_v14 = vsel %vm5834_vm6, %v5900_v30, 0.0  ;;  %v17413_v11 = vld [vmem:[#allocation22_spill] sm:$0xff] }
 0x412   : > { %v17415_v38 = vld [vmem:[#allocation98_spill] sm:$0xff] }
 0x413   : > { %v4692_v8 = vadd.f32 %v4659_v34, %v4568_v2  ;;  %v5908_v45 = vmul.f32 %v17415_v38, %v17415_v38  ;;  %v17416_v34 = vld [vmem:[#allocation55_spill] sm:$0xff] }
 0x414   : > { %v5910_v29 = vmul.f32 %v17416_v34, %v17416_v34  ;;  %v17417_v2 = vld [vmem:[#allocation83_spill] sm:$0xff] }
 0x415   : > { %v4816_v62 = vadd.f32 %v4783_v63, %v4692_v8  ;;  %v5940_v13 = vsel %vm5834_vm6, %v5908_v45, 0.0  ;;  %v5912_v17 = vmul.f32 %v17417_v2, %v17417_v2  ;;  %v5843_v8 = vpop.xlane.xlu1 %5842 }
 0x416   : > { %v5946_v56 = vsel %vm5834_vm6, %v5910_v29, 0.0 }
 0x417   : > { %v4940_v40 = vadd.f32 %v13925_v24, %v4816_v62  ;;  %v5650_v24 = vrot.slane %v5588_v27, 6  ;;  %v5952_v51 = vsel %vm5834_vm6, %v5912_v17, 0.0 }
 0x419   : > { %v5065_v31 = vadd.f32 %v5032_v25, %v4940_v40  ;;  %v5652_v46 = vsel %vm4994_vm5, %v5650_v24, %v5651_v4  ;;  %v5922_v4 = vsel %vm5834_vm6, %v5902_v3, 0.0  ;;  %v5846_v53 = vpop.xlane.xlu1 %5845  ;;  %v5840_v25 = vpop.xlane.xlu0 %5839 }
 0x41a   : > { %v14130_v24 = vmul.f32 0.03125, %v5846_v53 }
 0x41b   : > { %v5189_v19 = vadd.f32 %v5156_v0, %v5065_v31 }
 0x41d   : > { %v5313_v37 = vadd.f32 %v5280_v21, %v5189_v19  ;;  %v5852_v59 = vpop.xlane.xlu1 %5851  ;;  %v5849_v10 = vpop.xlane.xlu0 %5848  ;;  %v14126_v21 = vmul.f32 0.03125, %v5840_v25 }
 0x41f   : > { %v5437_v57 = vadd.f32 %v5404_v12, %v5313_v37  ;;  %v5981_v37 = vmul.f32 %v14126_v21, %v14126_v21 }
 0x421   : > { %v5561_v28 = vadd.f32 %v5528_v48, %v5437_v57  ;;  %v5858_v18 = vpop.xlane.xlu1 %5857  ;;  %v5855_v43 = vpop.xlane.xlu0 %5854 }
 0x423   : > { %v5685_v26 = vadd.f32 %v5652_v46, %v5561_v28  ;;  %v5983_v46 = vmul.f32 %v14130_v24, %v14130_v24  ;;  %v14136_v28 = vmul.f32 0.03125, %v5852_v59 }
 0x425   : > { %v5809_v9 = vadd.f32 %v13954_v33, %v5685_v26  ;;  %v5904_v33 = vmul.f32 %v17413_v11, %v17413_v11  ;;  %v5864_v62 = vpop.xlane.xlu1 %5863  ;;  %v14122_v58 = vpop.xlane.xlu0 %5860 }
 0x426   : > { %v14150_v17 = vmul.f32 0.03125, %v5864_v62 }
 0x427   : > { %v14084_v20 = vadd.f32 %v13880_v61, %v5809_v9  ;;  %v5928_v61 = vsel %vm5834_vm6, %v5904_v33, 0.0  ;;  %v14140_v9 = vmul.f32 0.03125, %v5837_v55  ;;  %v5985_v33 = vmul.f32 %v14136_v28, %v14136_v28 }
 0x428   : > { %v5989_v62 = vmul.f32 %v14150_v17, %v14150_v17 }
 0x429   : > { %v5877_v44 = vsel %vm5834_vm6, %v14084_v20, 0.0  ;;  %v5914_v63 = vmul.f32 %v14084_v20, %v14084_v20  ;;  %v5870_v16 = vpop.xlane.xlu1 %5869  ;;  %v14124_v31 = vpop.xlane.xlu0 %5866 }
 0x42a   : > { %5878 = vadd.xlane.f32.xlu0 %v5877_v44 }
 0x42b   : > { %v5958_v1 = vsel %vm5834_vm6, %v5914_v63, 0.0 }
 0x42d   : > { %v14118_v6 = vpop.xlane.xlu1 %5875 }
 0x42e   : > { %5917 = vadd.xlane.f32.xlu0 %v5916_v14 }
 0x432   : > { %5923 = vadd.xlane.f32.xlu0 %v5922_v4  ;;  %v14142_v4 = vmul.f32 0.03125, %v5843_v8  ;;  %v14156_v8 = vmul.f32 0.03125, %v5849_v10 }
 0x434   : > { %v5984_v10 = vmul.f32 %v14156_v8, %v14156_v8 }
 0x436   : > { %5929 = vadd.xlane.f32.xlu0 %v5928_v61  ;;  %v14146_v61 = vmul.f32 0.03125, %v5858_v18 }
 0x438   : > { %v5987_v35 = vmul.f32 %v14146_v61, %v14146_v61 }
 0x43a   : > { %5935 = vadd.xlane.f32.xlu0 %v5934_v5  ;;  %v5980_v5 = vmul.f32 %v14140_v9, %v14140_v9 }
 0x43e   : > { %5941 = vadd.xlane.f32.xlu0 %v5940_v13 }
 0x442   : > { %5947 = vadd.xlane.f32.xlu0 %v5946_v56 }
 0x445   : > { %v14128_v23 = vpop.xlane.xlu0 %5872 }
 0x446   : > { %5953 = vadd.xlane.f32.xlu0 %v5952_v51 }
 0x44a   : > { %5959 = vadd.xlane.f32.xlu0 %v5958_v1  ;;  %v5982_v1 = vmul.f32 %v14142_v4, %v14142_v4 }
 0x46f   : > { %v14120_v40 = vpop.xlane.xlu1 %5881 }
 0x476   : > { %v5921_v0 = vpop.xlane.xlu1 %5920 }
 0x477   : > { %v5965_v19 = vmul.f32 0.03125, %v5921_v0 }
 0x479   : > { %v5997_v57 = vsub.f32 %v5965_v19, %v5981_v37 }
 0x47a   : > { %v5927_v27 = vpop.xlane.xlu1 %5926 }
 0x47b   : > { %v5967_v48 = vmul.f32 0.03125, %v5927_v27  ;;  %v6013_v3 = vadd.f32 1e-06, %v5997_v57  ;;  %v14160_v27 = vmul.f32 0.03125, %v5855_v43  ;;  %v14171_v43 = vmul.f32 0.03125, %v14118_v6 }
 0x47c   : > { %v6047_v6 = vsub.f32 %v17352_v32, %v14130_v24 }
 0x47d   : > { %v5999_v44 = vsub.f32 %v5967_v48, %v5983_v46  ;;  %6974 = vrsqrt.f32 %v6013_v3 }
 0x47e   : > { %v5933_v39 = vpop.xlane.xlu1 %5932 }
 0x47f   : > { %v5969_v14 = vmul.f32 0.03125, %v5933_v39  ;;  %v6015_v13 = vadd.f32 1e-06, %v5999_v44  ;;  %v14162_v39 = vmul.f32 0.03125, %v5870_v16 }
 0x481   : > { %v6001_v29 = vsub.f32 %v5969_v14, %v5985_v33  ;;  %6976 = vrsqrt.f32 %v6015_v13  ;;  %v5986_v14 = vmul.f32 %v14160_v27, %v14160_v27  ;;  %v5991_v16 = vmul.f32 %v14162_v39, %v14162_v39 }
 0x482   : > { %v5939_v12 = vpop.xlane.xlu1 %5938 }
 0x483   : > { %v5971_v56 = vmul.f32 0.03125, %v5939_v12  ;;  %v6017_v55 = vadd.f32 1e-06, %v6001_v29  ;;  %v6045_v29 = vsub.f32 %v17349_v49, %v14126_v21  ;;  %v14188_v49 = vmul.f32 0.03125, %v14120_v40 }
 0x485   : > { %v6003_v25 = vsub.f32 %v5971_v56, %v5987_v35 }
 0x486   : > { %v5945_v30 = vpop.xlane.xlu1 %5944 }
 0x487   : > { %v5973_v18 = vmul.f32 0.03125, %v5945_v30  ;;  %v6019_v46 = vadd.f32 1e-06, %v6003_v25  ;;  %v6975_v33 = vpop.eup %6974 }
 0x489   : > { %v6005_v48 = vsub.f32 %v5973_v18, %v5989_v62  ;;  %v6046_v62 = vsub.f32 %v17412_v41, %v14142_v4 }
 0x48a   : > { %v5951_v63 = vpop.xlane.xlu1 %5950 }
 0x48b   : > { %v5975_v30 = vmul.f32 0.03125, %v5951_v63  ;;  %v6021_v13 = vadd.f32 1e-06, %v6005_v48  ;;  %v6044_v63 = vsub.f32 %v17411_v52, %v14140_v9 }
 0x48d   : > { %v6007_v56 = vsub.f32 %v5975_v30, %v5991_v16  ;;  %v14201_v30 = vmul.f32 0.03125, %v14128_v23 }
 0x48e   : > { %v5957_v57 = vpop.xlane.xlu1 %5956 }
 0x48f   : > { %v6023_v9 = vadd.f32 1e-06, %v6007_v56  ;;  %v5992_v23 = vmul.f32 %v14201_v30, %v14201_v30 }
 0x492   : > { %v5963_v35 = vpop.xlane.xlu1 %5962 }
 0x4b7   : > { %v14138_v26 = vpop.xlane.xlu0 %5878 }
 0x4bb   : > { %v5918_v47 = vpop.xlane.xlu0 %5917 }
 0x4bc   : > { %v5964_v45 = vmul.f32 0.03125, %v5918_v47  ;;  %v14174_v47 = vmul.f32 0.03125, %v14122_v58  ;;  %v6977_v58 = vpop.eup %6976 }
 0x4bd   : > { %v6063_v48 = vmul.f32 %v6977_v58, %v6047_v6 }
 0x4be   : > { %v5996_v51 = vsub.f32 %v5964_v45, %v5980_v5  ;;  %v5988_v52 = vmul.f32 %v14174_v47, %v14174_v47 }
 0x4bf   : > { %v5924_v54 = vpop.xlane.xlu0 %5923 }
 0x4c0   : > { %v6012_v53 = vadd.f32 1e-06, %v5996_v51  ;;  %v5966_v59 = vmul.f32 0.03125, %v5924_v54  ;;  %v5977_v51 = vmul.f32 0.03125, %v5957_v57  ;;  %v14183_v54 = vmul.f32 0.03125, %v14124_v31 }
 0x4c1   : > { %v5979_v31 = vmul.f32 0.03125, %v5963_v35  ;;  %v6050_v35 = vsub.f32 %v17414_v50, %v14160_v27  ;;  %v6052_v50 = vsub.f32 %v17415_v38, %v14174_v47  ;;  %v6057_v38 = vsub.f32 %v17382_v60, %v14171_v43 }
 0x4c2   : > { %6978 = vrsqrt.f32 %v6012_v53  ;;  %v5998_v0 = vsub.f32 %v5966_v59, %v5982_v1  ;;  %v5993_v53 = vmul.f32 %v14171_v43, %v14171_v43  ;;  %v6061_v59 = vmul.f32 %v6975_v33, %v6045_v29 }
 0x4c3   : > { %v5930_v19 = vpop.xlane.xlu0 %5929  ;;  %6980 = vrsqrt.f32 %v6017_v55  ;;  %v5898_v29 = vmul.f32 0.03125, %v14138_v26 }
 0x4c4   : > { %v6014_v12 = vadd.f32 1e-06, %v5998_v0  ;;  %v5968_v37 = vmul.f32 0.03125, %v5930_v19  ;;  %v6009_v25 = vsub.f32 %v5977_v51, %v5993_v53  ;;  %v6049_v19 = vsub.f32 %v17355_v15, %v14136_v28 }
 0x4c6   : > { %6982 = vrsqrt.f32 %v6014_v12  ;;  %v6000_v44 = vsub.f32 %v5968_v37, %v5984_v10  ;;  %v5995_v10 = vmul.f32 %v14188_v49, %v14188_v49 }
 0x4c7   : > { %v5936_v3 = vpop.xlane.xlu0 %5935  ;;  %6984 = vrsqrt.f32 %v6019_v46  ;;  %v5990_v46 = vmul.f32 %v14183_v54, %v14183_v54 }
 0x4c8   : > { %v6016_v5 = vadd.f32 1e-06, %v6000_v44  ;;  %v5970_v45 = vmul.f32 0.03125, %v5936_v3  ;;  %v6025_v44 = vadd.f32 1e-06, %v6009_v25  ;;  %v6011_v28 = vsub.f32 %v5979_v31, %v5995_v10 }
 0x4c9   : > { %v6048_v3 = vsub.f32 %v17413_v11, %v14156_v8  ;;  %v6055_v31 = vsub.f32 %v17375_v36, %v14162_v39  ;;  %v6056_v36 = vsub.f32 %v17417_v2, %v14201_v30  ;;  %v6966_v2 = vld [vmem:[%s14549_s5] sm:$0xff]  }
 0x4ca   : > { %6986 = vrsqrt.f32 %v6016_v5  ;;  %v6002_v1 = vsub.f32 %v5970_v45, %v5986_v14  ;;  %v6027_v6 = vadd.f32 1e-06, %v6011_v28  ;;  %6842 = vmatprep.subr.bf16.mxu0 %v6966_v2  ;;  %6874 = vmatprep.subr.bf16.mxu1 %v6966_v2  ;;  %v6970_v30 = vld [vmem:[%s14549_s5 + $0x20] sm:$0xff]  }
 0x4cb   : > { %v5942_v21 = vpop.xlane.xlu0 %5941  ;;  %6988 = vrsqrt.f32 %v6021_v13  ;;  %6882 = vmatpush3.bf16.msra.mxu1 %v6966_v2  ;;  %v14262_v28 = vld [vmem:[%s14548_s4] ss:$0 sm:$0xff] }
 0x4cc   : > { %v6979_v18 = vpop.eup %6978  ;;  %v6018_v32 = vadd.f32 1e-06, %v6002_v1  ;;  %v5972_v24 = vmul.f32 0.03125, %v5942_v21 }
 0x4cd   : > { %v6060_v55 = vmul.f32 %v6979_v18, %v6044_v63  ;;  %v6981_v40 = vpop.eup %6980  ;;  %v6051_v63 = vsub.f32 %v17361_v42, %v14146_v61  ;;  %v6053_v42 = vsub.f32 %v17368_v22, %v14150_v17 }
 0x4ce   : > { %6990 = vrsqrt.f32 %v6018_v32  ;;  %v6004_v0 = vsub.f32 %v5972_v24, %v5988_v52  ;;  %v6065_v45 = vmul.f32 %v6981_v40, %v6049_v19 }
 0x4cf   : > { %v5948_v12 = vpop.xlane.xlu0 %5947  ;;  %v6076_v37 = vpack.c.bf16 %v6061_v59, %v6060_v55  ;;  %6992 = vrsqrt.f32 %v6023_v9  ;;  %v5994_v59 = vmul.f32 %v5898_v29, %v5898_v29 }
 0x4d0   : > { %v6983_v57 = vpop.eup %6982  ;;  %v6020_v41 = vadd.f32 1e-06, %v6004_v0  ;;  %v5974_v4 = vmul.f32 0.03125, %v5948_v12 }
 0x4d1   : > { %6826 = vmatprep.mubr.msk.bf16.mxu0 %vm5834_vm6, %v6076_v37  ;;  %v6062_v15 = vmul.f32 %v6983_v57, %v6046_v62  ;;  %v6985_v16 = vpop.eup %6984  ;;  %v6054_v62 = vsub.f32 %v17416_v34, %v14183_v54  ;;  %v6058_v54 = vsub.f32 %v14084_v20, %v5898_v29  ;;  %v6968_v20 = vld [vmem:[%s14549_s5 + $0x10] sm:$0xff]  }
 0x4d2   : > { %6994 = vrsqrt.f32 %v6020_v41  ;;  %v6006_v14 = vsub.f32 %v5974_v4, %v5990_v46  ;;  %v6067_v21 = vmul.f32 %v6985_v16, %v6051_v63  ;;  %v6971_v4 = vld [vmem:[%s14549_s5 + $0x28] sm:$0xff]  }
 0x4d3   : > { %v5954_v33 = vpop.xlane.xlu0 %5953  ;;  %v6077_v5 = vpack.c.bf16 %v6063_v48, %v6062_v15  ;;  %6996 = vrsqrt.f32 %v6025_v44  ;;  %v6059_v48 = vsub.f32 %v13883_v7, %v14188_v49  ;;  %v6967_v7 = vld [vmem:[%s14549_s5 + $0x8] sm:$0xff]   ;;  %v6969_v49 = vld [vmem:[%s14549_s5 + $0x18] sm:$0xff]   ;;  %v6972_v44 = vld [vmem:[%s14549_s5 + $0x30] sm:$0xff]  }
 0x4d4   : > { %v6987_v13 = vpop.eup %6986  ;;  %v6022_v56 = vadd.f32 1e-06, %v6006_v14  ;;  %v5976_v51 = vmul.f32 0.03125, %v5954_v33  ;;  %6875 = vmatprep.subr.bf16.mxu1 %v6967_v7  ;;  %v6973_v15 = vld [vmem:[%s14549_s5 + $0x38] sm:$0xff]  }
 0x4d5   : > { %6827 = vmatmul.mubr.msk.bf16.vlgmr.msra.gmra.mrb[0].mxu0 %vm5834_vm6, %v6077_v5  ;;  %v6064_v1 = vmul.f32 %v6987_v13, %v6048_v3  ;;  %v6989_v11 = vpop.eup %6988  ;;  %6883 = vmatpush3.bf16.msra.mxu1 %v6967_v7 }
 0x4d6   : > { %6998 = vrsqrt.f32 %v6022_v56  ;;  %v6008_v8 = vsub.f32 %v5976_v51, %v5992_v23  ;;  %v6069_v9 = vmul.f32 %v6989_v11, %v6053_v42  ;;  %6843 = vmatpush3.bf16.msra.mxu0 %v6966_v2  ;;  %6876 = vmatprep.subr.bf16.mxu1 %v6968_v20 }
 0x4d7   : > { %v5960_v58 = vpop.xlane.xlu0 %5959  ;;  %v6078_v53 = vpack.c.bf16 %v6065_v45, %v6064_v1  ;;  %7000 = vrsqrt.f32 %v6027_v6  ;;  %6844 = vmatprep.subr.bf16.mxu0 %v6967_v7 }
 0x4d8   : > { %v6991_v26 = vpop.eup %6990  ;;  %v6024_v18 = vadd.f32 1e-06, %v6008_v8  ;;  %v5978_v52 = vmul.f32 0.03125, %v5960_v58 }
 0x4d9   : > { %6830 = vmatprep.mubr.msk.bf16.mxu0 %vm5834_vm6, %v6078_v53  ;;  %v6066_v61 = vmul.f32 %v6991_v26, %v6050_v35  ;;  %v6993_v24 = vpop.eup %6992  ;;  %6884 = vmatpush3.bf16.msra.mxu1 %v6968_v20 }
 0x4da   : > { %7002 = vrsqrt.f32 %v6024_v18  ;;  %v6010_v32 = vsub.f32 %v5978_v52, %v5994_v59  ;;  %v6071_v40 = vmul.f32 %v6993_v24, %v6055_v31  ;;  %6845 = vmatpush3.bf16.msra.mxu0 %v6967_v7  ;;  %6877 = vmatprep.subr.bf16.mxu1 %v6969_v49 }
 0x4db   : > { %v6079_v27 = vpack.c.bf16 %v6067_v21, %v6066_v61  ;;  %6846 = vmatprep.subr.bf16.mxu0 %v6968_v20 }
 0x4dc   : > { %v6995_v55 = vpop.eup %6994  ;;  %v6026_v25 = vadd.f32 1e-06, %v6010_v32 }
 0x4dd   : > { %6831 = vmatmul.mubr.msk.bf16.gmra.mrb[4].mxu0 %vm5834_vm6, %v6079_v27  ;;  %v6068_v22 = vmul.f32 %v6995_v55, %v6052_v50  ;;  %v6997_v17 = vpop.eup %6996  ;;  %6885 = vmatpush3.bf16.msra.mxu1 %v6969_v49 }
 0x4de   : > { %7004 = vrsqrt.f32 %v6026_v25  ;;  %v6073_v12 = vmul.f32 %v6997_v17, %v6057_v38  ;;  %6847 = vmatpush3.bf16.msra.mxu0 %v6968_v20  ;;  %6878 = vmatprep.subr.bf16.mxu1 %v6970_v30 }
 0x4df   : > { %v6080_v0 = vpack.c.bf16 %v6069_v9, %v6068_v22  ;;  %6848 = vmatprep.subr.bf16.mxu0 %v6969_v49 }
 0x4e0   : > { %v6999_v19 = vpop.eup %6998 }
 0x4e1   : > { %6834 = vmatprep.mubr.msk.bf16.mxu0 %vm5834_vm6, %v6080_v0  ;;  %v6070_v47 = vmul.f32 %v6999_v19, %v6054_v62  ;;  %v7001_v10 = vpop.eup %7000  ;;  %6886 = vmatpush3.bf16.msra.mxu1 %v6970_v30 }
 0x4e2   : > { %v6075_v60 = vmul.f32 %v7001_v10, %v6059_v48  ;;  %6849 = vmatpush3.bf16.msra.mxu0 %v6969_v49  ;;  %6879 = vmatprep.subr.bf16.mxu1 %v6971_v4 }
 0x4e3   : > { %v6081_v39 = vpack.c.bf16 %v6071_v40, %v6070_v47  ;;  %6850 = vmatprep.subr.bf16.mxu0 %v6970_v30 }
 0x4e4   : > { %v7003_v37 = vpop.eup %7002 }
 0x4e5   : > { %6835 = vmatmul.mubr.msk.bf16.gmra.mrb[8].mxu0 %vm5834_vm6, %v6081_v39  ;;  %v6072_v34 = vmul.f32 %v7003_v37, %v6056_v36  ;;  %6887 = vmatpush3.bf16.msra.mxu1 %v6971_v4 }
 0x4e6   : > { %6851 = vmatpush3.bf16.msra.mxu0 %v6970_v30  ;;  %6880 = vmatprep.subr.bf16.mxu1 %v6972_v44 }
 0x4e7   : > { %v6082_v57 = vpack.c.bf16 %v6073_v12, %v6072_v34  ;;  %6852 = vmatprep.subr.bf16.mxu0 %v6971_v4 }
 0x4e8   : > { %v7005_v43 = vpop.eup %7004 }
 0x4e9   : > { %6838 = vmatprep.mubr.msk.bf16.mxu0 %vm5834_vm6, %v6082_v57  ;;  %v6074_v46 = vmul.f32 %v7005_v43, %v6058_v54  ;;  %6888 = vmatpush3.bf16.msra.mxu1 %v6972_v44 }
 0x4ea   : > { %6853 = vmatpush3.bf16.msra.mxu0 %v6971_v4  ;;  %6881 = vmatprep.subr.bf16.mxu1 %v6973_v15 }
 0x4eb   : > { %v6083_v41 = vpack.c.bf16 %v6075_v60, %v6074_v46  ;;  %6854 = vmatprep.subr.bf16.mxu0 %v6972_v44 }
 0x4ed   : > { %6839 = vmatmul.mubr.msk.bf16.gmra.mrb[12].mxu0 %vm5834_vm6, %v6083_v41  ;;  %6889 = vmatpush3.bf16.msra.mxu1 %v6973_v15 }
 0x4ee   : > { %6855 = vmatpush3.bf16.msra.mxu0 %v6972_v44 }
 0x4ef   : > { %6856 = vmatprep.subr.bf16.mxu0 %v6973_v15 }
 0x4f2   : > { %6857 = vmatpush3.bf16.msra.mxu0 %v6973_v15 }
 0x5a8   : > { %v6828_v14 = vpop.f32.mrb[0].mxu0 }
 0x5a9   : > { %v6174_v16 = vadd.f32 %v6828_v14, %v14262_v28  ;;  %v6165_v3 = vpop.f32.mrb[1].mxu0 }
 0x5aa   : > { %v6166_v33 = vadd.f32 %v14262_v28, %v6165_v3  ;;  %v6829_v5 = vpop.f32.mrb[2].mxu0 }
 0x5ab   : > { %v6246_v45 = vmul.f32 0.044715, %v6174_v16  ;;  %v14267_v13 = vadd.f32 %v6829_v5, %v14262_v28  ;;  %v6168_v23 = vpop.f32.mrb[3].mxu0  ;;  %v6230_v37 = vmul.f32 0.5, %v6174_v16 }
 0x5ac   : > { %v6244_v29 = vmul.f32 0.044715, %v6166_v33  ;;  %v14270_v56 = vadd.f32 %v14262_v28, %v6168_v23  ;;  %v6228_v46 = vmul.f32 0.5, %v6166_v33 }
 0x5ad   : > { %v6262_v51 = vmul.f32 %v6246_v45, %v6174_v16  ;;  %v6247_v63 = vmul.f32 0.044715, %v14267_v13 }
 0x5ae   : > { %v6260_v6 = vmul.f32 %v6244_v29, %v6166_v33  ;;  %v6245_v1 = vmul.f32 0.044715, %v14270_v56 }
 0x5af   : > { %v6278_v11 = vmul.f32 %v6262_v51, %v6174_v16  ;;  %v6263_v8 = vmul.f32 %v6247_v63, %v14267_v13 }
 0x5b0   : > { %v6276_v35 = vmul.f32 %v6260_v6, %v6166_v33  ;;  %v6261_v58 = vmul.f32 %v6245_v1, %v14270_v56  ;;  %v6832_v53 = vpop.f32.mrb[4].mxu0  ;;  %v6231_v6 = vmul.f32 0.5, %v14267_v13  ;;  %v6229_v1 = vmul.f32 0.5, %v14270_v56 }
 0x5b1   : > { %v6294_v21 = vadd.f32 %v6278_v11, %v6174_v16  ;;  %v6279_v26 = vmul.f32 %v6263_v8, %v14267_v13  ;;  %v14278_v59 = vadd.f32 %v6832_v53, %v14262_v28  ;;  %v6181_v18 = vpop.f32.mrb[5].mxu0 }
 0x5b2   : > { %v6277_v52 = vmul.f32 %v6261_v58, %v14270_v56  ;;  %v6182_v42 = vadd.f32 %v14262_v28, %v6181_v18  ;;  %v6833_v61 = vpop.f32.mrb[6].mxu0  ;;  %v6292_v32 = vadd.f32 %v6276_v35, %v6166_v33 }
 0x5b3   : > { %v6310_v24 = vmul.f32 0.7978846, %v6294_v21  ;;  %v6295_v50 = vadd.f32 %v6279_v26, %v14267_v13  ;;  %v6250_v27 = vmul.f32 0.044715, %v14278_v59  ;;  %v14285_v9 = vadd.f32 %v6833_v61, %v14262_v28  ;;  %v6184_v55 = vpop.f32.mrb[7].mxu0 }
 0x5b4   : > { %v6248_v25 = vmul.f32 0.044715, %v6182_v42  ;;  %v14288_v31 = vadd.f32 %v14262_v28, %v6184_v55  ;;  %v6293_v22 = vadd.f32 %v6277_v52, %v14270_v56  ;;  %v6308_v17 = vmul.f32 0.7978846, %v6292_v32 }
 0x5b5   : > { %7006 = vtanh.f32 %v6310_v24  ;;  %v6311_v62 = vmul.f32 0.7978846, %v6295_v50  ;;  %v6266_v0 = vmul.f32 %v6250_v27, %v14278_v59  ;;  %v6251_v40 = vmul.f32 0.044715, %v14285_v9 }
 0x5b6   : > { %v6249_v19 = vmul.f32 0.044715, %v14288_v31  ;;  %v6309_v38 = vmul.f32 0.7978846, %v6293_v22  ;;  %7008 = vtanh.f32 %v6308_v17  ;;  %v6264_v39 = vmul.f32 %v6248_v25, %v6182_v42 }
 0x5b7   : > { %7010 = vtanh.f32 %v6311_v62  ;;  %v6282_v47 = vmul.f32 %v6266_v0, %v14278_v59  ;;  %v6267_v10 = vmul.f32 %v6251_v40, %v14285_v9  ;;  %v14322_v11 = vmul.f32 0.5, %v6182_v42 }
 0x5b8   : > { %v6836_v36 = vpop.f32.mrb[8].mxu0  ;;  %7012 = vtanh.f32 %v6309_v38  ;;  %v6265_v12 = vmul.f32 %v6249_v19, %v14288_v31  ;;  %v6280_v41 = vmul.f32 %v6264_v39, %v6182_v42 }
 0x5b9   : > { %v6283_v48 = vmul.f32 %v6267_v10, %v14285_v9  ;;  %v14299_v34 = vadd.f32 %v6836_v36, %v14262_v28  ;;  %v6197_v54 = vpop.f32.mrb[9].mxu0  ;;  %v6298_v57 = vadd.f32 %v6282_v47, %v14278_v59 }
 0x5ba   : > { %v14303_v60 = vadd.f32 %v14262_v28, %v6197_v54  ;;  %v6837_v43 = vpop.f32.mrb[10].mxu0  ;;  %v6281_v2 = vmul.f32 %v6265_v12, %v14288_v31  ;;  %v6296_v14 = vadd.f32 %v6280_v41, %v6182_v42 }
 0x5bb   : > { %v6254_v7 = vmul.f32 0.044715, %v14299_v34  ;;  %v14308_v20 = vadd.f32 %v6837_v43, %v14262_v28  ;;  %v6200_v49 = vpop.f32.mrb[11].mxu0  ;;  %v6299_v30 = vadd.f32 %v6283_v48, %v14285_v9  ;;  %v6314_v4 = vmul.f32 0.7978846, %v6298_v57 }
 0x5bc   : > { %v6252_v44 = vmul.f32 0.044715, %v14303_v60  ;;  %v14313_v15 = vadd.f32 %v14262_v28, %v6200_v49  ;;  %v6297_v16 = vadd.f32 %v6281_v2, %v14288_v31  ;;  %v6312_v29 = vmul.f32 0.7978846, %v6296_v14 }
 0x5bd   : > { %v6270_v3 = vmul.f32 %v6254_v7, %v14299_v34  ;;  %v6255_v33 = vmul.f32 0.044715, %v14308_v20  ;;  %v6315_v5 = vmul.f32 0.7978846, %v6299_v30  ;;  %7014 = vtanh.f32 %v6314_v4 }
 0x5be   : > { %v6268_v45 = vmul.f32 %v6252_v44, %v14303_v60  ;;  %v6253_v23 = vmul.f32 0.044715, %v14313_v15  ;;  %v6313_v51 = vmul.f32 0.7978846, %v6297_v16  ;;  %v6233_v44 = vmul.f32 0.5, %v14288_v31 }
 0x5bf   : > { %v7007_v63 = vpop.eup %7006  ;;  %7016 = vtanh.f32 %v6315_v5  ;;  %v6286_v35 = vmul.f32 %v6270_v3, %v14299_v34  ;;  %v6271_v42 = vmul.f32 %v6255_v33, %v14308_v20  ;;  %v6234_v14 = vmul.f32 0.5, %v14278_v59 }
 0x5c0   : > { %v7009_v8 = vpop.eup %7008  ;;  %v6269_v58 = vmul.f32 %v6253_v23, %v14313_v15  ;;  %v6840_v53 = vpop.f32.mrb[12].mxu0  ;;  %v6342_v21 = vadd.f32 1.0, %v7007_v63  ;;  %7018 = vtanh.f32 %v6312_v29  ;;  %v6284_v18 = vmul.f32 %v6268_v45, %v14303_v60 }
 0x5c1   : > { %v7011_v26 = vpop.eup %7010  ;;  %v14328_v52 = vadd.f32 %v6840_v53, %v14262_v28  ;;  %v6213_v13 = vpop.f32.mrb[13].mxu0  ;;  %v6340_v61 = vadd.f32 1.0, %v7009_v8  ;;  %7020 = vtanh.f32 %v6313_v51  ;;  %v6235_v16 = vmul.f32 0.5, %v14285_v9 }
 0x5c2   : > { %v7013_v56 = vpop.eup %7012  ;;  %v6285_v32 = vmul.f32 %v6269_v58, %v14313_v15  ;;  %v14333_v24 = vadd.f32 %v14262_v28, %v6213_v13  ;;  %v6841_v50 = vpop.f32.mrb[14].mxu0  ;;  %v6343_v27 = vadd.f32 1.0, %v7011_v26  ;;  %v6358_v62 = vmul.f32 %v6342_v21, %v6230_v37 }
 0x5c3   : > { %v6258_v55 = vmul.f32 0.044715, %v14328_v52  ;;  %v14337_v25 = vadd.f32 %v6841_v50, %v14262_v28  ;;  %v6216_v22 = vpop.f32.mrb[15].mxu0  ;;  %v6341_v17 = vadd.f32 1.0, %v7013_v56  ;;  %v6356_v19 = vmul.f32 %v6340_v61, %v6228_v46 }
 0x5c4   : > { %v6256_v0 = vmul.f32 0.044715, %v14333_v24  ;;  %v14341_v40 = vadd.f32 %v14262_v28, %v6216_v22  ;;  %v6359_v38 = vmul.f32 %v6343_v27, %v6231_v6  ;;  %v6300_v39 = vadd.f32 %v6284_v18, %v14303_v60 }
 0x5c5   : > { %v6274_v47 = vmul.f32 %v6258_v55, %v14328_v52  ;;  %v6259_v10 = vmul.f32 0.044715, %v14337_v25  ;;  %v6357_v36 = vmul.f32 %v6341_v17, %v6229_v1  ;;  %v6301_v37 = vadd.f32 %v6285_v32, %v14313_v15 }
 0x5c6   : > { %v6272_v12 = vmul.f32 %v6256_v0, %v14333_v24  ;;  %v6257_v48 = vmul.f32 0.044715, %v14341_v40  ;;  %v6373_v54 = vpack.c.bf16 %v6359_v38, %v6358_v62  ;;  %v6287_v28 = vmul.f32 %v6271_v42, %v14308_v20 }
 0x5c7   : > { %v7015_v57 = vpop.eup %7014  ;;  %v6275_v43 = vmul.f32 %v6259_v10, %v14337_v25  ;;  %v6372_v46 = vpack.c.bf16 %v6357_v36, %v6356_v19  ;;  %v6316_v41 = vmul.f32 0.7978846, %v6300_v39  ;;  %v6317_v30 = vmul.f32 0.7978846, %v6301_v37 }
 0x5c8   : > { %v6288_v2 = vmul.f32 %v6272_v12, %v14333_v24  ;;  %v6273_v7 = vmul.f32 %v6257_v48, %v14341_v40  ;;  %v6346_v49 = vadd.f32 1.0, %v7015_v57  ;;  %v6290_v33 = vmul.f32 %v6274_v47, %v14328_v52 }
 0x5c9   : > { %v7017_v4 = vpop.eup %7016  ;;  %6858 = vmatprep.mubr.bf16.mxu0 %v6372_v46  ;;  %7022 = vtanh.f32 %v6316_v41  ;;  %v6291_v29 = vmul.f32 %v6275_v43, %v14337_v25  ;;  %v6302_v63 = vadd.f32 %v6286_v35, %v14299_v34  ;;  %v6303_v31 = vadd.f32 %v6287_v28, %v14308_v20 }
 0x5ca   : > { %v7019_v3 = vpop.eup %7018  ;;  %v6289_v5 = vmul.f32 %v6273_v7, %v14341_v40  ;;  %6859 = vmatmul.mubr.bf16.vlgmr.msra.gmra.mrb[16].mxu0 %v6373_v54  ;;  %v6347_v45 = vadd.f32 1.0, %v7017_v4  ;;  %7024 = vtanh.f32 %v6317_v30  ;;  %v6362_v6 = vmul.f32 %v6346_v49, %v6234_v14 }
 0x5cb   : > { %v7021_v23 = vpop.eup %7020  ;;  %v6344_v51 = vadd.f32 1.0, %v7019_v3  ;;  %v6304_v1 = vadd.f32 %v6288_v2, %v14333_v24  ;;  %v6318_v8 = vmul.f32 0.7978846, %v6302_v63  ;;  %v6319_v58 = vmul.f32 0.7978846, %v6303_v31 }
 0x5cc   : > { %v6345_v59 = vadd.f32 1.0, %v7021_v23  ;;  %v6363_v9 = vmul.f32 %v6347_v45, %v6235_v16  ;;  %v6305_v53 = vadd.f32 %v6289_v5, %v14341_v40  ;;  %v6306_v35 = vadd.f32 %v6290_v33, %v14328_v52 }
 0x5cd   : > { %v6360_v21 = vmul.f32 %v6344_v51, %v14322_v11  ;;  %v6320_v13 = vmul.f32 0.7978846, %v6304_v1  ;;  %7026 = vtanh.f32 %v6318_v8  ;;  %v6307_v42 = vadd.f32 %v6291_v29, %v14337_v25  ;;  %v7152_v1 = vld [vmem:[%s7442_s10 + $0x48] sm:$0xff] }
 0x5ce   : > { %v6361_v26 = vmul.f32 %v6345_v59, %v6233_v44  ;;  %v6375_v18 = vpack.c.bf16 %v6363_v9, %v6362_v6  ;;  %v6321_v61 = vmul.f32 0.7978846, %v6305_v53  ;;  %7028 = vtanh.f32 %v6319_v58  ;;  %v7151_v59 = vld [vmem:[%s7442_s10 + $0x60] sm:$0xff] }
 0x5cf   : > { %7030 = vtanh.f32 %v6320_v13  ;;  %v6322_v32 = vmul.f32 0.7978846, %v6306_v35  ;;  %v6323_v50 = vmul.f32 0.7978846, %v6307_v42  ;;  %v6236_v22 = vmul.f32 0.5, %v14303_v60  ;;  %v7156_v42 = vld [vmem:[%s7442_s10 + $0x50] sm:$0xff] }
 0x5d0   : > { %v6374_v56 = vpack.c.bf16 %v6361_v26, %v6360_v21  ;;  %7032 = vtanh.f32 %v6321_v61  ;;  %v6237_v17 = vmul.f32 0.5, %v14313_v15  ;;  %v6238_v12 = vmul.f32 0.5, %v14299_v34  ;;  %v7153_v21 = vld [vmem:[%s7442_s10 + $0x70] sm:$0x3f]  ;;  %v7155_v35 = vld [vmem:[%s7442_s10 + $0x58] sm:$0x3f] }
 0x5d1   : > { %7034 = vtanh.f32 %v6322_v32  ;;  %v6239_v48 = vmul.f32 0.5, %v14308_v20  ;;  %v6240_v57 = vmul.f32 0.5, %v14333_v24  ;;  %v6241_v46 = vmul.f32 0.5, %v14341_v40 }
 0x5d2   : > { %6862 = vmatprep.mubr.bf16.mxu1 %v6374_v56  ;;  %7036 = vtanh.f32 %v6323_v50  ;;  %v6242_v7 = vmul.f32 0.5, %v14328_v52  ;;  %v6243_v49 = vmul.f32 0.5, %v14337_v25  ;;  %v14378_v52 = vld [vmem:[%s14550_s6] ss:$0 sm:$0xff] }
 0x5d3   : > { %v7023_v27 = vpop.eup %7022  ;;  %6863 = vmatmul.mubr.bf16.vlgmr.msra.gmra.mrb[0].mxu1 %v6375_v18  ;;  %v7154_v18 = vld [vmem:[%s7442_s10 + $0x68] sm:$0xff] }
 0x5d4   : > { %v7025_v11 = vpop.eup %7024  ;;  %v6348_v55 = vadd.f32 1.0, %v7023_v27 }
 0x5d5   : > { %v6349_v62 = vadd.f32 1.0, %v7025_v11 }
 0x5d6   : > { %v6364_v0 = vmul.f32 %v6348_v55, %v6236_v22 }
 0x5d7   : > { %v6365_v19 = vmul.f32 %v6349_v62, %v6237_v17  ;;  %v7027_v38 = vpop.eup %7026 }
 0x5d8   : > { %v7029_v10 = vpop.eup %7028  ;;  %v6350_v36 = vadd.f32 1.0, %v7027_v38 }
 0x5d9   : > { %v6376_v47 = vpack.c.bf16 %v6365_v19, %v6364_v0  ;;  %v7031_v39 = vpop.eup %7030  ;;  %v6351_v54 = vadd.f32 1.0, %v7029_v10 }
 0x5da   : > { %v7033_v37 = vpop.eup %7032  ;;  %v6352_v60 = vadd.f32 1.0, %v7031_v39  ;;  %v6366_v15 = vmul.f32 %v6350_v36, %v6238_v12  ;;  %v7158_v39 = vld [vmem:[%s7442_s10 + $0x78] sm:$0xff] }
 0x5db   : > { %6866 = vmatprep.mubr.bf16.mxu1 %v6376_v47  ;;  %v7035_v28 = vpop.eup %7034  ;;  %v6367_v43 = vmul.f32 %v6351_v54, %v6239_v48  ;;  %v6353_v41 = vadd.f32 1.0, %v7033_v37  ;;  %v7157_v47 = vld [vmem:[%s7442_s10 + $0x90] sm:$0xff]  ;;  %v7159_v37 = vld [vmem:[%s7442_s10 + $0xa0] sm:$0x3f] }
 0x5dc   : > { %v7037_v2 = vpop.eup %7036  ;;  %v6354_v34 = vadd.f32 1.0, %v7035_v28  ;;  %v6368_v30 = vmul.f32 %v6352_v60, %v6240_v57  ;;  %v7160_v60 = vld [vmem:[%s7442_s10 + $0x98] sm:$0xff] }
 0x5dd   : > { %v6377_v20 = vpack.c.bf16 %v6367_v43, %v6366_v15  ;;  %v6369_v4 = vmul.f32 %v6353_v41, %v6241_v46  ;;  %v6355_v44 = vadd.f32 1.0, %v7037_v2  ;;  %v7161_v43 = vld [vmem:[%s7442_s10 + $0x88] sm:$0x3f]  ;;  %v7162_v41 = vld [vmem:[%s7442_s10 + $0x80] sm:$0xff] }
 0x5de   : > { %v6370_v14 = vmul.f32 %v6354_v34, %v6242_v7 }
 0x5df   : > { %6867 = vmatmul.mubr.bf16.gmra.mrb[4].mxu1 %v6377_v20  ;;  %v6378_v24 = vpack.c.bf16 %v6369_v4, %v6368_v30  ;;  %v6371_v16 = vmul.f32 %v6355_v44, %v6243_v49 }
 0x5e1   : > { %6870 = vmatprep.mubr.bf16.mxu1 %v6378_v24  ;;  %v6379_v3 = vpack.c.bf16 %v6371_v16, %v6370_v14 }
 0x5e7   : > { %6871 = vmatmul.mubr.bf16.gmra.mrb[8].mxu1 %v6379_v3  ;;  %v7163_v3 = vld [vmem:[%s7442_s10 + $0xc0] sm:$0xff] }
 0x69d   : > { %v6860_v25 = vpop.f32.mrb[16].mxu0 }
 0x69e   : > { %v6494_v40 = vadd.f32 %v6860_v25, %v14378_v52  ;;  %v6485_v33 = vpop.f32.mrb[17].mxu0 }
 0x69f   : > { %v6486_v5 = vadd.f32 %v14378_v52, %v6485_v33  ;;  %v6861_v45 = vpop.f32.mrb[18].mxu0  ;;  %v7164_v33 = vld [vmem:[%s7442_s10 + $0xa8] sm:$0xff] }
 0x6a0   : > { %v6567_v23 = vrot.slane %v6494_v40, 5  ;;  %v6497_v29 = vadd.f32 %v6861_v45, %v14378_v52  ;;  %v6488_v51 = vpop.f32.mrb[19].mxu0 }
 0x6a1   : > { %v6564_v63 = vrot.slane %v6486_v5, 5  ;;  %v6489_v31 = vadd.f32 %v14378_v52, %v6488_v51 }
 0x6a2   : > { %v6615_v6 = vadd.f32 %v7151_v59, %v6567_v23  ;;  %v6568_v9 = vrot.slane %v6497_v29, 5  ;;  %v7165_v29 = vld [vmem:[%s7442_s10 + $0xd0] sm:$0x3f] }
 0x6a3   : > { %v6612_v8 = vadd.f32 %v7152_v1, %v6564_v63  ;;  %v6565_v58 = vrot.slane %v6489_v31, 5 }
 0x6a4   : > { %6641 = vst.msk [vmem:[%s14388_s16 + $0xd] sm:$0xf8] %vm6636_vm7, %v6615_v6  ;;  %v6569_v53 = vsel %vm4125_vm4, %v6567_v23, %v6568_v9  ;;  %v6617_v26 = vadd.f32 %v7153_v21, %v6568_v9  ;;  %v7167_v6 = vld [vmem:[%s7442_s10 + $0xb8] sm:$0x3f] }
 0x6a5   : > { %6637 = vst.msk [vmem:[%s14388_s16 - $0x3] sm:$0xf8] %vm6636_vm7, %v6612_v8  ;;  %v6616_v13 = vadd.f32 %v7154_v18, %v6569_v53  ;;  %v6566_v61 = vsel %vm4125_vm4, %v6564_v63, %v6565_v58  ;;  %v6614_v56 = vadd.f32 %v7155_v35, %v6565_v58  ;;  %v7166_v63 = vld [vmem:[%s7442_s10 + $0xc8] sm:$0xff]  ;;  %v7168_v8 = vld [vmem:[%s7442_s10 + $0xb0] sm:$0xff] }
 0x6a6   : > { %6643 = vst.msk [vmem:[%s14388_s16 + $0x1d] sm:$0x7] %vm6639_vm8, %v6617_v26  ;;  %v6613_v32 = vadd.f32 %v7156_v42, %v6566_v61  ;;  %v6864_v50 = vpop.f32.mrb[0].mxu1 }
 0x6a7   : > { %6642 = vst.msk [vmem:[%s14388_s16 + $0x15] sm:$0xff] %vm5834_vm6, %v6616_v13  ;;  %v6510_v27 = vadd.f32 %v6864_v50, %v14378_v52  ;;  %v6501_v11 = vpop.f32.mrb[1].mxu1 }
 0x6a8   : > { %6640 = vst.msk [vmem:[%s14388_s16 + $0xd] sm:$0x7] %vm6639_vm8, %v6614_v56  ;;  %v6502_v55 = vadd.f32 %v14378_v52, %v6501_v11  ;;  %v6865_v22 = vpop.f32.mrb[2].mxu1  ;;  %v7170_v11 = vld [vmem:[%s7442_s10 + $0xd8] sm:$0xff] }
 0x6a9   : > { %6638 = vst.msk [vmem:[%s14388_s16 + $0x5] sm:$0xff] %vm5834_vm6, %v6613_v32  ;;  %v6573_v17 = vrot.slane %v6510_v27, 5  ;;  %v6513_v62 = vadd.f32 %v6865_v22, %v14378_v52  ;;  %v6504_v0 = vpop.f32.mrb[3].mxu1  ;;  %v7169_v32 = vld [vmem:[%s7442_s10 + $0xf0] sm:$0xff] }
 0x6aa   : > { %v6570_v19 = vrot.slane %v6502_v55, 5  ;;  %v6505_v38 = vadd.f32 %v14378_v52, %v6504_v0  ;;  %v7172_v0 = vld [vmem:[%s7442_s10 + $0xf8] sm:$0xff] }
 0x6ab   : > { %v6621_v10 = vadd.f32 %v7157_v47, %v6573_v17  ;;  %v6574_v36 = vrot.slane %v6513_v62, 5  ;;  %v7171_v62 = vld [vmem:[%s7442_s10 + $0x100] sm:$0x3f]  ;;  %v7173_v47 = vld [vmem:[%s7442_s10 + $0xe8] sm:$0x3f] }
 0x6ac   : > { %v6618_v12 = vadd.f32 %v7158_v39, %v6570_v19  ;;  %v6571_v48 = vrot.slane %v6505_v38, 5 }
 0x6ad   : > { %6647 = vst.msk [vmem:[%s14388_s16 + $0x2d] sm:$0xf8] %vm6636_vm7, %v6621_v10  ;;  %v6575_v54 = vsel %vm4125_vm4, %v6573_v17, %v6574_v36  ;;  %v6623_v57 = vadd.f32 %v7159_v37, %v6574_v36  ;;  %v7174_v36 = vld [vmem:[%s7442_s10 + $0xe0] sm:$0xff] }
 0x6ae   : > { %6644 = vst.msk [vmem:[%s14388_s16 + $0x1d] sm:$0xf8] %vm6636_vm7, %v6618_v12  ;;  %v6622_v28 = vadd.f32 %v7160_v60, %v6575_v54  ;;  %v6572_v15 = vsel %vm4125_vm4, %v6570_v19, %v6571_v48  ;;  %v6620_v46 = vadd.f32 %v7161_v43, %v6571_v48 }
 0x6af   : > { %6649 = vst.msk [vmem:[%s14388_s16 + $0x3d] sm:$0x7] %vm6639_vm8, %v6623_v57  ;;  %v6619_v2 = vadd.f32 %v7162_v41, %v6572_v15 }
 0x6b0   : > { %6648 = vst.msk [vmem:[%s14388_s16 + $0x35] sm:$0xff] %vm5834_vm6, %v6622_v28 }
 0x6b1   : > { %6646 = vst.msk [vmem:[%s14388_s16 + $0x2d] sm:$0x7] %vm6639_vm8, %v6620_v46 }
 0x6b2   : > { %6645 = vst.msk [vmem:[%s14388_s16 + $0x25] sm:$0xff] %vm5834_vm6, %v6619_v2  ;;  %v6868_v7 = vpop.f32.mrb[4].mxu1 }
 0x6b3   : > { %v6526_v49 = vadd.f32 %v6868_v7, %v14378_v52  ;;  %v6517_v34 = vpop.f32.mrb[5].mxu1 }
 0x6b4   : > { %v6518_v20 = vadd.f32 %v14378_v52, %v6517_v34  ;;  %v6869_v30 = vpop.f32.mrb[6].mxu1 }
 0x6b5   : > { %v6579_v4 = vrot.slane %v6526_v49, 5  ;;  %v6529_v44 = vadd.f32 %v6869_v30, %v14378_v52  ;;  %v6520_v24 = vpop.f32.mrb[7].mxu1 }
 0x6b6   : > { %v6576_v14 = vrot.slane %v6518_v20, 5  ;;  %v6521_v16 = vadd.f32 %v14378_v52, %v6520_v24 }
 0x6b7   : > { %v6627_v25 = vadd.f32 %v7163_v3, %v6579_v4  ;;  %v6580_v40 = vrot.slane %v6529_v44, 5 }
 0x6b8   : > { %v6624_v5 = vadd.f32 %v7164_v33, %v6576_v14  ;;  %v6577_v45 = vrot.slane %v6521_v16, 5 }
 0x6b9   : > { %6653 = vst.msk [vmem:[%s14388_s16 + $0x4d] sm:$0xf8] %vm6636_vm7, %v6627_v25  ;;  %v6581_v23 = vsel %vm4125_vm4, %v6579_v4, %v6580_v40  ;;  %v6629_v51 = vadd.f32 %v7165_v29, %v6580_v40 }
 0x6ba   : > { %6650 = vst.msk [vmem:[%s14388_s16 + $0x3d] sm:$0xf8] %vm6636_vm7, %v6624_v5  ;;  %v6628_v31 = vadd.f32 %v7166_v63, %v6581_v23  ;;  %v6578_v59 = vsel %vm4125_vm4, %v6576_v14, %v6577_v45  ;;  %v6626_v9 = vadd.f32 %v7167_v6, %v6577_v45  ;;  %v6872_v1 = vpop.f32.mrb[8].mxu1 }
 0x6bb   : > { %6655 = vst.msk [vmem:[%s14388_s16 + $0x5d] sm:$0x7] %vm6639_vm8, %v6629_v51  ;;  %v6625_v58 = vadd.f32 %v7168_v8, %v6578_v59  ;;  %v6542_v53 = vadd.f32 %v6872_v1, %v14378_v52  ;;  %v6533_v21 = vpop.f32.mrb[9].mxu1 }
 0x6bc   : > { %6654 = vst.msk [vmem:[%s14388_s16 + $0x55] sm:$0xff] %vm5834_vm6, %v6628_v31  ;;  %v6534_v26 = vadd.f32 %v14378_v52, %v6533_v21  ;;  %v6873_v18 = vpop.f32.mrb[10].mxu1 }
 0x6bd   : > { %6652 = vst.msk [vmem:[%s14388_s16 + $0x4d] sm:$0x7] %vm6639_vm8, %v6626_v9  ;;  %v6585_v13 = vrot.slane %v6542_v53, 5  ;;  %v6545_v61 = vadd.f32 %v6873_v18, %v14378_v52  ;;  %v6536_v35 = vpop.f32.mrb[11].mxu1 }
 0x6be   : > { %6651 = vst.msk [vmem:[%s14388_s16 + $0x45] sm:$0xff] %vm5834_vm6, %v6625_v58  ;;  %v6582_v56 = vrot.slane %v6534_v26, 5  ;;  %v6537_v42 = vadd.f32 %v14378_v52, %v6536_v35 }
 0x6bf   : > { %v6633_v50 = vadd.f32 %v7169_v32, %v6585_v13  ;;  %v6586_v27 = vrot.slane %v6545_v61, 5 }
 0x6c0   : > { %v6630_v55 = vadd.f32 %v7170_v11, %v6582_v56  ;;  %v6583_v22 = vrot.slane %v6537_v42, 5 }
 0x6c1   : > { %6659 = vst.msk [vmem:[%s14388_s16 + $0x6d] sm:$0xf8] %vm6636_vm7, %v6633_v50  ;;  %v6587_v17 = vsel %vm4125_vm4, %v6585_v13, %v6586_v27  ;;  %v6635_v52 = vadd.f32 %v7171_v62, %v6586_v27 }
 0x6c2   : > { %6656 = vst.msk [vmem:[%s14388_s16 + $0x5d] sm:$0xf8] %vm6636_vm7, %v6630_v55  ;;  %v6634_v19 = vadd.f32 %v7172_v0, %v6587_v17  ;;  %v6584_v38 = vsel %vm4125_vm4, %v6582_v56, %v6583_v22  ;;  %v6632_v10 = vadd.f32 %v7173_v47, %v6583_v22 }
 0x6c3   : > { %6661 = vst.msk [vmem:[%s14388_s16 + $0x7d] sm:$0x7] %vm6639_vm8, %v6635_v52  ;;  %v6631_v39 = vadd.f32 %v7174_v36, %v6584_v38 }
 0x6c4   : > { %6660 = vst.msk [vmem:[%s14388_s16 + $0x75] sm:$0xff] %vm5834_vm6, %v6634_v19 }
 0x6c5   : > { %6658 = vst.msk [vmem:[%s14388_s16 + $0x6d] sm:$0x7] %vm6639_vm8, %v6632_v10 }
 0x6c6   : > { %6657 = vst.msk [vmem:[%s14388_s16 + $0x65] sm:$0xff] %vm5834_vm6, %v6631_v39 }
 0x6c7   : > { %7188 = shalt.err (!%p7185_p6)
}
 0x6c8   : > { %s7189_s10 = scalar_lea.hbm %s14477_s9, 2048  ;;  %s7193_s28 = scalar_lea.hbm %s14551_s7, 8192 }
 0x6c9   : > { %p7190_p7 = scmp.ne.s32.totalorder %s14477_s9, %s7189_s10  ;;  %p7194_p11 = scmp.lt.u32.totalorder %s14477_s9, %s14551_s7 }
 0x6ca   : > { %p7195_p12 = scmp.lt.u32.totalorder %s7193_s28, %s7189_s10  ;;  %p7197_p0 = scmp.lt.u32.totalorder %s7189_s10, %s14477_s9 }
 0x6cb   : > { %p7191_p9 = pnand %p7190_p7, %p7365_p3 }
 0x6cc   : > { %p7196_p13 = por %p7195_p12, %p7194_p11 }
 0x6cd   : > { %p7192_p10 = pneg %p7191_p9 }
 0x6ce   : > { %p7198_p1 = por %p7197_p0, %p7196_p13 }
 0x6d0   : > { %p7199_p2 = pnand %p7198_p1, %p7192_p10 }
 0x6d2   : > { %7202 = shalt.err (!%p7199_p2)
}
 0x6d3   : > { %s7272_s13 = smov 128   ;;  %s7273_s17 = smov 8  }
 0x6d4   : > { %6891 = dma.vmem_to_hbm [thread:$0]  (%p7365_p3), %s14479_s21, 2048, %s14477_s9, %s14492_s23, %s7272_s13, %s7272_s13, %s7273_s17  }
 0x6d5 PF: > { %p6897_p4 = scmp.ge.s32.totalorder %s7269_s8, 2  ;;  %s6694_s18 = sand.u32 1, %s7241_s24  }
 0x6d6   : > { %s6695_s27 = scalar_lea.sflag [#allocation3], %s6694_s18 }
 0x6d7   : > { %p6894_p5 = pnand %p6897_p4, %p7374_p8 }
 0x6d9   : > { %7236 = dma.done.wait (!%p6894_p5), %s6695_s27, 2048  }
 0x6da   : > { %7238 = vsyncadd (!%p6894_p5), %s6695_s27, 4294965248  ;;  %s20_s8 = sadd.s32 1, %s7269_s8   ;;  %s17418_s14 = sld [smem:[#allocation5_spill]] }
 0x6db   : > { %p17_p6 = scmp.ge.s32.totalorder %s20_s8, 6   ;;  %s17419_s24 = smov %s7245_s25 }
 0x6dc   : > { %s17420_s25 = smov %s7249_s26  ;;  %s17421_s26 = smov %s7383_s19 }
 0x6dd   : > { %s17422_s27 = smov %s7261_s29  ;;  %s17423_s28 = smov %s7265_s30 }
 0x6de   : > { %s17424_s29 = smov %s17427_s11  ;;  %19 = sbr.rel (!%p17_p6) target bundleno = 5 (0x5), region = 84 }
 0x6e0   : > { %s17425_s30 = smov %s17418_s14 }
 0x6e5   :  { %6700 = vsyncpa [#allocation3], 1 }
 0x6e6   :  { %6702 = vsyncpa [#allocation3 + $0x1], 1 }

</bundles_post_ra>
